<compile_context>
chip_gen: v5e
topology: v5e:2x2
jax: 0.10.0
libtpu: 0.0.40
codegen_flags: <defaults>
</compile_context>

<pallas_src>
import functools

import jax
import jax.numpy as jnp
from jax.experimental import pallas as pl
from jax.experimental.pallas import tpu as pltpu


def _round_up(v, m):
    return (v + m - 1) // m * m


def _pick_tile(m, cap=256):
    """Largest tile <= cap dividing m; prefer multiples of 16 (bf16 sublane
    packing), then 8; else fall back to the full dim (single block)."""
    for step in (16, 8):
        t = min(cap, m) // step * step
        while t >= step:
            if m % t == 0:
                return t
            t -= step
    return m


# ---------------------------------------------------------------------------
# Pallas kernels
# ---------------------------------------------------------------------------
def conv_pool_relu_bn_kernel(p_ref, w_ref, prm_ref, o_ref):
    """Fused conv(matmul) + bias + 2x2 maxpool + ReLU + BatchNorm(inference).

    p_ref  : (4, TM, Kp) bf16  im2col patches; leading axis enumerates the 2x2
                               pool-window position of each pooled output pixel.
    w_ref  : (Kp, Cp)    bf16  conv weights, zero-padded to 128-multiples.
    prm_ref: (8, Cp)     f32   row 0 = conv bias, row 1 = bn scale, row 2 = bn bias.
    o_ref  : (TM, Cp)    bf16  pooled, activated, normalized output tile.
    """
    w = w_ref[...]
    y = jnp.dot(p_ref[0], w, preferred_element_type=jnp.float32)
    for q in range(1, 4):
        y = jnp.maximum(y, jnp.dot(p_ref[q], w, preferred_element_type=jnp.float32))
    # per-channel conv bias commutes with the window max, so apply it after
    y = y + prm_ref[0:1, :]
    y = jnp.maximum(y, 0.0)                      # ReLU
    y = y * prm_ref[1:2, :] + prm_ref[2:3, :]    # BatchNorm (inference affine)
    o_ref[...] = y.astype(o_ref.dtype)


def head_kernel(x_ref, w1_ref, b1_ref, w2_ref, b2_ref, o_ref, *, num_classes):
    """fc1 -> ReLU -> fc2 -> log_softmax (class dim padded to 128 lanes)."""
    h = jnp.dot(x_ref[...], w1_ref[...], preferred_element_type=jnp.float32)
    h = jnp.maximum(h + b1_ref[...], 0.0)
    logits = jnp.dot(h.astype(w2_ref.dtype), w2_ref[...],
                     preferred_element_type=jnp.float32) + b2_ref[...]
    col = jax.lax.broadcasted_iota(jnp.int32, logits.shape, 1)
    logits = jnp.where(col < num_classes, logits, jnp.full_like(logits, -1e30))
    m = jnp.max(logits, axis=-1, keepdims=True)
    s = jnp.sum(jnp.exp(logits - m), axis=-1, keepdims=True)
    o_ref[...] = (logits - m - jnp.log(s)).astype(o_ref.dtype)


_VMEM = pl.BlockSpec(memory_space=pltpu.MemorySpace.VMEM)


# ---------------------------------------------------------------------------
# Conv stage wrapper: im2col glue + gridded pallas_call
# ---------------------------------------------------------------------------
def conv_pool_relu_bn(x, layer):
    """x: (N, H, W, >=cin) NHWC -> (N, H//2, W//2, Cp) bf16 (pad channels = 0)."""
    n, h, w = x.shape[0], x.shape[1], x.shape[2]
    cin, k = layer["cin"], layer["k"]
    kp, cp = layer["kp"], layer["coutp"]
    pad = k // 2

    # cast to bf16 first: all im2col glue intermediates and HBM patch storage
    # are half-width; the kernel only ever uses this data as a bf16 operand.
    xp = x[..., :cin].astype(jnp.bfloat16)
    xp = jnp.pad(xp, ((0, 0), (pad, pad), (pad, pad), (0, 0)))
    cols = [xp[:, di:di + h, dj:dj + w, :] for di in range(k) for dj in range(k)]
    patches = jnp.concatenate(cols, axis=-1)                    # (N, H, W, k*k*cin)
    kr = k * k * cin
    if kp > kr:                                                 # lane-align K
        patches = jnp.pad(patches, ((0, 0), (0, 0), (0, 0), (0, kp - kr)))
    hp, wp = h // 2, w // 2
    m_pool = n * hp * wp
    # group rows so axis 0 enumerates the 2x2 pool-window position
    patches = patches.reshape(n, hp, 2, wp, 2, kp)
    patches = patches.transpose(2, 4, 0, 1, 3, 5).reshape(4, m_pool, kp)

    tm = _pick_tile(m_pool, cap=256)   # bounded per-step VMEM: portable v5e..v7x
    grid = (m_pool // tm,)
    out = pl.pallas_call(
        conv_pool_relu_bn_kernel,
        out_shape=jax.ShapeDtypeStruct((m_pool, cp), jnp.bfloat16),
        grid=grid,
        in_specs=[
            pl.BlockSpec((4, tm, kp), lambda i: (0, i, 0)),
            pl.BlockSpec((kp, cp), lambda i: (0, 0)),
            pl.BlockSpec((8, cp), lambda i: (0, 0)),
        ],
        out_specs=pl.BlockSpec((tm, cp), lambda i: (i, 0)),
        compiler_params=pltpu.CompilerParams(
            dimension_semantics=("parallel",)),
    )(patches, layer["w"], layer["prm"])
    return out.reshape(n, hp, wp, cp)


def head_forward(x_flat, params):
    nc = params["num_classes"]
    out = pl.pallas_call(
        functools.partial(head_kernel, num_classes=nc),
        out_shape=jax.ShapeDtypeStruct(
            (x_flat.shape[0], params["w2"].shape[1]), jnp.float32),
        in_specs=[_VMEM] * 5,
        out_specs=_VMEM,
    )(x_flat.astype(jnp.bfloat16), params["w1"], params["b1"],
      params["w2"], params["b2"])
    return out[:, :nc]


def net_forward(x_nchw, params):
    x = jnp.transpose(x_nchw, (0, 2, 3, 1))                     # NCHW -> NHWC
    for layer in params["convs"]:
        x = conv_pool_relu_bn(x, layer)
    x = x[..., :params["convs"][-1]["cout"]]                    # drop lane padding
    n = x.shape[0]
    x = jnp.transpose(x, (0, 3, 1, 2)).reshape(n, -1)           # PyTorch .view(N,-1) order
    # TODO(synk): nn.Dropout(0.5) is eval-mode identity here (no RNG masking).
    return head_forward(x, params)


# ---------------------------------------------------------------------------
# Deterministic parameter construction (weights zero-padded for lane alignment)
# ---------------------------------------------------------------------------
def make_conv_layer(key, cin, cout, k):
    kr = k * k * cin
    kp = _round_up(kr, 128)
    cp = _round_up(cout, 128)
    ks = jax.random.split(key, 6)
    w = jax.random.normal(ks[0], (k, k, cin, cout), jnp.float32) / (kr ** 0.5)
    cb = 0.1 * jax.random.normal(ks[1], (cout,), jnp.float32)
    gamma = 1.0 + 0.1 * jax.random.normal(ks[2], (cout,), jnp.float32)
    beta = 0.1 * jax.random.normal(ks[3], (cout,), jnp.float32)
    mean = 0.1 * jax.random.normal(ks[4], (cout,), jnp.float32)
    var = 1.0 + 0.1 * jnp.abs(jax.random.normal(ks[5], (cout,), jnp.float32))
    scale = gamma / jnp.sqrt(var + 1e-5)
    bias = beta - mean * scale
    w_pad = jnp.zeros((kp, cp), jnp.float32).at[:kr, :cout].set(w.reshape(kr, cout))
    prm = jnp.zeros((8, cp), jnp.float32)
    prm = prm.at[0, :cout].set(cb).at[1, :cout].set(scale).at[2, :cout].set(bias)
    return {"w": w_pad.astype(jnp.bfloat16), "prm": prm,
            "k": k, "cin": cin, "cout": cout, "kp": kp, "coutp": cp}


def build_params(key, num_classes=10):
    key, k1, k2, k3, k4, kw1, kb1, kw2, kb2 = jax.random.split(key, 9)
    convs = [
        make_conv_layer(k1, 3, 32, 5),      # conv1 5x5 'same' + pool + relu + bn1
        make_conv_layer(k2, 32, 64, 3),     # conv2
        make_conv_layer(k3, 64, 128, 3),    # conv3
        make_conv_layer(k4, 128, 256, 3),   # conv4
    ]
    ncp = _round_up(num_classes, 128)
    w1 = (jax.random.normal(kw1, (1024, 256), jnp.float32) / 32.0).astype(jnp.bfloat16)
    b1 = 0.1 * jax.random.normal(kb1, (1, 256), jnp.float32)
    w2r = jax.random.normal(kw2, (256, num_classes), jnp.float32) / 16.0
    b2r = 0.1 * jax.random.normal(kb2, (1, num_classes), jnp.float32)
    w2 = jnp.zeros((256, ncp), jnp.float32).at[:, :num_classes].set(w2r)
    b2 = jnp.zeros((1, ncp), jnp.float32).at[:, :num_classes].set(b2r)
    return {"convs": convs, "w1": w1, "b1": b1,
            "w2": w2.astype(jnp.bfloat16), "b2": b2,
            "num_classes": num_classes}


if __name__ == "__main__":
    key = jax.random.PRNGKey(0)
    key, kx = jax.random.split(key)
    params = build_params(key)

    # fc1 expects 1024 = 256 * (H/16) * (W/16) features -> 3-channel 32x32 input
    x = jax.random.normal(kx, (2, 3, 32, 32), jnp.float32)

    fwd = jax.jit(lambda inp: net_forward(inp, params))
    out = fwd(x)
    jax.block_until_ready(out)

    assert out.shape == (2, 10), out.shape
    assert out.dtype == jnp.float32
    assert bool(jnp.all(jnp.isfinite(out)))
    print("KERNEL_OK")
</pallas_src>

<mosaic_0001>
module attributes {stable_mosaic.version = 11 : i64} {
  func.func @conv_pool_relu_bn_kernel(%arg0: i32, %arg1: memref<4x256x128xbf16, #tpu.memory_space<vmem>>, %arg2: memref<128x128xbf16, #tpu.memory_space<vmem>>, %arg3: memref<8x128xf32, #tpu.memory_space<vmem>>, %arg4: memref<256x128xbf16, #tpu.memory_space<vmem>>) attributes {dimension_semantics = [#tpu.dimension_semantics<parallel>], iteration_bounds = array<i64: 2>, scalar_prefetch = 0 : i64, scratch_operands = 0 : i64, tpu.core_type = #tpu.core_type<tc>, window_params = [{transform_indices = @transform_0, window_bounds = array<i64: 4, 256, 128>}, {pipeline_mode = #tpu.pipeline_mode<synchronous>, transform_indices = @transform_1, window_bounds = array<i64: 128, 128>}, {pipeline_mode = #tpu.pipeline_mode<synchronous>, transform_indices = @transform_2, window_bounds = array<i64: 8, 128>}, {transform_indices = @transform_3, window_bounds = array<i64: 256, 128>}]} {
    %c0 = arith.constant 0 : index
    %c0_0 = arith.constant 0 : index
    %0 = vector.load %arg2[%c0, %c0_0] : memref<128x128xbf16, #tpu.memory_space<vmem>>, vector<128x128xbf16>
    %c0_1 = arith.constant 0 : index
    %c0_2 = arith.constant 0 : index
    %c0_3 = arith.constant 0 : index
    %1 = vector.load %arg1[%c0_1, %c0_2, %c0_3] : memref<4x256x128xbf16, #tpu.memory_space<vmem>>, vector<1x256x128xbf16>
    %2 = vector.shape_cast %1 : vector<1x256x128xbf16> to vector<256x128xbf16>
    %cst = arith.constant dense<0.000000e+00> : vector<256x128xf32>
    %3 = tpu.matmul %2, %0, %cst {dimension_numbers = #tpu.dot_dimension_numbers<[1], [0], [0], [1], [0, 0, 1, 1], [], []>} : vector<256x128xbf16>, vector<128x128xbf16>, vector<256x128xf32> -> vector<256x128xf32>
    %c1 = arith.constant 1 : index
    %c0_4 = arith.constant 0 : index
    %c0_5 = arith.constant 0 : index
    %4 = vector.load %arg1[%c1, %c0_4, %c0_5] : memref<4x256x128xbf16, #tpu.memory_space<vmem>>, vector<1x256x128xbf16>
    %5 = vector.shape_cast %4 : vector<1x256x128xbf16> to vector<256x128xbf16>
    %cst_6 = arith.constant dense<0.000000e+00> : vector<256x128xf32>
    %6 = tpu.matmul %5, %0, %cst_6 {dimension_numbers = #tpu.dot_dimension_numbers<[1], [0], [0], [1], [0, 0, 1, 1], [], []>} : vector<256x128xbf16>, vector<128x128xbf16>, vector<256x128xf32> -> vector<256x128xf32>
    %7 = arith.maximumf %3, %6 : vector<256x128xf32>
    %c2 = arith.constant 2 : index
    %c0_7 = arith.constant 0 : index
    %c0_8 = arith.constant 0 : index
    %8 = vector.load %arg1[%c2, %c0_7, %c0_8] : memref<4x256x128xbf16, #tpu.memory_space<vmem>>, vector<1x256x128xbf16>
    %9 = vector.shape_cast %8 : vector<1x256x128xbf16> to vector<256x128xbf16>
    %cst_9 = arith.constant dense<0.000000e+00> : vector<256x128xf32>
    %10 = tpu.matmul %9, %0, %cst_9 {dimension_numbers = #tpu.dot_dimension_numbers<[1], [0], [0], [1], [0, 0, 1, 1], [], []>} : vector<256x128xbf16>, vector<128x128xbf16>, vector<256x128xf32> -> vector<256x128xf32>
    %11 = arith.maximumf %7, %10 : vector<256x128xf32>
    %c3 = arith.constant 3 : index
    %c0_10 = arith.constant 0 : index
    %c0_11 = arith.constant 0 : index
    %12 = vector.load %arg1[%c3, %c0_10, %c0_11] : memref<4x256x128xbf16, #tpu.memory_space<vmem>>, vector<1x256x128xbf16>
    %13 = vector.shape_cast %12 : vector<1x256x128xbf16> to vector<256x128xbf16>
    %cst_12 = arith.constant dense<0.000000e+00> : vector<256x128xf32>
    %14 = tpu.matmul %13, %0, %cst_12 {dimension_numbers = #tpu.dot_dimension_numbers<[1], [0], [0], [1], [0, 0, 1, 1], [], []>} : vector<256x128xbf16>, vector<128x128xbf16>, vector<256x128xf32> -> vector<256x128xf32>
    %15 = arith.maximumf %11, %14 : vector<256x128xf32>
    %c0_13 = arith.constant 0 : index
    %c0_14 = arith.constant 0 : index
    %16 = vector.load %arg3[%c0_13, %c0_14] : memref<8x128xf32, #tpu.memory_space<vmem>>, vector<1x128xf32>
    %17 = vector.broadcast %16 : vector<1x128xf32> to vector<256x128xf32>
    %18 = arith.addf %15, %17 : vector<256x128xf32>
    %cst_15 = arith.constant 0.000000e+00 : f32
    %19 = vector.broadcast %cst_15 : f32 to vector<256x128xf32>
    %20 = arith.maximumf %18, %19 : vector<256x128xf32>
    %c1_16 = arith.constant 1 : index
    %c0_17 = arith.constant 0 : index
    %21 = vector.load %arg3[%c1_16, %c0_17] : memref<8x128xf32, #tpu.memory_space<vmem>>, vector<1x128xf32>
    %22 = vector.broadcast %21 : vector<1x128xf32> to vector<256x128xf32>
    %23 = arith.mulf %20, %22 : vector<256x128xf32>
    %c2_18 = arith.constant 2 : index
    %c0_19 = arith.constant 0 : index
    %24 = vector.load %arg3[%c2_18, %c0_19] : memref<8x128xf32, #tpu.memory_space<vmem>>, vector<1x128xf32>
    %25 = vector.broadcast %24 : vector<1x128xf32> to vector<256x128xf32>
    %26 = arith.addf %23, %25 : vector<256x128xf32>
    %27 = arith.truncf %26 : vector<256x128xf32> to vector<256x128xbf16>
    %c0_20 = arith.constant 0 : index
    %c0_21 = arith.constant 0 : index
    %28 = vector.load %arg4[%c0_20, %c0_21] : memref<256x128xbf16, #tpu.memory_space<vmem>>, vector<256x128xbf16>
    tpu.vector_store %arg4[%c0_20, %c0_21], %27 {strides = array<i32>} : memref<256x128xbf16, #tpu.memory_space<vmem>>, vector<256x128xbf16>,
    return
  }
  func.func @transform_0(%arg0: i32) -> (i32, i32, i32) {
    %c0_i32 = arith.constant 0 : i32
    %c0_i32_0 = arith.constant 0 : i32
    %c0_i32_1 = arith.constant 0 : i32
    return %c0_i32, %arg0, %c0_i32_0 : i32, i32, i32
  }
  func.func @transform_1(%arg0: i32) -> (i32, i32) {
    %c0_i32 = arith.constant 0 : i32
    %c0_i32_0 = arith.constant 0 : i32
    %c0_i32_1 = arith.constant 0 : i32
    return %c0_i32, %c0_i32_0 : i32, i32
  }
  func.func @transform_2(%arg0: i32) -> (i32, i32) {
    %c0_i32 = arith.constant 0 : i32
    %c0_i32_0 = arith.constant 0 : i32
    %c0_i32_1 = arith.constant 0 : i32
    return %c0_i32, %c0_i32_0 : i32, i32
  }
  func.func @transform_3(%arg0: i32) -> (i32, i32) {
    %c0_i32 = arith.constant 0 : i32
    %c0_i32_0 = arith.constant 0 : i32
    return %arg0, %c0_i32 : i32, i32
  }
}

module attributes {stable_mosaic.version = 11 : i64} {
  func.func @conv_pool_relu_bn_kernel(%arg0: i32, %arg1: memref<4x128x384xbf16, #tpu.memory_space<vmem>>, %arg2: memref<384x128xbf16, #tpu.memory_space<vmem>>, %arg3: memref<8x128xf32, #tpu.memory_space<vmem>>, %arg4: memref<128x128xbf16, #tpu.memory_space<vmem>>) attributes {dimension_semantics = [#tpu.dimension_semantics<parallel>], iteration_bounds = array<i64: 1>, scalar_prefetch = 0 : i64, scratch_operands = 0 : i64, tpu.core_type = #tpu.core_type<tc>, window_params = [{transform_indices = @transform_0, window_bounds = array<i64: 4, 128, 384>}, {pipeline_mode = #tpu.pipeline_mode<synchronous>, transform_indices = @transform_1, window_bounds = array<i64: 384, 128>}, {pipeline_mode = #tpu.pipeline_mode<synchronous>, transform_indices = @transform_2, window_bounds = array<i64: 8, 128>}, {transform_indices = @transform_3, window_bounds = array<i64: 128, 128>}]} {
    %c0 = arith.constant 0 : index
    %c0_0 = arith.constant 0 : index
    %0 = vector.load %arg2[%c0, %c0_0] : memref<384x128xbf16, #tpu.memory_space<vmem>>, vector<384x128xbf16>
    %c0_1 = arith.constant 0 : index
    %c0_2 = arith.constant 0 : index
    %c0_3 = arith.constant 0 : index
    %1 = vector.load %arg1[%c0_1, %c0_2, %c0_3] : memref<4x128x384xbf16, #tpu.memory_space<vmem>>, vector<1x128x384xbf16>
    %2 = vector.shape_cast %1 : vector<1x128x384xbf16> to vector<128x384xbf16>
    %cst = arith.constant dense<0.000000e+00> : vector<128x128xf32>
    %3 = tpu.matmul %2, %0, %cst {dimension_numbers = #tpu.dot_dimension_numbers<[1], [0], [0], [1], [0, 0, 1, 1], [], []>} : vector<128x384xbf16>, vector<384x128xbf16>, vector<128x128xf32> -> vector<128x128xf32>
    %c1 = arith.constant 1 : index
    %c0_4 = arith.constant 0 : index
    %c0_5 = arith.constant 0 : index
    %4 = vector.load %arg1[%c1, %c0_4, %c0_5] : memref<4x128x384xbf16, #tpu.memory_space<vmem>>, vector<1x128x384xbf16>
    %5 = vector.shape_cast %4 : vector<1x128x384xbf16> to vector<128x384xbf16>
    %cst_6 = arith.constant dense<0.000000e+00> : vector<128x128xf32>
    %6 = tpu.matmul %5, %0, %cst_6 {dimension_numbers = #tpu.dot_dimension_numbers<[1], [0], [0], [1], [0, 0, 1, 1], [], []>} : vector<128x384xbf16>, vector<384x128xbf16>, vector<128x128xf32> -> vector<128x128xf32>
    %7 = arith.maximumf %3, %6 : vector<128x128xf32>
    %c2 = arith.constant 2 : index
    %c0_7 = arith.constant 0 : index
    %c0_8 = arith.constant 0 : index
    %8 = vector.load %arg1[%c2, %c0_7, %c0_8] : memref<4x128x384xbf16, #tpu.memory_space<vmem>>, vector<1x128x384xbf16>
    %9 = vector.shape_cast %8 : vector<1x128x384xbf16> to vector<128x384xbf16>
    %cst_9 = arith.constant dense<0.000000e+00> : vector<128x128xf32>
    %10 = tpu.matmul %9, %0, %cst_9 {dimension_numbers = #tpu.dot_dimension_numbers<[1], [0], [0], [1], [0, 0, 1, 1], [], []>} : vector<128x384xbf16>, vector<384x128xbf16>, vector<128x128xf32> -> vector<128x128xf32>
    %11 = arith.maximumf %7, %10 : vector<128x128xf32>
    %c3 = arith.constant 3 : index
    %c0_10 = arith.constant 0 : index
    %c0_11 = arith.constant 0 : index
    %12 = vector.load %arg1[%c3, %c0_10, %c0_11] : memref<4x128x384xbf16, #tpu.memory_space<vmem>>, vector<1x128x384xbf16>
    %13 = vector.shape_cast %12 : vector<1x128x384xbf16> to vector<128x384xbf16>
    %cst_12 = arith.constant dense<0.000000e+00> : vector<128x128xf32>
    %14 = tpu.matmul %13, %0, %cst_12 {dimension_numbers = #tpu.dot_dimension_numbers<[1], [0], [0], [1], [0, 0, 1, 1], [], []>} : vector<128x384xbf16>, vector<384x128xbf16>, vector<128x128xf32> -> vector<128x128xf32>
    %15 = arith.maximumf %11, %14 : vector<128x128xf32>
    %c0_13 = arith.constant 0 : index
    %c0_14 = arith.constant 0 : index
    %16 = vector.load %arg3[%c0_13, %c0_14] : memref<8x128xf32, #tpu.memory_space<vmem>>, vector<1x128xf32>
    %17 = vector.broadcast %16 : vector<1x128xf32> to vector<128x128xf32>
    %18 = arith.addf %15, %17 : vector<128x128xf32>
    %cst_15 = arith.constant 0.000000e+00 : f32
    %19 = vector.broadcast %cst_15 : f32 to vector<128x128xf32>
    %20 = arith.maximumf %18, %19 : vector<128x128xf32>
    %c1_16 = arith.constant 1 : index
    %c0_17 = arith.constant 0 : index
    %21 = vector.load %arg3[%c1_16, %c0_17] : memref<8x128xf32, #tpu.memory_space<vmem>>, vector<1x128xf32>
    %22 = vector.broadcast %21 : vector<1x128xf32> to vector<128x128xf32>
    %23 = arith.mulf %20, %22 : vector<128x128xf32>
    %c2_18 = arith.constant 2 : index
    %c0_19 = arith.constant 0 : index
    %24 = vector.load %arg3[%c2_18, %c0_19] : memref<8x128xf32, #tpu.memory_space<vmem>>, vector<1x128xf32>
    %25 = vector.broadcast %24 : vector<1x128xf32> to vector<128x128xf32>
    %26 = arith.addf %23, %25 : vector<128x128xf32>
    %27 = arith.truncf %26 : vector<128x128xf32> to vector<128x128xbf16>
    %c0_20 = arith.constant 0 : index
    %c0_21 = arith.constant 0 : index
    %28 = vector.load %arg4[%c0_20, %c0_21] : memref<128x128xbf16, #tpu.memory_space<vmem>>, vector<128x128xbf16>
    tpu.vector_store %arg4[%c0_20, %c0_21], %27 {strides = array<i32>} : memref<128x128xbf16, #tpu.memory_space<vmem>>, vector<128x128xbf16>,
    return
  }
  func.func @transform_0(%arg0: i32) -> (i32, i32, i32) {
    %c0_i32 = arith.constant 0 : i32
    %c0_i32_0 = arith.constant 0 : i32
    %c0_i32_1 = arith.constant 0 : i32
    return %c0_i32, %arg0, %c0_i32_0 : i32, i32, i32
  }
  func.func @transform_1(%arg0: i32) -> (i32, i32) {
    %c0_i32 = arith.constant 0 : i32
    %c0_i32_0 = arith.constant 0 : i32
    %c0_i32_1 = arith.constant 0 : i32
    return %c0_i32, %c0_i32_0 : i32, i32
  }
  func.func @transform_2(%arg0: i32) -> (i32, i32) {
    %c0_i32 = arith.constant 0 : i32
    %c0_i32_0 = arith.constant 0 : i32
    %c0_i32_1 = arith.constant 0 : i32
    return %c0_i32, %c0_i32_0 : i32, i32
  }
  func.func @transform_3(%arg0: i32) -> (i32, i32) {
    %c0_i32 = arith.constant 0 : i32
    %c0_i32_0 = arith.constant 0 : i32
    return %arg0, %c0_i32 : i32, i32
  }
}

module attributes {stable_mosaic.version = 11 : i64} {
  func.func @conv_pool_relu_bn_kernel(%arg0: i32, %arg1: memref<4x32x640xbf16, #tpu.memory_space<vmem>>, %arg2: memref<640x128xbf16, #tpu.memory_space<vmem>>, %arg3: memref<8x128xf32, #tpu.memory_space<vmem>>, %arg4: memref<32x128xbf16, #tpu.memory_space<vmem>>) attributes {dimension_semantics = [#tpu.dimension_semantics<parallel>], iteration_bounds = array<i64: 1>, scalar_prefetch = 0 : i64, scratch_operands = 0 : i64, tpu.core_type = #tpu.core_type<tc>, window_params = [{transform_indices = @transform_0, window_bounds = array<i64: 4, 32, 640>}, {pipeline_mode = #tpu.pipeline_mode<synchronous>, transform_indices = @transform_1, window_bounds = array<i64: 640, 128>}, {pipeline_mode = #tpu.pipeline_mode<synchronous>, transform_indices = @transform_2, window_bounds = array<i64: 8, 128>}, {transform_indices = @transform_3, window_bounds = array<i64: 32, 128>}]} {
    %c0 = arith.constant 0 : index
    %c0_0 = arith.constant 0 : index
    %0 = vector.load %arg2[%c0, %c0_0] : memref<640x128xbf16, #tpu.memory_space<vmem>>, vector<640x128xbf16>
    %c0_1 = arith.constant 0 : index
    %c0_2 = arith.constant 0 : index
    %c0_3 = arith.constant 0 : index
    %1 = vector.load %arg1[%c0_1, %c0_2, %c0_3] : memref<4x32x640xbf16, #tpu.memory_space<vmem>>, vector<1x32x640xbf16>
    %2 = vector.shape_cast %1 : vector<1x32x640xbf16> to vector<32x640xbf16>
    %cst = arith.constant dense<0.000000e+00> : vector<32x128xf32>
    %3 = tpu.matmul %2, %0, %cst {dimension_numbers = #tpu.dot_dimension_numbers<[1], [0], [0], [1], [0, 0, 1, 1], [], []>} : vector<32x640xbf16>, vector<640x128xbf16>, vector<32x128xf32> -> vector<32x128xf32>
    %c1 = arith.constant 1 : index
    %c0_4 = arith.constant 0 : index
    %c0_5 = arith.constant 0 : index
    %4 = vector.load %arg1[%c1, %c0_4, %c0_5] : memref<4x32x640xbf16, #tpu.memory_space<vmem>>, vector<1x32x640xbf16>
    %5 = vector.shape_cast %4 : vector<1x32x640xbf16> to vector<32x640xbf16>
    %cst_6 = arith.constant dense<0.000000e+00> : vector<32x128xf32>
    %6 = tpu.matmul %5, %0, %cst_6 {dimension_numbers = #tpu.dot_dimension_numbers<[1], [0], [0], [1], [0, 0, 1, 1], [], []>} : vector<32x640xbf16>, vector<640x128xbf16>, vector<32x128xf32> -> vector<32x128xf32>
    %7 = arith.maximumf %3, %6 : vector<32x128xf32>
    %c2 = arith.constant 2 : index
    %c0_7 = arith.constant 0 : index
    %c0_8 = arith.constant 0 : index
    %8 = vector.load %arg1[%c2, %c0_7, %c0_8] : memref<4x32x640xbf16, #tpu.memory_space<vmem>>, vector<1x32x640xbf16>
    %9 = vector.shape_cast %8 : vector<1x32x640xbf16> to vector<32x640xbf16>
    %cst_9 = arith.constant dense<0.000000e+00> : vector<32x128xf32>
    %10 = tpu.matmul %9, %0, %cst_9 {dimension_numbers = #tpu.dot_dimension_numbers<[1], [0], [0], [1], [0, 0, 1, 1], [], []>} : vector<32x640xbf16>, vector<640x128xbf16>, vector<32x128xf32> -> vector<32x128xf32>
    %11 = arith.maximumf %7, %10 : vector<32x128xf32>
    %c3 = arith.constant 3 : index
    %c0_10 = arith.constant 0 : index
    %c0_11 = arith.constant 0 : index
    %12 = vector.load %arg1[%c3, %c0_10, %c0_11] : memref<4x32x640xbf16, #tpu.memory_space<vmem>>, vector<1x32x640xbf16>
    %13 = vector.shape_cast %12 : vector<1x32x640xbf16> to vector<32x640xbf16>
    %cst_12 = arith.constant dense<0.000000e+00> : vector<32x128xf32>
    %14 = tpu.matmul %13, %0, %cst_12 {dimension_numbers = #tpu.dot_dimension_numbers<[1], [0], [0], [1], [0, 0, 1, 1], [], []>} : vector<32x640xbf16>, vector<640x128xbf16>, vector<32x128xf32> -> vector<32x128xf32>
    %15 = arith.maximumf %11, %14 : vector<32x128xf32>
    %c0_13 = arith.constant 0 : index
    %c0_14 = arith.constant 0 : index
    %16 = vector.load %arg3[%c0_13, %c0_14] : memref<8x128xf32, #tpu.memory_space<vmem>>, vector<1x128xf32>
    %17 = vector.broadcast %16 : vector<1x128xf32> to vector<32x128xf32>
    %18 = arith.addf %15, %17 : vector<32x128xf32>
    %cst_15 = arith.constant 0.000000e+00 : f32
    %19 = vector.broadcast %cst_15 : f32 to vector<32x128xf32>
    %20 = arith.maximumf %18, %19 : vector<32x128xf32>
    %c1_16 = arith.constant 1 : index
    %c0_17 = arith.constant 0 : index
    %21 = vector.load %arg3[%c1_16, %c0_17] : memref<8x128xf32, #tpu.memory_space<vmem>>, vector<1x128xf32>
    %22 = vector.broadcast %21 : vector<1x128xf32> to vector<32x128xf32>
    %23 = arith.mulf %20, %22 : vector<32x128xf32>
    %c2_18 = arith.constant 2 : index
    %c0_19 = arith.constant 0 : index
    %24 = vector.load %arg3[%c2_18, %c0_19] : memref<8x128xf32, #tpu.memory_space<vmem>>, vector<1x128xf32>
    %25 = vector.broadcast %24 : vector<1x128xf32> to vector<32x128xf32>
    %26 = arith.addf %23, %25 : vector<32x128xf32>
    %27 = arith.truncf %26 : vector<32x128xf32> to vector<32x128xbf16>
    %c0_20 = arith.constant 0 : index
    %c0_21 = arith.constant 0 : index
    %28 = vector.load %arg4[%c0_20, %c0_21] : memref<32x128xbf16, #tpu.memory_space<vmem>>, vector<32x128xbf16>
    tpu.vector_store %arg4[%c0_20, %c0_21], %27 {strides = array<i32>} : memref<32x128xbf16, #tpu.memory_space<vmem>>, vector<32x128xbf16>,
    return
  }
  func.func @transform_0(%arg0: i32) -> (i32, i32, i32) {
    %c0_i32 = arith.constant 0 : i32
    %c0_i32_0 = arith.constant 0 : i32
    %c0_i32_1 = arith.constant 0 : i32
    return %c0_i32, %arg0, %c0_i32_0 : i32, i32, i32
  }
  func.func @transform_1(%arg0: i32) -> (i32, i32) {
    %c0_i32 = arith.constant 0 : i32
    %c0_i32_0 = arith.constant 0 : i32
    %c0_i32_1 = arith.constant 0 : i32
    return %c0_i32, %c0_i32_0 : i32, i32
  }
  func.func @transform_2(%arg0: i32) -> (i32, i32) {
    %c0_i32 = arith.constant 0 : i32
    %c0_i32_0 = arith.constant 0 : i32
    %c0_i32_1 = arith.constant 0 : i32
    return %c0_i32, %c0_i32_0 : i32, i32
  }
  func.func @transform_3(%arg0: i32) -> (i32, i32) {
    %c0_i32 = arith.constant 0 : i32
    %c0_i32_0 = arith.constant 0 : i32
    return %arg0, %c0_i32 : i32, i32
  }
}

module attributes {stable_mosaic.version = 11 : i64} {
  func.func @conv_pool_relu_bn_kernel(%arg0: i32, %arg1: memref<4x8x1152xbf16, #tpu.memory_space<vmem>>, %arg2: memref<1152x256xbf16, #tpu.memory_space<vmem>>, %arg3: memref<8x256xf32, #tpu.memory_space<vmem>>, %arg4: memref<8x256xbf16, #tpu.memory_space<vmem>>) attributes {dimension_semantics = [#tpu.dimension_semantics<parallel>], iteration_bounds = array<i64: 1>, scalar_prefetch = 0 : i64, scratch_operands = 0 : i64, tpu.core_type = #tpu.core_type<tc>, window_params = [{transform_indices = @transform_0, window_bounds = array<i64: 4, 8, 1152>}, {pipeline_mode = #tpu.pipeline_mode<synchronous>, transform_indices = @transform_1, window_bounds = array<i64: 1152, 256>}, {pipeline_mode = #tpu.pipeline_mode<synchronous>, transform_indices = @transform_2, window_bounds = array<i64: 8, 256>}, {transform_indices = @transform_3, window_bounds = array<i64: 8, 256>}]} {
    %c0 = arith.constant 0 : index
    %c0_0 = arith.constant 0 : index
    %0 = vector.load %arg2[%c0, %c0_0] : memref<1152x256xbf16, #tpu.memory_space<vmem>>, vector<1152x256xbf16>
    %c0_1 = arith.constant 0 : index
    %c0_2 = arith.constant 0 : index
    %c0_3 = arith.constant 0 : index
    %1 = vector.load %arg1[%c0_1, %c0_2, %c0_3] : memref<4x8x1152xbf16, #tpu.memory_space<vmem>>, vector<1x8x1152xbf16>
    %2 = vector.shape_cast %1 : vector<1x8x1152xbf16> to vector<8x1152xbf16>
    %cst = arith.constant dense<0.000000e+00> : vector<8x256xf32>
    %3 = tpu.matmul %2, %0, %cst {dimension_numbers = #tpu.dot_dimension_numbers<[1], [0], [0], [1], [0, 0, 1, 1], [], []>} : vector<8x1152xbf16>, vector<1152x256xbf16>, vector<8x256xf32> -> vector<8x256xf32>
    %c1 = arith.constant 1 : index
    %c0_4 = arith.constant 0 : index
    %c0_5 = arith.constant 0 : index
    %4 = vector.load %arg1[%c1, %c0_4, %c0_5] : memref<4x8x1152xbf16, #tpu.memory_space<vmem>>, vector<1x8x1152xbf16>
    %5 = vector.shape_cast %4 : vector<1x8x1152xbf16> to vector<8x1152xbf16>
    %cst_6 = arith.constant dense<0.000000e+00> : vector<8x256xf32>
    %6 = tpu.matmul %5, %0, %cst_6 {dimension_numbers = #tpu.dot_dimension_numbers<[1], [0], [0], [1], [0, 0, 1, 1], [], []>} : vector<8x1152xbf16>, vector<1152x256xbf16>, vector<8x256xf32> -> vector<8x256xf32>
    %7 = arith.maximumf %3, %6 : vector<8x256xf32>
    %c2 = arith.constant 2 : index
    %c0_7 = arith.constant 0 : index
    %c0_8 = arith.constant 0 : index
    %8 = vector.load %arg1[%c2, %c0_7, %c0_8] : memref<4x8x1152xbf16, #tpu.memory_space<vmem>>, vector<1x8x1152xbf16>
    %9 = vector.shape_cast %8 : vector<1x8x1152xbf16> to vector<8x1152xbf16>
    %cst_9 = arith.constant dense<0.000000e+00> : vector<8x256xf32>
    %10 = tpu.matmul %9, %0, %cst_9 {dimension_numbers = #tpu.dot_dimension_numbers<[1], [0], [0], [1], [0, 0, 1, 1], [], []>} : vector<8x1152xbf16>, vector<1152x256xbf16>, vector<8x256xf32> -> vector<8x256xf32>
    %11 = arith.maximumf %7, %10 : vector<8x256xf32>
    %c3 = arith.constant 3 : index
    %c0_10 = arith.constant 0 : index
    %c0_11 = arith.constant 0 : index
    %12 = vector.load %arg1[%c3, %c0_10, %c0_11] : memref<4x8x1152xbf16, #tpu.memory_space<vmem>>, vector<1x8x1152xbf16>
    %13 = vector.shape_cast %12 : vector<1x8x1152xbf16> to vector<8x1152xbf16>
    %cst_12 = arith.constant dense<0.000000e+00> : vector<8x256xf32>
    %14 = tpu.matmul %13, %0, %cst_12 {dimension_numbers = #tpu.dot_dimension_numbers<[1], [0], [0], [1], [0, 0, 1, 1], [], []>} : vector<8x1152xbf16>, vector<1152x256xbf16>, vector<8x256xf32> -> vector<8x256xf32>
    %15 = arith.maximumf %11, %14 : vector<8x256xf32>
    %c0_13 = arith.constant 0 : index
    %c0_14 = arith.constant 0 : index
    %16 = vector.load %arg3[%c0_13, %c0_14] : memref<8x256xf32, #tpu.memory_space<vmem>>, vector<1x256xf32>
    %17 = vector.broadcast %16 : vector<1x256xf32> to vector<8x256xf32>
    %18 = arith.addf %15, %17 : vector<8x256xf32>
    %cst_15 = arith.constant 0.000000e+00 : f32
    %19 = vector.broadcast %cst_15 : f32 to vector<8x256xf32>
    %20 = arith.maximumf %18, %19 : vector<8x256xf32>
    %c1_16 = arith.constant 1 : index
    %c0_17 = arith.constant 0 : index
    %21 = vector.load %arg3[%c1_16, %c0_17] : memref<8x256xf32, #tpu.memory_space<vmem>>, vector<1x256xf32>
    %22 = vector.broadcast %21 : vector<1x256xf32> to vector<8x256xf32>
    %23 = arith.mulf %20, %22 : vector<8x256xf32>
    %c2_18 = arith.constant 2 : index
    %c0_19 = arith.constant 0 : index
    %24 = vector.load %arg3[%c2_18, %c0_19] : memref<8x256xf32, #tpu.memory_space<vmem>>, vector<1x256xf32>
    %25 = vector.broadcast %24 : vector<1x256xf32> to vector<8x256xf32>
    %26 = arith.addf %23, %25 : vector<8x256xf32>
    %27 = arith.truncf %26 : vector<8x256xf32> to vector<8x256xbf16>
    %c0_20 = arith.constant 0 : index
    %c0_21 = arith.constant 0 : index
    %28 = vector.load %arg4[%c0_20, %c0_21] : memref<8x256xbf16, #tpu.memory_space<vmem>>, vector<8x256xbf16>
    tpu.vector_store %arg4[%c0_20, %c0_21], %27 {strides = array<i32>} : memref<8x256xbf16, #tpu.memory_space<vmem>>, vector<8x256xbf16>,
    return
  }
  func.func @transform_0(%arg0: i32) -> (i32, i32, i32) {
    %c0_i32 = arith.constant 0 : i32
    %c0_i32_0 = arith.constant 0 : i32
    %c0_i32_1 = arith.constant 0 : i32
    return %c0_i32, %arg0, %c0_i32_0 : i32, i32, i32
  }
  func.func @transform_1(%arg0: i32) -> (i32, i32) {
    %c0_i32 = arith.constant 0 : i32
    %c0_i32_0 = arith.constant 0 : i32
    %c0_i32_1 = arith.constant 0 : i32
    return %c0_i32, %c0_i32_0 : i32, i32
  }
  func.func @transform_2(%arg0: i32) -> (i32, i32) {
    %c0_i32 = arith.constant 0 : i32
    %c0_i32_0 = arith.constant 0 : i32
    %c0_i32_1 = arith.constant 0 : i32
    return %c0_i32, %c0_i32_0 : i32, i32
  }
  func.func @transform_3(%arg0: i32) -> (i32, i32) {
    %c0_i32 = arith.constant 0 : i32
    %c0_i32_0 = arith.constant 0 : i32
    return %arg0, %c0_i32 : i32, i32
  }
}

module attributes {stable_mosaic.version = 11 : i64} {
  func.func @head_kernel(%arg0: memref<2x1024xbf16, #tpu.memory_space<vmem>>, %arg1: memref<1024x256xbf16, #tpu.memory_space<vmem>>, %arg2: memref<1x256xf32, #tpu.memory_space<vmem>>, %arg3: memref<256x128xbf16, #tpu.memory_space<vmem>>, %arg4: memref<1x128xf32, #tpu.memory_space<vmem>>, %arg5: memref<2x128xf32, #tpu.memory_space<vmem>>) attributes {dimension_semantics = [], scalar_prefetch = 0 : i64, scratch_operands = 0 : i64, tpu.core_type = #tpu.core_type<tc>} {
    %c0 = arith.constant 0 : index
    %c0_0 = arith.constant 0 : index
    %0 = vector.load %arg0[%c0, %c0_0] : memref<2x1024xbf16, #tpu.memory_space<vmem>>, vector<2x1024xbf16>
    %c0_1 = arith.constant 0 : index
    %c0_2 = arith.constant 0 : index
    %1 = vector.load %arg1[%c0_1, %c0_2] : memref<1024x256xbf16, #tpu.memory_space<vmem>>, vector<1024x256xbf16>
    %cst = arith.constant dense<0.000000e+00> : vector<2x256xf32>
    %2 = tpu.matmul %0, %1, %cst {dimension_numbers = #tpu.dot_dimension_numbers<[1], [0], [0], [1], [0, 0, 1, 1], [], []>} : vector<2x1024xbf16>, vector<1024x256xbf16>, vector<2x256xf32> -> vector<2x256xf32>
    %c0_3 = arith.constant 0 : index
    %c0_4 = arith.constant 0 : index
    %3 = vector.load %arg2[%c0_3, %c0_4] : memref<1x256xf32, #tpu.memory_space<vmem>>, vector<1x256xf32>
    %4 = vector.broadcast %3 : vector<1x256xf32> to vector<2x256xf32>
    %5 = arith.addf %2, %4 : vector<2x256xf32>
    %cst_5 = arith.constant 0.000000e+00 : f32
    %6 = vector.broadcast %cst_5 : f32 to vector<2x256xf32>
    %7 = arith.maximumf %5, %6 : vector<2x256xf32>
    %8 = arith.truncf %7 : vector<2x256xf32> to vector<2x256xbf16>
    %c0_6 = arith.constant 0 : index
    %c0_7 = arith.constant 0 : index
    %9 = vector.load %arg3[%c0_6, %c0_7] : memref<256x128xbf16, #tpu.memory_space<vmem>>, vector<256x128xbf16>
    %cst_8 = arith.constant dense<0.000000e+00> : vector<2x128xf32>
    %10 = tpu.matmul %8, %9, %cst_8 {dimension_numbers = #tpu.dot_dimension_numbers<[1], [0], [0], [1], [0, 0, 1, 1], [], []>} : vector<2x256xbf16>, vector<256x128xbf16>, vector<2x128xf32> -> vector<2x128xf32>
    %c0_9 = arith.constant 0 : index
    %c0_10 = arith.constant 0 : index
    %11 = vector.load %arg4[%c0_9, %c0_10] : memref<1x128xf32, #tpu.memory_space<vmem>>, vector<1x128xf32>
    %12 = vector.broadcast %11 : vector<1x128xf32> to vector<2x128xf32>
    %13 = arith.addf %10, %12 : vector<2x128xf32>
    %14 = tpu.iota {dimensions = array<i32: 1>} : vector<2x128xi32>
    %c10_i32 = arith.constant 10 : i32
    %15 = vector.broadcast %c10_i32 : i32 to vector<2x128xi32>
    %16 = arith.cmpi slt, %14, %15 : vector<2x128xi32>
    %cst_11 = arith.constant -1.000000e+30 : f32
    %17 = vector.broadcast %cst_11 : f32 to vector<2x128xf32>
    %18 = arith.select %16, %13, %17 : vector<2x128xi1>, vector<2x128xf32>
    %cst_12 = arith.constant dense<0xFF800000> : vector<2xf32>
    %19 = vector.multi_reduction <maximumf>, %18, %cst_12 [1] : vector<2x128xf32> to vector<2xf32>
    %20 = vector.shape_cast %19 : vector<2xf32> to vector<2x1xf32>
    %21 = vector.broadcast %20 : vector<2x1xf32> to vector<2x128xf32>
    %22 = arith.subf %18, %21 : vector<2x128xf32>
    %23 = math.exp %22 : vector<2x128xf32>
    %cst_13 = arith.constant dense<0.000000e+00> : vector<2xf32>
    %24 = vector.multi_reduction <add>, %23, %cst_13 [1] : vector<2x128xf32> to vector<2xf32>
    %25 = vector.shape_cast %24 : vector<2xf32> to vector<2x1xf32>
    %26 = vector.broadcast %20 : vector<2x1xf32> to vector<2x128xf32>
    %27 = arith.subf %18, %26 : vector<2x128xf32>
    %28 = math.log %25 : vector<2x1xf32>
    %29 = vector.broadcast %28 : vector<2x1xf32> to vector<2x128xf32>
    %30 = arith.subf %27, %29 : vector<2x128xf32>
    %c0_14 = arith.constant 0 : index
    %c0_15 = arith.constant 0 : index
    %31 = vector.load %arg5[%c0_14, %c0_15] : memref<2x128xf32, #tpu.memory_space<vmem>>, vector<2x128xf32>
    tpu.vector_store %arg5[%c0_14, %c0_15], %30 {strides = array<i32>} : memref<2x128xf32, #tpu.memory_space<vmem>>, vector<2x128xf32>,
    return
  }
}

</mosaic_0001>

<bundles_post_ra>
// kernel: _lambda_.5
= control target key start
LH: loop header
LB: loop body
LE: loop exit
PB: predicated region body
PF: predicated region fallthrough
CT: control target
= control target key end

     0   :  { %s2652_s12 = smov 0   ;;  %s2654_s13 = smov 0   ;;  %s3055_s0 = inlined_call_operand.vmem [shape: bf16[4,512,128], index: 0, kind: input, shape index: {}]   ;;  %s3056_s1 = inlined_call_operand.vmem [shape: bf16[128,128], index: 1, kind: input, shape index: {}]   ;;  %s3057_s2 = inlined_call_operand.vmem [shape: f32[8,128], index: 2, kind: input, shape index: {}]   ;;  %s3058_s3 = inlined_call_operand.vmem [shape: bf16[512,128], index: 3, kind: output, shape index: {}]  }
   0x1   :  { %s2656_s14 = smov 0  }
   0x2 LB: > { %s2016_s15 = sadd.s32 4294967295, %s2630_s14   ;;  %s2669_s16 = sadd.s32 1, %s2630_s14   ;;  %s2630_s14 = sphi %s2656_s14, %s3061_s14   ;;  %s2626_s13 = sphi %s2654_s13, %s3060_s13   ;;  %s2622_s12 = sphi %s2652_s12, %s3059_s12  }
   0x3   : > { %s17_s17 = ssub.s32 %s2630_s14, %s2669_s16  ;;  %s20_s18 = sadd.s32 1, %s2626_s13 }
   0x4   : > { %p18_p0 = scmp.eq.s32.totalorder %s17_s17, 0  ;;  %p27_p1 = scmp.ne.s32.totalorder %s2626_s13, %s2622_s12 }
   0x5   : > { %p28_p2 = scmp.eq.s32.totalorder %s2630_s14, 0  ;;  %p2019_p4 = scmp.ge.s32.totalorder %s2630_s14, 2 }
   0x6   : > { %s2678_s19 = scalar_select %p18_p0, %s2626_s13, %s20_s18  }
   0x7   : > { %p29_p3 = por %p28_p2, %p27_p1  ;;  %127 = sbr.rel (%p2019_p4) target bundleno = 80 (0x50), region = 24 }
   0xc   : > { %130 = sbr.rel (!%p29_p3) target bundleno = 80 (0x50), region = 28  ;;  %s132_s20 = sand.u32 (%p29_p3), 1, %s2626_s13  }
   0xd   : > { %s2413_s21 = sshll.u32 (%p29_p3), %s2630_s14, 7  ;;  %s2020_s22 = sshll.u32 (%p29_p3), %s132_s20, 9 }
   0xe   : > { %s2686_s25 = scalar_lea.vmem (%p29_p3), %s3055_s0, %s2413_s21  ;;  %s2691_s26 = scalar_lea.vmem (%p29_p3), [#allocation2], %s2020_s22 }
   0xf   : > { %v154_v0 = vld [vmem:[%s2686_s25] sm:$0xff] (%p29_p3)   ;;  %v158_v1 = vld [vmem:[%s2686_s25 + $0x8] sm:$0xff] (%p29_p3)   ;;  %v162_v2 = vld [vmem:[%s2686_s25 + $0x10] sm:$0xff] (%p29_p3)  }
  0x10   : > { %155 = vst [vmem:[%s2691_s26] sm:$0xff] (%p29_p3), %v154_v0   ;;  %v166_v3 = vld [vmem:[%s2686_s25 + $0x18] sm:$0xff] (%p29_p3)   ;;  %v170_v4 = vld [vmem:[%s2686_s25 + $0x20] sm:$0xff] (%p29_p3)   ;;  %v174_v5 = vld [vmem:[%s2686_s25 + $0x28] sm:$0xff] (%p29_p3)  }
  0x11   : > { %159 = vst [vmem:[%s2691_s26 + $0x8] sm:$0xff] %v158_v1   ;;  %v178_v6 = vld [vmem:[%s2686_s25 + $0x30] sm:$0xff]   ;;  %v182_v7 = vld [vmem:[%s2686_s25 + $0x38] sm:$0xff]   ;;  %v186_v8 = vld [vmem:[%s2686_s25 + $0x40] sm:$0xff]  }
  0x12   : > { %163 = vst [vmem:[%s2691_s26 + $0x10] sm:$0xff] %v162_v2   ;;  %v190_v9 = vld [vmem:[%s2686_s25 + $0x48] sm:$0xff]   ;;  %v194_v10 = vld [vmem:[%s2686_s25 + $0x50] sm:$0xff]   ;;  %v198_v11 = vld [vmem:[%s2686_s25 + $0x58] sm:$0xff]  }
  0x13   : > { %167 = vst [vmem:[%s2691_s26 + $0x18] sm:$0xff] %v166_v3   ;;  %v202_v12 = vld [vmem:[%s2686_s25 + $0x60] sm:$0xff]   ;;  %v206_v13 = vld [vmem:[%s2686_s25 + $0x68] sm:$0xff]   ;;  %v210_v14 = vld [vmem:[%s2686_s25 + $0x70] sm:$0xff]  }
  0x14   : > { %171 = vst [vmem:[%s2691_s26 + $0x20] sm:$0xff] %v170_v4   ;;  %v214_v15 = vld [vmem:[%s2686_s25 + $0x78] sm:$0xff]   ;;  %v218_v16 = vld [vmem:[%s2686_s25 + $0x100] sm:$0xff]   ;;  %v222_v17 = vld [vmem:[%s2686_s25 + $0x108] sm:$0xff]  }
  0x15   : > { %175 = vst [vmem:[%s2691_s26 + $0x28] sm:$0xff] %v174_v5   ;;  %v226_v18 = vld [vmem:[%s2686_s25 + $0x110] sm:$0xff]   ;;  %v230_v19 = vld [vmem:[%s2686_s25 + $0x118] sm:$0xff]   ;;  %v234_v20 = vld [vmem:[%s2686_s25 + $0x120] sm:$0xff]  }
  0x16   : > { %179 = vst [vmem:[%s2691_s26 + $0x30] sm:$0xff] %v178_v6   ;;  %v238_v21 = vld [vmem:[%s2686_s25 + $0x128] sm:$0xff]   ;;  %v242_v22 = vld [vmem:[%s2686_s25 + $0x130] sm:$0xff]   ;;  %v246_v23 = vld [vmem:[%s2686_s25 + $0x138] sm:$0xff]  }
  0x17   : > { %183 = vst [vmem:[%s2691_s26 + $0x38] sm:$0xff] %v182_v7   ;;  %v250_v24 = vld [vmem:[%s2686_s25 + $0x140] sm:$0xff]   ;;  %v254_v25 = vld [vmem:[%s2686_s25 + $0x148] sm:$0xff]   ;;  %v258_v26 = vld [vmem:[%s2686_s25 + $0x150] sm:$0xff]  }
  0x18   : > { %187 = vst [vmem:[%s2691_s26 + $0x40] sm:$0xff] %v186_v8   ;;  %v262_v27 = vld [vmem:[%s2686_s25 + $0x158] sm:$0xff]   ;;  %v266_v28 = vld [vmem:[%s2686_s25 + $0x160] sm:$0xff]   ;;  %v270_v29 = vld [vmem:[%s2686_s25 + $0x168] sm:$0xff]  }
  0x19   : > { %191 = vst [vmem:[%s2691_s26 + $0x48] sm:$0xff] %v190_v9   ;;  %v274_v30 = vld [vmem:[%s2686_s25 + $0x170] sm:$0xff]   ;;  %v278_v31 = vld [vmem:[%s2686_s25 + $0x178] sm:$0xff]   ;;  %v282_v32 = vld [vmem:[%s2686_s25 + $0x200] sm:$0xff]  }
  0x1a   : > { %195 = vst [vmem:[%s2691_s26 + $0x50] sm:$0xff] %v194_v10   ;;  %v286_v33 = vld [vmem:[%s2686_s25 + $0x208] sm:$0xff]   ;;  %v290_v34 = vld [vmem:[%s2686_s25 + $0x210] sm:$0xff]   ;;  %v294_v35 = vld [vmem:[%s2686_s25 + $0x218] sm:$0xff]  }
  0x1b   : > { %199 = vst [vmem:[%s2691_s26 + $0x58] sm:$0xff] %v198_v11   ;;  %v298_v36 = vld [vmem:[%s2686_s25 + $0x220] sm:$0xff]   ;;  %v302_v37 = vld [vmem:[%s2686_s25 + $0x228] sm:$0xff]   ;;  %v306_v38 = vld [vmem:[%s2686_s25 + $0x230] sm:$0xff]  }
  0x1c   : > { %203 = vst [vmem:[%s2691_s26 + $0x60] sm:$0xff] %v202_v12   ;;  %v310_v39 = vld [vmem:[%s2686_s25 + $0x238] sm:$0xff]   ;;  %v314_v40 = vld [vmem:[%s2686_s25 + $0x240] sm:$0xff]   ;;  %v318_v41 = vld [vmem:[%s2686_s25 + $0x248] sm:$0xff]  }
  0x1d   : > { %207 = vst [vmem:[%s2691_s26 + $0x68] sm:$0xff] %v206_v13   ;;  %v322_v42 = vld [vmem:[%s2686_s25 + $0x250] sm:$0xff]   ;;  %v326_v43 = vld [vmem:[%s2686_s25 + $0x258] sm:$0xff]   ;;  %v330_v44 = vld [vmem:[%s2686_s25 + $0x260] sm:$0xff]  }
  0x1e   : > { %211 = vst [vmem:[%s2691_s26 + $0x70] sm:$0xff] %v210_v14   ;;  %v334_v45 = vld [vmem:[%s2686_s25 + $0x268] sm:$0xff]   ;;  %v338_v46 = vld [vmem:[%s2686_s25 + $0x270] sm:$0xff]   ;;  %v342_v47 = vld [vmem:[%s2686_s25 + $0x278] sm:$0xff]  }
  0x1f   : > { %215 = vst [vmem:[%s2691_s26 + $0x78] sm:$0xff] %v214_v15   ;;  %v346_v48 = vld [vmem:[%s2686_s25 + $0x300] sm:$0xff]   ;;  %v350_v49 = vld [vmem:[%s2686_s25 + $0x308] sm:$0xff]   ;;  %v354_v50 = vld [vmem:[%s2686_s25 + $0x310] sm:$0xff]  }
  0x20   : > { %219 = vst [vmem:[%s2691_s26 + $0x80] sm:$0xff] %v218_v16   ;;  %v358_v51 = vld [vmem:[%s2686_s25 + $0x318] sm:$0xff]   ;;  %v362_v52 = vld [vmem:[%s2686_s25 + $0x320] sm:$0xff]   ;;  %v366_v53 = vld [vmem:[%s2686_s25 + $0x328] sm:$0xff]  }
  0x21   : > { %223 = vst [vmem:[%s2691_s26 + $0x88] sm:$0xff] %v222_v17   ;;  %v370_v54 = vld [vmem:[%s2686_s25 + $0x330] sm:$0xff]   ;;  %v374_v55 = vld [vmem:[%s2686_s25 + $0x338] sm:$0xff]   ;;  %v378_v56 = vld [vmem:[%s2686_s25 + $0x340] sm:$0xff]  }
  0x22   : > { %227 = vst [vmem:[%s2691_s26 + $0x90] sm:$0xff] %v226_v18   ;;  %v382_v57 = vld [vmem:[%s2686_s25 + $0x348] sm:$0xff]   ;;  %v386_v58 = vld [vmem:[%s2686_s25 + $0x350] sm:$0xff]   ;;  %v390_v59 = vld [vmem:[%s2686_s25 + $0x358] sm:$0xff]  }
  0x23   : > { %231 = vst [vmem:[%s2691_s26 + $0x98] sm:$0xff] %v230_v19   ;;  %v394_v60 = vld [vmem:[%s2686_s25 + $0x360] sm:$0xff]   ;;  %v398_v61 = vld [vmem:[%s2686_s25 + $0x368] sm:$0xff]   ;;  %v402_v62 = vld [vmem:[%s2686_s25 + $0x370] sm:$0xff]  }
  0x24   : > { %235 = vst [vmem:[%s2691_s26 + $0xa0] sm:$0xff] %v234_v20   ;;  %v406_v63 = vld [vmem:[%s2686_s25 + $0x378] sm:$0xff]  }
  0x25   : > { %239 = vst [vmem:[%s2691_s26 + $0xa8] sm:$0xff] %v238_v21  }
  0x26   : > { %243 = vst [vmem:[%s2691_s26 + $0xb0] sm:$0xff] %v242_v22  }
  0x27   : > { %247 = vst [vmem:[%s2691_s26 + $0xb8] sm:$0xff] %v246_v23  }
  0x28   : > { %251 = vst [vmem:[%s2691_s26 + $0xc0] sm:$0xff] %v250_v24  }
  0x29   : > { %255 = vst [vmem:[%s2691_s26 + $0xc8] sm:$0xff] %v254_v25  }
  0x2a   : > { %259 = vst [vmem:[%s2691_s26 + $0xd0] sm:$0xff] %v258_v26  }
  0x2b   : > { %263 = vst [vmem:[%s2691_s26 + $0xd8] sm:$0xff] %v262_v27  }
  0x2c   : > { %267 = vst [vmem:[%s2691_s26 + $0xe0] sm:$0xff] %v266_v28  }
  0x2d   : > { %271 = vst [vmem:[%s2691_s26 + $0xe8] sm:$0xff] %v270_v29  }
  0x2e   : > { %275 = vst [vmem:[%s2691_s26 + $0xf0] sm:$0xff] %v274_v30  }
  0x2f   : > { %279 = vst [vmem:[%s2691_s26 + $0xf8] sm:$0xff] %v278_v31  }
  0x30   : > { %283 = vst [vmem:[%s2691_s26 + $0x100] sm:$0xff] %v282_v32  }
  0x31   : > { %287 = vst [vmem:[%s2691_s26 + $0x108] sm:$0xff] %v286_v33  }
  0x32   : > { %291 = vst [vmem:[%s2691_s26 + $0x110] sm:$0xff] %v290_v34  }
  0x33   : > { %295 = vst [vmem:[%s2691_s26 + $0x118] sm:$0xff] %v294_v35  }
  0x34   : > { %299 = vst [vmem:[%s2691_s26 + $0x120] sm:$0xff] %v298_v36  }
  0x35   : > { %303 = vst [vmem:[%s2691_s26 + $0x128] sm:$0xff] %v302_v37  }
  0x36   : > { %307 = vst [vmem:[%s2691_s26 + $0x130] sm:$0xff] %v306_v38  }
  0x37   : > { %311 = vst [vmem:[%s2691_s26 + $0x138] sm:$0xff] %v310_v39  }
  0x38   : > { %315 = vst [vmem:[%s2691_s26 + $0x140] sm:$0xff] %v314_v40  }
  0x39   : > { %319 = vst [vmem:[%s2691_s26 + $0x148] sm:$0xff] %v318_v41  }
  0x3a   : > { %323 = vst [vmem:[%s2691_s26 + $0x150] sm:$0xff] %v322_v42  }
  0x3b   : > { %327 = vst [vmem:[%s2691_s26 + $0x158] sm:$0xff] %v326_v43  }
  0x3c   : > { %331 = vst [vmem:[%s2691_s26 + $0x160] sm:$0xff] %v330_v44  }
  0x3d   : > { %335 = vst [vmem:[%s2691_s26 + $0x168] sm:$0xff] %v334_v45  }
  0x3e   : > { %339 = vst [vmem:[%s2691_s26 + $0x170] sm:$0xff] %v338_v46  }
  0x3f   : > { %343 = vst [vmem:[%s2691_s26 + $0x178] sm:$0xff] %v342_v47  }
  0x40   : > { %347 = vst [vmem:[%s2691_s26 + $0x180] sm:$0xff] %v346_v48  }
  0x41   : > { %351 = vst [vmem:[%s2691_s26 + $0x188] sm:$0xff] %v350_v49  }
  0x42   : > { %355 = vst [vmem:[%s2691_s26 + $0x190] sm:$0xff] %v354_v50  }
  0x43   : > { %359 = vst [vmem:[%s2691_s26 + $0x198] sm:$0xff] %v358_v51  }
  0x44   : > { %363 = vst [vmem:[%s2691_s26 + $0x1a0] sm:$0xff] %v362_v52  }
  0x45   : > { %367 = vst [vmem:[%s2691_s26 + $0x1a8] sm:$0xff] %v366_v53  }
  0x46   : > { %371 = vst [vmem:[%s2691_s26 + $0x1b0] sm:$0xff] %v370_v54  }
  0x47   : > { %375 = vst [vmem:[%s2691_s26 + $0x1b8] sm:$0xff] %v374_v55  }
  0x48   : > { %379 = vst [vmem:[%s2691_s26 + $0x1c0] sm:$0xff] %v378_v56  }
  0x49   : > { %383 = vst [vmem:[%s2691_s26 + $0x1c8] sm:$0xff] %v382_v57  }
  0x4a   : > { %387 = vst [vmem:[%s2691_s26 + $0x1d0] sm:$0xff] %v386_v58  }
  0x4b   : > { %391 = vst [vmem:[%s2691_s26 + $0x1d8] sm:$0xff] %v390_v59  }
  0x4c   : > { %395 = vst [vmem:[%s2691_s26 + $0x1e0] sm:$0xff] %v394_v60  }
  0x4d   : > { %399 = vst [vmem:[%s2691_s26 + $0x1e8] sm:$0xff] %v398_v61  }
  0x4e   : > { %403 = vst [vmem:[%s2691_s26 + $0x1f0] sm:$0xff] %v402_v62  }
  0x4f   : > { %407 = vst [vmem:[%s2691_s26 + $0x1f8] sm:$0xff] %v406_v63  }
  0x50 PF: > { %p2023_p5 = scmp.ge.s32.totalorder %s2630_s14, 1  ;;  %p688_p6 = scmp.lt.s32.totalorder %s2630_s14, 3 }
  0x52   : > { %p689_p7 = pnand %p2023_p5, %p688_p6 }
  0x53   : > { %s695_s17 = sand.u32 (!%p689_p7), 1, %s2622_s12   ;;  %s2025_s26 = sshll.u32 (!%p689_p7), %s2016_s15, 5 }
  0x54   : > { %692 = sbr.rel (%p689_p7) target bundleno = 517 (0x205), region = 69  ;;  %s2024_s21 = sshll.u32 (!%p689_p7), %s695_s17, 9 }
  0x55   : > { %s2845_s24 = scalar_lea.vmem (!%p689_p7), [#allocation2], %s2024_s21  ;;  %p720_p8 = scmp.lt.s32.totalorder (!%p689_p7), %s2025_s26, 63 }
  0x59   : > { %v2421_v0 = vld [vmem:[%s3056_s1 + $0x38] sm:$0xff]  ;;  %v2420_v1 = vld [vmem:[%s3056_s1 + $0x30] sm:$0xff]  ;;  %v2419_v2 = vld [vmem:[%s3056_s1 + $0x28] sm:$0xff]  ;;  %s3063_s26 = smov (!%p720_p8, %s2025_s26), 63 }
  0x5a   : > { %917 = vmatpush.bf16.msra.mxu0 %v2421_v0  ;;  %1135 = vmatpush.bf16.msra.mxu1 %v2421_v0  ;;  %v2418_v3 = vld [vmem:[%s3056_s1 + $0x20] sm:$0xff]  ;;  %v2417_v4 = vld [vmem:[%s3056_s1 + $0x18] sm:$0xff]  ;;  %v2416_v5 = vld [vmem:[%s3056_s1 + $0x10] sm:$0xff]  ;;  %s2026_s29 = sshll.u32 %s3063_s26, 2 }
  0x5b   : > { %1385 = vmatpush.bf16.msra.mxu2 %v2421_v0  ;;  %1635 = vmatpush.bf16.msra.mxu3 %v2421_v0  ;;  %v2415_v6 = vld [vmem:[%s3056_s1 + $0x8] sm:$0xff]  ;;  %v2414_v7 = vld [vmem:[%s3056_s1] sm:$0xff]  ;;  %v2424_v16 = vld [vmem:[%s2845_s24 + $0x10] sm:$0xff]  ;;  %s2913_s5 = scalar_lea.vmem %s3058_s3, %s2026_s29 }
  0x5c   : > { %v2422_v8 = vld [vmem:[%s2845_s24] sm:$0xff]  ;;  %v2423_v12 = vld [vmem:[%s2845_s24 + $0x8] sm:$0xff]  ;;  %v2440_v17 = vld [vmem:[%s2845_s24 + $0x90] sm:$0xff] }
  0x5d   : > { %v2438_v9 = vld [vmem:[%s2845_s24 + $0x80] sm:$0xff]  ;;  %v2439_v13 = vld [vmem:[%s2845_s24 + $0x88] sm:$0xff]  ;;  %v2456_v18 = vld [vmem:[%s2845_s24 + $0x110] sm:$0xff] }
  0x5e   : > { %918 = vmatpush.bf16.msra.mxu0 %v2420_v1  ;;  %1136 = vmatpush.bf16.msra.mxu1 %v2420_v1  ;;  %v2454_v10 = vld [vmem:[%s2845_s24 + $0x100] sm:$0xff]  ;;  %v2455_v14 = vld [vmem:[%s2845_s24 + $0x108] sm:$0xff]  ;;  %v2472_v19 = vld [vmem:[%s2845_s24 + $0x190] sm:$0xff] }
  0x5f   : > { %1386 = vmatpush.bf16.msra.mxu2 %v2420_v1  ;;  %1636 = vmatpush.bf16.msra.mxu3 %v2420_v1  ;;  %v2470_v11 = vld [vmem:[%s2845_s24 + $0x180] sm:$0xff]  ;;  %v2471_v15 = vld [vmem:[%s2845_s24 + $0x188] sm:$0xff]  ;;  %v2425_v20 = vld [vmem:[%s2845_s24 + $0x18] sm:$0xff] }
  0x60   : > { %v2441_v21 = vld [vmem:[%s2845_s24 + $0x98] sm:$0xff]  ;;  %v2426_v24 = vld [vmem:[%s2845_s24 + $0x20] sm:$0xff]  ;;  %v2427_v28 = vld [vmem:[%s2845_s24 + $0x28] sm:$0xff] }
  0x61   : > { %v2457_v22 = vld [vmem:[%s2845_s24 + $0x118] sm:$0xff]  ;;  %v2442_v25 = vld [vmem:[%s2845_s24 + $0xa0] sm:$0xff]  ;;  %v2443_v29 = vld [vmem:[%s2845_s24 + $0xa8] sm:$0xff] }
  0x62   : > { %919 = vmatpush.bf16.msra.mxu0 %v2419_v2  ;;  %1137 = vmatpush.bf16.msra.mxu1 %v2419_v2  ;;  %v2473_v23 = vld [vmem:[%s2845_s24 + $0x198] sm:$0xff]  ;;  %v2458_v26 = vld [vmem:[%s2845_s24 + $0x120] sm:$0xff]  ;;  %v2459_v30 = vld [vmem:[%s2845_s24 + $0x128] sm:$0xff] }
  0x63   : > { %1387 = vmatpush.bf16.msra.mxu2 %v2419_v2  ;;  %1637 = vmatpush.bf16.msra.mxu3 %v2419_v2  ;;  %v2474_v27 = vld [vmem:[%s2845_s24 + $0x1a0] sm:$0xff]  ;;  %v2475_v31 = vld [vmem:[%s2845_s24 + $0x1a8] sm:$0xff]  ;;  %v2428_v32 = vld [vmem:[%s2845_s24 + $0x30] sm:$0xff] }
  0x64   : > { %v2444_v33 = vld [vmem:[%s2845_s24 + $0xb0] sm:$0xff]  ;;  %v2429_v36 = vld [vmem:[%s2845_s24 + $0x38] sm:$0xff]  ;;  %v2430_v40 = vld [vmem:[%s2845_s24 + $0x40] sm:$0xff] }
  0x65   : > { %v2460_v34 = vld [vmem:[%s2845_s24 + $0x130] sm:$0xff]  ;;  %v2445_v37 = vld [vmem:[%s2845_s24 + $0xb8] sm:$0xff]  ;;  %v2446_v41 = vld [vmem:[%s2845_s24 + $0xc0] sm:$0xff] }
  0x66   : > { %920 = vmatpush.bf16.msra.mxu0 %v2418_v3  ;;  %1138 = vmatpush.bf16.msra.mxu1 %v2418_v3  ;;  %v2476_v35 = vld [vmem:[%s2845_s24 + $0x1b0] sm:$0xff]  ;;  %v2461_v38 = vld [vmem:[%s2845_s24 + $0x138] sm:$0xff]  ;;  %v2462_v44 = vld [vmem:[%s2845_s24 + $0x140] sm:$0xff] }
  0x67   : > { %1388 = vmatpush.bf16.msra.mxu2 %v2418_v3  ;;  %1638 = vmatpush.bf16.msra.mxu3 %v2418_v3  ;;  %v2477_v39 = vld [vmem:[%s2845_s24 + $0x1b8] sm:$0xff]  ;;  %v2478_v45 = vld [vmem:[%s2845_s24 + $0x1c0] sm:$0xff]  ;;  %v2431_v58 = vld [vmem:[%s2845_s24 + $0x48] sm:$0xff] }
  0x68   : > { %v2886_v53 = vld [vmem:[%s3057_s2] ss:$0 sm:$0xff]  ;;  %v2447_v59 = vld [vmem:[%s2845_s24 + $0xc8] sm:$0xff]  ;;  %v2898_v2 = vld [vmem:[%s3057_s2 + $0x1] ss:$0 sm:$0xff] }
  0x69   : > { %v2463_v63 = vld [vmem:[%s2845_s24 + $0x148] sm:$0xff] }
  0x6a   : > { %921 = vmatpush.bf16.msra.mxu0 %v2417_v4  ;;  %1139 = vmatpush.bf16.msra.mxu1 %v2417_v4  ;;  %v2479_v0 = vld [vmem:[%s2845_s24 + $0x1c8] sm:$0xff] }
  0x6b   : > { %1389 = vmatpush.bf16.msra.mxu2 %v2417_v4  ;;  %1639 = vmatpush.bf16.msra.mxu3 %v2417_v4 }
  0x6e   : > { %922 = vmatpush.bf16.msra.mxu0 %v2416_v5  ;;  %1140 = vmatpush.bf16.msra.mxu1 %v2416_v5 }
  0x6f   : > { %1390 = vmatpush.bf16.msra.mxu2 %v2416_v5  ;;  %1640 = vmatpush.bf16.msra.mxu3 %v2416_v5 }
  0x72   : > { %923 = vmatpush.bf16.msra.mxu0 %v2415_v6  ;;  %1141 = vmatpush.bf16.msra.mxu1 %v2415_v6 }
  0x73   : > { %1391 = vmatpush.bf16.msra.mxu2 %v2415_v6  ;;  %1641 = vmatpush.bf16.msra.mxu3 %v2415_v6 }
  0x76   : > { %924 = vmatpush.bf16.msra.mxu0 %v2414_v7  ;;  %1142 = vmatpush.bf16.msra.mxu1 %v2414_v7 }
  0x77   : > { %1392 = vmatpush.bf16.msra.mxu2 %v2414_v7  ;;  %1642 = vmatpush.bf16.msra.mxu3 %v2414_v7  ;;  %v2905_v7 = vld [vmem:[%s3057_s2 + $0x2] ss:$0 sm:$0xff] }
  0x79   : > { %925 = vmatmul.bf16.vlgmr.msra.gmra.mxu0 %v2422_v8  ;;  %1143 = vmatmul.bf16.vlgmr.msra.gmra.mxu1 %v2438_v9 }
  0x7a   : > { %1393 = vmatmul.bf16.vlgmr.msra.gmra.mxu2 %v2454_v10  ;;  %1643 = vmatmul.bf16.vlgmr.msra.gmra.mxu3 %v2470_v11 }
  0x89   : > { %930 = vmatmul.bf16.gmra.mxu0 %v2423_v12  ;;  %1148 = vmatmul.bf16.gmra.mxu1 %v2439_v13 }
  0x8a   : > { %1398 = vmatmul.bf16.gmra.mxu2 %v2455_v14  ;;  %1648 = vmatmul.bf16.gmra.mxu3 %v2471_v15 }
  0x99   : > { %935 = vmatmul.bf16.gmra.mxu0 %v2424_v16  ;;  %1153 = vmatmul.bf16.gmra.mxu1 %v2440_v17 }
  0x9a   : > { %1403 = vmatmul.bf16.gmra.mxu2 %v2456_v18  ;;  %1653 = vmatmul.bf16.gmra.mxu3 %v2472_v19 }
  0xa9   : > { %940 = vmatmul.bf16.gmra.mxu0 %v2425_v20  ;;  %1158 = vmatmul.bf16.gmra.mxu1 %v2441_v21 }
  0xaa   : > { %1408 = vmatmul.bf16.gmra.mxu2 %v2457_v22  ;;  %1658 = vmatmul.bf16.gmra.mxu3 %v2473_v23  ;;  %v2432_v23 = vld [vmem:[%s2845_s24 + $0x50] sm:$0xff] }
  0xb9   : > { %945 = vmatmul.bf16.gmra.mxu0 %v2426_v24  ;;  %1163 = vmatmul.bf16.gmra.mxu1 %v2442_v25  ;;  %v2448_v24 = vld [vmem:[%s2845_s24 + $0xd0] sm:$0xff] }
  0xba   : > { %1413 = vmatmul.bf16.gmra.mxu2 %v2458_v26  ;;  %1663 = vmatmul.bf16.gmra.mxu3 %v2474_v27 }
  0xc9   : > { %950 = vmatmul.bf16.gmra.mxu0 %v2427_v28  ;;  %1168 = vmatmul.bf16.gmra.mxu1 %v2443_v29  ;;  %v2464_v28 = vld [vmem:[%s2845_s24 + $0x150] sm:$0xff] }
  0xca   : > { %1418 = vmatmul.bf16.gmra.mxu2 %v2459_v30  ;;  %1668 = vmatmul.bf16.gmra.mxu3 %v2475_v31  ;;  %v2480_v29 = vld [vmem:[%s2845_s24 + $0x1d0] sm:$0xff] }
  0xd9   : > { %955 = vmatmul.bf16.gmra.mxu0 %v2428_v32  ;;  %1173 = vmatmul.bf16.gmra.mxu1 %v2444_v33 }
  0xda   : > { %1423 = vmatmul.bf16.gmra.mxu2 %v2460_v34  ;;  %1673 = vmatmul.bf16.gmra.mxu3 %v2476_v35 }
  0xe9   : > { %960 = vmatmul.bf16.gmra.mxu0 %v2429_v36  ;;  %1178 = vmatmul.bf16.gmra.mxu1 %v2445_v37 }
  0xea   : > { %1428 = vmatmul.bf16.gmra.mxu2 %v2461_v38  ;;  %1678 = vmatmul.bf16.gmra.mxu3 %v2477_v39 }
  0xf6   : > { %v926_v42 = vpop.f32.mrf.mxu0  ;;  %v1144_v43 = vpop.f32.mrf.mxu1 }
  0xf7   : > { %v1224_v46 = vmax.f32 %v926_v42, %v1144_v43 }
  0xf9   : > { %965 = vmatmul.bf16.gmra.mxu0 %v2430_v40  ;;  %1183 = vmatmul.bf16.gmra.mxu1 %v2446_v41 }
  0xfa   : > { %1433 = vmatmul.bf16.gmra.mxu2 %v2462_v44  ;;  %1683 = vmatmul.bf16.gmra.mxu3 %v2478_v45 }
  0xfd   : > { %v1394_v47 = vpop.f32.mrf.mxu2  ;;  %v1644_v48 = vpop.f32.mrf.mxu3 }
  0xfe   : > { %v1474_v49 = vmax.f32 %v1224_v46, %v1394_v47  ;;  %v928_v50 = vpop.f32.mrf.mxu0  ;;  %v1146_v51 = vpop.f32.mrf.mxu1 }
  0xff   : > { %v1225_v55 = vmax.f32 %v928_v50, %v1146_v51  ;;  %v2433_v50 = vld [vmem:[%s2845_s24 + $0x58] sm:$0xff] }
 0x100   : > { %v1724_v52 = vmax.f32 %v1474_v49, %v1644_v48  ;;  %v2449_v51 = vld [vmem:[%s2845_s24 + $0xd8] sm:$0xff] }
 0x102   : > { %v1758_v54 = vadd.f32 %v2886_v53, %v1724_v52 }
 0x104   : > { %v1790_v1 = vmax.f32 %v1758_v54, 0.0 }
 0x105   : > { %v1396_v56 = vpop.f32.mrf.mxu2  ;;  %v1646_v57 = vpop.f32.mrf.mxu3 }
 0x106   : > { %v1475_v60 = vmax.f32 %v1225_v55, %v1396_v56  ;;  %v931_v61 = vpop.f32.mrf.mxu0  ;;  %v1149_v62 = vpop.f32.mrf.mxu1  ;;  %v1824_v6 = vmul.f32 %v2898_v2, %v1790_v1  ;;  %v2465_v56 = vld [vmem:[%s2845_s24 + $0x158] sm:$0xff] }
 0x107   : > { %v1226_v5 = vmax.f32 %v931_v61, %v1149_v62 }
 0x108   : > { %v1725_v3 = vmax.f32 %v1475_v60, %v1646_v57  ;;  %v1858_v15 = vadd.f32 %v2905_v7, %v1824_v6  ;;  %v2481_v57 = vld [vmem:[%s2845_s24 + $0x1d8] sm:$0xff] }
 0x109   : > { %970 = vmatmul.bf16.gmra.mxu0 %v2431_v58  ;;  %1188 = vmatmul.bf16.gmra.mxu1 %v2447_v59 }
 0x10a   : > { %v1759_v4 = vadd.f32 %v2886_v53, %v1725_v3  ;;  %1438 = vmatmul.bf16.gmra.mxu2 %v2463_v63  ;;  %1688 = vmatmul.bf16.gmra.mxu3 %v2479_v0 }
 0x10c   : > { %v1791_v8 = vmax.f32 %v1759_v4, 0.0 }
 0x10d   : > { %v1399_v9 = vpop.f32.mrf.mxu2  ;;  %v1649_v10 = vpop.f32.mrf.mxu3 }
 0x10e   : > { %v1825_v11 = vmul.f32 %v2898_v2, %v1791_v8  ;;  %v1476_v12 = vmax.f32 %v1226_v5, %v1399_v9  ;;  %v933_v13 = vpop.f32.mrf.mxu0  ;;  %v1151_v14 = vpop.f32.mrf.mxu1 }
 0x10f   : > { %v1227_v20 = vmax.f32 %v933_v13, %v1151_v14 }
 0x110   : > { %v1859_v16 = vadd.f32 %v2905_v7, %v1825_v11  ;;  %v1726_v17 = vmax.f32 %v1476_v12, %v1649_v10 }
 0x112   : > { %v2489_v18 = vpack.c.bf16 %v1859_v16, %v1858_v15  ;;  %v1760_v19 = vadd.f32 %v2886_v53, %v1726_v17  ;;  %v2434_v16 = vld [vmem:[%s2845_s24 + $0x60] sm:$0xff] }
 0x113   : > { %v2450_v17 = vld [vmem:[%s2845_s24 + $0xe0] sm:$0xff] }
 0x114   : > { %2490 = vst [vmem:[%s2913_s5] sm:$0xff] %v2489_v18   ;;  %v1792_v30 = vmax.f32 %v1760_v19, 0.0 }
 0x115   : > { %v1401_v21 = vpop.f32.mrf.mxu2  ;;  %v1651_v22 = vpop.f32.mrf.mxu3 }
 0x116   : > { %v1477_v25 = vmax.f32 %v1227_v20, %v1401_v21  ;;  %v936_v26 = vpop.f32.mrf.mxu0  ;;  %v1154_v27 = vpop.f32.mrf.mxu1  ;;  %v1826_v34 = vmul.f32 %v2898_v2, %v1792_v30  ;;  %v2466_v21 = vld [vmem:[%s2845_s24 + $0x160] sm:$0xff] }
 0x117   : > { %v1228_v33 = vmax.f32 %v936_v26, %v1154_v27 }
 0x118   : > { %v1727_v31 = vmax.f32 %v1477_v25, %v1651_v22  ;;  %v1860_v42 = vadd.f32 %v2905_v7, %v1826_v34  ;;  %v2482_v22 = vld [vmem:[%s2845_s24 + $0x1e0] sm:$0xff] }
 0x119   : > { %975 = vmatmul.bf16.gmra.mxu0 %v2432_v23  ;;  %1193 = vmatmul.bf16.gmra.mxu1 %v2448_v24 }
 0x11a   : > { %v1761_v32 = vadd.f32 %v2886_v53, %v1727_v31  ;;  %1443 = vmatmul.bf16.gmra.mxu2 %v2464_v28  ;;  %1693 = vmatmul.bf16.gmra.mxu3 %v2480_v29 }
 0x11c   : > { %v1793_v35 = vmax.f32 %v1761_v32, 0.0 }
 0x11d   : > { %v1404_v36 = vpop.f32.mrf.mxu2  ;;  %v1654_v37 = vpop.f32.mrf.mxu3 }
 0x11e   : > { %v1827_v38 = vmul.f32 %v2898_v2, %v1793_v35  ;;  %v1478_v39 = vmax.f32 %v1228_v33, %v1404_v36  ;;  %v938_v40 = vpop.f32.mrf.mxu0  ;;  %v1156_v41 = vpop.f32.mrf.mxu1 }
 0x11f   : > { %v1229_v47 = vmax.f32 %v938_v40, %v1156_v41 }
 0x120   : > { %v1861_v43 = vadd.f32 %v2905_v7, %v1827_v38  ;;  %v1728_v44 = vmax.f32 %v1478_v39, %v1654_v37 }
 0x122   : > { %v2494_v45 = vpack.c.bf16 %v1861_v43, %v1860_v42  ;;  %v1762_v46 = vadd.f32 %v2886_v53, %v1728_v44  ;;  %v2435_v43 = vld [vmem:[%s2845_s24 + $0x68] sm:$0xff] }
 0x123   : > { %v2451_v44 = vld [vmem:[%s2845_s24 + $0xe8] sm:$0xff] }
 0x124   : > { %2566 = vst [vmem:[%s2913_s5 + $0x8] sm:$0xff] %v2494_v45   ;;  %v1794_v58 = vmax.f32 %v1762_v46, 0.0 }
 0x125   : > { %v1406_v48 = vpop.f32.mrf.mxu2  ;;  %v1656_v49 = vpop.f32.mrf.mxu3 }
 0x126   : > { %v1479_v52 = vmax.f32 %v1229_v47, %v1406_v48  ;;  %v941_v54 = vpop.f32.mrf.mxu0  ;;  %v1159_v55 = vpop.f32.mrf.mxu1  ;;  %v1828_v62 = vmul.f32 %v2898_v2, %v1794_v58  ;;  %v2467_v48 = vld [vmem:[%s2845_s24 + $0x168] sm:$0xff] }
 0x127   : > { %v1230_v61 = vmax.f32 %v941_v54, %v1159_v55 }
 0x128   : > { %v1729_v59 = vmax.f32 %v1479_v52, %v1656_v49  ;;  %v1862_v8 = vadd.f32 %v2905_v7, %v1828_v62  ;;  %v2483_v49 = vld [vmem:[%s2845_s24 + $0x1e8] sm:$0xff] }
 0x129   : > { %980 = vmatmul.bf16.gmra.mxu0 %v2433_v50  ;;  %1198 = vmatmul.bf16.gmra.mxu1 %v2449_v51 }
 0x12a   : > { %v1763_v60 = vadd.f32 %v2886_v53, %v1729_v59  ;;  %1448 = vmatmul.bf16.gmra.mxu2 %v2465_v56  ;;  %1698 = vmatmul.bf16.gmra.mxu3 %v2481_v57 }
 0x12c   : > { %v1795_v63 = vmax.f32 %v1763_v60, 0.0 }
 0x12d   : > { %v1409_v0 = vpop.f32.mrf.mxu2  ;;  %v1659_v1 = vpop.f32.mrf.mxu3 }
 0x12e   : > { %v1829_v3 = vmul.f32 %v2898_v2, %v1795_v63  ;;  %v1480_v4 = vmax.f32 %v1230_v61, %v1409_v0  ;;  %v943_v5 = vpop.f32.mrf.mxu0  ;;  %v1161_v6 = vpop.f32.mrf.mxu1 }
 0x12f   : > { %v1231_v13 = vmax.f32 %v943_v5, %v1161_v6 }
 0x130   : > { %v1863_v9 = vadd.f32 %v2905_v7, %v1829_v3  ;;  %v1730_v10 = vmax.f32 %v1480_v4, %v1659_v1 }
 0x132   : > { %v2499_v11 = vpack.c.bf16 %v1863_v9, %v1862_v8  ;;  %v1764_v12 = vadd.f32 %v2886_v53, %v1730_v10  ;;  %v2436_v9 = vld [vmem:[%s2845_s24 + $0x70] sm:$0xff] }
 0x133   : > { %v2452_v10 = vld [vmem:[%s2845_s24 + $0xf0] sm:$0xff] }
 0x134   : > { %2567 = vst [vmem:[%s2913_s5 + $0x10] sm:$0xff] %v2499_v11   ;;  %v1796_v23 = vmax.f32 %v1764_v12, 0.0 }
 0x135   : > { %v1411_v14 = vpop.f32.mrf.mxu2  ;;  %v1661_v15 = vpop.f32.mrf.mxu3 }
 0x136   : > { %v1481_v18 = vmax.f32 %v1231_v13, %v1411_v14  ;;  %v946_v19 = vpop.f32.mrf.mxu0  ;;  %v1164_v20 = vpop.f32.mrf.mxu1  ;;  %v1830_v27 = vmul.f32 %v2898_v2, %v1796_v23  ;;  %v2468_v14 = vld [vmem:[%s2845_s24 + $0x170] sm:$0xff] }
 0x137   : > { %v1232_v26 = vmax.f32 %v946_v19, %v1164_v20 }
 0x138   : > { %v1731_v24 = vmax.f32 %v1481_v18, %v1661_v15  ;;  %v1864_v35 = vadd.f32 %v2905_v7, %v1830_v27  ;;  %v2484_v15 = vld [vmem:[%s2845_s24 + $0x1f0] sm:$0xff] }
 0x139   : > { %985 = vmatmul.bf16.gmra.mxu0 %v2434_v16  ;;  %1203 = vmatmul.bf16.gmra.mxu1 %v2450_v17 }
 0x13a   : > { %v1765_v25 = vadd.f32 %v2886_v53, %v1731_v24  ;;  %1453 = vmatmul.bf16.gmra.mxu2 %v2466_v21  ;;  %1703 = vmatmul.bf16.gmra.mxu3 %v2482_v22 }
 0x13c   : > { %v1797_v28 = vmax.f32 %v1765_v25, 0.0 }
 0x13d   : > { %v1414_v29 = vpop.f32.mrf.mxu2  ;;  %v1664_v30 = vpop.f32.mrf.mxu3 }
 0x13e   : > { %v1831_v31 = vmul.f32 %v2898_v2, %v1797_v28  ;;  %v1482_v32 = vmax.f32 %v1232_v26, %v1414_v29  ;;  %v948_v33 = vpop.f32.mrf.mxu0  ;;  %v1166_v34 = vpop.f32.mrf.mxu1 }
 0x13f   : > { %v1233_v40 = vmax.f32 %v948_v33, %v1166_v34 }
 0x140   : > { %v1865_v36 = vadd.f32 %v2905_v7, %v1831_v31  ;;  %v1732_v37 = vmax.f32 %v1482_v32, %v1664_v30 }
 0x142   : > { %v2504_v38 = vpack.c.bf16 %v1865_v36, %v1864_v35  ;;  %v1766_v39 = vadd.f32 %v2886_v53, %v1732_v37  ;;  %v2437_v36 = vld [vmem:[%s2845_s24 + $0x78] sm:$0xff] }
 0x143   : > { %v2453_v37 = vld [vmem:[%s2845_s24 + $0xf8] sm:$0xff] }
 0x144   : > { %2568 = vst [vmem:[%s2913_s5 + $0x18] sm:$0xff] %v2504_v38   ;;  %v1798_v50 = vmax.f32 %v1766_v39, 0.0 }
 0x145   : > { %v1416_v41 = vpop.f32.mrf.mxu2  ;;  %v1666_v42 = vpop.f32.mrf.mxu3 }
 0x146   : > { %v1483_v45 = vmax.f32 %v1233_v40, %v1416_v41  ;;  %v951_v46 = vpop.f32.mrf.mxu0  ;;  %v1169_v47 = vpop.f32.mrf.mxu1  ;;  %v1832_v55 = vmul.f32 %v2898_v2, %v1798_v50  ;;  %v2469_v41 = vld [vmem:[%s2845_s24 + $0x178] sm:$0xff] }
 0x147   : > { %v1234_v54 = vmax.f32 %v951_v46, %v1169_v47 }
 0x148   : > { %v1733_v51 = vmax.f32 %v1483_v45, %v1666_v42  ;;  %v1866_v63 = vadd.f32 %v2905_v7, %v1832_v55  ;;  %v2485_v42 = vld [vmem:[%s2845_s24 + $0x1f8] sm:$0xff] }
 0x149   : > { %990 = vmatmul.bf16.gmra.mxu0 %v2435_v43  ;;  %1208 = vmatmul.bf16.gmra.mxu1 %v2451_v44 }
 0x14a   : > { %v1767_v52 = vadd.f32 %v2886_v53, %v1733_v51  ;;  %1458 = vmatmul.bf16.gmra.mxu2 %v2467_v48  ;;  %1708 = vmatmul.bf16.gmra.mxu3 %v2483_v49 }
 0x14c   : > { %v1799_v56 = vmax.f32 %v1767_v52, 0.0 }
 0x14d   : > { %v1419_v57 = vpop.f32.mrf.mxu2  ;;  %v1669_v58 = vpop.f32.mrf.mxu3 }
 0x14e   : > { %v1833_v59 = vmul.f32 %v2898_v2, %v1799_v56  ;;  %v1484_v60 = vmax.f32 %v1234_v54, %v1419_v57  ;;  %v953_v61 = vpop.f32.mrf.mxu0  ;;  %v1171_v62 = vpop.f32.mrf.mxu1 }
 0x14f   : > { %v1235_v5 = vmax.f32 %v953_v61, %v1171_v62 }
 0x150   : > { %v1867_v0 = vadd.f32 %v2905_v7, %v1833_v59  ;;  %v1734_v1 = vmax.f32 %v1484_v60, %v1669_v58 }
 0x152   : > { %v2509_v3 = vpack.c.bf16 %v1867_v0, %v1866_v63  ;;  %v1768_v4 = vadd.f32 %v2886_v53, %v1734_v1 }
 0x154   : > { %2569 = vst [vmem:[%s2913_s5 + $0x20] sm:$0xff] %v2509_v3   ;;  %v1800_v16 = vmax.f32 %v1768_v4, 0.0 }
 0x155   : > { %v1421_v6 = vpop.f32.mrf.mxu2  ;;  %v1671_v8 = vpop.f32.mrf.mxu3 }
 0x156   : > { %v1485_v11 = vmax.f32 %v1235_v5, %v1421_v6  ;;  %v956_v12 = vpop.f32.mrf.mxu0  ;;  %v1174_v13 = vpop.f32.mrf.mxu1  ;;  %v1834_v20 = vmul.f32 %v2898_v2, %v1800_v16 }
 0x157   : > { %v1236_v19 = vmax.f32 %v956_v12, %v1174_v13 }
 0x158   : > { %v1735_v17 = vmax.f32 %v1485_v11, %v1671_v8  ;;  %v1868_v28 = vadd.f32 %v2905_v7, %v1834_v20 }
 0x159   : > { %995 = vmatmul.bf16.gmra.mxu0 %v2436_v9  ;;  %1213 = vmatmul.bf16.gmra.mxu1 %v2452_v10 }
 0x15a   : > { %v1769_v18 = vadd.f32 %v2886_v53, %v1735_v17  ;;  %1463 = vmatmul.bf16.gmra.mxu2 %v2468_v14  ;;  %1713 = vmatmul.bf16.gmra.mxu3 %v2484_v15 }
 0x15c   : > { %v1801_v21 = vmax.f32 %v1769_v18, 0.0 }
 0x15d   : > { %v1424_v22 = vpop.f32.mrf.mxu2  ;;  %v1674_v23 = vpop.f32.mrf.mxu3 }
 0x15e   : > { %v1835_v24 = vmul.f32 %v2898_v2, %v1801_v21  ;;  %v1486_v25 = vmax.f32 %v1236_v19, %v1424_v22  ;;  %v958_v26 = vpop.f32.mrf.mxu0  ;;  %v1176_v27 = vpop.f32.mrf.mxu1 }
 0x15f   : > { %v1237_v33 = vmax.f32 %v958_v26, %v1176_v27 }
 0x160   : > { %v1869_v29 = vadd.f32 %v2905_v7, %v1835_v24  ;;  %v1736_v30 = vmax.f32 %v1486_v25, %v1674_v23 }
 0x162   : > { %v2514_v31 = vpack.c.bf16 %v1869_v29, %v1868_v28  ;;  %v1770_v32 = vadd.f32 %v2886_v53, %v1736_v30 }
 0x164   : > { %2570 = vst [vmem:[%s2913_s5 + $0x28] sm:$0xff] %v2514_v31   ;;  %v1802_v43 = vmax.f32 %v1770_v32, 0.0 }
 0x165   : > { %v1426_v34 = vpop.f32.mrf.mxu2  ;;  %v1676_v35 = vpop.f32.mrf.mxu3 }
 0x166   : > { %v1487_v38 = vmax.f32 %v1237_v33, %v1426_v34  ;;  %v961_v39 = vpop.f32.mrf.mxu0  ;;  %v1179_v40 = vpop.f32.mrf.mxu1  ;;  %v1836_v47 = vmul.f32 %v2898_v2, %v1802_v43 }
 0x167   : > { %v1238_v46 = vmax.f32 %v961_v39, %v1179_v40 }
 0x168   : > { %v1737_v44 = vmax.f32 %v1487_v38, %v1676_v35  ;;  %v1870_v56 = vadd.f32 %v2905_v7, %v1836_v47 }
 0x169   : > { %1000 = vmatmul.bf16.gmra.mxu0 %v2437_v36  ;;  %1218 = vmatmul.bf16.gmra.mxu1 %v2453_v37 }
 0x16a   : > { %v1771_v45 = vadd.f32 %v2886_v53, %v1737_v44  ;;  %1468 = vmatmul.bf16.gmra.mxu2 %v2469_v41  ;;  %1718 = vmatmul.bf16.gmra.mxu3 %v2485_v42 }
 0x16c   : > { %v1803_v48 = vmax.f32 %v1771_v45, 0.0 }
 0x16d   : > { %v1429_v49 = vpop.f32.mrf.mxu2  ;;  %v1679_v50 = vpop.f32.mrf.mxu3 }
 0x16e   : > { %v1837_v51 = vmul.f32 %v2898_v2, %v1803_v48  ;;  %v1488_v52 = vmax.f32 %v1238_v46, %v1429_v49  ;;  %v963_v54 = vpop.f32.mrf.mxu0  ;;  %v1181_v55 = vpop.f32.mrf.mxu1 }
 0x16f   : > { %v1239_v61 = vmax.f32 %v963_v54, %v1181_v55 }
 0x170   : > { %v1871_v57 = vadd.f32 %v2905_v7, %v1837_v51  ;;  %v1738_v58 = vmax.f32 %v1488_v52, %v1679_v50 }
 0x172   : > { %v2519_v59 = vpack.c.bf16 %v1871_v57, %v1870_v56  ;;  %v1772_v60 = vadd.f32 %v2886_v53, %v1738_v58 }
 0x174   : > { %2571 = vst [vmem:[%s2913_s5 + $0x30] sm:$0xff] %v2519_v59   ;;  %v1804_v4 = vmax.f32 %v1772_v60, 0.0 }
 0x175   : > { %v1431_v62 = vpop.f32.mrf.mxu2  ;;  %v1681_v63 = vpop.f32.mrf.mxu3 }
 0x176   : > { %v1489_v0 = vmax.f32 %v1239_v61, %v1431_v62  ;;  %v966_v1 = vpop.f32.mrf.mxu0  ;;  %v1184_v3 = vpop.f32.mrf.mxu1  ;;  %v1838_v9 = vmul.f32 %v2898_v2, %v1804_v4 }
 0x177   : > { %v1240_v8 = vmax.f32 %v966_v1, %v1184_v3 }
 0x178   : > { %v1739_v5 = vmax.f32 %v1489_v0, %v1681_v63  ;;  %v1872_v17 = vadd.f32 %v2905_v7, %v1838_v9 }
 0x17a   : > { %v1773_v6 = vadd.f32 %v2886_v53, %v1739_v5 }
 0x17c   : > { %v1805_v10 = vmax.f32 %v1773_v6, 0.0 }
 0x17d   : > { %v1434_v11 = vpop.f32.mrf.mxu2  ;;  %v1684_v12 = vpop.f32.mrf.mxu3 }
 0x17e   : > { %v1839_v13 = vmul.f32 %v2898_v2, %v1805_v10  ;;  %v1490_v14 = vmax.f32 %v1240_v8, %v1434_v11  ;;  %v968_v15 = vpop.f32.mrf.mxu0  ;;  %v1186_v16 = vpop.f32.mrf.mxu1 }
 0x17f   : > { %v1241_v22 = vmax.f32 %v968_v15, %v1186_v16 }
 0x180   : > { %v1873_v18 = vadd.f32 %v2905_v7, %v1839_v13  ;;  %v1740_v19 = vmax.f32 %v1490_v14, %v1684_v12 }
 0x182   : > { %v2524_v20 = vpack.c.bf16 %v1873_v18, %v1872_v17  ;;  %v1774_v21 = vadd.f32 %v2886_v53, %v1740_v19 }
 0x184   : > { %2572 = vst [vmem:[%s2913_s5 + $0x38] sm:$0xff] %v2524_v20   ;;  %v1806_v28 = vmax.f32 %v1774_v21, 0.0 }
 0x185   : > { %v1436_v23 = vpop.f32.mrf.mxu2  ;;  %v1686_v24 = vpop.f32.mrf.mxu3 }
 0x186   : > { %v1491_v25 = vmax.f32 %v1241_v22, %v1436_v23  ;;  %v971_v26 = vpop.f32.mrf.mxu0  ;;  %v1189_v27 = vpop.f32.mrf.mxu1  ;;  %v1840_v32 = vmul.f32 %v2898_v2, %v1806_v28 }
 0x187   : > { %v1242_v31 = vmax.f32 %v971_v26, %v1189_v27 }
 0x188   : > { %v1741_v29 = vmax.f32 %v1491_v25, %v1686_v24  ;;  %v1874_v40 = vadd.f32 %v2905_v7, %v1840_v32 }
 0x18a   : > { %v1775_v30 = vadd.f32 %v2886_v53, %v1741_v29 }
 0x18c   : > { %v1807_v33 = vmax.f32 %v1775_v30, 0.0 }
 0x18d   : > { %v1439_v34 = vpop.f32.mrf.mxu2  ;;  %v1689_v35 = vpop.f32.mrf.mxu3 }
 0x18e   : > { %v1841_v36 = vmul.f32 %v2898_v2, %v1807_v33  ;;  %v1492_v37 = vmax.f32 %v1242_v31, %v1439_v34  ;;  %v973_v38 = vpop.f32.mrf.mxu0  ;;  %v1191_v39 = vpop.f32.mrf.mxu1 }
 0x18f   : > { %v1243_v45 = vmax.f32 %v973_v38, %v1191_v39 }
 0x190   : > { %v1875_v41 = vadd.f32 %v2905_v7, %v1841_v36  ;;  %v1742_v42 = vmax.f32 %v1492_v37, %v1689_v35 }
 0x192   : > { %v2529_v43 = vpack.c.bf16 %v1875_v41, %v1874_v40  ;;  %v1776_v44 = vadd.f32 %v2886_v53, %v1742_v42 }
 0x194   : > { %2573 = vst [vmem:[%s2913_s5 + $0x40] sm:$0xff] %v2529_v43   ;;  %v1808_v51 = vmax.f32 %v1776_v44, 0.0 }
 0x195   : > { %v1441_v46 = vpop.f32.mrf.mxu2  ;;  %v1691_v47 = vpop.f32.mrf.mxu3 }
 0x196   : > { %v1493_v48 = vmax.f32 %v1243_v45, %v1441_v46  ;;  %v976_v49 = vpop.f32.mrf.mxu0  ;;  %v1194_v50 = vpop.f32.mrf.mxu1  ;;  %v1842_v56 = vmul.f32 %v2898_v2, %v1808_v51 }
 0x197   : > { %v1244_v55 = vmax.f32 %v976_v49, %v1194_v50 }
 0x198   : > { %v1743_v52 = vmax.f32 %v1493_v48, %v1691_v47  ;;  %v1876_v0 = vadd.f32 %v2905_v7, %v1842_v56 }
 0x19a   : > { %v1777_v54 = vadd.f32 %v2886_v53, %v1743_v52 }
 0x19c   : > { %v1809_v57 = vmax.f32 %v1777_v54, 0.0 }
 0x19d   : > { %v1444_v58 = vpop.f32.mrf.mxu2  ;;  %v1694_v59 = vpop.f32.mrf.mxu3 }
 0x19e   : > { %v1843_v60 = vmul.f32 %v2898_v2, %v1809_v57  ;;  %v1494_v61 = vmax.f32 %v1244_v55, %v1444_v58  ;;  %v978_v62 = vpop.f32.mrf.mxu0  ;;  %v1196_v63 = vpop.f32.mrf.mxu1 }
 0x19f   : > { %v1245_v6 = vmax.f32 %v978_v62, %v1196_v63 }
 0x1a0   : > { %v1877_v1 = vadd.f32 %v2905_v7, %v1843_v60  ;;  %v1744_v3 = vmax.f32 %v1494_v61, %v1694_v59 }
 0x1a2   : > { %v2534_v4 = vpack.c.bf16 %v1877_v1, %v1876_v0  ;;  %v1778_v5 = vadd.f32 %v2886_v53, %v1744_v3 }
 0x1a4   : > { %2574 = vst [vmem:[%s2913_s5 + $0x48] sm:$0xff] %v2534_v4   ;;  %v1810_v13 = vmax.f32 %v1778_v5, 0.0 }
 0x1a5   : > { %v1446_v8 = vpop.f32.mrf.mxu2  ;;  %v1696_v9 = vpop.f32.mrf.mxu3 }
 0x1a6   : > { %v1495_v10 = vmax.f32 %v1245_v6, %v1446_v8  ;;  %v981_v11 = vpop.f32.mrf.mxu0  ;;  %v1199_v12 = vpop.f32.mrf.mxu1  ;;  %v1844_v17 = vmul.f32 %v2898_v2, %v1810_v13 }
 0x1a7   : > { %v1246_v16 = vmax.f32 %v981_v11, %v1199_v12 }
 0x1a8   : > { %v1745_v14 = vmax.f32 %v1495_v10, %v1696_v9  ;;  %v1878_v25 = vadd.f32 %v2905_v7, %v1844_v17 }
 0x1aa   : > { %v1779_v15 = vadd.f32 %v2886_v53, %v1745_v14 }
 0x1ac   : > { %v1811_v18 = vmax.f32 %v1779_v15, 0.0 }
 0x1ad   : > { %v1449_v19 = vpop.f32.mrf.mxu2  ;;  %v1699_v20 = vpop.f32.mrf.mxu3 }
 0x1ae   : > { %v1845_v21 = vmul.f32 %v2898_v2, %v1811_v18  ;;  %v1496_v22 = vmax.f32 %v1246_v16, %v1449_v19  ;;  %v983_v23 = vpop.f32.mrf.mxu0  ;;  %v1201_v24 = vpop.f32.mrf.mxu1 }
 0x1af   : > { %v1247_v30 = vmax.f32 %v983_v23, %v1201_v24 }
 0x1b0   : > { %v1879_v26 = vadd.f32 %v2905_v7, %v1845_v21  ;;  %v1746_v27 = vmax.f32 %v1496_v22, %v1699_v20 }
 0x1b2   : > { %v2539_v28 = vpack.c.bf16 %v1879_v26, %v1878_v25  ;;  %v1780_v29 = vadd.f32 %v2886_v53, %v1746_v27 }
 0x1b4   : > { %2575 = vst [vmem:[%s2913_s5 + $0x50] sm:$0xff] %v2539_v28   ;;  %v1812_v36 = vmax.f32 %v1780_v29, 0.0 }
 0x1b5   : > { %v1451_v31 = vpop.f32.mrf.mxu2  ;;  %v1701_v32 = vpop.f32.mrf.mxu3 }
 0x1b6   : > { %v1497_v33 = vmax.f32 %v1247_v30, %v1451_v31  ;;  %v986_v34 = vpop.f32.mrf.mxu0  ;;  %v1204_v35 = vpop.f32.mrf.mxu1  ;;  %v1846_v40 = vmul.f32 %v2898_v2, %v1812_v36 }
 0x1b7   : > { %v1248_v39 = vmax.f32 %v986_v34, %v1204_v35 }
 0x1b8   : > { %v1747_v37 = vmax.f32 %v1497_v33, %v1701_v32  ;;  %v1880_v48 = vadd.f32 %v2905_v7, %v1846_v40 }
 0x1ba   : > { %v1781_v38 = vadd.f32 %v2886_v53, %v1747_v37 }
 0x1bc   : > { %v1813_v41 = vmax.f32 %v1781_v38, 0.0 }
 0x1bd   : > { %v1454_v42 = vpop.f32.mrf.mxu2  ;;  %v1704_v43 = vpop.f32.mrf.mxu3 }
 0x1be   : > { %v1847_v44 = vmul.f32 %v2898_v2, %v1813_v41  ;;  %v1498_v45 = vmax.f32 %v1248_v39, %v1454_v42  ;;  %v988_v46 = vpop.f32.mrf.mxu0  ;;  %v1206_v47 = vpop.f32.mrf.mxu1 }
 0x1bf   : > { %v1249_v54 = vmax.f32 %v988_v46, %v1206_v47 }
 0x1c0   : > { %v1881_v49 = vadd.f32 %v2905_v7, %v1847_v44  ;;  %v1748_v50 = vmax.f32 %v1498_v45, %v1704_v43 }
 0x1c2   : > { %v2544_v51 = vpack.c.bf16 %v1881_v49, %v1880_v48  ;;  %v1782_v52 = vadd.f32 %v2886_v53, %v1748_v50 }
 0x1c4   : > { %2576 = vst [vmem:[%s2913_s5 + $0x58] sm:$0xff] %v2544_v51   ;;  %v1814_v60 = vmax.f32 %v1782_v52, 0.0 }
 0x1c5   : > { %v1456_v55 = vpop.f32.mrf.mxu2  ;;  %v1706_v56 = vpop.f32.mrf.mxu3 }
 0x1c6   : > { %v1499_v57 = vmax.f32 %v1249_v54, %v1456_v55  ;;  %v991_v58 = vpop.f32.mrf.mxu0  ;;  %v1209_v59 = vpop.f32.mrf.mxu1  ;;  %v1848_v0 = vmul.f32 %v2898_v2, %v1814_v60 }
 0x1c7   : > { %v1250_v63 = vmax.f32 %v991_v58, %v1209_v59 }
 0x1c8   : > { %v1749_v61 = vmax.f32 %v1499_v57, %v1706_v56  ;;  %v1882_v10 = vadd.f32 %v2905_v7, %v1848_v0 }
 0x1ca   : > { %v1783_v62 = vadd.f32 %v2886_v53, %v1749_v61 }
 0x1cc   : > { %v1815_v1 = vmax.f32 %v1783_v62, 0.0 }
 0x1cd   : > { %v1459_v3 = vpop.f32.mrf.mxu2  ;;  %v1709_v4 = vpop.f32.mrf.mxu3 }
 0x1ce   : > { %v1849_v5 = vmul.f32 %v2898_v2, %v1815_v1  ;;  %v1500_v6 = vmax.f32 %v1250_v63, %v1459_v3  ;;  %v993_v8 = vpop.f32.mrf.mxu0  ;;  %v1211_v9 = vpop.f32.mrf.mxu1 }
 0x1cf   : > { %v1251_v15 = vmax.f32 %v993_v8, %v1211_v9 }
 0x1d0   : > { %v1883_v11 = vadd.f32 %v2905_v7, %v1849_v5  ;;  %v1750_v12 = vmax.f32 %v1500_v6, %v1709_v4 }
 0x1d2   : > { %v2549_v13 = vpack.c.bf16 %v1883_v11, %v1882_v10  ;;  %v1784_v14 = vadd.f32 %v2886_v53, %v1750_v12 }
 0x1d4   : > { %2577 = vst [vmem:[%s2913_s5 + $0x60] sm:$0xff] %v2549_v13   ;;  %v1816_v21 = vmax.f32 %v1784_v14, 0.0 }
 0x1d5   : > { %v1461_v16 = vpop.f32.mrf.mxu2  ;;  %v1711_v17 = vpop.f32.mrf.mxu3 }
 0x1d6   : > { %v1501_v18 = vmax.f32 %v1251_v15, %v1461_v16  ;;  %v996_v19 = vpop.f32.mrf.mxu0  ;;  %v1214_v20 = vpop.f32.mrf.mxu1  ;;  %v1850_v25 = vmul.f32 %v2898_v2, %v1816_v21 }
 0x1d7   : > { %v1252_v24 = vmax.f32 %v996_v19, %v1214_v20 }
 0x1d8   : > { %v1751_v22 = vmax.f32 %v1501_v18, %v1711_v17  ;;  %v1884_v33 = vadd.f32 %v2905_v7, %v1850_v25 }
 0x1da   : > { %v1785_v23 = vadd.f32 %v2886_v53, %v1751_v22 }
 0x1dc   : > { %v1817_v26 = vmax.f32 %v1785_v23, 0.0 }
 0x1dd   : > { %v1464_v27 = vpop.f32.mrf.mxu2  ;;  %v1714_v28 = vpop.f32.mrf.mxu3 }
 0x1de   : > { %v1851_v29 = vmul.f32 %v2898_v2, %v1817_v26  ;;  %v1502_v30 = vmax.f32 %v1252_v24, %v1464_v27  ;;  %v998_v31 = vpop.f32.mrf.mxu0  ;;  %v1216_v32 = vpop.f32.mrf.mxu1 }
 0x1df   : > { %v1253_v38 = vmax.f32 %v998_v31, %v1216_v32 }
 0x1e0   : > { %v1885_v34 = vadd.f32 %v2905_v7, %v1851_v29  ;;  %v1752_v35 = vmax.f32 %v1502_v30, %v1714_v28 }
 0x1e2   : > { %v2554_v36 = vpack.c.bf16 %v1885_v34, %v1884_v33  ;;  %v1786_v37 = vadd.f32 %v2886_v53, %v1752_v35 }
 0x1e4   : > { %2578 = vst [vmem:[%s2913_s5 + $0x68] sm:$0xff] %v2554_v36   ;;  %v1818_v44 = vmax.f32 %v1786_v37, 0.0 }
 0x1e5   : > { %v1466_v39 = vpop.f32.mrf.mxu2  ;;  %v1716_v40 = vpop.f32.mrf.mxu3 }
 0x1e6   : > { %v1503_v41 = vmax.f32 %v1253_v38, %v1466_v39  ;;  %v1001_v42 = vpop.f32.mrf.mxu0  ;;  %v1219_v43 = vpop.f32.mrf.mxu1  ;;  %v1852_v48 = vmul.f32 %v2898_v2, %v1818_v44 }
 0x1e7   : > { %v1254_v47 = vmax.f32 %v1001_v42, %v1219_v43 }
 0x1e8   : > { %v1753_v45 = vmax.f32 %v1503_v41, %v1716_v40  ;;  %v1886_v55 = vadd.f32 %v2905_v7, %v1852_v48 }
 0x1ea   : > { %v1787_v46 = vadd.f32 %v2886_v53, %v1753_v45 }
 0x1ec   : > { %v1819_v49 = vmax.f32 %v1787_v46, 0.0 }
 0x1ed   : > { %v1469_v50 = vpop.f32.mrf.mxu2  ;;  %v1719_v51 = vpop.f32.mrf.mxu3 }
 0x1ee   : > { %v1853_v52 = vmul.f32 %v2898_v2, %v1819_v49  ;;  %v1504_v54 = vmax.f32 %v1254_v47, %v1469_v50  ;;  %v1003_v58 = vpop.f32.mrf.mxu0  ;;  %v1221_v59 = vpop.f32.mrf.mxu1 }
 0x1ef   : > { %v1255_v62 = vmax.f32 %v1003_v58, %v1221_v59 }
 0x1f0   : > { %v1887_v56 = vadd.f32 %v2905_v7, %v1853_v52  ;;  %v1754_v57 = vmax.f32 %v1504_v54, %v1719_v51 }
 0x1f2   : > { %v2559_v60 = vpack.c.bf16 %v1887_v56, %v1886_v55  ;;  %v1788_v61 = vadd.f32 %v2886_v53, %v1754_v57 }
 0x1f4   : > { %2579 = vst [vmem:[%s2913_s5 + $0x70] sm:$0xff] %v2559_v60   ;;  %v1820_v3 = vmax.f32 %v1788_v61, 0.0 }
 0x1f5   : > { %v1471_v63 = vpop.f32.mrf.mxu2  ;;  %v1721_v1 = vpop.f32.mrf.mxu3 }
 0x1f6   : > { %v1505_v0 = vmax.f32 %v1255_v62, %v1471_v63  ;;  %v1854_v6 = vmul.f32 %v2898_v2, %v1820_v3 }
 0x1f8   : > { %v1755_v4 = vmax.f32 %v1505_v0, %v1721_v1  ;;  %v1888_v10 = vadd.f32 %v2905_v7, %v1854_v6 }
 0x1fa   : > { %v1789_v5 = vadd.f32 %v2886_v53, %v1755_v4 }
 0x1fc   : > { %v1821_v8 = vmax.f32 %v1789_v5, 0.0 }
 0x1fe   : > { %v1855_v9 = vmul.f32 %v2898_v2, %v1821_v8 }
 0x200   : > { %v1889_v11 = vadd.f32 %v2905_v7, %v1855_v9 }
 0x202   : > { %v2564_v12 = vpack.c.bf16 %v1889_v11, %v1888_v10 }
 0x204   : > { %2580 = vst [vmem:[%s2913_s5 + $0x78] sm:$0xff] %v2564_v12  }
 0x205 PF: > { %p10_p9 = scmp.ge.s32.totalorder %s2669_s16, 4   ;;  %s3059_s12 = smov %s2626_s13 }
 0x206   : > { %s3060_s13 = smov %s2678_s19  ;;  %s3061_s14 = smov %s2669_s16 }
 0x207   :  { %12 = sbr.rel (!%p10_p9) target bundleno = 2 (0x2), region = 111 }

// kernel: _lambda_.6
= control target key start
LH: loop header
LB: loop body
LE: loop exit
PB: predicated region body
PF: predicated region fallthrough
CT: control target
= control target key end

     0   :  { %s3476_s1 = inlined_call_operand.vmem [shape: bf16[384,128], index: 1, kind: input, shape index: {}]   ;;  %s3477_s0 = inlined_call_operand.vmem [shape: bf16[4,128,384], index: 0, kind: input, shape index: {}]   ;;  %s3478_s2 = inlined_call_operand.vmem [shape: f32[8,128], index: 2, kind: input, shape index: {}]   ;;  %s3479_s3 = inlined_call_operand.vmem [shape: bf16[128,128], index: 3, kind: output, shape index: {}]  }
   0x1   :  { %v2360_v0 = vld [vmem:[%s3476_s1 + $0x38] sm:$0xff]  ;;  %v2377_v3 = vld [vmem:[%s3476_s1 + $0x30] sm:$0xff]  ;;  %v2396_v6 = vld [vmem:[%s3476_s1 + $0x28] sm:$0xff] }
   0x2   :  { %v2365_v1 = vld [vmem:[%s3476_s1 + $0x78] sm:$0xff]  ;;  %366 = vmatpush.bf16.msra.mxu0 %v2360_v0  ;;  %v2382_v4 = vld [vmem:[%s3476_s1 + $0x70] sm:$0xff]  ;;  %674 = vmatpush.bf16.msra.mxu3 %v2360_v0  ;;  %v2401_v7 = vld [vmem:[%s3476_s1 + $0x68] sm:$0xff] }
   0x3   :  { %v2370_v2 = vld [vmem:[%s3476_s1 + $0xb8] sm:$0xff]  ;;  %415 = vmatpush.bf16.msra.mxu1 %v2365_v1  ;;  %v2389_v5 = vld [vmem:[%s3476_s1 + $0xb0] sm:$0xff]  ;;  %v2408_v8 = vld [vmem:[%s3476_s1 + $0xa8] sm:$0xff] }
   0x4   :  { %464 = vmatpush.bf16.msra.mxu2 %v2370_v2  ;;  %v2415_v9 = vld [vmem:[%s3476_s1 + $0x20] sm:$0xff]  ;;  %v2434_v12 = vld [vmem:[%s3476_s1 + $0x18] sm:$0xff]  ;;  %v2453_v15 = vld [vmem:[%s3476_s1 + $0x10] sm:$0xff] }
   0x5   :  { %v2420_v10 = vld [vmem:[%s3476_s1 + $0x60] sm:$0xff]  ;;  %v2439_v13 = vld [vmem:[%s3476_s1 + $0x58] sm:$0xff]  ;;  %v2458_v16 = vld [vmem:[%s3476_s1 + $0x50] sm:$0xff] }
   0x6   :  { %367 = vmatpush.bf16.msra.mxu0 %v2377_v3  ;;  %675 = vmatpush.bf16.msra.mxu3 %v2377_v3  ;;  %v2427_v11 = vld [vmem:[%s3476_s1 + $0xa0] sm:$0xff]  ;;  %v2446_v14 = vld [vmem:[%s3476_s1 + $0x98] sm:$0xff]  ;;  %v2465_v17 = vld [vmem:[%s3476_s1 + $0x90] sm:$0xff] }
   0x7   :  { %416 = vmatpush.bf16.msra.mxu1 %v2382_v4  ;;  %v2472_v18 = vld [vmem:[%s3476_s1 + $0x8] sm:$0xff]  ;;  %v2489_v21 = vld [vmem:[%s3476_s1] sm:$0xff]  ;;  %v1595_v27 = vld [vmem:[%s3477_s0 + $0xc] sm:$0xf0] }
   0x8   :  { %465 = vmatpush.bf16.msra.mxu2 %v2389_v5  ;;  %v2477_v19 = vld [vmem:[%s3476_s1 + $0x48] sm:$0xff]  ;;  %v2494_v22 = vld [vmem:[%s3476_s1 + $0x40] sm:$0xff]  ;;  %v2193_v29 = vld [vmem:[%s3477_s0 + $0x10] sm:$0xf0] }
   0x9   :  { %v2484_v20 = vld [vmem:[%s3476_s1 + $0x88] sm:$0xff]  ;;  %v2499_v23 = vld [vmem:[%s3476_s1 + $0x80] sm:$0xff]  ;;  %v1605_v36 = vld [vmem:[%s3477_s0 + $0x18] sm:$0xf] }
   0xa   :  { %368 = vmatpush.bf16.msra.mxu0 %v2396_v6  ;;  %676 = vmatpush.bf16.msra.mxu3 %v2396_v6  ;;  %v1593_v24 = vld [vmem:[%s3477_s0] sm:$0xf]  ;;  %v2192_v25 = vld [vmem:[%s3477_s0 + $0x8] sm:$0xf0]  ;;  %v2191_v26 = vld [vmem:[%s3477_s0 + $0x4] sm:$0xf] }
   0xb   :  { %417 = vmatpush.bf16.msra.mxu1 %v2401_v7  ;;  %v1601_v28 = vld [vmem:[%s3477_s0 + $0x8] sm:$0xf]  ;;  %v1817_v30 = vld [vmem:[%s3477_s0 + $0xc0] sm:$0xf]  ;;  %v2216_v31 = vld [vmem:[%s3477_s0 + $0xc8] sm:$0xf0]  ;;  %v1594_v32 = vor.u32 %v2192_v25, %v1593_v24  ;;  %v1598_v33 = vor.u32 %v2191_v26, %v1595_v27 }
   0xc   :  { %466 = vmatpush.bf16.msra.mxu2 %v2408_v8  ;;  %v1602_v34 = vor.u32 %v2193_v29, %v1601_v28  ;;  %v1818_v35 = vor.u32 %v2216_v31, %v1817_v30  ;;  %v2195_v37 = vld [vmem:[%s3477_s0 + $0x20] sm:$0xf0]  ;;  %v2194_v38 = vld [vmem:[%s3477_s0 + $0x1c] sm:$0xf]  ;;  %v1607_v39 = vld [vmem:[%s3477_s0 + $0x24] sm:$0xf0] }
   0xd   :  { %v1613_v40 = vld [vmem:[%s3477_s0 + $0x20] sm:$0xf]  ;;  %v2196_v41 = vld [vmem:[%s3477_s0 + $0x28] sm:$0xf0]  ;;  %v1829_v42 = vld [vmem:[%s3477_s0 + $0xd8] sm:$0xf]  ;;  %v1606_v44 = vor.u32 %v2195_v37, %v1605_v36  ;;  %v1610_v45 = vor.u32 %v2194_v38, %v1607_v39 }
   0xe   :  { %369 = vmatpush.bf16.msra.mxu0 %v2415_v9  ;;  %677 = vmatpush.bf16.msra.mxu3 %v2415_v9  ;;  %v2219_v43 = vld [vmem:[%s3477_s0 + $0xe0] sm:$0xf0]  ;;  %v1614_v46 = vor.u32 %v2196_v41, %v1613_v40  ;;  %v1617_v48 = vld [vmem:[%s3477_s0 + $0x30] sm:$0xf]  ;;  %v2198_v49 = vld [vmem:[%s3477_s0 + $0x38] sm:$0xf0] }
   0xf   :  { %418 = vmatpush.bf16.msra.mxu1 %v2420_v10  ;;  %v1830_v47 = vor.u32 %v2219_v43, %v1829_v42  ;;  %v2197_v50 = vld [vmem:[%s3477_s0 + $0x34] sm:$0xf]  ;;  %v1619_v51 = vld [vmem:[%s3477_s0 + $0x3c] sm:$0xf0]  ;;  %v1625_v52 = vld [vmem:[%s3477_s0 + $0x38] sm:$0xf]  ;;  %v1618_v56 = vor.u32 %v2198_v49, %v1617_v48 }
  0x10   :  { %467 = vmatpush.bf16.msra.mxu2 %v2427_v11  ;;  %v2199_v53 = vld [vmem:[%s3477_s0 + $0x40] sm:$0xf0]  ;;  %v1841_v54 = vld [vmem:[%s3477_s0 + $0xf0] sm:$0xf]  ;;  %v2222_v55 = vld [vmem:[%s3477_s0 + $0xf8] sm:$0xf0]  ;;  %v1622_v57 = vor.u32 %v2197_v50, %v1619_v51 }
  0x11   :  { %v1626_v58 = vor.u32 %v2199_v53, %v1625_v52  ;;  %v1842_v59 = vor.u32 %v2222_v55, %v1841_v54  ;;  %v1629_v60 = vld [vmem:[%s3477_s0 + $0x48] sm:$0xf]  ;;  %v2201_v61 = vld [vmem:[%s3477_s0 + $0x50] sm:$0xf0]  ;;  %v2200_v62 = vld [vmem:[%s3477_s0 + $0x4c] sm:$0xf] }
  0x12   :  { %370 = vmatpush.bf16.msra.mxu0 %v2434_v12  ;;  %678 = vmatpush.bf16.msra.mxu3 %v2434_v12  ;;  %v1631_v63 = vld [vmem:[%s3477_s0 + $0x54] sm:$0xf0]  ;;  %v1661_v24 = vld [vmem:[%s3477_s0 + $0x80] sm:$0xf]  ;;  %v2208_v25 = vld [vmem:[%s3477_s0 + $0x88] sm:$0xf0] }
  0x13   :  { %419 = vmatpush.bf16.msra.mxu1 %v2439_v13  ;;  %v1877_v26 = vld [vmem:[%s3477_s0 + $0x138] sm:$0xf]  ;;  %v2231_v27 = vld [vmem:[%s3477_s0 + $0x140] sm:$0xf0]  ;;  %v1662_v30 = vor.u32 %v2208_v25, %v1661_v24  ;;  %v1889_v38 = vld [vmem:[%s3477_s0 + $0x150] sm:$0xf] }
  0x14   :  { %468 = vmatpush.bf16.msra.mxu2 %v2446_v14  ;;  %v1878_v31 = vor.u32 %v2231_v27, %v1877_v26  ;;  %v1673_v36 = vld [vmem:[%s3477_s0 + $0x98] sm:$0xf]  ;;  %v2211_v37 = vld [vmem:[%s3477_s0 + $0xa0] sm:$0xf0]  ;;  %v2234_v39 = vld [vmem:[%s3477_s0 + $0x158] sm:$0xf0] }
  0x15   :  { %v1674_v42 = vor.u32 %v2211_v37, %v1673_v36  ;;  %v1890_v43 = vor.u32 %v2234_v39, %v1889_v38  ;;  %v1685_v48 = vld [vmem:[%s3477_s0 + $0xb0] sm:$0xf]  ;;  %v2214_v49 = vld [vmem:[%s3477_s0 + $0xb8] sm:$0xf0]  ;;  %v1901_v50 = vld [vmem:[%s3477_s0 + $0x168] sm:$0xf] }
  0x16   :  { %371 = vmatpush.bf16.msra.mxu0 %v2453_v15  ;;  %679 = vmatpush.bf16.msra.mxu3 %v2453_v15  ;;  %v2237_v51 = vld [vmem:[%s3477_s0 + $0x170] sm:$0xf0]  ;;  %v1686_v54 = vor.u32 %v2214_v49, %v1685_v48  ;;  %v1843_v38 = vld [vmem:[%s3477_s0 + $0xfc] sm:$0xf0]  ;;  %v1849_v39 = vld [vmem:[%s3477_s0 + $0xf8] sm:$0xf] }
  0x17   :  { %420 = vmatpush.bf16.msra.mxu1 %v2458_v16  ;;  %v1902_v55 = vor.u32 %v2237_v51, %v1901_v50  ;;  %v2221_v37 = vld [vmem:[%s3477_s0 + $0xf4] sm:$0xf] }
  0x18   :  { %469 = vmatpush.bf16.msra.mxu2 %v2465_v17 }
  0x1a   :  { %372 = vmatpush.bf16.msra.mxu0 %v2472_v18  ;;  %680 = vmatpush.bf16.msra.mxu3 %v2472_v18 }
  0x1b   :  { %421 = vmatpush.bf16.msra.mxu1 %v2477_v19 }
  0x1c   :  { %470 = vmatpush.bf16.msra.mxu2 %v2484_v20 }
  0x1e   :  { %373 = vmatpush.bf16.msra.mxu0 %v2489_v21  ;;  %681 = vmatpush.bf16.msra.mxu3 %v2489_v21 }
  0x1f   :  { %422 = vmatpush.bf16.msra.mxu1 %v2494_v22 }
  0x20   :  { %471 = vmatpush.bf16.msra.mxu2 %v2499_v23 }
  0x21   :  { %374 = vmatmul.bf16.vlgmr.msra.gmra.mxu0 %v1594_v32  ;;  %682 = vmatmul.bf16.vlgmr.msra.gmra.mxu3 %v1818_v35  ;;  %v1665_v32 = vld [vmem:[%s3477_s0 + $0x90] sm:$0xf]  ;;  %v1667_v35 = vld [vmem:[%s3477_s0 + $0x9c] sm:$0xf0] }
  0x22   :  { %1047 = vmatpush.bf16.msrb.mxu3 %v2365_v1  ;;  %423 = vmatmul.bf16.vlgmr.msra.gmra.mxu1 %v1598_v33  ;;  %v2210_v33 = vld [vmem:[%s3477_s0 + $0x98] sm:$0xf0] }
  0x23   :  { %472 = vmatmul.bf16.vlgmr.msra.gmra.mxu2 %v1602_v34  ;;  %723 = vmatpush.bf16.msrb.mxu0 %v2365_v1  ;;  %v2209_v34 = vld [vmem:[%s3477_s0 + $0x94] sm:$0xf]  ;;  %v1666_v40 = vor.u32 %v2210_v33, %v1665_v32 }
  0x24   :  { %998 = vmatpush.bf16.msrb.mxu2 %v2360_v0  ;;  %772 = vmatpush.bf16.msrb.mxu1 %v2370_v2  ;;  %v1670_v41 = vor.u32 %v2209_v34, %v1667_v35 }
  0x26   :  { %1048 = vmatpush.bf16.msrb.mxu3 %v2382_v4 }
  0x27   :  { %724 = vmatpush.bf16.msrb.mxu0 %v2382_v4 }
  0x28   :  { %999 = vmatpush.bf16.msrb.mxu2 %v2377_v3  ;;  %773 = vmatpush.bf16.msrb.mxu1 %v2389_v5 }
  0x2a   :  { %1049 = vmatpush.bf16.msrb.mxu3 %v2401_v7 }
  0x2b   :  { %725 = vmatpush.bf16.msrb.mxu0 %v2401_v7 }
  0x2c   :  { %1000 = vmatpush.bf16.msrb.mxu2 %v2396_v6  ;;  %774 = vmatpush.bf16.msrb.mxu1 %v2408_v8 }
  0x2e   :  { %1050 = vmatpush.bf16.msrb.mxu3 %v2420_v10 }
  0x2f   :  { %726 = vmatpush.bf16.msrb.mxu0 %v2420_v10 }
  0x30   :  { %1001 = vmatpush.bf16.msrb.mxu2 %v2415_v9  ;;  %775 = vmatpush.bf16.msrb.mxu1 %v2427_v11 }
  0x31   :  { %379 = vmatmul.bf16.gmra.mxu0 %v1606_v44  ;;  %687 = vmatmul.bf16.gmra.mxu3 %v1830_v47  ;;  %v1677_v44 = vld [vmem:[%s3477_s0 + $0xa8] sm:$0xf]  ;;  %v1679_v47 = vld [vmem:[%s3477_s0 + $0xb4] sm:$0xf0] }
  0x32   :  { %1051 = vmatpush.bf16.msrb.mxu3 %v2439_v13  ;;  %428 = vmatmul.bf16.gmra.mxu1 %v1610_v45  ;;  %v2213_v45 = vld [vmem:[%s3477_s0 + $0xb0] sm:$0xf0] }
  0x33   :  { %477 = vmatmul.bf16.gmra.mxu2 %v1614_v46  ;;  %727 = vmatpush.bf16.msrb.mxu0 %v2439_v13  ;;  %v2212_v46 = vld [vmem:[%s3477_s0 + $0xac] sm:$0xf]  ;;  %v1678_v52 = vor.u32 %v2213_v45, %v1677_v44  ;;  %v1971_v44 = vld [vmem:[%s3477_s0 + $0x1bc] sm:$0xf0] }
  0x34   :  { %1002 = vmatpush.bf16.msrb.mxu2 %v2434_v12  ;;  %776 = vmatpush.bf16.msrb.mxu1 %v2446_v14  ;;  %v1682_v53 = vor.u32 %v2212_v46, %v1679_v47  ;;  %v1846_v47 = vor.u32 %v2221_v37, %v1843_v38 }
  0x36   :  { %1052 = vmatpush.bf16.msrb.mxu3 %v2458_v16 }
  0x37   :  { %728 = vmatpush.bf16.msrb.mxu0 %v2458_v16 }
  0x38   :  { %1003 = vmatpush.bf16.msrb.mxu2 %v2453_v15  ;;  %777 = vmatpush.bf16.msrb.mxu1 %v2465_v17 }
  0x3a   :  { %1053 = vmatpush.bf16.msrb.mxu3 %v2477_v19 }
  0x3b   :  { %729 = vmatpush.bf16.msrb.mxu0 %v2477_v19 }
  0x3c   :  { %1004 = vmatpush.bf16.msrb.mxu2 %v2472_v18  ;;  %778 = vmatpush.bf16.msrb.mxu1 %v2484_v20 }
  0x3e   :  { %1054 = vmatpush.bf16.msrb.mxu3 %v2494_v22 }
  0x3f   :  { %730 = vmatpush.bf16.msrb.mxu0 %v2494_v22 }
  0x40   :  { %1005 = vmatpush.bf16.msrb.mxu2 %v2489_v21  ;;  %779 = vmatpush.bf16.msrb.mxu1 %v2499_v23 }
  0x41   :  { %384 = vmatmul.bf16.gmra.mxu0 %v1618_v56  ;;  %692 = vmatmul.bf16.gmra.mxu3 %v1842_v59  ;;  %v2215_v56 = vld [vmem:[%s3477_s0 + $0xc4] sm:$0xf]  ;;  %v2217_v59 = vld [vmem:[%s3477_s0 + $0xd0] sm:$0xf0] }
  0x42   :  { %1420 = vmatpush.bf16.msra.mxu3 %v2370_v2  ;;  %433 = vmatmul.bf16.gmra.mxu1 %v1622_v57  ;;  %v1819_v57 = vld [vmem:[%s3477_s0 + $0xcc] sm:$0xf0] }
  0x43   :  { %1096 = vmatpush.bf16.msra.mxu0 %v2370_v2  ;;  %482 = vmatmul.bf16.gmra.mxu2 %v1626_v58  ;;  %v1853_v2 = vld [vmem:[%s3477_s0 + $0x108] sm:$0xf] }
  0x44   :  { %1371 = vmatpush.bf16.msra.mxu2 %v2365_v1  ;;  %1322 = vmatpush.bf16.msra.mxu1 %v2360_v0  ;;  %v1637_v0 = vld [vmem:[%s3477_s0 + $0x50] sm:$0xf]  ;;  %v2202_v1 = vld [vmem:[%s3477_s0 + $0x58] sm:$0xf0]  ;;  %v1825_v58 = vld [vmem:[%s3477_s0 + $0xc8] sm:$0xf] }
  0x46   :  { %1421 = vmatpush.bf16.msra.mxu3 %v2389_v5 }
  0x47   :  { %1097 = vmatpush.bf16.msra.mxu0 %v2389_v5  ;;  %v1634_v5 = vor.u32 %v2200_v62, %v1631_v63  ;;  %v2239_v62 = vld [vmem:[%s3477_s0 + $0x184] sm:$0xf]  ;;  %v1947_v63 = vld [vmem:[%s3477_s0 + $0x18c] sm:$0xf0] }
  0x48   :  { %1372 = vmatpush.bf16.msra.mxu2 %v2382_v4  ;;  %1323 = vmatpush.bf16.msra.mxu1 %v2377_v3  ;;  %v2225_v3 = vld [vmem:[%s3477_s0 + $0x110] sm:$0xf0]  ;;  %v1630_v4 = vor.u32 %v2201_v61, %v1629_v60  ;;  %v1945_v60 = vld [vmem:[%s3477_s0 + $0x180] sm:$0xf]  ;;  %v2240_v61 = vld [vmem:[%s3477_s0 + $0x188] sm:$0xf0] }
  0x4a   :  { %1422 = vmatpush.bf16.msra.mxu3 %v2408_v8 }
  0x4b   :  { %1098 = vmatpush.bf16.msra.mxu0 %v2408_v8  ;;  %v1641_v8 = vld [vmem:[%s3477_s0 + $0x60] sm:$0xf] }
  0x4c   :  { %1373 = vmatpush.bf16.msra.mxu2 %v2401_v7  ;;  %1324 = vmatpush.bf16.msra.mxu1 %v2396_v6  ;;  %v1638_v6 = vor.u32 %v2202_v1, %v1637_v0  ;;  %v1854_v7 = vor.u32 %v2225_v3, %v1853_v2  ;;  %v1822_v0 = vor.u32 %v2215_v56, %v1819_v57 }
  0x4d   :  { %v1826_v1 = vor.u32 %v2217_v59, %v1825_v58 }
  0x4e   :  { %1423 = vmatpush.bf16.msra.mxu3 %v2427_v11 }
  0x4f   :  { %1099 = vmatpush.bf16.msra.mxu0 %v2427_v11  ;;  %v1643_v11 = vld [vmem:[%s3477_s0 + $0x6c] sm:$0xf0] }
  0x50   :  { %1374 = vmatpush.bf16.msra.mxu2 %v2420_v10  ;;  %1325 = vmatpush.bf16.msra.mxu1 %v2415_v9  ;;  %v2204_v9 = vld [vmem:[%s3477_s0 + $0x68] sm:$0xf0]  ;;  %v2203_v10 = vld [vmem:[%s3477_s0 + $0x64] sm:$0xf] }
  0x51   :  { %389 = vmatmul.bf16.gmra.mxu0 %v1630_v4  ;;  %697 = vmatmul.bf16.gmra.mxu3 %v1854_v7  ;;  %v1946_v4 = vor.u32 %v2240_v61, %v1945_v60  ;;  %v2224_v61 = vld [vmem:[%s3477_s0 + $0x10c] sm:$0xf] }
  0x52   :  { %1424 = vmatpush.bf16.msra.mxu3 %v2446_v14  ;;  %438 = vmatmul.bf16.gmra.mxu1 %v1634_v5  ;;  %v1950_v5 = vor.u32 %v2239_v62, %v1947_v63  ;;  %v1855_v62 = vld [vmem:[%s3477_s0 + $0x114] sm:$0xf0]  ;;  %v1861_v63 = vld [vmem:[%s3477_s0 + $0x110] sm:$0xf] }
  0x53   :  { %1100 = vmatpush.bf16.msra.mxu0 %v2446_v14  ;;  %487 = vmatmul.bf16.gmra.mxu2 %v1638_v6  ;;  %v1865_v14 = vld [vmem:[%s3477_s0 + $0x120] sm:$0xf] }
  0x54   :  { %1375 = vmatpush.bf16.msra.mxu2 %v2439_v13  ;;  %1326 = vmatpush.bf16.msra.mxu1 %v2434_v12  ;;  %v1649_v12 = vld [vmem:[%s3477_s0 + $0x68] sm:$0xf]  ;;  %v2205_v13 = vld [vmem:[%s3477_s0 + $0x70] sm:$0xf0] }
  0x56   :  { %1425 = vmatpush.bf16.msra.mxu3 %v2465_v17 }
  0x57   :  { %1101 = vmatpush.bf16.msra.mxu0 %v2465_v17  ;;  %v1646_v17 = vor.u32 %v2203_v10, %v1643_v11 }
  0x58   :  { %1376 = vmatpush.bf16.msra.mxu2 %v2458_v16  ;;  %1327 = vmatpush.bf16.msra.mxu1 %v2453_v15  ;;  %v2228_v15 = vld [vmem:[%s3477_s0 + $0x128] sm:$0xf0]  ;;  %v1642_v16 = vor.u32 %v2204_v9, %v1641_v8 }
  0x5a   :  { %1426 = vmatpush.bf16.msra.mxu3 %v2484_v20 }
  0x5b   :  { %1102 = vmatpush.bf16.msra.mxu0 %v2484_v20  ;;  %v1653_v20 = vld [vmem:[%s3477_s0 + $0x78] sm:$0xf] }
  0x5c   :  { %1377 = vmatpush.bf16.msra.mxu2 %v2477_v19  ;;  %1328 = vmatpush.bf16.msra.mxu1 %v2472_v18  ;;  %v1650_v18 = vor.u32 %v2205_v13, %v1649_v12  ;;  %v1866_v19 = vor.u32 %v2228_v15, %v1865_v14  ;;  %v2218_v13 = vld [vmem:[%s3477_s0 + $0xdc] sm:$0xf]  ;;  %v1831_v14 = vld [vmem:[%s3477_s0 + $0xe4] sm:$0xf0]  ;;  %v1837_v15 = vld [vmem:[%s3477_s0 + $0xe0] sm:$0xf] }
  0x5e   :  { %1427 = vmatpush.bf16.msra.mxu3 %v2499_v23 }
  0x5f   :  { %1103 = vmatpush.bf16.msra.mxu0 %v2499_v23  ;;  %v1655_v23 = vld [vmem:[%s3477_s0 + $0x84] sm:$0xf0] }
  0x60   :  { %1378 = vmatpush.bf16.msra.mxu2 %v2494_v22  ;;  %1329 = vmatpush.bf16.msra.mxu1 %v2489_v21  ;;  %v2207_v22 = vld [vmem:[%s3477_s0 + $0x80] sm:$0xf0]  ;;  %v2206_v21 = vld [vmem:[%s3477_s0 + $0x7c] sm:$0xf] }
  0x61   :  { %394 = vmatmul.bf16.gmra.mxu0 %v1642_v16  ;;  %702 = vmatmul.bf16.gmra.mxu3 %v1866_v19  ;;  %v1654_v28 = vor.u32 %v2207_v22, %v1653_v20  ;;  %v1658_v29 = vor.u32 %v2206_v21, %v1655_v23  ;;  %v2220_v16 = vld [vmem:[%s3477_s0 + $0xe8] sm:$0xf0]  ;;  %v2242_v19 = vld [vmem:[%s3477_s0 + $0x19c] sm:$0xf]  ;;  %v1959_v20 = vld [vmem:[%s3477_s0 + $0x1a4] sm:$0xf0]  ;;  %v1834_v23 = vor.u32 %v2218_v13, %v1831_v14 }
  0x62   :  { %443 = vmatmul.bf16.gmra.mxu1 %v1646_v17  ;;  %v1957_v17 = vld [vmem:[%s3477_s0 + $0x198] sm:$0xf]  ;;  %v1838_v24 = vor.u32 %v2220_v16, %v1837_v15 }
  0x63   :  { %492 = vmatmul.bf16.gmra.mxu2 %v1650_v18  ;;  %v2243_v18 = vld [vmem:[%s3477_s0 + $0x1a0] sm:$0xf0] }
  0x71   :  { %399 = vmatmul.bf16.gmra.mxu0 %v1654_v28  ;;  %707 = vmatmul.bf16.gmra.mxu3 %v1878_v31  ;;  %v1958_v28 = vor.u32 %v2243_v18, %v1957_v17 }
  0x72   :  { %448 = vmatmul.bf16.gmra.mxu1 %v1658_v29  ;;  %v1962_v29 = vor.u32 %v2242_v19, %v1959_v20 }
  0x73   :  { %497 = vmatmul.bf16.gmra.mxu2 %v1662_v30 }
  0x81   :  { %404 = vmatmul.bf16.gmra.mxu0 %v1666_v40  ;;  %712 = vmatmul.bf16.gmra.mxu3 %v1890_v43  ;;  %v2223_v40 = vld [vmem:[%s3477_s0 + $0x100] sm:$0xf0]  ;;  %v2245_v43 = vld [vmem:[%s3477_s0 + $0x1b4] sm:$0xf] }
  0x82   :  { %453 = vmatmul.bf16.gmra.mxu1 %v1670_v41  ;;  %v1969_v41 = vld [vmem:[%s3477_s0 + $0x1b0] sm:$0xf]  ;;  %v1850_v48 = vor.u32 %v2223_v40, %v1849_v39 }
  0x83   :  { %502 = vmatmul.bf16.gmra.mxu2 %v1674_v42  ;;  %v2246_v42 = vld [vmem:[%s3477_s0 + $0x1b8] sm:$0xf0] }
  0x91   :  { %409 = vmatmul.bf16.gmra.mxu0 %v1678_v52  ;;  %717 = vmatmul.bf16.gmra.mxu3 %v1902_v55  ;;  %v1970_v52 = vor.u32 %v2246_v42, %v1969_v41 }
  0x92   :  { %458 = vmatmul.bf16.gmra.mxu1 %v1682_v53  ;;  %v1974_v53 = vor.u32 %v2245_v43, %v1971_v44 }
  0x93   :  { %507 = vmatmul.bf16.gmra.mxu2 %v1686_v54 }
  0x9e   :  { %v375_v2 = vpop.f32.mrf.mxu0 }
  0x9f   :  { %v424_v3 = vpop.f32.mrf.mxu1 }
  0xa0   :  { %v425_v6 = vadd.f32 %v424_v3, %v375_v2  ;;  %v2249_v2 = vld [vmem:[%s3477_s0 + $0x1d0] sm:$0xf0]  ;;  %v2248_v3 = vld [vmem:[%s3477_s0 + $0x1cc] sm:$0xf] }
  0xa1   :  { %731 = vmatmul.bf16.vlgmr.msrb.gmra.mxu0 %v1822_v0  ;;  %1055 = vmatmul.bf16.vlgmr.msrb.gmra.mxu3 %v1950_v5  ;;  %v2226_v0 = vld [vmem:[%s3477_s0 + $0x118] sm:$0xf0] }
  0xa2   :  { %780 = vmatmul.bf16.vlgmr.msrb.gmra.mxu1 %v1826_v1  ;;  %v1981_v1 = vld [vmem:[%s3477_s0 + $0x1c8] sm:$0xf] }
  0xa3   :  { %1006 = vmatmul.bf16.vlgmr.msrb.gmra.mxu2 %v1946_v4  ;;  %v1983_v4 = vld [vmem:[%s3477_s0 + $0x1d4] sm:$0xf0]  ;;  %v1982_v14 = vor.u32 %v2249_v2, %v1981_v1 }
  0xa4   :  { %v2789_v8 = vpop.f32.mrf.mxu3  ;;  %v1986_v15 = vor.u32 %v2248_v3, %v1983_v4 }
  0xa6   :  { %v473_v7 = vpop.f32.mrf.mxu2  ;;  %v377_v10 = vpop.f32.mrf.mxu0 }
  0xa7   :  { %v2791_v9 = vadd.f32 %v473_v7, %v425_v6  ;;  %v426_v11 = vpop.f32.mrf.mxu1  ;;  %v1858_v7 = vor.u32 %v2224_v61, %v1855_v62  ;;  %v2254_v61 = vld [vmem:[%s3477_s0 + $0x1fc] sm:$0xf]  ;;  %v2007_v62 = vld [vmem:[%s3477_s0 + $0x204] sm:$0xf0] }
  0xa8   :  { %v427_v12 = vadd.f32 %v426_v11, %v377_v10  ;;  %v1862_v10 = vor.u32 %v2226_v0, %v1861_v63 }
  0xac   :  { %v2817_v21 = vpop.f32.mrf.mxu3 }
  0xae   :  { %v475_v22 = vpop.f32.mrf.mxu2  ;;  %v380_v26 = vpop.f32.mrf.mxu0 }
  0xaf   :  { %v2819_v25 = vadd.f32 %v475_v22, %v427_v12  ;;  %v429_v27 = vpop.f32.mrf.mxu1 }
  0xb0   :  { %v430_v30 = vadd.f32 %v429_v27, %v380_v26  ;;  %v1867_v26 = vld [vmem:[%s3477_s0 + $0x12c] sm:$0xf0]  ;;  %v1873_v27 = vld [vmem:[%s3477_s0 + $0x128] sm:$0xf] }
  0xb1   :  { %736 = vmatmul.bf16.gmra.mxu0 %v1834_v23  ;;  %1060 = vmatmul.bf16.gmra.mxu3 %v1962_v29  ;;  %v1993_v29 = vld [vmem:[%s3477_s0 + $0x1e0] sm:$0xf] }
  0xb2   :  { %785 = vmatmul.bf16.gmra.mxu1 %v1838_v24  ;;  %v2227_v24 = vld [vmem:[%s3477_s0 + $0x124] sm:$0xf] }
  0xb3   :  { %1011 = vmatmul.bf16.gmra.mxu2 %v1958_v28  ;;  %v2229_v28 = vld [vmem:[%s3477_s0 + $0x130] sm:$0xf0]  ;;  %v1870_v37 = vor.u32 %v2227_v24, %v1867_v26  ;;  %v1897_v24 = vld [vmem:[%s3477_s0 + $0x158] sm:$0xf]  ;;  %v2235_v26 = vld [vmem:[%s3477_s0 + $0x160] sm:$0xf0] }
  0xb4   :  { %v2821_v32 = vpop.f32.mrf.mxu3  ;;  %v1874_v38 = vor.u32 %v2229_v28, %v1873_v27  ;;  %v2017_v27 = vld [vmem:[%s3477_s0 + $0x210] sm:$0xf]  ;;  %v2258_v28 = vld [vmem:[%s3477_s0 + $0x218] sm:$0xf0] }
  0xb6   :  { %v478_v31 = vpop.f32.mrf.mxu2  ;;  %v382_v34 = vpop.f32.mrf.mxu0 }
  0xb7   :  { %v2823_v33 = vadd.f32 %v478_v31, %v430_v30  ;;  %v431_v35 = vpop.f32.mrf.mxu1  ;;  %v2252_v30 = vld [vmem:[%s3477_s0 + $0x1e8] sm:$0xf0]  ;;  %v2251_v31 = vld [vmem:[%s3477_s0 + $0x1e4] sm:$0xf] }
  0xb8   :  { %v432_v36 = vadd.f32 %v431_v35, %v382_v34  ;;  %v1995_v34 = vld [vmem:[%s3477_s0 + $0x1ec] sm:$0xf0]  ;;  %v1994_v42 = vor.u32 %v2252_v30, %v1993_v29  ;;  %v2257_v29 = vld [vmem:[%s3477_s0 + $0x214] sm:$0xf]  ;;  %v2019_v30 = vld [vmem:[%s3477_s0 + $0x21c] sm:$0xf0] }
  0xb9   :  { %v1998_v43 = vor.u32 %v2251_v31, %v1995_v34 }
  0xbc   :  { %v2849_v46 = vpop.f32.mrf.mxu3 }
  0xbe   :  { %v480_v45 = vpop.f32.mrf.mxu2  ;;  %v385_v50 = vpop.f32.mrf.mxu0 }
  0xbf   :  { %v2851_v49 = vadd.f32 %v480_v45, %v432_v36  ;;  %v434_v51 = vpop.f32.mrf.mxu1 }
  0xc0   :  { %v435_v54 = vadd.f32 %v434_v51, %v385_v50 }
  0xc1   :  { %741 = vmatmul.bf16.gmra.mxu0 %v1846_v47  ;;  %1065 = vmatmul.bf16.gmra.mxu3 %v1974_v53  ;;  %v2230_v53 = vld [vmem:[%s3477_s0 + $0x13c] sm:$0xf] }
  0xc2   :  { %790 = vmatmul.bf16.gmra.mxu1 %v1850_v48 }
  0xc3   :  { %1016 = vmatmul.bf16.gmra.mxu2 %v1970_v52 }
  0xc4   :  { %v2853_v56 = vpop.f32.mrf.mxu3 }
  0xc6   :  { %v483_v55 = vpop.f32.mrf.mxu2  ;;  %v387_v58 = vpop.f32.mrf.mxu0 }
  0xc7   :  { %v2855_v57 = vadd.f32 %v483_v55, %v435_v54  ;;  %v436_v59 = vpop.f32.mrf.mxu1  ;;  %v1879_v54 = vld [vmem:[%s3477_s0 + $0x144] sm:$0xf0]  ;;  %v1885_v55 = vld [vmem:[%s3477_s0 + $0x140] sm:$0xf] }
  0xc8   :  { %v437_v60 = vadd.f32 %v436_v59, %v387_v58  ;;  %v2232_v58 = vld [vmem:[%s3477_s0 + $0x148] sm:$0xf0]  ;;  %v2005_v59 = vld [vmem:[%s3477_s0 + $0x1f8] sm:$0xf]  ;;  %v1882_v1 = vor.u32 %v2230_v53, %v1879_v54 }
  0xc9   :  { %v1886_v2 = vor.u32 %v2232_v58, %v1885_v55  ;;  %v2236_v55 = vld [vmem:[%s3477_s0 + $0x16c] sm:$0xf]  ;;  %v1903_v58 = vld [vmem:[%s3477_s0 + $0x174] sm:$0xf0] }
  0xcc   :  { %v2881_v6 = vpop.f32.mrf.mxu3 }
  0xce   :  { %v485_v5 = vpop.f32.mrf.mxu2  ;;  %v390_v12 = vpop.f32.mrf.mxu0 }
  0xcf   :  { %v2883_v11 = vadd.f32 %v485_v5, %v437_v60  ;;  %v439_v13 = vpop.f32.mrf.mxu1  ;;  %v2255_v60 = vld [vmem:[%s3477_s0 + $0x200] sm:$0xf0] }
  0xd0   :  { %v440_v16 = vadd.f32 %v439_v13, %v390_v12 }
  0xd1   :  { %746 = vmatmul.bf16.gmra.mxu0 %v1858_v7  ;;  %1070 = vmatmul.bf16.gmra.mxu3 %v1986_v15  ;;  %v2006_v7 = vor.u32 %v2255_v60, %v2005_v59  ;;  %v1909_v59 = vld [vmem:[%s3477_s0 + $0x170] sm:$0xf]  ;;  %v2238_v60 = vld [vmem:[%s3477_s0 + $0x178] sm:$0xf0] }
  0xd2   :  { %795 = vmatmul.bf16.gmra.mxu1 %v1862_v10  ;;  %v2010_v10 = vor.u32 %v2254_v61, %v2007_v62  ;;  %v2029_v61 = vld [vmem:[%s3477_s0 + $0x228] sm:$0xf]  ;;  %v2261_v62 = vld [vmem:[%s3477_s0 + $0x230] sm:$0xf0] }
  0xd3   :  { %1021 = vmatmul.bf16.gmra.mxu2 %v1982_v14 }
  0xd4   :  { %v2885_v18 = vpop.f32.mrf.mxu3 }
  0xd6   :  { %v488_v17 = vpop.f32.mrf.mxu2  ;;  %v392_v20 = vpop.f32.mrf.mxu0 }
  0xd7   :  { %v2887_v19 = vadd.f32 %v488_v17, %v440_v16  ;;  %v441_v22 = vpop.f32.mrf.mxu1 }
  0xd8   :  { %v442_v23 = vadd.f32 %v441_v22, %v392_v20  ;;  %v2233_v22 = vld [vmem:[%s3477_s0 + $0x154] sm:$0xf] }
  0xdc   :  { %v2913_v36 = vpop.f32.mrf.mxu3 }
  0xde   :  { %v490_v35 = vpop.f32.mrf.mxu2  ;;  %v395_v40 = vpop.f32.mrf.mxu0 }
  0xdf   :  { %v2915_v39 = vadd.f32 %v490_v35, %v442_v23  ;;  %v444_v41 = vpop.f32.mrf.mxu1  ;;  %v1891_v23 = vld [vmem:[%s3477_s0 + $0x15c] sm:$0xf0] }
  0xe0   :  { %v445_v44 = vadd.f32 %v444_v41, %v395_v40  ;;  %v1894_v35 = vor.u32 %v2233_v22, %v1891_v23 }
  0xe1   :  { %751 = vmatmul.bf16.gmra.mxu0 %v1870_v37  ;;  %1075 = vmatmul.bf16.gmra.mxu3 %v1998_v43  ;;  %v1898_v37 = vor.u32 %v2235_v26, %v1897_v24  ;;  %v2022_v43 = vor.u32 %v2257_v29, %v2019_v30  ;;  %v1953_v29 = vld [vmem:[%s3477_s0 + $0x188] sm:$0xf]  ;;  %v2241_v30 = vld [vmem:[%s3477_s0 + $0x190] sm:$0xf0] }
  0xe2   :  { %800 = vmatmul.bf16.gmra.mxu1 %v1874_v38 }
  0xe3   :  { %1026 = vmatmul.bf16.gmra.mxu2 %v1994_v42  ;;  %v2018_v42 = vor.u32 %v2258_v28, %v2017_v27 }
  0xe4   :  { %v2917_v47 = vpop.f32.mrf.mxu3 }
  0xe6   :  { %v493_v45 = vpop.f32.mrf.mxu2  ;;  %v397_v50 = vpop.f32.mrf.mxu0 }
  0xe7   :  { %v2919_v48 = vadd.f32 %v493_v45, %v445_v44  ;;  %v446_v51 = vpop.f32.mrf.mxu1 }
  0xe8   :  { %v447_v52 = vadd.f32 %v446_v51, %v397_v50 }
  0xec   :  { %v2945_v0 = vpop.f32.mrf.mxu3 }
  0xee   :  { %v495_v63 = vpop.f32.mrf.mxu2  ;;  %v400_v4 = vpop.f32.mrf.mxu0 }
  0xef   :  { %v2947_v3 = vadd.f32 %v495_v63, %v447_v52  ;;  %v449_v5 = vpop.f32.mrf.mxu1  ;;  %v2260_v63 = vld [vmem:[%s3477_s0 + $0x22c] sm:$0xf] }
  0xf0   :  { %v450_v12 = vadd.f32 %v449_v5, %v400_v4  ;;  %v1906_v5 = vor.u32 %v2236_v55, %v1903_v58 }
  0xf1   :  { %756 = vmatmul.bf16.gmra.mxu0 %v1882_v1  ;;  %1080 = vmatmul.bf16.gmra.mxu3 %v2010_v10  ;;  %v2031_v1 = vld [vmem:[%s3477_s0 + $0x234] sm:$0xf0] }
  0xf2   :  { %805 = vmatmul.bf16.gmra.mxu1 %v1886_v2 }
  0xf3   :  { %1031 = vmatmul.bf16.gmra.mxu2 %v2006_v7  ;;  %v1910_v7 = vor.u32 %v2238_v60, %v1909_v59 }
  0xf4   :  { %v2949_v14 = vpop.f32.mrf.mxu3 }
  0xf6   :  { %v498_v13 = vpop.f32.mrf.mxu2  ;;  %v402_v16 = vpop.f32.mrf.mxu0 }
  0xf7   :  { %v2951_v15 = vadd.f32 %v498_v13, %v450_v12  ;;  %v451_v17 = vpop.f32.mrf.mxu1 }
  0xf8   :  { %v452_v20 = vadd.f32 %v451_v17, %v402_v16  ;;  %v2030_v16 = vor.u32 %v2261_v62, %v2029_v61  ;;  %v2034_v17 = vor.u32 %v2260_v63, %v2031_v1 }
  0xfc   :  { %v2977_v34 = vpop.f32.mrf.mxu3 }
  0xfe   :  { %v500_v31 = vpop.f32.mrf.mxu2  ;;  %v405_v40 = vpop.f32.mrf.mxu0 }
  0xff   :  { %v2979_v38 = vadd.f32 %v500_v31, %v452_v20  ;;  %v454_v41 = vpop.f32.mrf.mxu1  ;;  %v2073_v31 = vld [vmem:[%s3477_s0 + $0x240] sm:$0xf] }
 0x100   :  { %v455_v44 = vadd.f32 %v454_v41, %v405_v40  ;;  %v2075_v40 = vld [vmem:[%s3477_s0 + $0x24c] sm:$0xf0]  ;;  %v2081_v41 = vld [vmem:[%s3477_s0 + $0x248] sm:$0xf] }
 0x101   :  { %761 = vmatmul.bf16.gmra.mxu0 %v1894_v35  ;;  %1085 = vmatmul.bf16.gmra.mxu3 %v2022_v43  ;;  %v2264_v35 = vld [vmem:[%s3477_s0 + $0x248] sm:$0xf0] }
 0x102   :  { %810 = vmatmul.bf16.gmra.mxu1 %v1898_v37  ;;  %v2263_v37 = vld [vmem:[%s3477_s0 + $0x244] sm:$0xf] }
 0x103   :  { %1036 = vmatmul.bf16.gmra.mxu2 %v2018_v42  ;;  %v2265_v42 = vld [vmem:[%s3477_s0 + $0x250] sm:$0xf0]  ;;  %v2078_v58 = vor.u32 %v2263_v37, %v2075_v40 }
 0x104   :  { %v2981_v50 = vpop.f32.mrf.mxu3  ;;  %v2082_v59 = vor.u32 %v2265_v42, %v2081_v41 }
 0x106   :  { %v503_v45 = vpop.f32.mrf.mxu2  ;;  %v407_v52 = vpop.f32.mrf.mxu0 }
 0x107   :  { %v2983_v51 = vadd.f32 %v503_v45, %v455_v44  ;;  %v456_v53 = vpop.f32.mrf.mxu1  ;;  %v1954_v45 = vor.u32 %v2241_v30, %v1953_v29 }
 0x108   :  { %v457_v54 = vadd.f32 %v456_v53, %v407_v52  ;;  %v2074_v52 = vor.u32 %v2264_v35, %v2073_v31 }
 0x10c   :  { %v3009_v4 = vpop.f32.mrf.mxu3 }
 0x10e   :  { %v505_v2 = vpop.f32.mrf.mxu2  ;;  %v410_v12 = vpop.f32.mrf.mxu0 }
 0x10f   :  { %v3011_v10 = vadd.f32 %v505_v2, %v457_v54  ;;  %v459_v13 = vpop.f32.mrf.mxu1 }
 0x110   :  { %v460_v20 = vadd.f32 %v459_v13, %v410_v12 }
 0x111   :  { %3482 = vst [vmem:[#allocation2_spill] sm:$0xff] %v3011_v10  ;;  %766 = vmatmul.bf16.gmra.mxu0 %v1906_v5  ;;  %1090 = vmatmul.bf16.gmra.mxu3 %v2034_v17  ;;  %v2085_v17 = vld [vmem:[%s3477_s0 + $0x258] sm:$0xf] }
 0x112   :  { %815 = vmatmul.bf16.gmra.mxu1 %v1910_v7 }
 0x113   :  { %1041 = vmatmul.bf16.gmra.mxu2 %v2030_v16  ;;  %v2244_v16 = vld [vmem:[%s3477_s0 + $0x1a8] sm:$0xf0] }
 0x114   :  { %v3013_v23 = vpop.f32.mrf.mxu3 }
 0x116   :  { %v508_v22 = vpop.f32.mrf.mxu2  ;;  %v412_v26 = vpop.f32.mrf.mxu0 }
 0x117   :  { %v3015_v24 = vadd.f32 %v508_v22, %v460_v20  ;;  %v461_v27 = vpop.f32.mrf.mxu1  ;;  %v2267_v20 = vld [vmem:[%s3477_s0 + $0x260] sm:$0xf0] }
 0x118   :  { %v462_v28 = vadd.f32 %v461_v27, %v412_v26  ;;  %v2087_v26 = vld [vmem:[%s3477_s0 + $0x264] sm:$0xf0]  ;;  %v2093_v27 = vld [vmem:[%s3477_s0 + $0x260] sm:$0xf]  ;;  %v2086_v35 = vor.u32 %v2267_v20, %v2085_v17  ;;  %v2105_v20 = vld [vmem:[%s3477_s0 + $0x278] sm:$0xf] }
 0x119   :  { %v2099_v17 = vld [vmem:[%s3477_s0 + $0x27c] sm:$0xf0] }
 0x11c   :  { %v3041_v44 = vpop.f32.mrf.mxu3 }
 0x11e   :  { %v510_v43 = vpop.f32.mrf.mxu2  ;;  %v732_v54 = vpop.f32.mrf.mxu0 }
 0x11f   :  { %v3043_v53 = vadd.f32 %v510_v43, %v462_v28  ;;  %v781_v55 = vpop.f32.mrf.mxu1  ;;  %v733_v60 = vadd.f32 %v732_v54, %v2789_v8  ;;  %v1965_v8 = vld [vmem:[%s3477_s0 + $0x1a0] sm:$0xf]  ;;  %v2268_v28 = vld [vmem:[%s3477_s0 + $0x268] sm:$0xf0] }
 0x120   :  { %v1966_v31 = vor.u32 %v2244_v16, %v1965_v8  ;;  %v2094_v43 = vor.u32 %v2268_v28, %v2093_v27  ;;  %v2270_v8 = vld [vmem:[%s3477_s0 + $0x278] sm:$0xf0] }
 0x121   :  { %v3046_v61 = vadd.f32 %v781_v55, %v733_v60  ;;  %1104 = vmatmul.bf16.vlgmr.msra.gmra.mxu0 %v1954_v45  ;;  %1428 = vmatmul.bf16.vlgmr.msra.gmra.mxu3 %v2082_v59 }
 0x122   :  { %1330 = vmatmul.bf16.vlgmr.msra.gmra.mxu1 %v2074_v52 }
 0x123   :  { %1379 = vmatmul.bf16.vlgmr.msra.gmra.mxu2 %v2078_v58 }
 0x124   :  { %v1056_v1 = vpop.f32.mrf.mxu3 }
 0x126   :  { %v1007_v63 = vpop.f32.mrf.mxu2  ;;  %v734_v5 = vpop.f32.mrf.mxu0 }
 0x127   :  { %v3050_v2 = vadd.f32 %v1056_v1, %v1007_v63  ;;  %v783_v7 = vpop.f32.mrf.mxu1  ;;  %v735_v12 = vadd.f32 %v734_v5, %v2817_v21  ;;  %v2266_v21 = vld [vmem:[%s3477_s0 + $0x25c] sm:$0xf] }
 0x128   :  { %v2090_v42 = vor.u32 %v2266_v21, %v2087_v26  ;;  %v2271_v21 = vld [vmem:[%s3477_s0 + $0x280] sm:$0xf0] }
 0x129   :  { %v3053_v13 = vadd.f32 %v783_v7, %v735_v12  ;;  %v2247_v7 = vld [vmem:[%s3477_s0 + $0x1c0] sm:$0xf0]  ;;  %v2097_v12 = vld [vmem:[%s3477_s0 + $0x270] sm:$0xf] }
 0x12c   :  { %v1058_v30 = vpop.f32.mrf.mxu3 }
 0x12e   :  { %v1009_v29 = vpop.f32.mrf.mxu2  ;;  %v737_v40 = vpop.f32.mrf.mxu0 }
 0x12f   :  { %v3081_v37 = vadd.f32 %v1058_v30, %v1009_v29  ;;  %v786_v41 = vpop.f32.mrf.mxu1  ;;  %v738_v45 = vadd.f32 %v737_v40, %v2821_v32  ;;  %v1977_v32 = vld [vmem:[%s3477_s0 + $0x1b8] sm:$0xf]  ;;  %v2098_v29 = vor.u32 %v2270_v8, %v2097_v12  ;;  %v2250_v12 = vld [vmem:[%s3477_s0 + $0x1d8] sm:$0xf0]  ;;  %v2109_v8 = vld [vmem:[%s3477_s0 + $0x288] sm:$0xf] }
 0x130   :  { %v1978_v28 = vor.u32 %v2247_v7, %v1977_v32 }
 0x131   :  { %v3084_v52 = vadd.f32 %v786_v41, %v738_v45  ;;  %1109 = vmatmul.bf16.gmra.mxu0 %v1966_v31  ;;  %1433 = vmatmul.bf16.gmra.mxu3 %v2094_v43  ;;  %v2106_v41 = vor.u32 %v2271_v21, %v2105_v20  ;;  %v2111_v20 = vld [vmem:[%s3477_s0 + $0x294] sm:$0xf0]  ;;  %v2117_v21 = vld [vmem:[%s3477_s0 + $0x290] sm:$0xf] }
 0x132   :  { %1335 = vmatmul.bf16.gmra.mxu1 %v2086_v35 }
 0x133   :  { %1384 = vmatmul.bf16.gmra.mxu2 %v2090_v42 }
 0x134   :  { %v1061_v58 = vpop.f32.mrf.mxu3 }
 0x136   :  { %v1012_v55 = vpop.f32.mrf.mxu2  ;;  %v739_v60 = vpop.f32.mrf.mxu0 }
 0x137   :  { %v3088_v59 = vadd.f32 %v1061_v58, %v1012_v55  ;;  %v788_v63 = vpop.f32.mrf.mxu1  ;;  %v740_v1 = vadd.f32 %v739_v60, %v2849_v46  ;;  %v2269_v46 = vld [vmem:[%s3477_s0 + $0x274] sm:$0xf] }
 0x138   :  { %v2102_v40 = vor.u32 %v2269_v46, %v2099_v17  ;;  %v2273_v46 = vld [vmem:[%s3477_s0 + $0x290] sm:$0xf0] }
 0x139   :  { %v3091_v5 = vadd.f32 %v788_v63, %v740_v1 }
 0x13c   :  { %v1063_v27 = vpop.f32.mrf.mxu3 }
 0x13e   :  { %v1014_v26 = vpop.f32.mrf.mxu2  ;;  %v742_v31 = vpop.f32.mrf.mxu0 }
 0x13f   :  { %v3119_v30 = vadd.f32 %v1063_v27, %v1014_v26  ;;  %v791_v35 = vpop.f32.mrf.mxu1  ;;  %v743_v42 = vadd.f32 %v742_v31, %v2853_v56  ;;  %v1989_v56 = vld [vmem:[%s3477_s0 + $0x1d0] sm:$0xf]  ;;  %v2274_v26 = vld [vmem:[%s3477_s0 + $0x298] sm:$0xf0]  ;;  %v2110_v31 = vor.u32 %v2273_v46, %v2109_v8 }
 0x141   :  { %v3122_v43 = vadd.f32 %v791_v35, %v743_v42  ;;  %1114 = vmatmul.bf16.gmra.mxu0 %v1978_v28  ;;  %1438 = vmatmul.bf16.gmra.mxu3 %v2106_v41 }
 0x142   :  { %1340 = vmatmul.bf16.gmra.mxu1 %v2098_v29  ;;  %v1990_v29 = vor.u32 %v2250_v12, %v1989_v56 }
 0x143   :  { %1389 = vmatmul.bf16.gmra.mxu2 %v2102_v40 }
 0x144   :  { %v1066_v58 = vpop.f32.mrf.mxu3 }
 0x146   :  { %v1017_v55 = vpop.f32.mrf.mxu2  ;;  %v744_v63 = vpop.f32.mrf.mxu0 }
 0x147   :  { %v3126_v60 = vadd.f32 %v1066_v58, %v1017_v55  ;;  %v793_v1 = vpop.f32.mrf.mxu1  ;;  %v745_v32 = vadd.f32 %v744_v63, %v2881_v6  ;;  %v2272_v6 = vld [vmem:[%s3477_s0 + $0x28c] sm:$0xf]  ;;  %v2118_v55 = vor.u32 %v2274_v26, %v2117_v21  ;;  %v2253_v21 = vld [vmem:[%s3477_s0 + $0x1f0] sm:$0xf0]  ;;  %v2121_v26 = vld [vmem:[%s3477_s0 + $0x2a0] sm:$0xf] }
 0x148   :  { %v2114_v42 = vor.u32 %v2272_v6, %v2111_v20 }
 0x149   :  { %v3129_v7 = vadd.f32 %v793_v1, %v745_v32 }
 0x14c   :  { %v1068_v28 = vpop.f32.mrf.mxu3 }
 0x14e   :  { %v1019_v27 = vpop.f32.mrf.mxu2  ;;  %v747_v40 = vpop.f32.mrf.mxu0 }
 0x14f   :  { %v3157_v35 = vadd.f32 %v1068_v28, %v1019_v27  ;;  %v796_v41 = vpop.f32.mrf.mxu1  ;;  %v748_v58 = vadd.f32 %v747_v40, %v2885_v18  ;;  %v2001_v18 = vld [vmem:[%s3477_s0 + $0x1e8] sm:$0xf]  ;;  %v2276_v27 = vld [vmem:[%s3477_s0 + $0x2a8] sm:$0xf0]  ;;  %v2277_v40 = vld [vmem:[%s3477_s0 + $0x2b0] sm:$0xf0] }
 0x151   :  { %v3160_v63 = vadd.f32 %v796_v41, %v748_v58  ;;  %1119 = vmatmul.bf16.gmra.mxu0 %v1990_v29  ;;  %1443 = vmatmul.bf16.gmra.mxu3 %v2118_v55  ;;  %v2123_v29 = vld [vmem:[%s3477_s0 + $0x2ac] sm:$0xf0]  ;;  %v2002_v55 = vor.u32 %v2253_v21, %v2001_v18  ;;  %v2122_v58 = vor.u32 %v2276_v27, %v2121_v26 }
 0x152   :  { %1345 = vmatmul.bf16.gmra.mxu1 %v2110_v31  ;;  %v2129_v31 = vld [vmem:[%s3477_s0 + $0x2a8] sm:$0xf] }
 0x153   :  { %1394 = vmatmul.bf16.gmra.mxu2 %v2114_v42 }
 0x154   :  { %v1071_v56 = vpop.f32.mrf.mxu3 }
 0x156   :  { %v1022_v32 = vpop.f32.mrf.mxu2  ;;  %v749_v8 = vpop.f32.mrf.mxu0 }
 0x157   :  { %v3164_v12 = vadd.f32 %v1071_v56, %v1022_v32  ;;  %v798_v46 = vpop.f32.mrf.mxu1  ;;  %v750_v6 = vadd.f32 %v749_v8, %v2913_v36  ;;  %v2275_v36 = vld [vmem:[%s3477_s0 + $0x2a4] sm:$0xf] }
 0x159   :  { %v3167_v20 = vadd.f32 %v798_v46, %v750_v6  ;;  %v2126_v46 = vor.u32 %v2275_v36, %v2123_v29  ;;  %v2130_v6 = vor.u32 %v2277_v40, %v2129_v31  ;;  %v2133_v31 = vld [vmem:[%s3477_s0 + $0x2b8] sm:$0xf] }
 0x15c   :  { %v1073_v42 = vpop.f32.mrf.mxu3 }
 0x15e   :  { %v1024_v41 = vpop.f32.mrf.mxu2  ;;  %v752_v56 = vpop.f32.mrf.mxu0 }
 0x15f   :  { %v3195_v32 = vadd.f32 %v1073_v42, %v1024_v41  ;;  %v801_v8 = vpop.f32.mrf.mxu1  ;;  %v753_v28 = vadd.f32 %v752_v56, %v2917_v47  ;;  %v2013_v47 = vld [vmem:[%s3477_s0 + $0x200] sm:$0xf]  ;;  %v2135_v41 = vld [vmem:[%s3477_s0 + $0x2c4] sm:$0xf0] }
 0x160   :  { %v2141_v42 = vld [vmem:[%s3477_s0 + $0x2c0] sm:$0xf] }
 0x161   :  { %v3198_v1 = vadd.f32 %v801_v8, %v753_v28  ;;  %1124 = vmatmul.bf16.gmra.mxu0 %v2002_v55  ;;  %1448 = vmatmul.bf16.gmra.mxu3 %v2130_v6  ;;  %v2256_v28 = vld [vmem:[%s3477_s0 + $0x208] sm:$0xf0] }
 0x162   :  { %1350 = vmatmul.bf16.gmra.mxu1 %v2122_v58  ;;  %v2280_v55 = vld [vmem:[%s3477_s0 + $0x2c8] sm:$0xf0]  ;;  %v2014_v8 = vor.u32 %v2256_v28, %v2013_v47 }
 0x163   :  { %1399 = vmatmul.bf16.gmra.mxu2 %v2126_v46 }
 0x164   :  { %v1076_v18 = vpop.f32.mrf.mxu3 }
 0x166   :  { %v1027_v45 = vpop.f32.mrf.mxu2  ;;  %v754_v26 = vpop.f32.mrf.mxu0 }
 0x167   :  { %v3202_v21 = vadd.f32 %v1076_v18, %v1027_v45  ;;  %v803_v27 = vpop.f32.mrf.mxu1  ;;  %v755_v36 = vadd.f32 %v754_v26, %v2945_v0  ;;  %v2279_v45 = vld [vmem:[%s3477_s0 + $0x2c0] sm:$0xf0]  ;;  %v2278_v0 = vld [vmem:[%s3477_s0 + $0x2bc] sm:$0xf] }
 0x168   :  { %v2134_v46 = vor.u32 %v2279_v45, %v2133_v31 }
 0x169   :  { %v3205_v29 = vadd.f32 %v803_v27, %v755_v36  ;;  %v2138_v27 = vor.u32 %v2278_v0, %v2135_v41  ;;  %v2142_v36 = vor.u32 %v2280_v55, %v2141_v42  ;;  %v2145_v42 = vld [vmem:[%s3477_s0 + $0x2d0] sm:$0xf] }
 0x16c   :  { %v1078_v56 = vpop.f32.mrf.mxu3 }
 0x16e   :  { %v1029_v58 = vpop.f32.mrf.mxu2  ;;  %v757_v18 = vpop.f32.mrf.mxu0 }
 0x16f   :  { %v3233_v6 = vadd.f32 %v1078_v56, %v1029_v58  ;;  %v806_v26 = vpop.f32.mrf.mxu1  ;;  %v758_v40 = vadd.f32 %v757_v18, %v2949_v14  ;;  %v2025_v14 = vld [vmem:[%s3477_s0 + $0x218] sm:$0xf]  ;;  %v2147_v58 = vld [vmem:[%s3477_s0 + $0x2dc] sm:$0xf0] }
 0x170   :  { %v2153_v56 = vld [vmem:[%s3477_s0 + $0x2d8] sm:$0xf] }
 0x171   :  { %v3236_v17 = vadd.f32 %v806_v26, %v758_v40  ;;  %1129 = vmatmul.bf16.gmra.mxu0 %v2014_v8  ;;  %1453 = vmatmul.bf16.gmra.mxu3 %v2142_v36  ;;  %v2259_v40 = vld [vmem:[%s3477_s0 + $0x220] sm:$0xf0] }
 0x172   :  { %1355 = vmatmul.bf16.gmra.mxu1 %v2134_v46  ;;  %v2283_v8 = vld [vmem:[%s3477_s0 + $0x2e0] sm:$0xf0]  ;;  %v2026_v26 = vor.u32 %v2259_v40, %v2025_v14 }
 0x173   :  { %1404 = vmatmul.bf16.gmra.mxu2 %v2138_v27 }
 0x174   :  { %v1081_v47 = vpop.f32.mrf.mxu3 }
 0x176   :  { %v1032_v54 = vpop.f32.mrf.mxu2  ;;  %v759_v31 = vpop.f32.mrf.mxu0 }
 0x177   :  { %v3240_v28 = vadd.f32 %v1081_v47, %v1032_v54  ;;  %v808_v45 = vpop.f32.mrf.mxu1  ;;  %v760_v0 = vadd.f32 %v759_v31, %v2977_v34  ;;  %v2282_v54 = vld [vmem:[%s3477_s0 + $0x2d8] sm:$0xf0]  ;;  %v2281_v34 = vld [vmem:[%s3477_s0 + $0x2d4] sm:$0xf] }
 0x178   :  { %v2146_v27 = vor.u32 %v2282_v54, %v2145_v42 }
 0x179   :  { %v3243_v41 = vadd.f32 %v808_v45, %v760_v0  ;;  %v2150_v45 = vor.u32 %v2281_v34, %v2147_v58  ;;  %v2154_v0 = vor.u32 %v2283_v8, %v2153_v56  ;;  %v2157_v56 = vld [vmem:[%s3477_s0 + $0x2e8] sm:$0xf] }
 0x17c   :  { %v1083_v18 = vpop.f32.mrf.mxu3 }
 0x17e   :  { %v1034_v46 = vpop.f32.mrf.mxu2  ;;  %v762_v47 = vpop.f32.mrf.mxu0 }
 0x17f   :  { %v3271_v36 = vadd.f32 %v1083_v18, %v1034_v46  ;;  %v811_v31 = vpop.f32.mrf.mxu1  ;;  %v763_v55 = vadd.f32 %v762_v47, %v2981_v50  ;;  %v2037_v50 = vld [vmem:[%s3477_s0 + $0x230] sm:$0xf]  ;;  %v2159_v46 = vld [vmem:[%s3477_s0 + $0x2f4] sm:$0xf0] }
 0x180   :  { %v2165_v18 = vld [vmem:[%s3477_s0 + $0x2f0] sm:$0xf] }
 0x181   :  { %v3274_v16 = vadd.f32 %v811_v31, %v763_v55  ;;  %1134 = vmatmul.bf16.gmra.mxu0 %v2026_v26  ;;  %1458 = vmatmul.bf16.gmra.mxu3 %v2154_v0  ;;  %v2262_v55 = vld [vmem:[%s3477_s0 + $0x238] sm:$0xf0] }
 0x182   :  { %1360 = vmatmul.bf16.gmra.mxu1 %v2146_v27  ;;  %v2286_v26 = vld [vmem:[%s3477_s0 + $0x2f8] sm:$0xf0]  ;;  %v2038_v31 = vor.u32 %v2262_v55, %v2037_v50 }
 0x183   :  { %1409 = vmatmul.bf16.gmra.mxu2 %v2150_v45 }
 0x184   :  { %v1086_v14 = vpop.f32.mrf.mxu3 }
 0x186   :  { %v1037_v62 = vpop.f32.mrf.mxu2  ;;  %v764_v42 = vpop.f32.mrf.mxu0 }
 0x187   :  { %v3278_v40 = vadd.f32 %v1086_v14, %v1037_v62  ;;  %v813_v54 = vpop.f32.mrf.mxu1  ;;  %v765_v34 = vadd.f32 %v764_v42, %v3009_v4  ;;  %v2285_v62 = vld [vmem:[%s3477_s0 + $0x2f0] sm:$0xf0]  ;;  %v2284_v4 = vld [vmem:[%s3477_s0 + $0x2ec] sm:$0xf] }
 0x188   :  { %v2158_v45 = vor.u32 %v2285_v62, %v2157_v56 }
 0x189   :  { %v3281_v58 = vadd.f32 %v813_v54, %v765_v34  ;;  %v2162_v54 = vor.u32 %v2284_v4, %v2159_v46  ;;  %v2166_v34 = vor.u32 %v2286_v26, %v2165_v18 }
 0x18b   :  { %3483 = vst [vmem:[#allocation3_spill] sm:$0xff] %v3281_v58 }
 0x18c   :  { %v1088_v47 = vpop.f32.mrf.mxu3 }
 0x18e   :  { %v1039_v27 = vpop.f32.mrf.mxu2  ;;  %v767_v14 = vpop.f32.mrf.mxu0 }
 0x18f   :  { %v3309_v0 = vadd.f32 %v1088_v47, %v1039_v27  ;;  %v816_v42 = vpop.f32.mrf.mxu1  ;;  %v768_v8 = vadd.f32 %v767_v14, %v3013_v23 }
 0x191   :  { %v3312_v22 = vadd.f32 %v816_v42, %v768_v8  ;;  %1139 = vmatmul.bf16.gmra.mxu0 %v2038_v31  ;;  %1463 = vmatmul.bf16.gmra.mxu3 %v2166_v34 }
 0x192   :  { %1365 = vmatmul.bf16.gmra.mxu1 %v2158_v45 }
 0x193   :  { %1414 = vmatmul.bf16.gmra.mxu2 %v2162_v54  ;;  %v835_v58 = vmax.f32 %v3015_v24, %v3312_v22 }
 0x194   :  { %v1091_v50 = vpop.f32.mrf.mxu3 }
 0x196   :  { %v1042_v10 = vpop.f32.mrf.mxu2  ;;  %v769_v56 = vpop.f32.mrf.mxu0 }
 0x197   :  { %v3316_v55 = vadd.f32 %v1091_v50, %v1042_v10  ;;  %v818_v62 = vpop.f32.mrf.mxu1  ;;  %v770_v4 = vadd.f32 %v769_v56, %v3041_v44  ;;  %v3484_v10 = vmax.f32 %v2791_v9, %v3046_v61 }
 0x199   :  { %v3319_v46 = vadd.f32 %v818_v62, %v770_v4  ;;  %v3485_v62 = vmax.f32 %v2819_v25, %v3053_v13  ;;  %v3486_v25 = vmax.f32 %v2823_v33, %v3084_v52 }
 0x19b   :  { %v836_v23 = vmax.f32 %v3043_v53, %v3319_v46 }
 0x19c   :  { %v1093_v18 = vpop.f32.mrf.mxu3 }
 0x19e   :  { %v1044_v8 = vpop.f32.mrf.mxu2  ;;  %v1105_v27 = vpop.f32.mrf.mxu0 }
 0x19f   :  { %v3323_v26 = vadd.f32 %v1093_v18, %v1044_v8  ;;  %v1331_v47 = vpop.f32.mrf.mxu1  ;;  %v1106_v31 = vadd.f32 %v1105_v27, %v3050_v2  ;;  %v3336_v2 = vld [vmem:[%s3478_s2] ss:$0 sm:$0xff] }
 0x1a1   :  { %v1145_v45 = vmax.f32 %v3484_v10, %v1106_v31 }
 0x1a4   :  { %v1429_v42 = vpop.f32.mrf.mxu3 }
 0x1a6   :  { %v1380_v14 = vpop.f32.mrf.mxu2  ;;  %v1107_v54 = vpop.f32.mrf.mxu0 }
 0x1a7   :  { %v1381_v44 = vadd.f32 %v1380_v14, %v1331_v47  ;;  %v1333_v34 = vpop.f32.mrf.mxu1  ;;  %v1108_v50 = vadd.f32 %v1107_v54, %v3081_v37  ;;  %v3346_v14 = vld [vmem:[%s3478_s2 + $0x1] ss:$0 sm:$0xff] }
 0x1a9   :  { %v1430_v56 = vadd.f32 %v1429_v42, %v1381_v44  ;;  %v1146_v4 = vmax.f32 %v3485_v62, %v1108_v50 }
 0x1ab   :  { %v1469_v8 = vmax.f32 %v1145_v45, %v1430_v56 }
 0x1ac   :  { %v1431_v61 = vpop.f32.mrf.mxu3 }
 0x1ad   :  { %v1487_v18 = vadd.f32 %v3336_v2, %v1469_v8 }
 0x1ae   :  { %v1382_v9 = vpop.f32.mrf.mxu2  ;;  %v1110_v47 = vpop.f32.mrf.mxu0 }
 0x1af   :  { %v1383_v27 = vadd.f32 %v1382_v9, %v1333_v34  ;;  %v1336_v31 = vpop.f32.mrf.mxu1  ;;  %v1111_v37 = vadd.f32 %v1110_v47, %v3088_v59  ;;  %v1503_v45 = vmax.f32 %v1487_v18, 0.0  ;;  %v3353_v59 = vld [vmem:[%s3478_s2 + $0x2] ss:$0 sm:$0xff] }
 0x1b1   :  { %v1432_v10 = vadd.f32 %v1431_v61, %v1383_v27  ;;  %v1147_v13 = vmax.f32 %v3486_v25, %v1111_v37  ;;  %v1521_v50 = vmul.f32 %v3346_v14, %v1503_v45  ;;  %v3487_v61 = vmax.f32 %v2851_v49, %v3091_v5 }
 0x1b3   :  { %v1470_v42 = vmax.f32 %v1146_v4, %v1432_v10  ;;  %v1539_v27 = vadd.f32 %v3353_v59, %v1521_v50 }
 0x1b4   :  { %v1434_v34 = vpop.f32.mrf.mxu3 }
 0x1b5   :  { %v1488_v44 = vadd.f32 %v3336_v2, %v1470_v42 }
 0x1b6   :  { %v1385_v54 = vpop.f32.mrf.mxu2  ;;  %v1112_v56 = vpop.f32.mrf.mxu0 }
 0x1b7   :  { %v1504_v33 = vmax.f32 %v1488_v44, 0.0  ;;  %v1386_v52 = vadd.f32 %v1385_v54, %v1336_v31  ;;  %v1338_v62 = vpop.f32.mrf.mxu1  ;;  %v1113_v8 = vadd.f32 %v1112_v56, %v3119_v30  ;;  %v3488_v54 = vmax.f32 %v2855_v57, %v3122_v43 }
 0x1b8   :  { %v3489_v57 = vmax.f32 %v2883_v11, %v3129_v7 }
 0x1b9   :  { %v1522_v9 = vmul.f32 %v3346_v14, %v1504_v33  ;;  %v1435_v4 = vadd.f32 %v1434_v34, %v1386_v52  ;;  %v1148_v18 = vmax.f32 %v3487_v61, %v1113_v8 }
 0x1bb   :  { %v1540_v47 = vadd.f32 %v3353_v59, %v1522_v9  ;;  %v1471_v37 = vmax.f32 %v1147_v13, %v1435_v4 }
 0x1bc   :  { %v1436_v45 = vpop.f32.mrf.mxu3 }
 0x1bd   :  { %v2290_v10 = vpack.c.bf16 %v1540_v47, %v1539_v27  ;;  %v1489_v30 = vadd.f32 %v3336_v2, %v1471_v37 }
 0x1be   :  { %v1387_v25 = vpop.f32.mrf.mxu2  ;;  %v1115_v42 = vpop.f32.mrf.mxu0 }
 0x1bf   :  { %2291 = vst [vmem:[%s3479_s3] sm:$0xff] %v2290_v10   ;;  %v1388_v31 = vadd.f32 %v1387_v25, %v1338_v62  ;;  %v1341_v44 = vpop.f32.mrf.mxu1  ;;  %v1116_v49 = vadd.f32 %v1115_v42, %v3126_v60  ;;  %v1505_v13 = vmax.f32 %v1489_v30, 0.0 }
 0x1c1   :  { %v1437_v5 = vadd.f32 %v1436_v45, %v1388_v31  ;;  %v1149_v34 = vmax.f32 %v3488_v54, %v1116_v49  ;;  %v1523_v8 = vmul.f32 %v3346_v14, %v1505_v13  ;;  %v3490_v49 = vmax.f32 %v2887_v19, %v3160_v63 }
 0x1c2   :  { %v3491_v19 = vmax.f32 %v2915_v39, %v3167_v20 }
 0x1c3   :  { %v1472_v50 = vmax.f32 %v1148_v18, %v1437_v5  ;;  %v1541_v18 = vadd.f32 %v3353_v59, %v1523_v8 }
 0x1c4   :  { %v1439_v56 = vpop.f32.mrf.mxu3 }
 0x1c5   :  { %v1490_v33 = vadd.f32 %v3336_v2, %v1472_v50 }
 0x1c6   :  { %v1390_v52 = vpop.f32.mrf.mxu2  ;;  %v1117_v62 = vpop.f32.mrf.mxu0 }
 0x1c7   :  { %v1506_v9 = vmax.f32 %v1490_v33, 0.0  ;;  %v1391_v4 = vadd.f32 %v1390_v52, %v1341_v44  ;;  %v1343_v61 = vpop.f32.mrf.mxu1  ;;  %v1118_v27 = vadd.f32 %v1117_v62, %v3157_v35 }
 0x1c9   :  { %v1524_v60 = vmul.f32 %v3346_v14, %v1506_v9  ;;  %v1440_v47 = vadd.f32 %v1439_v56, %v1391_v4  ;;  %v1150_v43 = vmax.f32 %v3489_v57, %v1118_v27 }
 0x1cb   :  { %v1542_v37 = vadd.f32 %v3353_v59, %v1524_v60  ;;  %v1473_v10 = vmax.f32 %v1149_v34, %v1440_v47 }
 0x1cc   :  { %v1441_v30 = vpop.f32.mrf.mxu3 }
 0x1cd   :  { %v2295_v25 = vpack.c.bf16 %v1542_v37, %v1541_v18  ;;  %v1491_v35 = vadd.f32 %v3336_v2, %v1473_v10 }
 0x1ce   :  { %v1392_v45 = vpop.f32.mrf.mxu2  ;;  %v1120_v42 = vpop.f32.mrf.mxu0 }
 0x1cf   :  { %2327 = vst [vmem:[%s3479_s3 + $0x8] sm:$0xff] %v2295_v25   ;;  %v1393_v31 = vadd.f32 %v1392_v45, %v1343_v61  ;;  %v1346_v44 = vpop.f32.mrf.mxu1  ;;  %v1121_v11 = vadd.f32 %v1120_v42, %v3164_v12  ;;  %v1507_v54 = vmax.f32 %v1491_v35, 0.0  ;;  %v3492_v45 = vmax.f32 %v2919_v48, %v3198_v1 }
 0x1d0   :  { %v3493_v48 = vmax.f32 %v2947_v3, %v3205_v29 }
 0x1d1   :  { %v1442_v7 = vadd.f32 %v1441_v30, %v1393_v31  ;;  %v1151_v5 = vmax.f32 %v3490_v49, %v1121_v11  ;;  %v1525_v52 = vmul.f32 %v3346_v14, %v1507_v54 }
 0x1d3   :  { %v1474_v34 = vmax.f32 %v1150_v43, %v1442_v7  ;;  %v1543_v27 = vadd.f32 %v3353_v59, %v1525_v52 }
 0x1d4   :  { %v1444_v33 = vpop.f32.mrf.mxu3 }
 0x1d5   :  { %v1492_v13 = vadd.f32 %v3336_v2, %v1474_v34 }
 0x1d6   :  { %v1395_v50 = vpop.f32.mrf.mxu2  ;;  %v1122_v9 = vpop.f32.mrf.mxu0 }
 0x1d7   :  { %v1508_v56 = vmax.f32 %v1492_v13, 0.0  ;;  %v1396_v8 = vadd.f32 %v1395_v50, %v1346_v44  ;;  %v1348_v4 = vpop.f32.mrf.mxu1  ;;  %v1123_v62 = vadd.f32 %v1122_v9, %v3195_v32 }
 0x1d9   :  { %v1526_v12 = vmul.f32 %v3346_v14, %v1508_v56  ;;  %v1445_v61 = vadd.f32 %v1444_v33, %v1396_v8  ;;  %v1152_v63 = vmax.f32 %v3491_v19, %v1123_v62  ;;  %v3494_v19 = vmax.f32 %v2951_v15, %v3236_v17 }
 0x1da   :  { %v3495_v15 = vmax.f32 %v2979_v38, %v3243_v41 }
 0x1db   :  { %v1544_v60 = vadd.f32 %v3353_v59, %v1526_v12  ;;  %v1475_v47 = vmax.f32 %v1151_v5, %v1445_v61 }
 0x1dc   :  { %v1446_v18 = vpop.f32.mrf.mxu3 }
 0x1dd   :  { %v2300_v57 = vpack.c.bf16 %v1544_v60, %v1543_v27  ;;  %v1493_v32 = vadd.f32 %v3336_v2, %v1475_v47 }
 0x1de   :  { %v1397_v43 = vpop.f32.mrf.mxu2  ;;  %v1125_v10 = vpop.f32.mrf.mxu0 }
 0x1df   :  { %2328 = vst [vmem:[%s3479_s3 + $0x10] sm:$0xff] %v2300_v57   ;;  %v1398_v37 = vadd.f32 %v1397_v43, %v1348_v4  ;;  %v1351_v25 = vpop.f32.mrf.mxu1  ;;  %v1126_v39 = vadd.f32 %v1125_v10, %v3202_v21  ;;  %v1509_v35 = vmax.f32 %v1493_v32, 0.0 }
 0x1e1   :  { %v1447_v20 = vadd.f32 %v1446_v18, %v1398_v37  ;;  %v1153_v30 = vmax.f32 %v3492_v45, %v1126_v39  ;;  %v1527_v7 = vmul.f32 %v3346_v14, %v1509_v35 }
 0x1e3   :  { %v1476_v31 = vmax.f32 %v1152_v63, %v1447_v20  ;;  %v1545_v33 = vadd.f32 %v3353_v59, %v1527_v7 }
 0x1e4   :  { %v1449_v11 = vpop.f32.mrf.mxu3 }
 0x1e5   :  { %v1494_v42 = vadd.f32 %v3336_v2, %v1476_v31 }
 0x1e6   :  { %v1400_v44 = vpop.f32.mrf.mxu2  ;;  %v1127_v54 = vpop.f32.mrf.mxu0 }
 0x1e7   :  { %v1510_v49 = vmax.f32 %v1494_v42, 0.0  ;;  %v1401_v5 = vadd.f32 %v1400_v44, %v1351_v25  ;;  %v1353_v34 = vpop.f32.mrf.mxu1  ;;  %v1128_v13 = vadd.f32 %v1127_v54, %v3233_v6 }
 0x1e9   :  { %v1528_v21 = vmul.f32 %v3346_v14, %v1510_v49  ;;  %v1450_v50 = vadd.f32 %v1449_v11, %v1401_v5  ;;  %v1154_v1 = vmax.f32 %v3493_v48, %v1128_v13  ;;  %v3496_v5 = vmax.f32 %v2983_v51, %v3274_v16 }
 0x1eb   :  { %v1546_v52 = vadd.f32 %v3353_v59, %v1528_v21  ;;  %v1477_v56 = vmax.f32 %v1153_v30, %v1450_v50 }
 0x1ec   :  { %v1451_v4 = vpop.f32.mrf.mxu3 }
 0x1ed   :  { %v2305_v8 = vpack.c.bf16 %v1546_v52, %v1545_v33  ;;  %v1495_v6 = vadd.f32 %v3336_v2, %v1477_v56 }
 0x1ee   :  { %v1402_v9 = vpop.f32.mrf.mxu2  ;;  %v1130_v12 = vpop.f32.mrf.mxu0 }
 0x1ef   :  { %2329 = vst [vmem:[%s3479_s3 + $0x18] sm:$0xff] %v2305_v8   ;;  %v1403_v62 = vadd.f32 %v1402_v9, %v1353_v34  ;;  %v1356_v61 = vpop.f32.mrf.mxu1  ;;  %v1131_v3 = vadd.f32 %v1130_v12, %v3240_v28  ;;  %v1511_v27 = vmax.f32 %v1495_v6, 0.0  ;;  %v3498_v6 = vld [vmem:[#allocation3_spill] sm:$0xff] }
 0x1f1   :  { %v1452_v29 = vadd.f32 %v1451_v4, %v1403_v62  ;;  %v1155_v63 = vmax.f32 %v3494_v19, %v1131_v3  ;;  %v1529_v18 = vmul.f32 %v3346_v14, %v1511_v27  ;;  %v3497_v4 = vld [vmem:[#allocation2_spill] sm:$0xff] }
 0x1f2   :  { %v3499_v51 = vmax.f32 %v3497_v4, %v3498_v6 }
 0x1f3   :  { %v1478_v60 = vmax.f32 %v1154_v1, %v1452_v29  ;;  %v1547_v45 = vadd.f32 %v3353_v59, %v1529_v18 }
 0x1f4   :  { %v1454_v43 = vpop.f32.mrf.mxu3 }
 0x1f5   :  { %v1496_v47 = vadd.f32 %v3336_v2, %v1478_v60 }
 0x1f6   :  { %v1405_v57 = vpop.f32.mrf.mxu2  ;;  %v1132_v10 = vpop.f32.mrf.mxu0 }
 0x1f7   :  { %v1512_v32 = vmax.f32 %v1496_v47, 0.0  ;;  %v1406_v37 = vadd.f32 %v1405_v57, %v1356_v61  ;;  %v1358_v25 = vpop.f32.mrf.mxu1  ;;  %v1133_v39 = vadd.f32 %v1132_v10, %v3271_v36 }
 0x1f9   :  { %v1530_v28 = vmul.f32 %v3346_v14, %v1512_v32  ;;  %v1455_v20 = vadd.f32 %v1454_v43, %v1406_v37  ;;  %v1156_v17 = vmax.f32 %v3495_v15, %v1133_v39 }
 0x1fb   :  { %v1548_v30 = vadd.f32 %v3353_v59, %v1530_v28  ;;  %v1479_v35 = vmax.f32 %v1155_v63, %v1455_v20 }
 0x1fc   :  { %v1456_v44 = vpop.f32.mrf.mxu3 }
 0x1fd   :  { %v2310_v31 = vpack.c.bf16 %v1548_v30, %v1547_v45  ;;  %v1497_v36 = vadd.f32 %v3336_v2, %v1479_v35 }
 0x1fe   :  { %v1407_v42 = vpop.f32.mrf.mxu2  ;;  %v1135_v7 = vpop.f32.mrf.mxu0 }
 0x1ff   :  { %2330 = vst [vmem:[%s3479_s3 + $0x20] sm:$0xff] %v2310_v31   ;;  %v1408_v11 = vadd.f32 %v1407_v42, %v1358_v25  ;;  %v1136_v49 = vadd.f32 %v1135_v7, %v3278_v40  ;;  %v1361_v38 = vpop.f32.mrf.mxu1  ;;  %v1513_v34 = vmax.f32 %v1497_v36, 0.0 }
 0x201   :  { %v1457_v41 = vadd.f32 %v1456_v44, %v1408_v11  ;;  %v1157_v54 = vmax.f32 %v3496_v5, %v1136_v49  ;;  %v1531_v1 = vmul.f32 %v3346_v14, %v1513_v34 }
 0x203   :  { %v1480_v13 = vmax.f32 %v1156_v17, %v1457_v41  ;;  %v1549_v12 = vadd.f32 %v3353_v59, %v1531_v1 }
 0x204   :  { %v1459_v48 = vpop.f32.mrf.mxu3 }
 0x205   :  { %v1498_v21 = vadd.f32 %v3336_v2, %v1480_v13 }
 0x206   :  { %v1410_v50 = vpop.f32.mrf.mxu2  ;;  %v1137_v56 = vpop.f32.mrf.mxu0 }
 0x207   :  { %v1514_v33 = vmax.f32 %v1498_v21, 0.0  ;;  %v1411_v52 = vadd.f32 %v1410_v50, %v1361_v38  ;;  %v1138_v8 = vadd.f32 %v1137_v56, %v3309_v0  ;;  %v1363_v62 = vpop.f32.mrf.mxu1 }
 0x209   :  { %v1532_v40 = vmul.f32 %v3346_v14, %v1514_v33  ;;  %v1460_v9 = vadd.f32 %v1459_v48, %v1411_v52  ;;  %v1158_v16 = vmax.f32 %v3499_v51, %v1138_v8 }
 0x20b   :  { %v1550_v61 = vadd.f32 %v3353_v59, %v1532_v40  ;;  %v1481_v3 = vmax.f32 %v1157_v54, %v1460_v9 }
 0x20c   :  { %v1461_v63 = vpop.f32.mrf.mxu3 }
 0x20d   :  { %v2315_v29 = vpack.c.bf16 %v1550_v61, %v1549_v12  ;;  %v1499_v0 = vadd.f32 %v3336_v2, %v1481_v3 }
 0x20e   :  { %v1412_v19 = vpop.f32.mrf.mxu2  ;;  %v1140_v60 = vpop.f32.mrf.mxu0 }
 0x20f   :  { %2331 = vst [vmem:[%s3479_s3 + $0x28] sm:$0xff] %v2315_v29   ;;  %v1413_v27 = vadd.f32 %v1412_v19, %v1363_v62  ;;  %v1141_v47 = vadd.f32 %v1140_v60, %v3316_v55  ;;  %v1515_v18 = vmax.f32 %v1499_v0, 0.0  ;;  %v1366_v37 = vpop.f32.mrf.mxu1 }
 0x211   :  { %v1462_v57 = vadd.f32 %v1461_v63, %v1413_v27  ;;  %v1159_v43 = vmax.f32 %v835_v58, %v1141_v47  ;;  %v1533_v28 = vmul.f32 %v3346_v14, %v1515_v18 }
 0x213   :  { %v1482_v32 = vmax.f32 %v1158_v16, %v1462_v57  ;;  %v1551_v22 = vadd.f32 %v3353_v59, %v1533_v28 }
 0x214   :  { %v1464_v39 = vpop.f32.mrf.mxu3 }
 0x215   :  { %v1500_v10 = vadd.f32 %v3336_v2, %v1482_v32 }
 0x216   :  { %v1415_v25 = vpop.f32.mrf.mxu2  ;;  %v1142_v17 = vpop.f32.mrf.mxu0 }
 0x217   :  { %v1516_v20 = vmax.f32 %v1500_v10, 0.0  ;;  %v1416_v15 = vadd.f32 %v1415_v25, %v1366_v37  ;;  %v1143_v45 = vadd.f32 %v1142_v17, %v3323_v26  ;;  %v1368_v42 = vpop.f32.mrf.mxu1 }
 0x219   :  { %v1534_v55 = vmul.f32 %v3346_v14, %v1516_v20  ;;  %v1465_v30 = vadd.f32 %v1464_v39, %v1416_v15  ;;  %v1160_v24 = vmax.f32 %v836_v23, %v1143_v45 }
 0x21b   :  { %v1552_v58 = vadd.f32 %v3353_v59, %v1534_v55  ;;  %v1483_v35 = vmax.f32 %v1159_v43, %v1465_v30 }
 0x21c   :  { %v1466_v11 = vpop.f32.mrf.mxu3 }
 0x21d   :  { %v2320_v31 = vpack.c.bf16 %v1552_v58, %v1551_v22  ;;  %v1501_v26 = vadd.f32 %v3336_v2, %v1483_v35 }
 0x21e   :  { %v1417_v44 = vpop.f32.mrf.mxu2 }
 0x21f   :  { %2332 = vst [vmem:[%s3479_s3 + $0x30] sm:$0xff] %v2320_v31   ;;  %v1418_v36 = vadd.f32 %v1417_v44, %v1368_v42  ;;  %v1517_v49 = vmax.f32 %v1501_v26, 0.0 }
 0x221   :  { %v1467_v7 = vadd.f32 %v1466_v11, %v1418_v36  ;;  %v1535_v23 = vmul.f32 %v3346_v14, %v1517_v49 }
 0x223   :  { %v1484_v53 = vmax.f32 %v1160_v24, %v1467_v7  ;;  %v1553_v5 = vadd.f32 %v3353_v59, %v1535_v23 }
 0x225   :  { %v1502_v46 = vadd.f32 %v3336_v2, %v1484_v53 }
 0x227   :  { %v1518_v38 = vmax.f32 %v1502_v46, 0.0 }
 0x229   :  { %v1536_v41 = vmul.f32 %v3346_v14, %v1518_v38 }
 0x22b   :  { %v1554_v54 = vadd.f32 %v3353_v59, %v1536_v41 }
 0x22d   :  { %v2325_v34 = vpack.c.bf16 %v1554_v54, %v1553_v5 }
 0x22f   :  { %2333 = vst [vmem:[%s3479_s3 + $0x38] sm:$0xff] %v2325_v34  }

// kernel: _lambda_.7
= control target key start
LH: loop header
LB: loop body
LE: loop exit
PB: predicated region body
PF: predicated region fallthrough
CT: control target
= control target key end

     0   :  { %s2128_s1 = inlined_call_operand.vmem [shape: bf16[640,128], index: 1, kind: input, shape index: {}]   ;;  %s2129_s0 = inlined_call_operand.vmem [shape: bf16[4,32,640], index: 0, kind: input, shape index: {}]   ;;  %s2130_s2 = inlined_call_operand.vmem [shape: f32[8,128], index: 2, kind: input, shape index: {}]   ;;  %s2131_s3 = inlined_call_operand.vmem [shape: bf16[32,128], index: 3, kind: output, shape index: {}]  }
   0x1   :  { %v1492_v0 = vld [vmem:[%s2128_s1 + $0x38] sm:$0xff]  ;;  %v1514_v4 = vld [vmem:[%s2128_s1 + $0x30] sm:$0xff]  ;;  %v1538_v8 = vld [vmem:[%s2128_s1 + $0x28] sm:$0xff] }
   0x2   :  { %v1497_v1 = vld [vmem:[%s2128_s1 + $0x78] sm:$0xff]  ;;  %398 = vmatpush.bf16.msra.mxu0 %v1492_v0  ;;  %v1519_v5 = vld [vmem:[%s2128_s1 + $0x70] sm:$0xff]  ;;  %v1543_v9 = vld [vmem:[%s2128_s1 + $0x68] sm:$0xff] }
   0x3   :  { %v1502_v2 = vld [vmem:[%s2128_s1 + $0xb8] sm:$0xff]  ;;  %417 = vmatpush.bf16.msra.mxu1 %v1497_v1  ;;  %v1526_v6 = vld [vmem:[%s2128_s1 + $0xb0] sm:$0xff]  ;;  %v1550_v10 = vld [vmem:[%s2128_s1 + $0xa8] sm:$0xff] }
   0x4   :  { %v1507_v3 = vld [vmem:[%s2128_s1 + $0xf8] sm:$0xff]  ;;  %436 = vmatpush.bf16.msra.mxu2 %v1502_v2  ;;  %v1531_v7 = vld [vmem:[%s2128_s1 + $0xf0] sm:$0xff]  ;;  %v1555_v11 = vld [vmem:[%s2128_s1 + $0xe8] sm:$0xff] }
   0x5   :  { %455 = vmatpush.bf16.msra.mxu3 %v1507_v3  ;;  %v1562_v12 = vld [vmem:[%s2128_s1 + $0x20] sm:$0xff]  ;;  %v1586_v16 = vld [vmem:[%s2128_s1 + $0x18] sm:$0xff]  ;;  %v1610_v20 = vld [vmem:[%s2128_s1 + $0x10] sm:$0xff] }
   0x6   :  { %399 = vmatpush.bf16.msra.mxu0 %v1514_v4  ;;  %v1567_v13 = vld [vmem:[%s2128_s1 + $0x60] sm:$0xff]  ;;  %v1591_v17 = vld [vmem:[%s2128_s1 + $0x58] sm:$0xff]  ;;  %v1615_v21 = vld [vmem:[%s2128_s1 + $0x50] sm:$0xff] }
   0x7   :  { %418 = vmatpush.bf16.msra.mxu1 %v1519_v5  ;;  %v1574_v14 = vld [vmem:[%s2128_s1 + $0xa0] sm:$0xff]  ;;  %v1598_v18 = vld [vmem:[%s2128_s1 + $0x98] sm:$0xff]  ;;  %v1622_v22 = vld [vmem:[%s2128_s1 + $0x90] sm:$0xff] }
   0x8   :  { %437 = vmatpush.bf16.msra.mxu2 %v1526_v6  ;;  %v1579_v15 = vld [vmem:[%s2128_s1 + $0xe0] sm:$0xff]  ;;  %v1603_v19 = vld [vmem:[%s2128_s1 + $0xd8] sm:$0xff]  ;;  %v1627_v23 = vld [vmem:[%s2128_s1 + $0xd0] sm:$0xff] }
   0x9   :  { %456 = vmatpush.bf16.msra.mxu3 %v1531_v7  ;;  %v1634_v24 = vld [vmem:[%s2128_s1 + $0x8] sm:$0xff]  ;;  %v1656_v28 = vld [vmem:[%s2128_s1] sm:$0xff]  ;;  %v1417_v33 = vld [vmem:[%s2129_s0 + $0x10] sm:$0xf0] }
   0xa   :  { %400 = vmatpush.bf16.msra.mxu0 %v1538_v8  ;;  %v1639_v25 = vld [vmem:[%s2128_s1 + $0x48] sm:$0xff]  ;;  %v1661_v29 = vld [vmem:[%s2128_s1 + $0x40] sm:$0xff]  ;;  %v1023_v35 = vld [vmem:[%s2129_s0 + $0x14] sm:$0xf0] }
   0xb   :  { %419 = vmatpush.bf16.msra.mxu1 %v1543_v9  ;;  %v1646_v26 = vld [vmem:[%s2128_s1 + $0x88] sm:$0xff]  ;;  %v1666_v30 = vld [vmem:[%s2128_s1 + $0x80] sm:$0xff]  ;;  %v1418_v37 = vld [vmem:[%s2129_s0 + $0x18] sm:$0xf0] }
   0xc   :  { %438 = vmatpush.bf16.msra.mxu2 %v1550_v10  ;;  %v1651_v27 = vld [vmem:[%s2128_s1 + $0xc8] sm:$0xff]  ;;  %v1671_v31 = vld [vmem:[%s2128_s1 + $0xc0] sm:$0xff]  ;;  %v1704_v40 = vld [vmem:[%s2128_s1 + $0x138] sm:$0xff] }
   0xd   :  { %457 = vmatpush.bf16.msra.mxu3 %v1555_v11  ;;  %v1021_v32 = vld [vmem:[%s2129_s0] sm:$0xf]  ;;  %v1415_v34 = vld [vmem:[%s2129_s0 + $0x4] sm:$0xf]  ;;  %v1029_v36 = vld [vmem:[%s2129_s0 + $0x8] sm:$0xf] }
   0xe   :  { %401 = vmatpush.bf16.msra.mxu0 %v1562_v12  ;;  %v1416_v38 = vld [vmem:[%s2129_s0 + $0xc] sm:$0xf]  ;;  %v1031_v39 = vld [vmem:[%s2129_s0 + $0x1c] sm:$0xf0]  ;;  %v1022_v41 = vor.u32 %v1417_v33, %v1021_v32  ;;  %v1026_v42 = vor.u32 %v1415_v34, %v1023_v35  ;;  %v1030_v43 = vor.u32 %v1418_v37, %v1029_v36  ;;  %v1715_v45 = vld [vmem:[%s2128_s1 + $0x130] sm:$0xff] }
   0xf   :  { %420 = vmatpush.bf16.msra.mxu1 %v1567_v13  ;;  %v1034_v44 = vor.u32 %v1416_v38, %v1031_v39  ;;  %v1724_v46 = vld [vmem:[%s2128_s1 + $0x128] sm:$0xff]  ;;  %v1733_v47 = vld [vmem:[%s2128_s1 + $0x120] sm:$0xff]  ;;  %v1422_v49 = vld [vmem:[%s2129_s0 + $0x38] sm:$0xf0] }
  0x10   :  { %439 = vmatpush.bf16.msra.mxu2 %v1574_v14  ;;  %v1041_v48 = vld [vmem:[%s2129_s0 + $0x28] sm:$0xf]  ;;  %v1420_v50 = vld [vmem:[%s2129_s0 + $0x2c] sm:$0xf]  ;;  %v1043_v51 = vld [vmem:[%s2129_s0 + $0x3c] sm:$0xf0] }
  0x11   :  { %458 = vmatpush.bf16.msra.mxu3 %v1579_v15  ;;  %v1049_v52 = vld [vmem:[%s2129_s0 + $0x30] sm:$0xf]  ;;  %v1423_v53 = vld [vmem:[%s2129_s0 + $0x40] sm:$0xf0]  ;;  %v1421_v54 = vld [vmem:[%s2129_s0 + $0x34] sm:$0xf]  ;;  %v1042_v57 = vor.u32 %v1422_v49, %v1041_v48  ;;  %v1046_v58 = vor.u32 %v1420_v50, %v1043_v51 }
  0x12   :  { %402 = vmatpush.bf16.msra.mxu0 %v1586_v16  ;;  %v1051_v55 = vld [vmem:[%s2129_s0 + $0x44] sm:$0xf0]  ;;  %v1766_v56 = vld [vmem:[%s2128_s1 + $0x118] sm:$0xff]  ;;  %v1050_v59 = vor.u32 %v1423_v53, %v1049_v52  ;;  %v1775_v61 = vld [vmem:[%s2128_s1 + $0x110] sm:$0xff] }
  0x13   :  { %421 = vmatpush.bf16.msra.mxu1 %v1591_v17  ;;  %v1054_v60 = vor.u32 %v1421_v54, %v1051_v55  ;;  %v1784_v62 = vld [vmem:[%s2128_s1 + $0x108] sm:$0xff]  ;;  %v1793_v63 = vld [vmem:[%s2128_s1 + $0x100] sm:$0xff]  ;;  %v1037_v32 = vld [vmem:[%s2129_s0 + $0x10] sm:$0xf] }
  0x14   :  { %440 = vmatpush.bf16.msra.mxu2 %v1598_v18  ;;  %v1419_v33 = vld [vmem:[%s2129_s0 + $0x20] sm:$0xf0]  ;;  %v1233_v34 = vld [vmem:[%s2129_s0 + $0x50] sm:$0xf]  ;;  %v1425_v36 = vld [vmem:[%s2129_s0 + $0x54] sm:$0xf] }
  0x15   :  { %459 = vmatpush.bf16.msra.mxu3 %v1603_v19  ;;  %v1427_v35 = vld [vmem:[%s2129_s0 + $0x60] sm:$0xf0]  ;;  %v1235_v37 = vld [vmem:[%s2129_s0 + $0x64] sm:$0xf0]  ;;  %v1241_v38 = vld [vmem:[%s2129_s0 + $0x58] sm:$0xf] }
  0x16   :  { %403 = vmatpush.bf16.msra.mxu0 %v1610_v20  ;;  %v1428_v39 = vld [vmem:[%s2129_s0 + $0x68] sm:$0xf0]  ;;  %v1057_v48 = vld [vmem:[%s2129_s0 + $0x38] sm:$0xf]  ;;  %v1430_v52 = vld [vmem:[%s2129_s0 + $0x7c] sm:$0xf] }
  0x17   :  { %422 = vmatpush.bf16.msra.mxu1 %v1615_v21  ;;  %v1424_v49 = vld [vmem:[%s2129_s0 + $0x48] sm:$0xf0]  ;;  %v1253_v50 = vld [vmem:[%s2129_s0 + $0x78] sm:$0xf]  ;;  %v1255_v53 = vld [vmem:[%s2129_s0 + $0x8c] sm:$0xf0] }
  0x18   :  { %441 = vmatpush.bf16.msra.mxu2 %v1622_v22  ;;  %v1432_v51 = vld [vmem:[%s2129_s0 + $0x88] sm:$0xf0]  ;;  %v1261_v54 = vld [vmem:[%s2129_s0 + $0x80] sm:$0xf]  ;;  %v1433_v55 = vld [vmem:[%s2129_s0 + $0x90] sm:$0xf0] }
  0x19   :  { %460 = vmatpush.bf16.msra.mxu3 %v1627_v23 }
  0x1a   :  { %404 = vmatpush.bf16.msra.mxu0 %v1634_v24 }
  0x1b   :  { %423 = vmatpush.bf16.msra.mxu1 %v1639_v25 }
  0x1c   :  { %442 = vmatpush.bf16.msra.mxu2 %v1646_v26 }
  0x1d   :  { %461 = vmatpush.bf16.msra.mxu3 %v1651_v27 }
  0x1e   :  { %405 = vmatpush.bf16.msra.mxu0 %v1656_v28 }
  0x1f   :  { %424 = vmatpush.bf16.msra.mxu1 %v1661_v29 }
  0x20   :  { %443 = vmatpush.bf16.msra.mxu2 %v1666_v30 }
  0x21   :  { %462 = vmatpush.bf16.msra.mxu3 %v1671_v31  ;;  %406 = vmatmul.bf16.vlgmr.msra.gmra.mxu0 %v1022_v41  ;;  %v1038_v41 = vor.u32 %v1419_v33, %v1037_v32  ;;  %v1426_v32 = vld [vmem:[%s2129_s0 + $0x5c] sm:$0xf]  ;;  %v1243_v33 = vld [vmem:[%s2129_s0 + $0x6c] sm:$0xf0] }
  0x22   :  { %474 = vmatpush.bf16.msrb.mxu0 %v1704_v40  ;;  %425 = vmatmul.bf16.vlgmr.msra.gmra.mxu1 %v1026_v42  ;;  %v1234_v42 = vor.u32 %v1427_v35, %v1233_v34  ;;  %v1249_v34 = vld [vmem:[%s2129_s0 + $0x60] sm:$0xf]  ;;  %v1429_v35 = vld [vmem:[%s2129_s0 + $0x70] sm:$0xf0] }
  0x23   :  { %444 = vmatmul.bf16.vlgmr.msra.gmra.mxu2 %v1030_v43  ;;  %558 = vmatpush.bf16.msrb.mxu1 %v1492_v0  ;;  %v1238_v43 = vor.u32 %v1425_v36, %v1235_v37  ;;  %v1285_v36 = vld [vmem:[%s2129_s0 + $0xa0] sm:$0xf]  ;;  %v1437_v37 = vld [vmem:[%s2129_s0 + $0xb0] sm:$0xf0] }
  0x24   :  { %577 = vmatpush.bf16.msrb.mxu2 %v1497_v1  ;;  %463 = vmatmul.bf16.vlgmr.msra.gmra.mxu3 %v1034_v44  ;;  %v1242_v44 = vor.u32 %v1428_v39, %v1241_v38  ;;  %v1435_v38 = vld [vmem:[%s2129_s0 + $0xa4] sm:$0xf]  ;;  %v1287_v39 = vld [vmem:[%s2129_s0 + $0xb4] sm:$0xf0] }
  0x25   :  { %596 = vmatpush.bf16.msrb.mxu3 %v1502_v2 }
  0x26   :  { %475 = vmatpush.bf16.msrb.mxu0 %v1715_v45 }
  0x27   :  { %559 = vmatpush.bf16.msrb.mxu1 %v1514_v4 }
  0x28   :  { %578 = vmatpush.bf16.msrb.mxu2 %v1519_v5 }
  0x29   :  { %597 = vmatpush.bf16.msrb.mxu3 %v1526_v6 }
  0x2a   :  { %476 = vmatpush.bf16.msrb.mxu0 %v1724_v46 }
  0x2b   :  { %560 = vmatpush.bf16.msrb.mxu1 %v1538_v8 }
  0x2c   :  { %579 = vmatpush.bf16.msrb.mxu2 %v1543_v9 }
  0x2d   :  { %598 = vmatpush.bf16.msrb.mxu3 %v1550_v10 }
  0x2e   :  { %477 = vmatpush.bf16.msrb.mxu0 %v1733_v47 }
  0x2f   :  { %561 = vmatpush.bf16.msrb.mxu1 %v1562_v12 }
  0x30   :  { %580 = vmatpush.bf16.msrb.mxu2 %v1567_v13 }
  0x31   :  { %599 = vmatpush.bf16.msrb.mxu3 %v1574_v14  ;;  %411 = vmatmul.bf16.gmra.mxu0 %v1042_v57  ;;  %v1058_v57 = vor.u32 %v1424_v49, %v1057_v48  ;;  %v1269_v48 = vld [vmem:[%s2129_s0 + $0x88] sm:$0xf] }
  0x32   :  { %478 = vmatpush.bf16.msrb.mxu0 %v1766_v56  ;;  %430 = vmatmul.bf16.gmra.mxu1 %v1046_v58  ;;  %v1254_v58 = vor.u32 %v1432_v51, %v1253_v50  ;;  %v1305_v49 = vld [vmem:[%s2129_s0 + $0xc8] sm:$0xf]  ;;  %v1442_v50 = vld [vmem:[%s2129_s0 + $0xd8] sm:$0xf0]  ;;  %v1440_v51 = vld [vmem:[%s2129_s0 + $0xcc] sm:$0xf] }
  0x33   :  { %449 = vmatmul.bf16.gmra.mxu2 %v1050_v59  ;;  %562 = vmatpush.bf16.msrb.mxu1 %v1586_v16  ;;  %v1258_v59 = vor.u32 %v1430_v52, %v1255_v53  ;;  %v1307_v52 = vld [vmem:[%s2129_s0 + $0xdc] sm:$0xf0] }
  0x34   :  { %581 = vmatpush.bf16.msrb.mxu2 %v1591_v17  ;;  %468 = vmatmul.bf16.gmra.mxu3 %v1054_v60  ;;  %v1262_v60 = vor.u32 %v1433_v55, %v1261_v54  ;;  %v1306_v55 = vor.u32 %v1442_v50, %v1305_v49 }
  0x35   :  { %600 = vmatpush.bf16.msrb.mxu3 %v1598_v18 }
  0x36   :  { %479 = vmatpush.bf16.msrb.mxu0 %v1775_v61 }
  0x37   :  { %563 = vmatpush.bf16.msrb.mxu1 %v1610_v20 }
  0x38   :  { %582 = vmatpush.bf16.msrb.mxu2 %v1615_v21 }
  0x39   :  { %601 = vmatpush.bf16.msrb.mxu3 %v1622_v22 }
  0x3a   :  { %480 = vmatpush.bf16.msrb.mxu0 %v1784_v62 }
  0x3b   :  { %564 = vmatpush.bf16.msrb.mxu1 %v1634_v24 }
  0x3c   :  { %583 = vmatpush.bf16.msrb.mxu2 %v1639_v25 }
  0x3d   :  { %602 = vmatpush.bf16.msrb.mxu3 %v1646_v26 }
  0x3e   :  { %481 = vmatpush.bf16.msrb.mxu0 %v1793_v63 }
  0x3f   :  { %565 = vmatpush.bf16.msrb.mxu1 %v1656_v28 }
  0x40   :  { %584 = vmatpush.bf16.msrb.mxu2 %v1661_v29 }
  0x41   :  { %603 = vmatpush.bf16.msrb.mxu3 %v1666_v30  ;;  %482 = vmatmul.bf16.vlgmr.msrb.gmra.mxu0 %v1038_v41  ;;  %v1246_v41 = vor.u32 %v1426_v32, %v1243_v33 }
  0x42   :  { %615 = vmatpush.bf16.msra.mxu0 %v1507_v3  ;;  %566 = vmatmul.bf16.vlgmr.msrb.gmra.mxu1 %v1234_v42  ;;  %v1250_v42 = vor.u32 %v1429_v35, %v1249_v34 }
  0x43   :  { %634 = vmatpush.bf16.msra.mxu1 %v1704_v40  ;;  %585 = vmatmul.bf16.vlgmr.msrb.gmra.mxu2 %v1238_v43  ;;  %v1286_v43 = vor.u32 %v1437_v37, %v1285_v36 }
  0x44   :  { %722 = vmatpush.bf16.msra.mxu2 %v1492_v0  ;;  %604 = vmatmul.bf16.vlgmr.msrb.gmra.mxu3 %v1242_v44  ;;  %v1290_v44 = vor.u32 %v1435_v38, %v1287_v39  ;;  %v1450_v38 = vld [vmem:[%s2129_s0 + $0x11c] sm:$0xf]  ;;  %v1359_v39 = vld [vmem:[%s2129_s0 + $0x12c] sm:$0xf0] }
  0x45   :  { %741 = vmatpush.bf16.msra.mxu3 %v1497_v1  ;;  %v1362_v49 = vor.u32 %v1450_v38, %v1359_v39 }
  0x46   :  { %616 = vmatpush.bf16.msra.mxu0 %v1531_v7 }
  0x47   :  { %635 = vmatpush.bf16.msra.mxu1 %v1715_v45 }
  0x48   :  { %723 = vmatpush.bf16.msra.mxu2 %v1514_v4 }
  0x49   :  { %742 = vmatpush.bf16.msra.mxu3 %v1519_v5 }
  0x4a   :  { %617 = vmatpush.bf16.msra.mxu0 %v1555_v11 }
  0x4b   :  { %636 = vmatpush.bf16.msra.mxu1 %v1724_v46 }
  0x4c   :  { %724 = vmatpush.bf16.msra.mxu2 %v1538_v8 }
  0x4d   :  { %743 = vmatpush.bf16.msra.mxu3 %v1543_v9 }
  0x4e   :  { %618 = vmatpush.bf16.msra.mxu0 %v1579_v15 }
  0x4f   :  { %637 = vmatpush.bf16.msra.mxu1 %v1733_v47 }
  0x50   :  { %725 = vmatpush.bf16.msra.mxu2 %v1562_v12 }
  0x51   :  { %744 = vmatpush.bf16.msra.mxu3 %v1567_v13  ;;  %487 = vmatmul.bf16.gmra.mxu0 %v1058_v57  ;;  %v1310_v57 = vor.u32 %v1440_v51, %v1307_v52 }
  0x52   :  { %619 = vmatpush.bf16.msra.mxu0 %v1603_v19  ;;  %571 = vmatmul.bf16.gmra.mxu1 %v1254_v58  ;;  %v1439_v58 = vld [vmem:[%s2129_s0 + $0xc0] sm:$0xf0] }
  0x53   :  { %638 = vmatpush.bf16.msra.mxu1 %v1766_v56  ;;  %590 = vmatmul.bf16.gmra.mxu2 %v1258_v59  ;;  %v1447_v59 = vld [vmem:[%s2129_s0 + $0x100] sm:$0xf0] }
  0x54   :  { %726 = vmatpush.bf16.msra.mxu2 %v1586_v16  ;;  %609 = vmatmul.bf16.gmra.mxu3 %v1262_v60 }
  0x55   :  { %745 = vmatpush.bf16.msra.mxu3 %v1591_v17 }
  0x56   :  { %620 = vmatpush.bf16.msra.mxu0 %v1627_v23 }
  0x57   :  { %639 = vmatpush.bf16.msra.mxu1 %v1775_v61 }
  0x58   :  { %727 = vmatpush.bf16.msra.mxu2 %v1610_v20 }
  0x59   :  { %746 = vmatpush.bf16.msra.mxu3 %v1615_v21 }
  0x5a   :  { %621 = vmatpush.bf16.msra.mxu0 %v1651_v27 }
  0x5b   :  { %640 = vmatpush.bf16.msra.mxu1 %v1784_v62 }
  0x5c   :  { %728 = vmatpush.bf16.msra.mxu2 %v1634_v24 }
  0x5d   :  { %747 = vmatpush.bf16.msra.mxu3 %v1639_v25 }
  0x5e   :  { %622 = vmatpush.bf16.msra.mxu0 %v1671_v31 }
  0x5f   :  { %641 = vmatpush.bf16.msra.mxu1 %v1793_v63 }
  0x60   :  { %729 = vmatpush.bf16.msra.mxu2 %v1656_v28 }
  0x61   :  { %748 = vmatpush.bf16.msra.mxu3 %v1661_v29  ;;  %623 = vmatmul.bf16.vlgmr.msra.gmra.mxu0 %v1246_v41  ;;  %v1365_v41 = vld [vmem:[%s2129_s0 + $0x120] sm:$0xf] }
  0x62   :  { %760 = vmatpush.bf16.msrb.mxu0 %v1502_v2  ;;  %642 = vmatmul.bf16.vlgmr.msra.gmra.mxu1 %v1250_v42  ;;  %v1453_v42 = vld [vmem:[%s2129_s0 + $0x130] sm:$0xf0] }
  0x63   :  { %779 = vmatpush.bf16.msrb.mxu1 %v1507_v3  ;;  %730 = vmatmul.bf16.vlgmr.msra.gmra.mxu2 %v1286_v43  ;;  %v1451_v43 = vld [vmem:[%s2129_s0 + $0x124] sm:$0xf] }
  0x64   :  { %798 = vmatpush.bf16.msrb.mxu2 %v1704_v40  ;;  %749 = vmatmul.bf16.vlgmr.msra.gmra.mxu3 %v1290_v44  ;;  %v1367_v44 = vld [vmem:[%s2129_s0 + $0x134] sm:$0xf0] }
  0x65   :  { %886 = vmatpush.bf16.msrb.mxu3 %v1492_v0  ;;  %v1431_v0 = vld [vmem:[%s2129_s0 + $0x84] sm:$0xf] }
  0x66   :  { %761 = vmatpush.bf16.msrb.mxu0 %v1526_v6 }
  0x67   :  { %780 = vmatpush.bf16.msrb.mxu1 %v1531_v7 }
  0x68   :  { %799 = vmatpush.bf16.msrb.mxu2 %v1715_v45 }
  0x69   :  { %887 = vmatpush.bf16.msrb.mxu3 %v1514_v4  ;;  %v1263_v4 = vld [vmem:[%s2129_s0 + $0x94] sm:$0xf0] }
  0x6a   :  { %762 = vmatpush.bf16.msrb.mxu0 %v1550_v10  ;;  %v1266_v53 = vor.u32 %v1431_v0, %v1263_v4  ;;  %v1373_v0 = vld [vmem:[%s2129_s0 + $0x128] sm:$0xf]  ;;  %v1454_v4 = vld [vmem:[%s2129_s0 + $0x138] sm:$0xf0] }
  0x6b   :  { %781 = vmatpush.bf16.msrb.mxu1 %v1555_v11 }
  0x6c   :  { %800 = vmatpush.bf16.msrb.mxu2 %v1724_v46 }
  0x6d   :  { %888 = vmatpush.bf16.msrb.mxu3 %v1538_v8  ;;  %v1434_v8 = vld [vmem:[%s2129_s0 + $0x98] sm:$0xf0] }
  0x6e   :  { %763 = vmatpush.bf16.msrb.mxu0 %v1574_v14  ;;  %v1270_v54 = vor.u32 %v1434_v8, %v1269_v48 }
  0x6f   :  { %782 = vmatpush.bf16.msrb.mxu1 %v1579_v15 }
  0x70   :  { %801 = vmatpush.bf16.msrb.mxu2 %v1733_v47 }
  0x71   :  { %889 = vmatpush.bf16.msrb.mxu3 %v1562_v12  ;;  %628 = vmatmul.bf16.gmra.mxu0 %v1266_v53  ;;  %v1293_v12 = vld [vmem:[%s2129_s0 + $0xa8] sm:$0xf]  ;;  %v1366_v53 = vor.u32 %v1453_v42, %v1365_v41 }
  0x72   :  { %764 = vmatpush.bf16.msrb.mxu0 %v1598_v18  ;;  %647 = vmatmul.bf16.gmra.mxu1 %v1270_v54  ;;  %v1370_v54 = vor.u32 %v1451_v43, %v1367_v44 }
  0x73   :  { %783 = vmatpush.bf16.msrb.mxu1 %v1603_v19  ;;  %735 = vmatmul.bf16.gmra.mxu2 %v1306_v55 }
  0x74   :  { %802 = vmatpush.bf16.msrb.mxu2 %v1766_v56  ;;  %754 = vmatmul.bf16.gmra.mxu3 %v1310_v57  ;;  %v1374_v57 = vor.u32 %v1454_v4, %v1373_v0 }
  0x75   :  { %890 = vmatpush.bf16.msrb.mxu3 %v1586_v16  ;;  %v1438_v16 = vld [vmem:[%s2129_s0 + $0xb8] sm:$0xf0] }
  0x76   :  { %765 = vmatpush.bf16.msrb.mxu0 %v1622_v22  ;;  %v1294_v60 = vor.u32 %v1438_v16, %v1293_v12 }
  0x77   :  { %784 = vmatpush.bf16.msrb.mxu1 %v1627_v23 }
  0x78   :  { %803 = vmatpush.bf16.msrb.mxu2 %v1775_v61 }
  0x79   :  { %891 = vmatpush.bf16.msrb.mxu3 %v1610_v20  ;;  %v1436_v20 = vld [vmem:[%s2129_s0 + $0xac] sm:$0xf] }
  0x7a   :  { %766 = vmatpush.bf16.msrb.mxu0 %v1646_v26 }
  0x7b   :  { %785 = vmatpush.bf16.msrb.mxu1 %v1651_v27 }
  0x7c   :  { %804 = vmatpush.bf16.msrb.mxu2 %v1784_v62 }
  0x7d   :  { %892 = vmatpush.bf16.msrb.mxu3 %v1634_v24  ;;  %v1301_v24 = vld [vmem:[%s2129_s0 + $0xb0] sm:$0xf] }
  0x7e   :  { %767 = vmatpush.bf16.msrb.mxu0 %v1666_v30  ;;  %v1302_v33 = vor.u32 %v1439_v58, %v1301_v24 }
  0x7f   :  { %786 = vmatpush.bf16.msrb.mxu1 %v1671_v31 }
  0x80   :  { %805 = vmatpush.bf16.msrb.mxu2 %v1793_v63 }
  0x81   :  { %893 = vmatpush.bf16.msrb.mxu3 %v1656_v28  ;;  %768 = vmatmul.bf16.vlgmr.msrb.gmra.mxu0 %v1294_v60 }
  0x82   :  { %905 = vmatpush.bf16.msra.mxu0 %v1497_v1  ;;  %v1313_v1 = vld [vmem:[%s2129_s0 + $0xd0] sm:$0xf] }
  0x83   :  { %924 = vmatpush.bf16.msra.mxu1 %v1502_v2  ;;  %v1337_v2 = vld [vmem:[%s2129_s0 + $0xf0] sm:$0xf]  ;;  %806 = vmatmul.bf16.vlgmr.msrb.gmra.mxu2 %v1302_v33 }
  0x84   :  { %943 = vmatpush.bf16.msra.mxu2 %v1507_v3  ;;  %v1295_v3 = vld [vmem:[%s2129_s0 + $0xbc] sm:$0xf0]  ;;  %v1338_v28 = vor.u32 %v1447_v59, %v1337_v2 }
  0x85   :  { %962 = vmatpush.bf16.msra.mxu3 %v1704_v40  ;;  %v1298_v32 = vor.u32 %v1436_v20, %v1295_v3 }
  0x86   :  { %906 = vmatpush.bf16.msra.mxu0 %v1519_v5  ;;  %894 = vmatmul.bf16.vlgmr.msrb.gmra.mxu3 %v1338_v28  ;;  %v1443_v5 = vld [vmem:[%s2129_s0 + $0xe0] sm:$0xf0] }
  0x87   :  { %925 = vmatpush.bf16.msra.mxu1 %v1526_v6  ;;  %v1441_v6 = vld [vmem:[%s2129_s0 + $0xd4] sm:$0xf] }
  0x88   :  { %944 = vmatpush.bf16.msra.mxu2 %v1531_v7  ;;  %787 = vmatmul.bf16.vlgmr.msrb.gmra.mxu1 %v1298_v32  ;;  %v1315_v7 = vld [vmem:[%s2129_s0 + $0xe4] sm:$0xf0] }
  0x89   :  { %963 = vmatpush.bf16.msra.mxu3 %v1715_v45 }
  0x8a   :  { %907 = vmatpush.bf16.msra.mxu0 %v1543_v9  ;;  %v1321_v9 = vld [vmem:[%s2129_s0 + $0xd8] sm:$0xf] }
  0x8b   :  { %926 = vmatpush.bf16.msra.mxu1 %v1550_v10  ;;  %v1444_v10 = vld [vmem:[%s2129_s0 + $0xe8] sm:$0xf0] }
  0x8c   :  { %945 = vmatpush.bf16.msra.mxu2 %v1555_v11  ;;  %v1357_v11 = vld [vmem:[%s2129_s0 + $0x118] sm:$0xf]  ;;  %v1322_v40 = vor.u32 %v1444_v10, %v1321_v9 }
  0x8d   :  { %964 = vmatpush.bf16.msra.mxu3 %v1724_v46 }
  0x8e   :  { %908 = vmatpush.bf16.msra.mxu0 %v1567_v13  ;;  %v1452_v13 = vld [vmem:[%s2129_s0 + $0x128] sm:$0xf0] }
  0x8f   :  { %927 = vmatpush.bf16.msra.mxu1 %v1574_v14  ;;  %v1314_v14 = vor.u32 %v1443_v5, %v1313_v1  ;;  %v1358_v45 = vor.u32 %v1452_v13, %v1357_v11 }
  0x90   :  { %946 = vmatpush.bf16.msra.mxu2 %v1579_v15  ;;  %v1318_v15 = vor.u32 %v1441_v6, %v1315_v7 }
  0x91   :  { %965 = vmatpush.bf16.msra.mxu3 %v1733_v47  ;;  %773 = vmatmul.bf16.gmra.mxu0 %v1314_v14 }
  0x92   :  { %909 = vmatpush.bf16.msra.mxu0 %v1591_v17  ;;  %v1445_v17 = vld [vmem:[%s2129_s0 + $0xf4] sm:$0xf] }
  0x93   :  { %928 = vmatpush.bf16.msra.mxu1 %v1598_v18  ;;  %811 = vmatmul.bf16.gmra.mxu2 %v1322_v40  ;;  %v1339_v18 = vld [vmem:[%s2129_s0 + $0x104] sm:$0xf0] }
  0x94   :  { %947 = vmatpush.bf16.msra.mxu2 %v1603_v19  ;;  %v1345_v19 = vld [vmem:[%s2129_s0 + $0xf8] sm:$0xf] }
  0x95   :  { %966 = vmatpush.bf16.msra.mxu3 %v1766_v56 }
  0x96   :  { %910 = vmatpush.bf16.msra.mxu0 %v1615_v21  ;;  %899 = vmatmul.bf16.gmra.mxu3 %v1358_v45  ;;  %v1448_v21 = vld [vmem:[%s2129_s0 + $0x108] sm:$0xf0] }
  0x97   :  { %929 = vmatpush.bf16.msra.mxu1 %v1622_v22  ;;  %v1446_v22 = vld [vmem:[%s2129_s0 + $0xfc] sm:$0xf] }
  0x98   :  { %948 = vmatpush.bf16.msra.mxu2 %v1627_v23  ;;  %792 = vmatmul.bf16.gmra.mxu1 %v1318_v15  ;;  %v1347_v23 = vld [vmem:[%s2129_s0 + $0x10c] sm:$0xf0] }
  0x99   :  { %967 = vmatpush.bf16.msra.mxu3 %v1775_v61  ;;  %v1350_v46 = vor.u32 %v1446_v22, %v1347_v23 }
  0x9a   :  { %911 = vmatpush.bf16.msra.mxu0 %v1639_v25  ;;  %v1353_v25 = vld [vmem:[%s2129_s0 + $0x100] sm:$0xf] }
  0x9b   :  { %930 = vmatpush.bf16.msra.mxu1 %v1646_v26  ;;  %v1449_v26 = vld [vmem:[%s2129_s0 + $0x110] sm:$0xf0] }
  0x9c   :  { %949 = vmatpush.bf16.msra.mxu2 %v1651_v27  ;;  %v1342_v27 = vor.u32 %v1445_v17, %v1339_v18  ;;  %v1354_v56 = vor.u32 %v1449_v26, %v1353_v25 }
  0x9d   :  { %968 = vmatpush.bf16.msra.mxu3 %v1784_v62 }
  0x9e   :  { %912 = vmatpush.bf16.msra.mxu0 %v1661_v29  ;;  %v407_v29 = vpop.f32.mrf.mxu0 }
  0x9f   :  { %931 = vmatpush.bf16.msra.mxu1 %v1666_v30  ;;  %v426_v30 = vpop.f32.mrf.mxu1 }
  0xa0   :  { %950 = vmatpush.bf16.msra.mxu2 %v1671_v31  ;;  %v1346_v31 = vor.u32 %v1448_v21, %v1345_v19  ;;  %v427_v47 = vadd.f32 %v426_v30, %v407_v29 }
  0xa1   :  { %969 = vmatpush.bf16.msra.mxu3 %v1793_v63  ;;  %913 = vmatmul.bf16.vlgmr.msra.gmra.mxu0 %v1342_v27 }
  0xa3   :  { %951 = vmatmul.bf16.vlgmr.msra.gmra.mxu2 %v1350_v46 }
  0xa6   :  { %970 = vmatmul.bf16.vlgmr.msra.gmra.mxu3 %v1354_v56  ;;  %v445_v61 = vpop.f32.mrf.mxu2  ;;  %v409_v34 = vpop.f32.mrf.mxu0 }
  0xa7   :  { %v464_v62 = vpop.f32.mrf.mxu3  ;;  %v446_v63 = vadd.f32 %v445_v61, %v427_v47  ;;  %v428_v35 = vpop.f32.mrf.mxu1 }
  0xa8   :  { %932 = vmatmul.bf16.vlgmr.msra.gmra.mxu1 %v1346_v31  ;;  %v429_v36 = vadd.f32 %v428_v35, %v409_v34 }
  0xa9   :  { %v465_v37 = vadd.f32 %v464_v62, %v446_v63 }
  0xae   :  { %v447_v48 = vpop.f32.mrf.mxu2  ;;  %v412_v51 = vpop.f32.mrf.mxu0 }
  0xaf   :  { %v466_v8 = vpop.f32.mrf.mxu3  ;;  %v448_v50 = vadd.f32 %v447_v48, %v429_v36  ;;  %v431_v52 = vpop.f32.mrf.mxu1 }
  0xb0   :  { %v432_v55 = vadd.f32 %v431_v52, %v412_v51 }
  0xb1   :  { %v467_v12 = vadd.f32 %v466_v8, %v448_v50  ;;  %918 = vmatmul.bf16.gmra.mxu0 %v1362_v49 }
  0xb3   :  { %956 = vmatmul.bf16.gmra.mxu2 %v1370_v54 }
  0xb6   :  { %975 = vmatmul.bf16.gmra.mxu3 %v1374_v57  ;;  %v450_v16 = vpop.f32.mrf.mxu2  ;;  %v414_v24 = vpop.f32.mrf.mxu0 }
  0xb7   :  { %v469_v20 = vpop.f32.mrf.mxu3  ;;  %v451_v3 = vadd.f32 %v450_v16, %v432_v55  ;;  %v433_v58 = vpop.f32.mrf.mxu1 }
  0xb8   :  { %937 = vmatmul.bf16.gmra.mxu1 %v1366_v53  ;;  %v434_v2 = vadd.f32 %v433_v58, %v414_v24 }
  0xb9   :  { %v470_v59 = vadd.f32 %v469_v20, %v451_v3 }
  0xbe   :  { %v452_v60 = vpop.f32.mrf.mxu2  ;;  %v483_v28 = vpop.f32.mrf.mxu0 }
  0xbf   :  { %v471_v32 = vpop.f32.mrf.mxu3  ;;  %v453_v33 = vadd.f32 %v452_v60, %v434_v2  ;;  %v2089_v1 = vadd.f32 %v483_v28, %v465_v37  ;;  %v567_v5 = vpop.f32.mrf.mxu1 }
  0xc1   :  { %v472_v6 = vadd.f32 %v471_v32, %v453_v33 }
  0xc6   :  { %v586_v7 = vpop.f32.mrf.mxu2  ;;  %v485_v11 = vpop.f32.mrf.mxu0 }
  0xc7   :  { %v587_v9 = vadd.f32 %v586_v7, %v567_v5  ;;  %v605_v10 = vpop.f32.mrf.mxu3  ;;  %v2091_v13 = vadd.f32 %v485_v11, %v467_v12  ;;  %v569_v14 = vpop.f32.mrf.mxu1 }
  0xc9   :  { %v606_v15 = vadd.f32 %v605_v10, %v587_v9 }
  0xce   :  { %v588_v40 = vpop.f32.mrf.mxu2  ;;  %v488_v18 = vpop.f32.mrf.mxu0 }
  0xcf   :  { %v589_v45 = vadd.f32 %v588_v40, %v569_v14  ;;  %v607_v17 = vpop.f32.mrf.mxu3  ;;  %v2093_v19 = vadd.f32 %v488_v18, %v470_v59  ;;  %v572_v21 = vpop.f32.mrf.mxu1 }
  0xd1   :  { %v608_v22 = vadd.f32 %v607_v17, %v589_v45 }
  0xd6   :  { %v591_v23 = vpop.f32.mrf.mxu2  ;;  %v490_v27 = vpop.f32.mrf.mxu0 }
  0xd7   :  { %v592_v25 = vadd.f32 %v591_v23, %v572_v21  ;;  %v610_v26 = vpop.f32.mrf.mxu3  ;;  %v2095_v29 = vadd.f32 %v490_v27, %v472_v6  ;;  %v574_v30 = vpop.f32.mrf.mxu1 }
  0xd9   :  { %v611_v31 = vadd.f32 %v610_v26, %v592_v25 }
  0xde   :  { %v593_v46 = vpop.f32.mrf.mxu2  ;;  %v624_v61 = vpop.f32.mrf.mxu0 }
  0xdf   :  { %v594_v47 = vadd.f32 %v593_v46, %v574_v30  ;;  %v612_v56 = vpop.f32.mrf.mxu3  ;;  %v625_v62 = vadd.f32 %v624_v61, %v606_v15  ;;  %v643_v63 = vpop.f32.mrf.mxu1 }
  0xe1   :  { %v613_v34 = vadd.f32 %v612_v56, %v594_v47  ;;  %v644_v35 = vadd.f32 %v643_v63, %v625_v62 }
  0xe3   :  { %v653_v36 = vmax.f32 %v2089_v1, %v644_v35 }
  0xe6   :  { %v731_v37 = vpop.f32.mrf.mxu2  ;;  %v626_v39 = vpop.f32.mrf.mxu0 }
  0xe7   :  { %v750_v38 = vpop.f32.mrf.mxu3  ;;  %v627_v42 = vadd.f32 %v626_v39, %v608_v22  ;;  %v645_v43 = vpop.f32.mrf.mxu1  ;;  %v1466_v39 = vld [vmem:[%s2130_s2] ss:$0 sm:$0xff] }
  0xe8   :  { %v751_v41 = vadd.f32 %v750_v38, %v731_v37 }
  0xe9   :  { %v2098_v44 = vadd.f32 %v645_v43, %v627_v42 }
  0xeb   :  { %v654_v0 = vmax.f32 %v2091_v13, %v2098_v44  ;;  %v1468_v13 = vld [vmem:[%s2130_s2 + $0x2] ss:$0 sm:$0xff] }
  0xee   :  { %v733_v4 = vpop.f32.mrf.mxu2  ;;  %v629_v8 = vpop.f32.mrf.mxu0 }
  0xef   :  { %v752_v48 = vpop.f32.mrf.mxu3  ;;  %v630_v49 = vadd.f32 %v629_v8, %v611_v31  ;;  %v648_v50 = vpop.f32.mrf.mxu1 }
  0xf0   :  { %v753_v31 = vadd.f32 %v752_v48, %v733_v4 }
  0xf1   :  { %v649_v51 = vadd.f32 %v648_v50, %v630_v49 }
  0xf3   :  { %v655_v52 = vmax.f32 %v2093_v19, %v649_v51 }
  0xf6   :  { %v736_v53 = vpop.f32.mrf.mxu2  ;;  %v631_v55 = vpop.f32.mrf.mxu0 }
  0xf7   :  { %v755_v54 = vpop.f32.mrf.mxu3  ;;  %v632_v12 = vadd.f32 %v631_v55, %v613_v34  ;;  %v650_v16 = vpop.f32.mrf.mxu1  ;;  %v1467_v55 = vld [vmem:[%s2130_s2 + $0x1] ss:$0 sm:$0xff] }
  0xf8   :  { %v756_v57 = vadd.f32 %v755_v54, %v736_v53 }
  0xf9   :  { %v2103_v20 = vadd.f32 %v650_v16, %v632_v12 }
  0xfb   :  { %v656_v3 = vmax.f32 %v2095_v29, %v2103_v20 }
  0xfe   :  { %v738_v24 = vpop.f32.mrf.mxu2  ;;  %v769_v2 = vpop.f32.mrf.mxu0 }
  0xff   :  { %v757_v58 = vpop.f32.mrf.mxu3  ;;  %v770_v60 = vadd.f32 %v769_v2, %v751_v41 }
 0x100   :  { %v758_v12 = vadd.f32 %v757_v58, %v738_v24 }
 0x105   :  { %v788_v59 = vpop.f32.mrf.mxu1 }
 0x106   :  { %v789_v32 = vadd.f32 %v788_v59, %v770_v60  ;;  %v807_v33 = vpop.f32.mrf.mxu2  ;;  %v771_v5 = vpop.f32.mrf.mxu0 }
 0x107   :  { %v772_v56 = vadd.f32 %v771_v5, %v753_v31 }
 0x108   :  { %v808_v28 = vadd.f32 %v807_v33, %v789_v32 }
 0x109   :  { %v895_v1 = vpop.f32.mrf.mxu3 }
 0x10a   :  { %v817_v7 = vmax.f32 %v653_v36, %v808_v28 }
 0x10d   :  { %v790_v6 = vpop.f32.mrf.mxu1 }
 0x10e   :  { %v809_v9 = vpop.f32.mrf.mxu2  ;;  %v774_v11 = vpop.f32.mrf.mxu0  ;;  %v791_v37 = vadd.f32 %v790_v6, %v772_v56 }
 0x10f   :  { %v775_v15 = vadd.f32 %v774_v11, %v756_v57 }
 0x110   :  { %v810_v41 = vadd.f32 %v809_v9, %v791_v37 }
 0x111   :  { %v897_v10 = vpop.f32.mrf.mxu3 }
 0x112   :  { %v818_v50 = vmax.f32 %v654_v0, %v810_v41 }
 0x115   :  { %v793_v14 = vpop.f32.mrf.mxu1 }
 0x116   :  { %v794_v40 = vadd.f32 %v793_v14, %v775_v15  ;;  %v812_v45 = vpop.f32.mrf.mxu2  ;;  %v776_v19 = vpop.f32.mrf.mxu0 }
 0x117   :  { %v777_v60 = vadd.f32 %v776_v19, %v758_v12 }
 0x118   :  { %v813_v17 = vadd.f32 %v812_v45, %v794_v40 }
 0x119   :  { %v900_v18 = vpop.f32.mrf.mxu3 }
 0x11a   :  { %v819_v22 = vmax.f32 %v655_v52, %v813_v17 }
 0x11d   :  { %v795_v21 = vpop.f32.mrf.mxu1 }
 0x11e   :  { %v814_v23 = vpop.f32.mrf.mxu2  ;;  %v914_v26 = vpop.f32.mrf.mxu0 }
 0x11f   :  { %v915_v30 = vadd.f32 %v914_v26, %v895_v1 }
 0x121   :  { %v902_v25 = vpop.f32.mrf.mxu3 }
 0x125   :  { %v933_v27 = vpop.f32.mrf.mxu1 }
 0x126   :  { %v934_v46 = vadd.f32 %v933_v27, %v915_v30  ;;  %v952_v47 = vpop.f32.mrf.mxu2  ;;  %v916_v63 = vpop.f32.mrf.mxu0 }
 0x127   :  { %v917_v36 = vadd.f32 %v916_v63, %v897_v10 }
 0x128   :  { %v953_v61 = vadd.f32 %v952_v47, %v934_v46 }
 0x129   :  { %v971_v62 = vpop.f32.mrf.mxu3 }
 0x12a   :  { %v972_v35 = vadd.f32 %v971_v62, %v953_v61 }
 0x12c   :  { %v981_v38 = vmax.f32 %v817_v7, %v972_v35  ;;  %v796_v7 = vadd.f32 %v795_v21, %v777_v60 }
 0x12d   :  { %v935_v34 = vpop.f32.mrf.mxu1 }
 0x12e   :  { %v936_v42 = vadd.f32 %v935_v34, %v917_v36  ;;  %v954_v43 = vpop.f32.mrf.mxu2  ;;  %v987_v8 = vadd.f32 %v1466_v39, %v981_v38  ;;  %v919_v49 = vpop.f32.mrf.mxu0  ;;  %v815_v11 = vadd.f32 %v814_v23, %v796_v7 }
 0x12f   :  { %v920_v52 = vadd.f32 %v919_v49, %v900_v18 }
 0x130   :  { %v955_v4 = vadd.f32 %v954_v43, %v936_v42  ;;  %v991_v54 = vmax.f32 %v987_v8, 0.0  ;;  %v820_v19 = vmax.f32 %v656_v3, %v815_v11 }
 0x131   :  { %v973_v48 = vpop.f32.mrf.mxu3 }
 0x132   :  { %v974_v51 = vadd.f32 %v973_v48, %v955_v4  ;;  %v997_v32 = vmul.f32 %v1467_v55, %v991_v54 }
 0x134   :  { %v982_v57 = vmax.f32 %v818_v50, %v974_v51  ;;  %v1003_v9 = vadd.f32 %v1468_v13, %v997_v32 }
 0x135   :  { %v938_v53 = vpop.f32.mrf.mxu1 }
 0x136   :  { %v988_v16 = vadd.f32 %v1466_v39, %v982_v57  ;;  %v939_v2 = vadd.f32 %v938_v53, %v920_v52  ;;  %v957_v59 = vpop.f32.mrf.mxu2  ;;  %v921_v28 = vpop.f32.mrf.mxu0 }
 0x137   :  { %v922_v6 = vadd.f32 %v921_v28, %v902_v25 }
 0x138   :  { %v992_v44 = vmax.f32 %v988_v16, 0.0  ;;  %v958_v0 = vadd.f32 %v957_v59, %v939_v2 }
 0x139   :  { %v976_v33 = vpop.f32.mrf.mxu3 }
 0x13a   :  { %v998_v1 = vmul.f32 %v1467_v55, %v992_v44  ;;  %v977_v5 = vadd.f32 %v976_v33, %v958_v0 }
 0x13c   :  { %v1004_v10 = vadd.f32 %v1468_v13, %v998_v1  ;;  %v983_v24 = vmax.f32 %v819_v22, %v977_v5 }
 0x13d   :  { %v940_v58 = vpop.f32.mrf.mxu1 }
 0x13e   :  { %v1458_v14 = vpack.c.bf16 %v1004_v10, %v1003_v9  ;;  %v941_v15 = vadd.f32 %v940_v58, %v922_v6  ;;  %v959_v40 = vpop.f32.mrf.mxu2  ;;  %v989_v45 = vadd.f32 %v1466_v39, %v983_v24 }
 0x140   :  { %1459 = vst [vmem:[%s2131_s3] sm:$0xff] %v1458_v14   ;;  %v960_v17 = vadd.f32 %v959_v40, %v941_v15  ;;  %v993_v25 = vmax.f32 %v989_v45, 0.0 }
 0x141   :  { %v978_v18 = vpop.f32.mrf.mxu3 }
 0x142   :  { %v979_v21 = vadd.f32 %v978_v18, %v960_v17  ;;  %v999_v27 = vmul.f32 %v1467_v55, %v993_v25 }
 0x144   :  { %v984_v26 = vmax.f32 %v820_v19, %v979_v21  ;;  %v1005_v31 = vadd.f32 %v1468_v13, %v999_v27 }
 0x146   :  { %v990_v22 = vadd.f32 %v1466_v39, %v984_v26 }
 0x148   :  { %v994_v23 = vmax.f32 %v990_v22, 0.0 }
 0x14a   :  { %v1000_v30 = vmul.f32 %v1467_v55, %v994_v23 }
 0x14c   :  { %v1006_v46 = vadd.f32 %v1468_v13, %v1000_v30 }
 0x14e   :  { %v1463_v47 = vpack.c.bf16 %v1006_v46, %v1005_v31 }
 0x150   :  { %1465 = vst [vmem:[%s2131_s3 + $0x8] sm:$0xff] %v1463_v47  }

// kernel: _lambda_.8
= control target key start
LH: loop header
LB: loop body
LE: loop exit
PB: predicated region body
PF: predicated region fallthrough
CT: control target
= control target key end

     0   :  { %s4730_s1 = inlined_call_operand.vmem [shape: bf16[1152,256], index: 1, kind: input, shape index: {}]   ;;  %s4731_s0 = inlined_call_operand.vmem [shape: bf16[4,8,1152], index: 0, kind: input, shape index: {}]   ;;  %s4732_s2 = inlined_call_operand.vmem [shape: f32[8,256], index: 2, kind: input, shape index: {}]   ;;  %s4733_s3 = inlined_call_operand.vmem [shape: bf16[8,256], index: 3, kind: output, shape index: {}]  }
   0x1   :  { %v2063_v0 = vld [vmem:[%s4730_s1 + $0x70] sm:$0xf]  ;;  %v2613_v1 = vld [vmem:[%s4730_s1 + $0x74] sm:$0xf0]  ;;  %v2055_v11 = vld [vmem:[%s4730_s1 + $0x60] sm:$0xf] }
   0x2   :  { %v2127_v2 = vld [vmem:[%s4730_s1 + $0xf0] sm:$0xf]  ;;  %v2771_v3 = vor.u32 %v2613_v1, %v2063_v0  ;;  %v2629_v4 = vld [vmem:[%s4730_s1 + $0xf4] sm:$0xf0]  ;;  %v2611_v13 = vld [vmem:[%s4730_s1 + $0x64] sm:$0xf0] }
   0x3   :  { %v2191_v5 = vld [vmem:[%s4730_s1 + $0x170] sm:$0xf]  ;;  %v2645_v6 = vld [vmem:[%s4730_s1 + $0x174] sm:$0xf0]  ;;  %v2782_v7 = vor.u32 %v2629_v4, %v2127_v2  ;;  %v2119_v14 = vld [vmem:[%s4730_s1 + $0xe0] sm:$0xf]  ;;  %v2809_v16 = vor.u32 %v2611_v13, %v2055_v11 }
   0x4   :  { %v2784_v8 = vor.u32 %v2645_v6, %v2191_v5  ;;  %v2255_v9 = vld [vmem:[%s4730_s1 + $0x1f0] sm:$0xf]  ;;  %v2661_v10 = vld [vmem:[%s4730_s1 + $0x1f4] sm:$0xf0]  ;;  %915 = vmatpush.bf16.msra.mxu0 %v2771_v3  ;;  %v2627_v15 = vld [vmem:[%s4730_s1 + $0xe4] sm:$0xf0] }
   0x5   :  { %v2796_v12 = vor.u32 %v2661_v10, %v2255_v9  ;;  %928 = vmatpush.bf16.msra.mxu1 %v2782_v7  ;;  %v2811_v17 = vor.u32 %v2627_v15, %v2119_v14  ;;  %v2183_v18 = vld [vmem:[%s4730_s1 + $0x160] sm:$0xf]  ;;  %v2643_v19 = vld [vmem:[%s4730_s1 + $0x164] sm:$0xf0]  ;;  %v2047_v23 = vld [vmem:[%s4730_s1 + $0x50] sm:$0xf] }
   0x6   :  { %5008 = vst [vmem:[#allocation2_spill] sm:$0xff] %v2784_v8  ;;  %941 = vmatpush.bf16.msra.mxu2 %v2784_v8  ;;  %v2247_v20 = vld [vmem:[%s4730_s1 + $0x1e0] sm:$0xf]  ;;  %v2823_v21 = vor.u32 %v2643_v19, %v2183_v18  ;;  %v2659_v22 = vld [vmem:[%s4730_s1 + $0x1e4] sm:$0xf0] }
   0x7   :  { %5009 = vst [vmem:[#allocation3_spill] sm:$0xff] %v2796_v12  ;;  %954 = vmatpush.bf16.msra.mxu3 %v2796_v12  ;;  %v2609_v24 = vld [vmem:[%s4730_s1 + $0x54] sm:$0xf0]  ;;  %v2834_v25 = vor.u32 %v2659_v22, %v2247_v20  ;;  %v2111_v26 = vld [vmem:[%s4730_s1 + $0xd0] sm:$0xf] }
   0x8   :  { %5010 = vst [vmem:[#allocation4_spill] sm:$0xff] %v2823_v21  ;;  %v2625_v27 = vld [vmem:[%s4730_s1 + $0xd4] sm:$0xf0]  ;;  %v2175_v28 = vld [vmem:[%s4730_s1 + $0x150] sm:$0xf]  ;;  %916 = vmatpush.bf16.msra.mxu0 %v2809_v16  ;;  %v2846_v29 = vor.u32 %v2609_v24, %v2047_v23 }
   0x9   :  { %5011 = vst [vmem:[#allocation5_spill] sm:$0xff] %v2834_v25  ;;  %v2641_v30 = vld [vmem:[%s4730_s1 + $0x154] sm:$0xf0]  ;;  %v2239_v31 = vld [vmem:[%s4730_s1 + $0x1d0] sm:$0xf]  ;;  %929 = vmatpush.bf16.msra.mxu1 %v2811_v17  ;;  %v2859_v33 = vor.u32 %v2625_v27, %v2111_v26 }
   0xa   :  { %v2657_v32 = vld [vmem:[%s4730_s1 + $0x1d4] sm:$0xf0]  ;;  %942 = vmatpush.bf16.msra.mxu2 %v2823_v21  ;;  %v2861_v34 = vor.u32 %v2641_v30, %v2175_v28  ;;  %v2039_v35 = vld [vmem:[%s4730_s1 + $0x40] sm:$0xf]  ;;  %v2607_v36 = vld [vmem:[%s4730_s1 + $0x44] sm:$0xf0] }
   0xb   :  { %v2103_v37 = vld [vmem:[%s4730_s1 + $0xc0] sm:$0xf]  ;;  %955 = vmatpush.bf16.msra.mxu3 %v2834_v25  ;;  %v2873_v38 = vor.u32 %v2657_v32, %v2239_v31  ;;  %v2623_v39 = vld [vmem:[%s4730_s1 + $0xc4] sm:$0xf0]  ;;  %v2891_v44 = vor.u32 %v2607_v36, %v2039_v35  ;;  %v2031_v47 = vld [vmem:[%s4730_s1 + $0x30] sm:$0xf] }
   0xc   :  { %5012 = vst [vmem:[#allocation6_spill] sm:$0xff] %v2861_v34  ;;  %v2167_v40 = vld [vmem:[%s4730_s1 + $0x140] sm:$0xf]  ;;  %v2639_v41 = vld [vmem:[%s4730_s1 + $0x144] sm:$0xf0]  ;;  %917 = vmatpush.bf16.msra.mxu0 %v2846_v29  ;;  %v2895_v45 = vor.u32 %v2623_v39, %v2103_v37 }
   0xd   :  { %5013 = vst [vmem:[#allocation7_spill] sm:$0xff] %v2873_v38  ;;  %v2231_v42 = vld [vmem:[%s4730_s1 + $0x1c0] sm:$0xf]  ;;  %v2655_v43 = vld [vmem:[%s4730_s1 + $0x1c4] sm:$0xf0]  ;;  %930 = vmatpush.bf16.msra.mxu1 %v2859_v33  ;;  %v2897_v46 = vor.u32 %v2639_v41, %v2167_v40 }
   0xe   :  { %5014 = vst [vmem:[#allocation8_spill] sm:$0xff] %v2891_v44  ;;  %943 = vmatpush.bf16.msra.mxu2 %v2861_v34  ;;  %v2605_v48 = vld [vmem:[%s4730_s1 + $0x34] sm:$0xf0]  ;;  %v2095_v49 = vld [vmem:[%s4730_s1 + $0xb0] sm:$0xf]  ;;  %v2909_v50 = vor.u32 %v2655_v43, %v2231_v42 }
   0xf   :  { %5015 = vst [vmem:[#allocation9_spill] sm:$0xff] %v2895_v45  ;;  %956 = vmatpush.bf16.msra.mxu3 %v2873_v38  ;;  %v2621_v51 = vld [vmem:[%s4730_s1 + $0xb4] sm:$0xf0]  ;;  %v2159_v52 = vld [vmem:[%s4730_s1 + $0x130] sm:$0xf]  ;;  %v2927_v56 = vor.u32 %v2605_v48, %v2031_v47 }
  0x10   :  { %5016 = vst [vmem:[#allocation10_spill] sm:$0xff] %v2897_v46  ;;  %v2637_v53 = vld [vmem:[%s4730_s1 + $0x134] sm:$0xf0]  ;;  %v2223_v54 = vld [vmem:[%s4730_s1 + $0x1b0] sm:$0xf]  ;;  %918 = vmatpush.bf16.msra.mxu0 %v2891_v44  ;;  %v2931_v57 = vor.u32 %v2621_v51, %v2095_v49 }
  0x11   :  { %5017 = vst [vmem:[#allocation11_spill] sm:$0xff] %v2909_v50  ;;  %v2653_v55 = vld [vmem:[%s4730_s1 + $0x1b4] sm:$0xf0]  ;;  %931 = vmatpush.bf16.msra.mxu1 %v2895_v45  ;;  %v2933_v58 = vor.u32 %v2637_v53, %v2159_v52  ;;  %v2023_v59 = vld [vmem:[%s4730_s1 + $0x20] sm:$0xf] }
  0x12   :  { %5018 = vst [vmem:[#allocation12_spill] sm:$0xff] %v2927_v56  ;;  %944 = vmatpush.bf16.msra.mxu2 %v2897_v46  ;;  %v2603_v60 = vld [vmem:[%s4730_s1 + $0x24] sm:$0xf0]  ;;  %v2087_v61 = vld [vmem:[%s4730_s1 + $0xa0] sm:$0xf]  ;;  %v2945_v62 = vor.u32 %v2653_v55, %v2223_v54 }
  0x13   :  { %5019 = vst [vmem:[#allocation13_spill] sm:$0xff] %v2931_v57  ;;  %957 = vmatpush.bf16.msra.mxu3 %v2909_v50  ;;  %v2619_v63 = vld [vmem:[%s4730_s1 + $0xa4] sm:$0xf0]  ;;  %v2151_v0 = vld [vmem:[%s4730_s1 + $0x120] sm:$0xf]  ;;  %v2963_v5 = vor.u32 %v2603_v60, %v2023_v59 }
  0x14   :  { %5020 = vst [vmem:[#allocation14_spill] sm:$0xff] %v2933_v58  ;;  %v2635_v1 = vld [vmem:[%s4730_s1 + $0x124] sm:$0xf0]  ;;  %v2215_v2 = vld [vmem:[%s4730_s1 + $0x1a0] sm:$0xf]  ;;  %919 = vmatpush.bf16.msra.mxu0 %v2927_v56  ;;  %v2967_v6 = vor.u32 %v2619_v63, %v2087_v61 }
  0x15   :  { %5021 = vst [vmem:[#allocation15_spill] sm:$0xff] %v2945_v62  ;;  %v2651_v4 = vld [vmem:[%s4730_s1 + $0x1a4] sm:$0xf0]  ;;  %932 = vmatpush.bf16.msra.mxu1 %v2931_v57  ;;  %v2969_v9 = vor.u32 %v2635_v1, %v2151_v0  ;;  %v2015_v10 = vld [vmem:[%s4730_s1 + $0x10] sm:$0xf] }
  0x16   :  { %5022 = vst [vmem:[#allocation16_spill] sm:$0xff] %v2963_v5  ;;  %945 = vmatpush.bf16.msra.mxu2 %v2933_v58  ;;  %v2601_v11 = vld [vmem:[%s4730_s1 + $0x14] sm:$0xf0]  ;;  %v2079_v13 = vld [vmem:[%s4730_s1 + $0x90] sm:$0xf]  ;;  %v2981_v14 = vor.u32 %v2651_v4, %v2215_v2 }
  0x17   :  { %5023 = vst [vmem:[#allocation17_spill] sm:$0xff] %v2967_v6  ;;  %958 = vmatpush.bf16.msra.mxu3 %v2945_v62  ;;  %v2617_v15 = vld [vmem:[%s4730_s1 + $0x94] sm:$0xf0]  ;;  %v2143_v18 = vld [vmem:[%s4730_s1 + $0x110] sm:$0xf]  ;;  %v2999_v23 = vor.u32 %v2601_v11, %v2015_v10 }
  0x18   :  { %5024 = vst [vmem:[#allocation18_spill] sm:$0xff] %v2969_v9  ;;  %v2633_v19 = vld [vmem:[%s4730_s1 + $0x114] sm:$0xf0]  ;;  %v2207_v20 = vld [vmem:[%s4730_s1 + $0x190] sm:$0xf]  ;;  %920 = vmatpush.bf16.msra.mxu0 %v2963_v5  ;;  %v3009_v27 = vor.u32 %v2617_v15, %v2079_v13 }
  0x19   :  { %5025 = vst [vmem:[#allocation19_spill] sm:$0xff] %v2981_v14  ;;  %v2649_v22 = vld [vmem:[%s4730_s1 + $0x194] sm:$0xf0]  ;;  %v2007_v24 = vld [vmem:[%s4730_s1] sm:$0xf]  ;;  %933 = vmatpush.bf16.msra.mxu1 %v2967_v6  ;;  %v3011_v28 = vor.u32 %v2633_v19, %v2143_v18 }
  0x1a   :  { %5026 = vst [vmem:[#allocation20_spill] sm:$0xff] %v2999_v23  ;;  %v2599_v26 = vld [vmem:[%s4730_s1 + $0x4] sm:$0xf0]  ;;  %946 = vmatpush.bf16.msra.mxu2 %v2969_v9  ;;  %v2071_v30 = vld [vmem:[%s4730_s1 + $0x80] sm:$0xf]  ;;  %v3023_v35 = vor.u32 %v2649_v22, %v2207_v20 }
  0x1b   :  { %5027 = vst [vmem:[#allocation21_spill] sm:$0xff] %v3009_v27  ;;  %v2615_v31 = vld [vmem:[%s4730_s1 + $0x84] sm:$0xf0]  ;;  %v2135_v32 = vld [vmem:[%s4730_s1 + $0x100] sm:$0xf]  ;;  %959 = vmatpush.bf16.msra.mxu3 %v2981_v14  ;;  %v3044_v43 = vor.u32 %v2599_v26, %v2007_v24 }
  0x1c   :  { %5028 = vst [vmem:[#allocation22_spill] sm:$0xff] %v3011_v28  ;;  %v2631_v36 = vld [vmem:[%s4730_s1 + $0x104] sm:$0xf0]  ;;  %v2199_v37 = vld [vmem:[%s4730_s1 + $0x180] sm:$0xf]  ;;  %921 = vmatpush.bf16.msra.mxu0 %v2999_v23  ;;  %v3057_v51 = vor.u32 %v2615_v31, %v2071_v30 }
  0x1d   :  { %5029 = vst [vmem:[#allocation23_spill] sm:$0xff] %v3023_v35  ;;  %v2647_v39 = vld [vmem:[%s4730_s1 + $0x184] sm:$0xf0]  ;;  %v2319_v40 = vld [vmem:[%s4730_s1 + $0x270] sm:$0xf]  ;;  %934 = vmatpush.bf16.msra.mxu1 %v3009_v27  ;;  %v3059_v52 = vor.u32 %v2631_v36, %v2135_v32 }
  0x1e   :  { %v2677_v41 = vld [vmem:[%s4730_s1 + $0x274] sm:$0xf0]  ;;  %v2383_v42 = vld [vmem:[%s4730_s1 + $0x2f0] sm:$0xf]  ;;  %5030 = vst [vmem:[#allocation24_spill] sm:$0xff] %v3044_v43  ;;  %947 = vmatpush.bf16.msra.mxu2 %v3011_v28  ;;  %v3068_v55 = vor.u32 %v2647_v39, %v2199_v37  ;;  %v159_v30 = vld [vmem:[%s4731_s0 + $0x8] sm:$0xff] }
  0x1f   :  { %v2693_v47 = vld [vmem:[%s4730_s1 + $0x2f4] sm:$0xf0]  ;;  %v2447_v48 = vld [vmem:[%s4730_s1 + $0x370] sm:$0xf]  ;;  %5031 = vst [vmem:[#allocation25_spill] sm:$0xff] %v3057_v51  ;;  %960 = vmatpush.bf16.msra.mxu3 %v3023_v35  ;;  %v3070_v59 = vor.u32 %v2677_v41, %v2319_v40  ;;  %v170_v39 = vunpack.c.l.b16 %v159_v30  ;;  %v171_v40 = vunpack.c.h.b16 %v159_v30 }
  0x20   :  { %v2709_v49 = vld [vmem:[%s4730_s1 + $0x374] sm:$0xf0]  ;;  %5032 = vst [vmem:[#allocation26_spill] sm:$0xff] %v3059_v52  ;;  %v2511_v53 = vld [vmem:[%s4730_s1 + $0x3f0] sm:$0xf]  ;;  %v3072_v60 = vor.u32 %v2693_v47, %v2383_v42  ;;  %922 = vmatpush.bf16.msra.mxu0 %v3044_v43 }
  0x21   :  { %v2725_v54 = vld [vmem:[%s4730_s1 + $0x3f4] sm:$0xf0]  ;;  %5033 = vst [vmem:[#allocation27_spill] sm:$0xff] %v3068_v55  ;;  %v3074_v61 = vor.u32 %v2709_v49, %v2447_v48  ;;  %v2311_v63 = vld [vmem:[%s4730_s1 + $0x260] sm:$0xf]  ;;  %935 = vmatpush.bf16.msra.mxu1 %v3057_v51  ;;  %v3148_v48 = vpack.c.b16 %v170_v39, %v170_v39 }
  0x22   :  { %5034 = vst [vmem:[#allocation28_spill] sm:$0xff] %v3070_v59  ;;  %v2675_v0 = vld [vmem:[%s4730_s1 + $0x264] sm:$0xf0]  ;;  %v2375_v1 = vld [vmem:[%s4730_s1 + $0x2e0] sm:$0xf]  ;;  %v3086_v2 = vor.u32 %v2725_v54, %v2511_v53  ;;  %948 = vmatpush.bf16.msra.mxu2 %v3059_v52  ;;  %v3153_v53 = vpack.c.b16 %v171_v40, %v171_v40  ;;  %v161_v52 = vld [vmem:[%s4731_s0 + $0x18] sm:$0xff] }
  0x23   :  { %5035 = vst [vmem:[#allocation29_spill] sm:$0xff] %v3072_v60  ;;  %v2691_v4 = vld [vmem:[%s4730_s1 + $0x2e4] sm:$0xf0]  ;;  %v2439_v10 = vld [vmem:[%s4730_s1 + $0x360] sm:$0xf]  ;;  %961 = vmatpush.bf16.msra.mxu3 %v3068_v55  ;;  %v3107_v18 = vor.u32 %v2675_v0, %v2311_v63 }
  0x24   :  { %5036 = vst [vmem:[#allocation30_spill] sm:$0xff] %v3074_v61  ;;  %v2707_v11 = vld [vmem:[%s4730_s1 + $0x364] sm:$0xf0]  ;;  %v2503_v13 = vld [vmem:[%s4730_s1 + $0x3e0] sm:$0xf]  ;;  %967 = vmatpush.bf16.msrb.mxu0 %v3070_v59  ;;  %v3114_v20 = vor.u32 %v2691_v4, %v2375_v1 }
  0x25   :  { %5037 = vst [vmem:[#allocation31_spill] sm:$0xff] %v3086_v2  ;;  %v2723_v15 = vld [vmem:[%s4730_s1 + $0x3e4] sm:$0xf0]  ;;  %v2303_v19 = vld [vmem:[%s4730_s1 + $0x250] sm:$0xf]  ;;  %980 = vmatpush.bf16.msrb.mxu1 %v3072_v60  ;;  %v3116_v22 = vor.u32 %v2707_v11, %v2439_v10  ;;  %v158_v49 = vld [vmem:[%s4731_s0] sm:$0xff]  ;;  %949 = vmatmul.bf16.vlgmr.msra.gmra.mxu2 %v3148_v48 }
  0x26   :  { %5038 = vst [vmem:[#allocation32_spill] sm:$0xff] %v3107_v18  ;;  %993 = vmatpush.bf16.msrb.mxu2 %v3074_v61  ;;  %v2673_v24 = vld [vmem:[%s4730_s1 + $0x254] sm:$0xf0]  ;;  %v2367_v26 = vld [vmem:[%s4730_s1 + $0x2d0] sm:$0xf]  ;;  %v3128_v31 = vor.u32 %v2723_v15, %v2503_v13  ;;  %v168_v10 = vunpack.c.l.b16 %v158_v49  ;;  %v169_v11 = vunpack.c.h.b16 %v158_v49  ;;  %962 = vmatmul.bf16.vlgmr.msra.gmra.mxu3 %v3153_v53 }
  0x27   :  { %5039 = vst [vmem:[#allocation33_spill] sm:$0xff] %v3114_v20  ;;  %1006 = vmatpush.bf16.msrb.mxu3 %v3086_v2  ;;  %v2689_v32 = vld [vmem:[%s4730_s1 + $0x2d4] sm:$0xf0]  ;;  %v2431_v36 = vld [vmem:[%s4730_s1 + $0x350] sm:$0xf]  ;;  %v3146_v47 = vor.u32 %v2673_v24, %v2303_v19 }
  0x28   :  { %5040 = vst [vmem:[#allocation34_spill] sm:$0xff] %v3116_v22  ;;  %v2705_v37 = vld [vmem:[%s4730_s1 + $0x354] sm:$0xf0]  ;;  %v2495_v41 = vld [vmem:[%s4730_s1 + $0x3d0] sm:$0xf]  ;;  %968 = vmatpush.bf16.msrb.mxu0 %v3107_v18  ;;  %v3157_v54 = vor.u32 %v2689_v32, %v2367_v26  ;;  %v3189_v32 = vpack.c.b16 %v168_v10, %v168_v10 }
  0x29   :  { %5041 = vst [vmem:[#allocation35_spill] sm:$0xff] %v3128_v31  ;;  %v2721_v42 = vld [vmem:[%s4730_s1 + $0x3d4] sm:$0xf0]  ;;  %981 = vmatpush.bf16.msrb.mxu1 %v3114_v20  ;;  %v3159_v63 = vor.u32 %v2705_v37, %v2431_v36  ;;  %v2295_v0 = vld [vmem:[%s4730_s1 + $0x240] sm:$0xf]  ;;  %v3192_v36 = vpack.c.b16 %v169_v11, %v169_v11 }
  0x2a   :  { %5042 = vst [vmem:[#allocation36_spill] sm:$0xff] %v3146_v47  ;;  %994 = vmatpush.bf16.msrb.mxu2 %v3116_v22  ;;  %v2671_v1 = vld [vmem:[%s4730_s1 + $0x244] sm:$0xf0]  ;;  %v2359_v4 = vld [vmem:[%s4730_s1 + $0x2c0] sm:$0xf]  ;;  %v3171_v13 = vor.u32 %v2721_v42, %v2495_v41  ;;  %923 = vmatmul.bf16.vlgmr.msra.gmra.mxu0 %v3189_v32 }
  0x2b   :  { %5043 = vst [vmem:[#allocation37_spill] sm:$0xff] %v3157_v54  ;;  %1007 = vmatpush.bf16.msrb.mxu3 %v3128_v31  ;;  %v2687_v15 = vld [vmem:[%s4730_s1 + $0x2c4] sm:$0xf0]  ;;  %v2423_v19 = vld [vmem:[%s4730_s1 + $0x340] sm:$0xf]  ;;  %v3195_v37 = vor.u32 %v2671_v1, %v2295_v0  ;;  %936 = vmatmul.bf16.vlgmr.msra.gmra.mxu1 %v3192_v36 }
  0x2c   :  { %5044 = vst [vmem:[#allocation38_spill] sm:$0xff] %v3159_v63  ;;  %v2703_v24 = vld [vmem:[%s4730_s1 + $0x344] sm:$0xf0]  ;;  %v2487_v26 = vld [vmem:[%s4730_s1 + $0x3c0] sm:$0xf]  ;;  %969 = vmatpush.bf16.msrb.mxu0 %v3146_v47  ;;  %v3199_v39 = vor.u32 %v2687_v15, %v2359_v4 }
  0x2d   :  { %5045 = vst [vmem:[#allocation39_spill] sm:$0xff] %v3171_v13  ;;  %v2719_v30 = vld [vmem:[%s4730_s1 + $0x3c4] sm:$0xf0]  ;;  %982 = vmatpush.bf16.msrb.mxu1 %v3157_v54  ;;  %v3201_v40 = vor.u32 %v2703_v24, %v2423_v19  ;;  %v2287_v41 = vld [vmem:[%s4730_s1 + $0x230] sm:$0xf] }
  0x2e   :  { %5046 = vst [vmem:[#allocation40_spill] sm:$0xff] %v3195_v37  ;;  %995 = vmatpush.bf16.msrb.mxu2 %v3159_v63  ;;  %v2669_v42 = vld [vmem:[%s4730_s1 + $0x234] sm:$0xf0]  ;;  %v2351_v49 = vld [vmem:[%s4730_s1 + $0x2b0] sm:$0xf]  ;;  %v3213_v0 = vor.u32 %v2719_v30, %v2487_v26 }
  0x2f   :  { %5047 = vst [vmem:[#allocation41_spill] sm:$0xff] %v3199_v39  ;;  %1008 = vmatpush.bf16.msrb.mxu3 %v3171_v13  ;;  %v2685_v1 = vld [vmem:[%s4730_s1 + $0x2b4] sm:$0xf0]  ;;  %v2415_v4 = vld [vmem:[%s4730_s1 + $0x330] sm:$0xf]  ;;  %v3233_v19 = vor.u32 %v2669_v42, %v2287_v41 }
  0x30   :  { %5048 = vst [vmem:[#allocation42_spill] sm:$0xff] %v3201_v40  ;;  %v2701_v10 = vld [vmem:[%s4730_s1 + $0x334] sm:$0xf0]  ;;  %v2479_v11 = vld [vmem:[%s4730_s1 + $0x3b0] sm:$0xf]  ;;  %970 = vmatpush.bf16.msrb.mxu0 %v3195_v37  ;;  %v3237_v24 = vor.u32 %v2685_v1, %v2351_v49 }
  0x31   :  { %5049 = vst [vmem:[#allocation43_spill] sm:$0xff] %v3213_v0  ;;  %v2717_v15 = vld [vmem:[%s4730_s1 + $0x3b4] sm:$0xf0]  ;;  %983 = vmatpush.bf16.msrb.mxu1 %v3199_v39  ;;  %v3239_v26 = vor.u32 %v2701_v10, %v2415_v4  ;;  %v2279_v30 = vld [vmem:[%s4730_s1 + $0x220] sm:$0xf] }
  0x32   :  { %5050 = vst [vmem:[#allocation44_spill] sm:$0xff] %v3233_v19  ;;  %996 = vmatpush.bf16.msrb.mxu2 %v3201_v40  ;;  %v2667_v13 = vld [vmem:[%s4730_s1 + $0x224] sm:$0xf0]  ;;  %v2343_v41 = vld [vmem:[%s4730_s1 + $0x2a0] sm:$0xf]  ;;  %v3251_v42 = vor.u32 %v2717_v15, %v2479_v11 }
  0x33   :  { %5051 = vst [vmem:[#allocation45_spill] sm:$0xff] %v3237_v24  ;;  %1009 = vmatpush.bf16.msrb.mxu3 %v3213_v0  ;;  %v2683_v49 = vld [vmem:[%s4730_s1 + $0x2a4] sm:$0xf0]  ;;  %v2407_v1 = vld [vmem:[%s4730_s1 + $0x320] sm:$0xf]  ;;  %v3269_v15 = vor.u32 %v2667_v13, %v2279_v30 }
  0x34   :  { %5052 = vst [vmem:[#allocation46_spill] sm:$0xff] %v3239_v26  ;;  %v2699_v4 = vld [vmem:[%s4730_s1 + $0x324] sm:$0xf0]  ;;  %v2471_v10 = vld [vmem:[%s4730_s1 + $0x3a0] sm:$0xf]  ;;  %971 = vmatpush.bf16.msrb.mxu0 %v3233_v19  ;;  %v3273_v0 = vor.u32 %v2683_v49, %v2343_v41 }
  0x35   :  { %5053 = vst [vmem:[#allocation47_spill] sm:$0xff] %v3251_v42  ;;  %v2715_v11 = vld [vmem:[%s4730_s1 + $0x3a4] sm:$0xf0]  ;;  %984 = vmatpush.bf16.msrb.mxu1 %v3237_v24  ;;  %v3275_v40 = vor.u32 %v2699_v4, %v2407_v1  ;;  %v2271_v63 = vld [vmem:[%s4730_s1 + $0x210] sm:$0xf]  ;;  %v175_v24 = vunpack.c.h.b16 %v161_v52 }
  0x36   :  { %5054 = vst [vmem:[#allocation48_spill] sm:$0xff] %v3269_v15  ;;  %997 = vmatpush.bf16.msrb.mxu2 %v3239_v26  ;;  %v2665_v31 = vld [vmem:[%s4730_s1 + $0x214] sm:$0xf0]  ;;  %v2335_v13 = vld [vmem:[%s4730_s1 + $0x290] sm:$0xf]  ;;  %v3287_v30 = vor.u32 %v2715_v11, %v2471_v10 }
  0x37   :  { %5055 = vst [vmem:[#allocation49_spill] sm:$0xff] %v3273_v0  ;;  %1010 = vmatpush.bf16.msrb.mxu3 %v3251_v42  ;;  %v2681_v41 = vld [vmem:[%s4730_s1 + $0x294] sm:$0xf0]  ;;  %v2399_v49 = vld [vmem:[%s4730_s1 + $0x310] sm:$0xf]  ;;  %v3308_v42 = vor.u32 %v2665_v31, %v2271_v63 }
  0x38   :  { %5056 = vst [vmem:[#allocation50_spill] sm:$0xff] %v3275_v40  ;;  %v2697_v1 = vld [vmem:[%s4730_s1 + $0x314] sm:$0xf0]  ;;  %v2463_v4 = vld [vmem:[%s4730_s1 + $0x390] sm:$0xf]  ;;  %972 = vmatpush.bf16.msrb.mxu0 %v3269_v15  ;;  %v3321_v61 = vor.u32 %v2681_v41, %v2335_v13  ;;  %v174_v15 = vunpack.c.l.b16 %v161_v52 }
  0x39   :  { %5057 = vst [vmem:[#allocation51_spill] sm:$0xff] %v3287_v30  ;;  %v2713_v10 = vld [vmem:[%s4730_s1 + $0x394] sm:$0xf0]  ;;  %v2263_v11 = vld [vmem:[%s4730_s1 + $0x200] sm:$0xf]  ;;  %985 = vmatpush.bf16.msrb.mxu1 %v3273_v0  ;;  %v3323_v31 = vor.u32 %v2697_v1, %v2399_v49  ;;  %v160_v49 = vld [vmem:[%s4731_s0 + $0x10] sm:$0xff] }
  0x3a   :  { %5058 = vst [vmem:[#allocation52_spill] sm:$0xff] %v3308_v42  ;;  %v2663_v26 = vld [vmem:[%s4730_s1 + $0x204] sm:$0xf0]  ;;  %v2327_v22 = vld [vmem:[%s4730_s1 + $0x280] sm:$0xf]  ;;  %998 = vmatpush.bf16.msrb.mxu2 %v3275_v40  ;;  %v3335_v35 = vor.u32 %v2713_v10, %v2463_v4  ;;  %v172_v9 = vunpack.c.l.b16 %v160_v49 }
  0x3b   :  { %v2679_v2 = vld [vmem:[%s4730_s1 + $0x284] sm:$0xf0]  ;;  %5059 = vst [vmem:[#allocation53_spill] sm:$0xff] %v3321_v61  ;;  %v2391_v63 = vld [vmem:[%s4730_s1 + $0x300] sm:$0xf]  ;;  %1011 = vmatpush.bf16.msrb.mxu3 %v3287_v30  ;;  %v3356_v30 = vor.u32 %v2663_v26, %v2263_v11 }
  0x3c   :  { %5060 = vst [vmem:[#allocation54_spill] sm:$0xff] %v3323_v31  ;;  %v2695_v55 = vld [vmem:[%s4730_s1 + $0x304] sm:$0xf0]  ;;  %v2455_v13 = vld [vmem:[%s4730_s1 + $0x380] sm:$0xf]  ;;  %973 = vmatpush.bf16.msrb.mxu0 %v3308_v42  ;;  %v3369_v42 = vor.u32 %v2679_v2, %v2327_v22  ;;  %v173_v2 = vunpack.c.h.b16 %v160_v49 }
  0x3d   :  { %5061 = vst [vmem:[#allocation55_spill] sm:$0xff] %v3335_v35  ;;  %v2711_v41 = vld [vmem:[%s4730_s1 + $0x384] sm:$0xf0]  ;;  %v2575_v1 = vld [vmem:[%s4730_s1 + $0x470] sm:$0xf]  ;;  %986 = vmatpush.bf16.msrb.mxu1 %v3321_v61  ;;  %v3371_v26 = vor.u32 %v2695_v55, %v2391_v63 }
  0x3e   :  { %v2741_v4 = vld [vmem:[%s4730_s1 + $0x474] sm:$0xf0]  ;;  %v2612_v10 = vld [vmem:[%s4730_s1 + $0x74] sm:$0xf]  ;;  %5062 = vst [vmem:[#allocation56_spill] sm:$0xff] %v3356_v30  ;;  %999 = vmatpush.bf16.msrb.mxu2 %v3323_v31  ;;  %v3380_v19 = vor.u32 %v2711_v41, %v2455_v13  ;;  %v3409_v41 = vpack.c.b16 %v174_v15, %v174_v15 }
  0x3f   :  { %v2065_v40 = vld [vmem:[%s4730_s1 + $0x78] sm:$0xf0]  ;;  %v2628_v28 = vld [vmem:[%s4730_s1 + $0xf4] sm:$0xf]  ;;  %5063 = vst [vmem:[#allocation57_spill] sm:$0xff] %v3369_v42  ;;  %1012 = vmatpush.bf16.msrb.mxu3 %v3335_v35  ;;  %v3382_v61 = vor.u32 %v2741_v4, %v2575_v1  ;;  %v3419_v1 = vpack.c.b16 %v172_v9, %v172_v9  ;;  %v3421_v4 = vpack.c.b16 %v175_v24, %v175_v24 }
  0x40   :  { %v2129_v0 = vld [vmem:[%s4730_s1 + $0xf8] sm:$0xf0]  ;;  %5064 = vst [vmem:[#allocation58_spill] sm:$0xff] %v3371_v26  ;;  %v2644_v11 = vld [vmem:[%s4730_s1 + $0x174] sm:$0xf]  ;;  %v3384_v22 = vor.u32 %v2612_v10, %v2065_v40  ;;  %974 = vmatpush.bf16.msrb.mxu0 %v3356_v30  ;;  %v3427_v10 = vpack.c.b16 %v173_v2, %v173_v2 }
  0x41   :  { %v2193_v14 = vld [vmem:[%s4730_s1 + $0x178] sm:$0xf0]  ;;  %5065 = vst [vmem:[#allocation59_spill] sm:$0xff] %v3380_v19  ;;  %v3386_v55 = vor.u32 %v2628_v28, %v2129_v0  ;;  %v2567_v63 = vld [vmem:[%s4730_s1 + $0x460] sm:$0xf]  ;;  %987 = vmatpush.bf16.msrb.mxu1 %v3369_v42 }
  0x42   :  { %5066 = vst [vmem:[#allocation60_spill] sm:$0xff] %v3382_v61  ;;  %v2739_v31 = vld [vmem:[%s4730_s1 + $0x464] sm:$0xf0]  ;;  %v2610_v52 = vld [vmem:[%s4730_s1 + $0x64] sm:$0xf]  ;;  %v3398_v13 = vor.u32 %v2644_v11, %v2193_v14  ;;  %1000 = vmatpush.bf16.msrb.mxu2 %v3371_v26 }
  0x43   :  { %5067 = vst [vmem:[#allocation61_spill] sm:$0xff] %v3384_v22  ;;  %v2057_v28 = vld [vmem:[%s4730_s1 + $0x68] sm:$0xf0]  ;;  %v2626_v40 = vld [vmem:[%s4730_s1 + $0xe4] sm:$0xf]  ;;  %1013 = vmatpush.bf16.msrb.mxu3 %v3380_v19  ;;  %v3425_v15 = vor.u32 %v2739_v31, %v2567_v63  ;;  %975 = vmatmul.bf16.vlgmr.msrb.gmra.mxu0 %v3419_v1 }
  0x44   :  { %5068 = vst [vmem:[#allocation62_spill] sm:$0xff] %v3386_v55  ;;  %v2121_v0 = vld [vmem:[%s4730_s1 + $0xe8] sm:$0xf0]  ;;  %v2642_v14 = vld [vmem:[%s4730_s1 + $0x164] sm:$0xf]  ;;  %1019 = vmatpush.bf16.msra.mxu0 %v3382_v61  ;;  %v3431_v11 = vor.u32 %v2610_v52, %v2057_v28  ;;  %988 = vmatmul.bf16.vlgmr.msrb.gmra.mxu1 %v3427_v10 }
  0x45   :  { %5069 = vst [vmem:[#allocation63_spill] sm:$0xff] %v3398_v13  ;;  %v2185_v49 = vld [vmem:[%s4730_s1 + $0x168] sm:$0xf0]  ;;  %1032 = vmatpush.bf16.msra.mxu1 %v3384_v22  ;;  %v3433_v26 = vor.u32 %v2626_v40, %v2121_v0  ;;  %v2559_v9 = vld [vmem:[%s4730_s1 + $0x450] sm:$0xf]  ;;  %1001 = vmatmul.bf16.vlgmr.msrb.gmra.mxu2 %v3409_v41 }
  0x46   :  { %5070 = vst [vmem:[#allocation64_spill] sm:$0xff] %v3425_v15  ;;  %1045 = vmatpush.bf16.msra.mxu2 %v3386_v55  ;;  %v2737_v24 = vld [vmem:[%s4730_s1 + $0x454] sm:$0xf0]  ;;  %v2608_v31 = vld [vmem:[%s4730_s1 + $0x54] sm:$0xf]  ;;  %v3445_v2 = vor.u32 %v2642_v14, %v2185_v49  ;;  %1014 = vmatmul.bf16.vlgmr.msrb.gmra.mxu3 %v3421_v4 }
  0x47   :  { %5071 = vst [vmem:[#allocation65_spill] sm:$0xff] %v3431_v11  ;;  %1058 = vmatpush.bf16.msra.mxu3 %v3398_v13  ;;  %v2049_v63 = vld [vmem:[%s4730_s1 + $0x58] sm:$0xf0]  ;;  %v2624_v52 = vld [vmem:[%s4730_s1 + $0xd4] sm:$0xf]  ;;  %v3466_v14 = vor.u32 %v2737_v24, %v2559_v9 }
  0x48   :  { %5072 = vst [vmem:[#allocation66_spill] sm:$0xff] %v3433_v26  ;;  %v2113_v28 = vld [vmem:[%s4730_s1 + $0xd8] sm:$0xf0]  ;;  %v2640_v40 = vld [vmem:[%s4730_s1 + $0x154] sm:$0xf]  ;;  %1020 = vmatpush.bf16.msra.mxu0 %v3425_v15  ;;  %v3471_v49 = vor.u32 %v2608_v31, %v2049_v63 }
  0x49   :  { %5073 = vst [vmem:[#allocation67_spill] sm:$0xff] %v3445_v2  ;;  %v2177_v0 = vld [vmem:[%s4730_s1 + $0x158] sm:$0xf0]  ;;  %1033 = vmatpush.bf16.msra.mxu1 %v3431_v11  ;;  %v3473_v13 = vor.u32 %v2624_v52, %v2113_v28  ;;  %v2551_v55 = vld [vmem:[%s4730_s1 + $0x440] sm:$0xf] }
  0x4a   :  { %5074 = vst [vmem:[#allocation68_spill] sm:$0xff] %v3466_v14  ;;  %1046 = vmatpush.bf16.msra.mxu2 %v3433_v26  ;;  %v2735_v19 = vld [vmem:[%s4730_s1 + $0x444] sm:$0xf0]  ;;  %v2606_v9 = vld [vmem:[%s4730_s1 + $0x44] sm:$0xf]  ;;  %v3485_v24 = vor.u32 %v2640_v40, %v2177_v0 }
  0x4b   :  { %5075 = vst [vmem:[#allocation69_spill] sm:$0xff] %v3471_v49  ;;  %1059 = vmatpush.bf16.msra.mxu3 %v3445_v2  ;;  %v2041_v31 = vld [vmem:[%s4730_s1 + $0x48] sm:$0xf0]  ;;  %v2622_v63 = vld [vmem:[%s4730_s1 + $0xc4] sm:$0xf]  ;;  %v3503_v0 = vor.u32 %v2735_v19, %v2551_v55 }
  0x4c   :  { %5076 = vst [vmem:[#allocation70_spill] sm:$0xff] %v3473_v13  ;;  %v2105_v52 = vld [vmem:[%s4730_s1 + $0xc8] sm:$0xf0]  ;;  %v2638_v28 = vld [vmem:[%s4730_s1 + $0x144] sm:$0xf]  ;;  %1021 = vmatpush.bf16.msra.mxu0 %v3466_v14  ;;  %v3507_v2 = vor.u32 %v2606_v9, %v2041_v31 }
  0x4d   :  { %5077 = vst [vmem:[#allocation71_spill] sm:$0xff] %v3485_v24  ;;  %v2169_v40 = vld [vmem:[%s4730_s1 + $0x148] sm:$0xf0]  ;;  %1034 = vmatpush.bf16.msra.mxu1 %v3471_v49  ;;  %v3509_v26 = vor.u32 %v2622_v63, %v2105_v52  ;;  %v2543_v35 = vld [vmem:[%s4730_s1 + $0x430] sm:$0xf] }
  0x4e   :  { %5078 = vst [vmem:[#allocation72_spill] sm:$0xff] %v3503_v0  ;;  %1047 = vmatpush.bf16.msra.mxu2 %v3473_v13  ;;  %v2733_v11 = vld [vmem:[%s4730_s1 + $0x434] sm:$0xf0]  ;;  %v2604_v19 = vld [vmem:[%s4730_s1 + $0x34] sm:$0xf]  ;;  %v3521_v55 = vor.u32 %v2638_v28, %v2169_v40 }
  0x4f   :  { %5079 = vst [vmem:[#allocation73_spill] sm:$0xff] %v3507_v2  ;;  %1060 = vmatpush.bf16.msra.mxu3 %v3485_v24  ;;  %v2033_v9 = vld [vmem:[%s4730_s1 + $0x38] sm:$0xf0]  ;;  %v2620_v31 = vld [vmem:[%s4730_s1 + $0xb4] sm:$0xf]  ;;  %v3539_v40 = vor.u32 %v2733_v11, %v2543_v35 }
  0x50   :  { %5080 = vst [vmem:[#allocation74_spill] sm:$0xff] %v3509_v26  ;;  %v2097_v63 = vld [vmem:[%s4730_s1 + $0xb8] sm:$0xf0]  ;;  %v2636_v52 = vld [vmem:[%s4730_s1 + $0x134] sm:$0xf]  ;;  %1022 = vmatpush.bf16.msra.mxu0 %v3503_v0  ;;  %v3543_v24 = vor.u32 %v2604_v19, %v2033_v9 }
  0x51   :  { %5081 = vst [vmem:[#allocation75_spill] sm:$0xff] %v3521_v55  ;;  %v2161_v28 = vld [vmem:[%s4730_s1 + $0x138] sm:$0xf0]  ;;  %1035 = vmatpush.bf16.msra.mxu1 %v3507_v2  ;;  %v3545_v13 = vor.u32 %v2620_v31, %v2097_v63  ;;  %v2535_v49 = vld [vmem:[%s4730_s1 + $0x420] sm:$0xf] }
  0x52   :  { %5082 = vst [vmem:[#allocation76_spill] sm:$0xff] %v3539_v40  ;;  %1048 = vmatpush.bf16.msra.mxu2 %v3509_v26  ;;  %v2731_v14 = vld [vmem:[%s4730_s1 + $0x424] sm:$0xf0]  ;;  %v2602_v35 = vld [vmem:[%s4730_s1 + $0x24] sm:$0xf]  ;;  %v3557_v11 = vor.u32 %v2636_v52, %v2161_v28 }
  0x53   :  { %5083 = vst [vmem:[#allocation77_spill] sm:$0xff] %v3543_v24  ;;  %1061 = vmatpush.bf16.msra.mxu3 %v3521_v55  ;;  %v2025_v19 = vld [vmem:[%s4730_s1 + $0x28] sm:$0xf0]  ;;  %v2618_v9 = vld [vmem:[%s4730_s1 + $0xa4] sm:$0xf]  ;;  %v3575_v28 = vor.u32 %v2731_v14, %v2535_v49 }
  0x54   :  { %5084 = vst [vmem:[#allocation78_spill] sm:$0xff] %v3545_v13  ;;  %v2089_v31 = vld [vmem:[%s4730_s1 + $0xa8] sm:$0xf0]  ;;  %v2634_v63 = vld [vmem:[%s4730_s1 + $0x124] sm:$0xf]  ;;  %1023 = vmatpush.bf16.msra.mxu0 %v3539_v40  ;;  %v3579_v55 = vor.u32 %v2602_v35, %v2025_v19 }
  0x55   :  { %5085 = vst [vmem:[#allocation79_spill] sm:$0xff] %v3557_v11  ;;  %v2153_v52 = vld [vmem:[%s4730_s1 + $0x128] sm:$0xf0]  ;;  %1036 = vmatpush.bf16.msra.mxu1 %v3543_v24  ;;  %v3581_v26 = vor.u32 %v2618_v9, %v2089_v31  ;;  %v2527_v2 = vld [vmem:[%s4730_s1 + $0x410] sm:$0xf] }
  0x56   :  { %5086 = vst [vmem:[#allocation80_spill] sm:$0xff] %v3575_v28  ;;  %1049 = vmatpush.bf16.msra.mxu2 %v3545_v13  ;;  %v2729_v0 = vld [vmem:[%s4730_s1 + $0x414] sm:$0xf0]  ;;  %v2600_v14 = vld [vmem:[%s4730_s1 + $0x14] sm:$0xf]  ;;  %v3593_v49 = vor.u32 %v2634_v63, %v2153_v52 }
  0x57   :  { %5087 = vst [vmem:[#allocation81_spill] sm:$0xff] %v3579_v55  ;;  %1062 = vmatpush.bf16.msra.mxu3 %v3557_v11  ;;  %v2017_v35 = vld [vmem:[%s4730_s1 + $0x18] sm:$0xf0]  ;;  %v2616_v19 = vld [vmem:[%s4730_s1 + $0x94] sm:$0xf]  ;;  %v3611_v52 = vor.u32 %v2729_v0, %v2527_v2 }
  0x58   :  { %5088 = vst [vmem:[#allocation82_spill] sm:$0xff] %v3581_v26  ;;  %v2081_v9 = vld [vmem:[%s4730_s1 + $0x98] sm:$0xf0]  ;;  %v2632_v31 = vld [vmem:[%s4730_s1 + $0x114] sm:$0xf]  ;;  %1024 = vmatpush.bf16.msra.mxu0 %v3575_v28  ;;  %v3624_v40 = vor.u32 %v2600_v14, %v2017_v35 }
  0x59   :  { %5089 = vst [vmem:[#allocation83_spill] sm:$0xff] %v3593_v49  ;;  %v2145_v63 = vld [vmem:[%s4730_s1 + $0x118] sm:$0xf0]  ;;  %v2519_v11 = vld [vmem:[%s4730_s1 + $0x400] sm:$0xf]  ;;  %1037 = vmatpush.bf16.msra.mxu1 %v3579_v55  ;;  %v3626_v2 = vor.u32 %v2616_v19, %v2081_v9 }
  0x5a   :  { %5090 = vst [vmem:[#allocation84_spill] sm:$0xff] %v3611_v52  ;;  %v2727_v13 = vld [vmem:[%s4730_s1 + $0x404] sm:$0xf0]  ;;  %v2598_v24 = vld [vmem:[%s4730_s1 + $0x4] sm:$0xf]  ;;  %1050 = vmatpush.bf16.msra.mxu2 %v3581_v26  ;;  %v3638_v55 = vor.u32 %v2632_v31, %v2145_v63 }
  0x5b   :  { %5091 = vst [vmem:[#allocation85_spill] sm:$0xff] %v3624_v40  ;;  %v2009_v0 = vld [vmem:[%s4730_s1 + $0x8] sm:$0xf0]  ;;  %v2614_v28 = vld [vmem:[%s4730_s1 + $0x84] sm:$0xf]  ;;  %1063 = vmatpush.bf16.msra.mxu3 %v3593_v49  ;;  %v3659_v49 = vor.u32 %v2727_v13, %v2519_v11 }
  0x5c   :  { %5092 = vst [vmem:[#allocation86_spill] sm:$0xff] %v3626_v2  ;;  %v162_v15 = vld [vmem:[%s4731_s0 + $0x20] sm:$0xf]  ;;  %v2073_v14 = vld [vmem:[%s4730_s1 + $0x88] sm:$0xf0]  ;;  %1025 = vmatpush.bf16.msra.mxu0 %v3611_v52  ;;  %v3672_v52 = vor.u32 %v2598_v24, %v2009_v0 }
  0x5d   :  { %5093 = vst [vmem:[#allocation87_spill] sm:$0xff] %v3638_v55  ;;  %v2630_v35 = vld [vmem:[%s4730_s1 + $0x104] sm:$0xf]  ;;  %v2137_v19 = vld [vmem:[%s4730_s1 + $0x108] sm:$0xf0]  ;;  %v176_v42 = vunpack.c.l.b16 %v162_v15  ;;  %1038 = vmatpush.bf16.msra.mxu1 %v3624_v40  ;;  %v3674_v13 = vor.u32 %v2614_v28, %v2073_v14 }
  0x5e   :  { %v2660_v9 = vld [vmem:[%s4730_s1 + $0x1f4] sm:$0xf]  ;;  %v2257_v31 = vld [vmem:[%s4730_s1 + $0x1f8] sm:$0xf0]  ;;  %5094 = vst [vmem:[#allocation88_spill] sm:$0xff] %v3659_v49  ;;  %1051 = vmatpush.bf16.msra.mxu2 %v3626_v2  ;;  %v3683_v62 = vor.u32 %v2630_v35, %v2137_v19 }
  0x5f   :  { %v2676_v63 = vld [vmem:[%s4730_s1 + $0x274] sm:$0xf]  ;;  %v2321_v26 = vld [vmem:[%s4730_s1 + $0x278] sm:$0xf0]  ;;  %5095 = vst [vmem:[#allocation89_spill] sm:$0xff] %v3672_v52  ;;  %1064 = vmatpush.bf16.msra.mxu3 %v3638_v55  ;;  %v3685_v15 = vor.u32 %v2660_v9, %v2257_v31 }
  0x60   :  { %v2692_v22 = vld [vmem:[%s4730_s1 + $0x2f4] sm:$0xf]  ;;  %v2385_v61 = vld [vmem:[%s4730_s1 + $0x2f8] sm:$0xf0]  ;;  %5096 = vst [vmem:[#allocation90_spill] sm:$0xff] %v3674_v13  ;;  %v3687_v40 = vor.u32 %v2676_v63, %v2321_v26  ;;  %1026 = vmatpush.bf16.msra.mxu0 %v3659_v49  ;;  %v3703_v26 = vpack.c.b16 %v176_v42, %v176_v42 }
  0x61   :  { %v2708_v11 = vld [vmem:[%s4730_s1 + $0x374] sm:$0xf]  ;;  %v2449_v30 = vld [vmem:[%s4730_s1 + $0x378] sm:$0xf0]  ;;  %5097 = vst [vmem:[#allocation91_spill] sm:$0xff] %v3683_v62  ;;  %v3689_v24 = vor.u32 %v2692_v22, %v2385_v61  ;;  %1039 = vmatpush.bf16.msra.mxu1 %v3672_v52 }
  0x62   :  { %5098 = vst [vmem:[#allocation92_spill] sm:$0xff] %v3685_v15  ;;  %v2658_v28 = vld [vmem:[%s4730_s1 + $0x1e4] sm:$0xf]  ;;  %v2249_v0 = vld [vmem:[%s4730_s1 + $0x1e8] sm:$0xf0]  ;;  %v3701_v35 = vor.u32 %v2708_v11, %v2449_v30  ;;  %1052 = vmatpush.bf16.msra.mxu2 %v3674_v13 }
  0x63   :  { %5099 = vst [vmem:[#allocation93_spill] sm:$0xff] %v3687_v40  ;;  %v2674_v14 = vld [vmem:[%s4730_s1 + $0x264] sm:$0xf]  ;;  %v2313_v61 = vld [vmem:[%s4730_s1 + $0x268] sm:$0xf0]  ;;  %1065 = vmatpush.bf16.msra.mxu3 %v3683_v62  ;;  %v3724_v9 = vor.u32 %v2658_v28, %v2249_v0  ;;  %1027 = vmatmul.bf16.vlgmr.msra.gmra.mxu0 %v3703_v26 }
  0x64   :  { %5100 = vst [vmem:[#allocation94_spill] sm:$0xff] %v3689_v24  ;;  %v2690_v22 = vld [vmem:[%s4730_s1 + $0x2e4] sm:$0xf]  ;;  %v2377_v19 = vld [vmem:[%s4730_s1 + $0x2e8] sm:$0xf0]  ;;  %1071 = vmatpush.bf16.msrb.mxu0 %v3685_v15  ;;  %v3728_v31 = vor.u32 %v2674_v14, %v2313_v61  ;;  %1040 = vmatmul.bf16.vlgmr.msra.gmra.mxu1 %v3189_v32 }
  0x65   :  { %5101 = vst [vmem:[#allocation95_spill] sm:$0xff] %v3701_v35  ;;  %v2706_v42 = vld [vmem:[%s4730_s1 + $0x364] sm:$0xf]  ;;  %v2441_v30 = vld [vmem:[%s4730_s1 + $0x368] sm:$0xf0]  ;;  %1084 = vmatpush.bf16.msrb.mxu1 %v3687_v40  ;;  %v3730_v63 = vor.u32 %v2690_v22, %v2377_v19  ;;  %1053 = vmatmul.bf16.vlgmr.msra.gmra.mxu2 %v3192_v36 }
  0x66   :  { %5102 = vst [vmem:[#allocation96_spill] sm:$0xff] %v3724_v9  ;;  %1097 = vmatpush.bf16.msrb.mxu2 %v3689_v24  ;;  %v2656_v11 = vld [vmem:[%s4730_s1 + $0x1d4] sm:$0xf]  ;;  %v2241_v62 = vld [vmem:[%s4730_s1 + $0x1d8] sm:$0xf0]  ;;  %v3743_v0 = vor.u32 %v2706_v42, %v2441_v30  ;;  %1066 = vmatmul.bf16.vlgmr.msra.gmra.mxu3 %v3148_v48 }
  0x67   :  { %5103 = vst [vmem:[#allocation97_spill] sm:$0xff] %v3728_v31  ;;  %v2672_v28 = vld [vmem:[%s4730_s1 + $0x254] sm:$0xf]  ;;  %1110 = vmatpush.bf16.msrb.mxu3 %v3701_v35  ;;  %v2305_v14 = vld [vmem:[%s4730_s1 + $0x258] sm:$0xf0]  ;;  %v3763_v30 = vor.u32 %v2656_v11, %v2241_v62 }
  0x68   :  { %5104 = vst [vmem:[#allocation98_spill] sm:$0xff] %v3730_v63  ;;  %v2688_v61 = vld [vmem:[%s4730_s1 + $0x2d4] sm:$0xf]  ;;  %v2369_v22 = vld [vmem:[%s4730_s1 + $0x2d8] sm:$0xf0]  ;;  %1072 = vmatpush.bf16.msrb.mxu0 %v3724_v9  ;;  %v3768_v35 = vor.u32 %v2672_v28, %v2305_v14 }
  0x69   :  { %5105 = vst [vmem:[#allocation99_spill] sm:$0xff] %v3743_v0  ;;  %v2704_v19 = vld [vmem:[%s4730_s1 + $0x354] sm:$0xf]  ;;  %v2433_v42 = vld [vmem:[%s4730_s1 + $0x358] sm:$0xf0]  ;;  %1085 = vmatpush.bf16.msrb.mxu1 %v3728_v31  ;;  %v3770_v24 = vor.u32 %v2688_v61, %v2369_v22 }
  0x6a   :  { %5106 = vst [vmem:[#allocation100_spill] sm:$0xff] %v3763_v30  ;;  %1098 = vmatpush.bf16.msrb.mxu2 %v3730_v63  ;;  %v2654_v36 = vld [vmem:[%s4730_s1 + $0x1c4] sm:$0xf]  ;;  %v2233_v48 = vld [vmem:[%s4730_s1 + $0x1c8] sm:$0xf0]  ;;  %v3782_v32 = vor.u32 %v2704_v19, %v2433_v42 }
  0x6b   :  { %5107 = vst [vmem:[#allocation101_spill] sm:$0xff] %v3768_v35  ;;  %v2670_v62 = vld [vmem:[%s4730_s1 + $0x244] sm:$0xf]  ;;  %1111 = vmatpush.bf16.msrb.mxu3 %v3743_v0  ;;  %v2297_v11 = vld [vmem:[%s4730_s1 + $0x248] sm:$0xf0]  ;;  %v3800_v19 = vor.u32 %v2654_v36, %v2233_v48 }
  0x6c   :  { %5108 = vst [vmem:[#allocation102_spill] sm:$0xff] %v3770_v24  ;;  %v2686_v28 = vld [vmem:[%s4730_s1 + $0x2c4] sm:$0xf]  ;;  %v2361_v14 = vld [vmem:[%s4730_s1 + $0x2c8] sm:$0xf0]  ;;  %1073 = vmatpush.bf16.msrb.mxu0 %v3763_v30  ;;  %v3804_v42 = vor.u32 %v2670_v62, %v2297_v11 }
  0x6d   :  { %5109 = vst [vmem:[#allocation103_spill] sm:$0xff] %v3782_v32  ;;  %v2702_v61 = vld [vmem:[%s4730_s1 + $0x344] sm:$0xf]  ;;  %v2425_v22 = vld [vmem:[%s4730_s1 + $0x348] sm:$0xf0]  ;;  %1086 = vmatpush.bf16.msrb.mxu1 %v3768_v35  ;;  %v3806_v0 = vor.u32 %v2686_v28, %v2361_v14 }
  0x6e   :  { %5110 = vst [vmem:[#allocation104_spill] sm:$0xff] %v3800_v19  ;;  %1099 = vmatpush.bf16.msrb.mxu2 %v3770_v24  ;;  %v2652_v63 = vld [vmem:[%s4730_s1 + $0x1b4] sm:$0xf]  ;;  %v2225_v13 = vld [vmem:[%s4730_s1 + $0x1b8] sm:$0xf0]  ;;  %v3818_v48 = vor.u32 %v2702_v61, %v2425_v22 }
  0x6f   :  { %5111 = vst [vmem:[#allocation105_spill] sm:$0xff] %v3804_v42  ;;  %v2668_v36 = vld [vmem:[%s4730_s1 + $0x234] sm:$0xf]  ;;  %1112 = vmatpush.bf16.msrb.mxu3 %v3782_v32  ;;  %v2289_v62 = vld [vmem:[%s4730_s1 + $0x238] sm:$0xf0]  ;;  %v3836_v22 = vor.u32 %v2652_v63, %v2225_v13 }
  0x70   :  { %5112 = vst [vmem:[#allocation106_spill] sm:$0xff] %v3806_v0  ;;  %v2684_v11 = vld [vmem:[%s4730_s1 + $0x2b4] sm:$0xf]  ;;  %v2353_v28 = vld [vmem:[%s4730_s1 + $0x2b8] sm:$0xf0]  ;;  %1074 = vmatpush.bf16.msrb.mxu0 %v3800_v19  ;;  %v3840_v32 = vor.u32 %v2668_v36, %v2289_v62 }
  0x71   :  { %5113 = vst [vmem:[#allocation107_spill] sm:$0xff] %v3818_v48  ;;  %v2700_v14 = vld [vmem:[%s4730_s1 + $0x334] sm:$0xf]  ;;  %v2417_v61 = vld [vmem:[%s4730_s1 + $0x338] sm:$0xf0]  ;;  %1087 = vmatpush.bf16.msrb.mxu1 %v3804_v42  ;;  %v3842_v24 = vor.u32 %v2684_v11, %v2353_v28 }
  0x72   :  { %5114 = vst [vmem:[#allocation108_spill] sm:$0xff] %v3836_v22  ;;  %1100 = vmatpush.bf16.msrb.mxu2 %v3806_v0  ;;  %v2650_v55 = vld [vmem:[%s4730_s1 + $0x1a4] sm:$0xf]  ;;  %v2217_v2 = vld [vmem:[%s4730_s1 + $0x1a8] sm:$0xf0]  ;;  %v3854_v63 = vor.u32 %v2700_v14, %v2417_v61 }
  0x73   :  { %5115 = vst [vmem:[#allocation109_spill] sm:$0xff] %v3840_v32  ;;  %v2666_v13 = vld [vmem:[%s4730_s1 + $0x224] sm:$0xf]  ;;  %1113 = vmatpush.bf16.msrb.mxu3 %v3818_v48  ;;  %v2281_v36 = vld [vmem:[%s4730_s1 + $0x228] sm:$0xf0]  ;;  %v3872_v61 = vor.u32 %v2650_v55, %v2217_v2 }
  0x74   :  { %5116 = vst [vmem:[#allocation110_spill] sm:$0xff] %v3842_v24  ;;  %v2682_v62 = vld [vmem:[%s4730_s1 + $0x2a4] sm:$0xf]  ;;  %v2345_v11 = vld [vmem:[%s4730_s1 + $0x2a8] sm:$0xf0]  ;;  %1075 = vmatpush.bf16.msrb.mxu0 %v3836_v22  ;;  %v3876_v48 = vor.u32 %v2666_v13, %v2281_v36 }
  0x75   :  { %5117 = vst [vmem:[#allocation111_spill] sm:$0xff] %v3854_v63  ;;  %v2698_v28 = vld [vmem:[%s4730_s1 + $0x324] sm:$0xf]  ;;  %v2409_v14 = vld [vmem:[%s4730_s1 + $0x328] sm:$0xf0]  ;;  %1088 = vmatpush.bf16.msrb.mxu1 %v3840_v32  ;;  %v3878_v0 = vor.u32 %v2682_v62, %v2345_v11 }
  0x76   :  { %5118 = vst [vmem:[#allocation112_spill] sm:$0xff] %v3872_v61  ;;  %1101 = vmatpush.bf16.msrb.mxu2 %v3842_v24  ;;  %v2648_v42 = vld [vmem:[%s4730_s1 + $0x194] sm:$0xf]  ;;  %v2209_v19 = vld [vmem:[%s4730_s1 + $0x198] sm:$0xf0]  ;;  %v3890_v2 = vor.u32 %v2698_v28, %v2409_v14 }
  0x77   :  { %5119 = vst [vmem:[#allocation113_spill] sm:$0xff] %v3876_v48  ;;  %v2664_v55 = vld [vmem:[%s4730_s1 + $0x214] sm:$0xf]  ;;  %1114 = vmatpush.bf16.msrb.mxu3 %v3854_v63  ;;  %v2273_v13 = vld [vmem:[%s4730_s1 + $0x218] sm:$0xf0]  ;;  %v3908_v14 = vor.u32 %v2648_v42, %v2209_v19 }
  0x78   :  { %5120 = vst [vmem:[#allocation114_spill] sm:$0xff] %v3878_v0  ;;  %v2680_v36 = vld [vmem:[%s4730_s1 + $0x294] sm:$0xf]  ;;  %v2337_v62 = vld [vmem:[%s4730_s1 + $0x298] sm:$0xf0]  ;;  %1076 = vmatpush.bf16.msrb.mxu0 %v3872_v61  ;;  %v3915_v24 = vor.u32 %v2664_v55, %v2273_v13 }
  0x79   :  { %5121 = vst [vmem:[#allocation115_spill] sm:$0xff] %v3890_v2  ;;  %v2696_v11 = vld [vmem:[%s4730_s1 + $0x314] sm:$0xf]  ;;  %v2401_v28 = vld [vmem:[%s4730_s1 + $0x318] sm:$0xf0]  ;;  %1089 = vmatpush.bf16.msrb.mxu1 %v3876_v48  ;;  %v3917_v32 = vor.u32 %v2680_v36, %v2337_v62 }
  0x7a   :  { %5122 = vst [vmem:[#allocation116_spill] sm:$0xff] %v3908_v14  ;;  %v2646_v63 = vld [vmem:[%s4730_s1 + $0x184] sm:$0xf]  ;;  %1102 = vmatpush.bf16.msrb.mxu2 %v3878_v0  ;;  %v2201_v22 = vld [vmem:[%s4730_s1 + $0x188] sm:$0xf0]  ;;  %v3929_v48 = vor.u32 %v2696_v11, %v2401_v28 }
  0x7b   :  { %5123 = vst [vmem:[#allocation117_spill] sm:$0xff] %v3915_v24  ;;  %v2662_v19 = vld [vmem:[%s4730_s1 + $0x204] sm:$0xf]  ;;  %v2265_v42 = vld [vmem:[%s4730_s1 + $0x208] sm:$0xf0]  ;;  %1115 = vmatpush.bf16.msrb.mxu3 %v3890_v2  ;;  %v3950_v2 = vor.u32 %v2646_v63, %v2201_v22 }
  0x7c   :  { %5124 = vst [vmem:[#allocation118_spill] sm:$0xff] %v3917_v32  ;;  %v2678_v55 = vld [vmem:[%s4730_s1 + $0x284] sm:$0xf]  ;;  %v2329_v13 = vld [vmem:[%s4730_s1 + $0x288] sm:$0xf0]  ;;  %1077 = vmatpush.bf16.msrb.mxu0 %v3908_v14  ;;  %v3960_v35 = vor.u32 %v2662_v19, %v2265_v42 }
  0x7d   :  { %5125 = vst [vmem:[#allocation119_spill] sm:$0xff] %v3929_v48  ;;  %v2694_v36 = vld [vmem:[%s4730_s1 + $0x304] sm:$0xf]  ;;  %v2393_v62 = vld [vmem:[%s4730_s1 + $0x308] sm:$0xf0]  ;;  %1090 = vmatpush.bf16.msrb.mxu1 %v3915_v24  ;;  %v3962_v30 = vor.u32 %v2678_v55, %v2329_v13 }
  0x7e   :  { %v2724_v11 = vld [vmem:[%s4730_s1 + $0x3f4] sm:$0xf]  ;;  %v2513_v28 = vld [vmem:[%s4730_s1 + $0x3f8] sm:$0xf0]  ;;  %5126 = vst [vmem:[#allocation120_spill] sm:$0xff] %v3950_v2  ;;  %1103 = vmatpush.bf16.msrb.mxu2 %v3917_v32  ;;  %v3965_v22 = vor.u32 %v2694_v36, %v2393_v62 }
  0x7f   :  { %v2740_v0 = vld [vmem:[%s4730_s1 + $0x474] sm:$0xf]  ;;  %v2577_v61 = vld [vmem:[%s4730_s1 + $0x478] sm:$0xf0]  ;;  %5127 = vst [vmem:[#allocation121_spill] sm:$0xff] %v3960_v35  ;;  %1116 = vmatpush.bf16.msrb.mxu3 %v3929_v48  ;;  %v3967_v63 = vor.u32 %v2724_v11, %v2513_v28 }
  0x80   :  { %5128 = vst [vmem:[#allocation122_spill] sm:$0xff] %v3962_v30  ;;  %v3969_v14 = vor.u32 %v2740_v0, %v2577_v61  ;;  %v2722_v31 = vld [vmem:[%s4730_s1 + $0x3e4] sm:$0xf]  ;;  %v2505_v32 = vld [vmem:[%s4730_s1 + $0x3e8] sm:$0xf0]  ;;  %1078 = vmatpush.bf16.msrb.mxu0 %v3950_v2 }
  0x81   :  { %5129 = vst [vmem:[#allocation123_spill] sm:$0xff] %v3965_v22  ;;  %v2738_v19 = vld [vmem:[%s4730_s1 + $0x464] sm:$0xf]  ;;  %v2569_v42 = vld [vmem:[%s4730_s1 + $0x468] sm:$0xf0]  ;;  %1091 = vmatpush.bf16.msrb.mxu1 %v3960_v35  ;;  %v3988_v0 = vor.u32 %v2722_v31, %v2505_v32 }
  0x82   :  { %5130 = vst [vmem:[#allocation124_spill] sm:$0xff] %v3967_v63  ;;  %1104 = vmatpush.bf16.msrb.mxu2 %v3962_v30  ;;  %v3992_v61 = vor.u32 %v2738_v19, %v2569_v42  ;;  %v2720_v55 = vld [vmem:[%s4730_s1 + $0x3d4] sm:$0xf]  ;;  %v2497_v13 = vld [vmem:[%s4730_s1 + $0x3d8] sm:$0xf0] }
  0x83   :  { %5131 = vst [vmem:[#allocation125_spill] sm:$0xff] %v3969_v14  ;;  %1117 = vmatpush.bf16.msrb.mxu3 %v3965_v22  ;;  %v2736_v31 = vld [vmem:[%s4730_s1 + $0x454] sm:$0xf]  ;;  %v2561_v32 = vld [vmem:[%s4730_s1 + $0x458] sm:$0xf0]  ;;  %1079 = vmatmul.bf16.vlgmr.msrb.gmra.mxu0 %v3153_v53  ;;  %v4011_v36 = vor.u32 %v2720_v55, %v2497_v13 }
  0x84   :  { %1123 = vmatpush.bf16.msra.mxu0 %v3967_v63  ;;  %5132 = vst [vmem:[#allocation126_spill] sm:$0xff] %v3988_v0  ;;  %1092 = vmatmul.bf16.vlgmr.msrb.gmra.mxu1 %v3419_v1  ;;  %v2718_v62 = vld [vmem:[%s4730_s1 + $0x3c4] sm:$0xf]  ;;  %v2489_v53 = vld [vmem:[%s4730_s1 + $0x3c8] sm:$0xf0] }
  0x85   :  { %1136 = vmatpush.bf16.msra.mxu1 %v3969_v14  ;;  %5133 = vst [vmem:[#allocation127_spill] sm:$0xff] %v3992_v61  ;;  %1105 = vmatmul.bf16.vlgmr.msrb.gmra.mxu2 %v3427_v10  ;;  %v4016_v10 = vor.u32 %v2736_v31, %v2561_v32  ;;  %v2553_v1 = vld [vmem:[%s4730_s1 + $0x448] sm:$0xf0]  ;;  %v4032_v11 = vor.u32 %v2718_v62, %v2489_v53  ;;  %v2716_v19 = vld [vmem:[%s4730_s1 + $0x3b4] sm:$0xf] }
  0x86   :  { %1187 = vmatpush.bf16.msra.mxu2 %v2771_v3  ;;  %1118 = vmatmul.bf16.vlgmr.msrb.gmra.mxu3 %v3409_v41  ;;  %5134 = vst [vmem:[#allocation128_spill] sm:$0xff] %v4011_v36  ;;  %v2734_v41 = vld [vmem:[%s4730_s1 + $0x444] sm:$0xf]  ;;  %v2481_v42 = vld [vmem:[%s4730_s1 + $0x3b8] sm:$0xf0] }
  0x87   :  { %1200 = vmatpush.bf16.msra.mxu3 %v2782_v7  ;;  %v4036_v28 = vor.u32 %v2734_v41, %v2553_v1  ;;  %v2732_v55 = vld [vmem:[%s4730_s1 + $0x434] sm:$0xf]  ;;  %v2545_v13 = vld [vmem:[%s4730_s1 + $0x438] sm:$0xf0]  ;;  %v4052_v31 = vor.u32 %v2716_v19, %v2481_v42  ;;  %v2714_v62 = vld [vmem:[%s4730_s1 + $0x3a4] sm:$0xf] }
  0x88   :  { %1124 = vmatpush.bf16.msra.mxu0 %v3988_v0  ;;  %v4056_v32 = vor.u32 %v2732_v55, %v2545_v13  ;;  %v2473_v53 = vld [vmem:[%s4730_s1 + $0x3a8] sm:$0xf0]  ;;  %v2730_v41 = vld [vmem:[%s4730_s1 + $0x424] sm:$0xf]  ;;  %v2712_v55 = vld [vmem:[%s4730_s1 + $0x394] sm:$0xf] }
  0x89   :  { %1137 = vmatpush.bf16.msra.mxu1 %v3992_v61  ;;  %5135 = vst [vmem:[#allocation129_spill] sm:$0xff] %v4036_v28  ;;  %v2537_v1 = vld [vmem:[%s4730_s1 + $0x428] sm:$0xf0]  ;;  %v4072_v19 = vor.u32 %v2714_v62, %v2473_v53  ;;  %v2465_v13 = vld [vmem:[%s4730_s1 + $0x398] sm:$0xf0] }
  0x8a   :  { %1188 = vmatpush.bf16.msra.mxu2 %v2809_v16  ;;  %v4076_v42 = vor.u32 %v2730_v41, %v2537_v1  ;;  %v2728_v62 = vld [vmem:[%s4730_s1 + $0x414] sm:$0xf]  ;;  %v2529_v53 = vld [vmem:[%s4730_s1 + $0x418] sm:$0xf0]  ;;  %v4092_v41 = vor.u32 %v2712_v55, %v2465_v13  ;;  %v2726_v55 = vld [vmem:[%s4730_s1 + $0x404] sm:$0xf] }
  0x8b   :  { %1201 = vmatpush.bf16.msra.mxu3 %v2811_v17  ;;  %v4096_v1 = vor.u32 %v2728_v62, %v2529_v53  ;;  %v2521_v13 = vld [vmem:[%s4730_s1 + $0x408] sm:$0xf0]  ;;  %v2581_v62 = vld [vmem:[%s4731_s0 + $0x24] sm:$0xff] }
  0x8c   :  { %1125 = vmatpush.bf16.msra.mxu0 %v4011_v36  ;;  %5136 = vst [vmem:[#allocation130_spill] sm:$0xff] %v4076_v42 }
  0x8d   :  { %1138 = vmatpush.bf16.msra.mxu1 %v4016_v10  ;;  %5137 = vst [vmem:[#allocation131_spill] sm:$0xff] %v4092_v41 }
  0x8e   :  { %1189 = vmatpush.bf16.msra.mxu2 %v2846_v29  ;;  %5138 = vst [vmem:[#allocation132_spill] sm:$0xff] %v4096_v1 }
  0x8f   :  { %1202 = vmatpush.bf16.msra.mxu3 %v2859_v33 }
  0x90   :  { %1126 = vmatpush.bf16.msra.mxu0 %v4032_v11 }
  0x91   :  { %1139 = vmatpush.bf16.msra.mxu1 %v4036_v28 }
  0x92   :  { %1190 = vmatpush.bf16.msra.mxu2 %v2891_v44 }
  0x93   :  { %1203 = vmatpush.bf16.msra.mxu3 %v2895_v45  ;;  %v1161_v45 = vunpack.c.h.b16 %v2581_v62 }
  0x94   :  { %1127 = vmatpush.bf16.msra.mxu0 %v4052_v31 }
  0x95   :  { %1140 = vmatpush.bf16.msra.mxu1 %v4056_v32 }
  0x96   :  { %1191 = vmatpush.bf16.msra.mxu2 %v2927_v56  ;;  %v2457_v56 = vld [vmem:[%s4730_s1 + $0x388] sm:$0xf0] }
  0x97   :  { %1204 = vmatpush.bf16.msra.mxu3 %v2931_v57  ;;  %v2710_v57 = vld [vmem:[%s4730_s1 + $0x384] sm:$0xf] }
  0x98   :  { %1128 = vmatpush.bf16.msra.mxu0 %v4072_v19  ;;  %v4115_v53 = vor.u32 %v2710_v57, %v2457_v56  ;;  %v4129_v56 = vpack.c.b16 %v1161_v45, %v1161_v45 }
  0x99   :  { %1141 = vmatpush.bf16.msra.mxu1 %v4076_v42 }
  0x9a   :  { %1192 = vmatpush.bf16.msra.mxu2 %v2963_v5  ;;  %5139 = vst [vmem:[#allocation133_spill] sm:$0xff] %v4115_v53  ;;  %v1160_v5 = vunpack.c.l.b16 %v2581_v62 }
  0x9b   :  { %1205 = vmatpush.bf16.msra.mxu3 %v2967_v6  ;;  %v4119_v6 = vor.u32 %v2726_v55, %v2521_v13  ;;  %v5143_v13 = vld [vmem:[#allocation45_spill] sm:$0xff] }
  0x9c   :  { %1129 = vmatpush.bf16.msra.mxu0 %v4092_v41  ;;  %v4125_v44 = vpack.c.b16 %v1160_v5, %v1160_v5  ;;  %v5141_v5 = vld [vmem:[#allocation15_spill] sm:$0xff] }
  0x9d   :  { %1142 = vmatpush.bf16.msra.mxu1 %v4096_v1  ;;  %5140 = vst [vmem:[#allocation134_spill] sm:$0xff] %v4119_v6 }
  0x9e   :  { %1193 = vmatpush.bf16.msra.mxu2 %v2999_v23 }
  0x9f   :  { %1206 = vmatpush.bf16.msra.mxu3 %v3009_v27  ;;  %v5151_v27 = vld [vmem:[#allocation53_spill] sm:$0xff] }
  0xa0   :  { %1130 = vmatpush.bf16.msra.mxu0 %v4115_v53 }
  0xa1   :  { %1143 = vmatpush.bf16.msra.mxu1 %v4119_v6 }
  0xa2   :  { %1194 = vmatpush.bf16.msra.mxu2 %v3044_v43 }
  0xa3   :  { %1207 = vmatpush.bf16.msra.mxu3 %v3057_v51  ;;  %1131 = vmatmul.bf16.vlgmr.msra.gmra.mxu0 %v3421_v4  ;;  %v5142_v4 = vld [vmem:[#allocation44_spill] sm:$0xff] }
  0xa4   :  { %1213 = vmatpush.bf16.msrb.mxu0 %v2784_v8  ;;  %1144 = vmatmul.bf16.vlgmr.msra.gmra.mxu1 %v3703_v26 }
  0xa5   :  { %1226 = vmatpush.bf16.msrb.mxu1 %v2796_v12  ;;  %1195 = vmatmul.bf16.vlgmr.msra.gmra.mxu2 %v4125_v44 }
  0xa6   :  { %1239 = vmatpush.bf16.msrb.mxu2 %v3070_v59  ;;  %1208 = vmatmul.bf16.vlgmr.msra.gmra.mxu3 %v4129_v56  ;;  %v5150_v59 = vld [vmem:[#allocation52_spill] sm:$0xff] }
  0xa7   :  { %1252 = vmatpush.bf16.msrb.mxu3 %v3072_v60  ;;  %v924_v45 = vpop.f32.mrf.mxu0  ;;  %v5147_v60 = vld [vmem:[#allocation49_spill] sm:$0xff] }
  0xa8   :  { %1214 = vmatpush.bf16.msrb.mxu0 %v2823_v21  ;;  %v937_v57 = vpop.f32.mrf.mxu1  ;;  %v950_v55 = vpop.f32.mrf.mxu2 }
  0xa9   :  { %1227 = vmatpush.bf16.msrb.mxu1 %v2834_v25  ;;  %v938_v26 = vadd.f32 %v937_v57, %v924_v45  ;;  %v963_v62 = vpop.f32.mrf.mxu3  ;;  %v2582_v45 = vld [vmem:[%s4731_s0 + $0x2c] sm:$0xff] }
  0xaa   :  { %1240 = vmatpush.bf16.msrb.mxu2 %v3107_v18 }
  0xab   :  { %1253 = vmatpush.bf16.msrb.mxu3 %v3114_v20  ;;  %v5145_v20 = vld [vmem:[#allocation19_spill] sm:$0xff] }
  0xac   :  { %1215 = vmatpush.bf16.msrb.mxu0 %v2861_v34 }
  0xad   :  { %1228 = vmatpush.bf16.msrb.mxu1 %v2873_v38 }
  0xae   :  { %1241 = vmatpush.bf16.msrb.mxu2 %v3146_v47  ;;  %v5144_v47 = vld [vmem:[#allocation18_spill] sm:$0xff] }
  0xaf   :  { %1254 = vmatpush.bf16.msrb.mxu3 %v3157_v54  ;;  %v951_v54 = vadd.f32 %v950_v55, %v938_v26  ;;  %v926_v57 = vpop.f32.mrf.mxu0 }
  0xb0   :  { %1216 = vmatpush.bf16.msrb.mxu0 %v2897_v46  ;;  %v939_v55 = vpop.f32.mrf.mxu1  ;;  %v952_v43 = vpop.f32.mrf.mxu2  ;;  %v5153_v57 = vld [vmem:[#allocation27_spill] sm:$0xff] }
  0xb1   :  { %1229 = vmatpush.bf16.msrb.mxu1 %v2909_v50  ;;  %v964_v18 = vadd.f32 %v963_v62, %v951_v54  ;;  %v1163_v54 = vunpack.c.h.b16 %v2582_v45  ;;  %v965_v62 = vpop.f32.mrf.mxu3 }
  0xb2   :  { %1242 = vmatpush.bf16.msrb.mxu2 %v3195_v37  ;;  %v5146_v37 = vld [vmem:[#allocation48_spill] sm:$0xff] }
  0xb3   :  { %1255 = vmatpush.bf16.msrb.mxu3 %v3199_v39  ;;  %v2583_v39 = vld [vmem:[%s4731_s0 + $0x34] sm:$0xff]  ;;  %v4179_v43 = vpack.c.b16 %v1163_v54, %v1163_v54 }
  0xb4   :  { %1217 = vmatpush.bf16.msrb.mxu0 %v2933_v58  ;;  %v1164_v26 = vunpack.c.l.b16 %v2583_v39  ;;  %v1165_v51 = vunpack.c.h.b16 %v2583_v39  ;;  %v5156_v39 = vld [vmem:[#allocation30_spill] sm:$0xff]  ;;  %v5158_v62 = vld [vmem:[#allocation60_spill] sm:$0xff] }
  0xb5   :  { %1230 = vmatpush.bf16.msrb.mxu1 %v5141_v5  ;;  %v5162_v54 = vld [vmem:[#allocation64_spill] sm:$0xff]  ;;  %v5172_v5 = vld [vmem:[#allocation46_spill] sm:$0xff] }
  0xb6   :  { %1243 = vmatpush.bf16.msrb.mxu2 %v5142_v4  ;;  %v5149_v4 = vld [vmem:[#allocation23_spill] sm:$0xff]  ;;  %v4169_v23 = vpack.c.b16 %v1164_v26, %v1164_v26  ;;  %v5159_v26 = vld [vmem:[#allocation61_spill] sm:$0xff] }
  0xb7   :  { %1256 = vmatpush.bf16.msrb.mxu3 %v5143_v13  ;;  %v5148_v13 = vld [vmem:[#allocation22_spill] sm:$0xff] }
  0xb8   :  { %1218 = vmatpush.bf16.msrb.mxu0 %v5144_v47 }
  0xb9   :  { %1231 = vmatpush.bf16.msrb.mxu1 %v5145_v20  ;;  %v5169_v20 = vld [vmem:[#allocation43_spill] sm:$0xff] }
  0xba   :  { %1244 = vmatpush.bf16.msrb.mxu2 %v5146_v37  ;;  %v1162_v37 = vunpack.c.l.b16 %v2582_v45  ;;  %v5157_v45 = vld [vmem:[#allocation31_spill] sm:$0xff] }
  0xbb   :  { %1257 = vmatpush.bf16.msrb.mxu3 %v5147_v60  ;;  %v5152_v60 = vld [vmem:[#allocation26_spill] sm:$0xff] }
  0xbc   :  { %1219 = vmatpush.bf16.msrb.mxu0 %v5148_v13  ;;  %v5154_v13 = vld [vmem:[#allocation56_spill] sm:$0xff]  ;;  %v4173_v55 = vpack.c.b16 %v1162_v37, %v1162_v37  ;;  %v5161_v37 = vld [vmem:[#allocation35_spill] sm:$0xff] }
  0xbd   :  { %1232 = vmatpush.bf16.msrb.mxu1 %v5149_v4  ;;  %v4175_v4 = vpack.c.b16 %v1165_v51, %v1165_v51  ;;  %v5160_v51 = vld [vmem:[#allocation34_spill] sm:$0xff] }
  0xbe   :  { %1245 = vmatpush.bf16.msrb.mxu2 %v5150_v59  ;;  %v5155_v59 = vld [vmem:[#allocation57_spill] sm:$0xff] }
  0xbf   :  { %1258 = vmatpush.bf16.msrb.mxu3 %v5151_v27  ;;  %v5166_v27 = vld [vmem:[#allocation68_spill] sm:$0xff] }
  0xc0   :  { %1220 = vmatpush.bf16.msrb.mxu0 %v5152_v60  ;;  %v5168_v60 = vld [vmem:[#allocation42_spill] sm:$0xff] }
  0xc1   :  { %1233 = vmatpush.bf16.msrb.mxu1 %v5153_v57  ;;  %v5167_v57 = vld [vmem:[#allocation69_spill] sm:$0xff] }
  0xc2   :  { %1246 = vmatpush.bf16.msrb.mxu2 %v5154_v13  ;;  %v5164_v13 = vld [vmem:[#allocation38_spill] sm:$0xff] }
  0xc3   :  { %1259 = vmatpush.bf16.msrb.mxu3 %v5155_v59  ;;  %1221 = vmatmul.bf16.vlgmr.msrb.gmra.mxu0 %v4173_v55  ;;  %v5163_v59 = vld [vmem:[#allocation65_spill] sm:$0xff] }
  0xc4   :  { %1265 = vmatpush.bf16.msra.mxu0 %v5156_v39  ;;  %1234 = vmatmul.bf16.vlgmr.msrb.gmra.mxu1 %v4179_v43  ;;  %v989_v39 = vpop.f32.mrf.mxu1 }
  0xc5   :  { %1278 = vmatpush.bf16.msra.mxu1 %v5157_v45  ;;  %1247 = vmatmul.bf16.vlgmr.msrb.gmra.mxu2 %v4169_v23 }
  0xc6   :  { %1291 = vmatpush.bf16.msra.mxu2 %v5158_v62  ;;  %1260 = vmatmul.bf16.vlgmr.msrb.gmra.mxu3 %v4175_v4  ;;  %v976_v62 = vpop.f32.mrf.mxu0 }
  0xc7   :  { %1304 = vmatpush.bf16.msra.mxu3 %v5159_v26  ;;  %v5165_v26 = vld [vmem:[#allocation39_spill] sm:$0xff]  ;;  %v977_v45 = vadd.f32 %v976_v62, %v964_v18  ;;  %v5174_v62 = vld [vmem:[#allocation76_spill] sm:$0xff] }
  0xc8   :  { %1266 = vmatpush.bf16.msra.mxu0 %v5160_v51  ;;  %v5173_v18 = vld [vmem:[#allocation47_spill] sm:$0xff] }
  0xc9   :  { %1279 = vmatpush.bf16.msra.mxu1 %v5161_v37  ;;  %v990_v51 = vadd.f32 %v989_v39, %v977_v45  ;;  %v5170_v37 = vld [vmem:[#allocation72_spill] sm:$0xff]  ;;  %v1015_v47 = vpop.f32.mrf.mxu3  ;;  %v5175_v45 = vld [vmem:[#allocation77_spill] sm:$0xff] }
  0xca   :  { %1292 = vmatpush.bf16.msra.mxu2 %v5162_v54  ;;  %v1002_v54 = vpop.f32.mrf.mxu2 }
  0xcb   :  { %1305 = vmatpush.bf16.msra.mxu3 %v5163_v59  ;;  %v5171_v59 = vld [vmem:[#allocation73_spill] sm:$0xff] }
  0xcc   :  { %1267 = vmatpush.bf16.msra.mxu0 %v5164_v13  ;;  %v1003_v13 = vadd.f32 %v1002_v54, %v990_v51  ;;  %v991_v39 = vpop.f32.mrf.mxu1  ;;  %v2584_v51 = vld [vmem:[%s4731_s0 + $0x3c] sm:$0xff] }
  0xcd   :  { %1280 = vmatpush.bf16.msra.mxu1 %v5165_v26  ;;  %v5180_v39 = vld [vmem:[#allocation54_spill] sm:$0xff] }
  0xce   :  { %1293 = vmatpush.bf16.msra.mxu2 %v5166_v27  ;;  %v1016_v26 = vadd.f32 %v1015_v47, %v1003_v13  ;;  %v978_v27 = vpop.f32.mrf.mxu0  ;;  %v5179_v47 = vld [vmem:[#allocation81_spill] sm:$0xff] }
  0xcf   :  { %1306 = vmatpush.bf16.msra.mxu3 %v5167_v57  ;;  %v5176_v57 = vld [vmem:[#allocation50_spill] sm:$0xff] }
  0xd0   :  { %1268 = vmatpush.bf16.msra.mxu0 %v5168_v60  ;;  %v2585_v27 = vld [vmem:[%s4731_s0 + $0x44] sm:$0xf] }
  0xd1   :  { %1281 = vmatpush.bf16.msra.mxu1 %v5169_v20  ;;  %v5177_v20 = vld [vmem:[#allocation51_spill] sm:$0xff]  ;;  %v1017_v13 = vpop.f32.mrf.mxu3 }
  0xd2   :  { %1294 = vmatpush.bf16.msra.mxu2 %v5170_v37  ;;  %v5178_v37 = vld [vmem:[#allocation80_spill] sm:$0xff]  ;;  %v1004_v54 = vpop.f32.mrf.mxu2 }
  0xd3   :  { %1307 = vmatpush.bf16.msra.mxu3 %v5171_v59  ;;  %v5182_v59 = vld [vmem:[#allocation84_spill] sm:$0xff] }
  0xd4   :  { %1269 = vmatpush.bf16.msra.mxu0 %v5172_v5 }
  0xd5   :  { %1282 = vmatpush.bf16.msra.mxu1 %v5173_v18  ;;  %v5184_v18 = vld [vmem:[#allocation58_spill] sm:$0xff] }
  0xd6   :  { %1295 = vmatpush.bf16.msra.mxu2 %v5174_v62  ;;  %v5181_v62 = vld [vmem:[#allocation55_spill] sm:$0xff] }
  0xd7   :  { %1308 = vmatpush.bf16.msra.mxu3 %v5175_v45  ;;  %v1166_v45 = vunpack.c.l.b16 %v2584_v51 }
  0xd8   :  { %1270 = vmatpush.bf16.msra.mxu0 %v5176_v57  ;;  %v5183_v57 = vld [vmem:[#allocation85_spill] sm:$0xff] }
  0xd9   :  { %1283 = vmatpush.bf16.msra.mxu1 %v5177_v20  ;;  %v1167_v20 = vunpack.c.h.b16 %v2584_v51  ;;  %v4219_v54 = vpack.c.b16 %v1166_v45, %v1166_v45  ;;  %v5190_v45 = vld [vmem:[#allocation97_spill] sm:$0xff] }
  0xda   :  { %1296 = vmatpush.bf16.msra.mxu2 %v5178_v37  ;;  %v1168_v37 = vunpack.c.l.b16 %v2585_v27  ;;  %v5187_v27 = vld [vmem:[#allocation63_spill] sm:$0xff] }
  0xdb   :  { %1309 = vmatpush.bf16.msra.mxu3 %v5179_v47  ;;  %v5185_v47 = vld [vmem:[#allocation59_spill] sm:$0xff] }
  0xdc   :  { %1271 = vmatpush.bf16.msra.mxu0 %v5180_v39  ;;  %v4223_v13 = vpack.c.b16 %v1168_v37, %v1168_v37  ;;  %v4225_v39 = vpack.c.b16 %v1167_v20, %v1167_v20  ;;  %v5188_v37 = vld [vmem:[#allocation66_spill] sm:$0xff]  ;;  %v5189_v20 = vld [vmem:[#allocation67_spill] sm:$0xff] }
  0xdd   :  { %1284 = vmatpush.bf16.msra.mxu1 %v5181_v62  ;;  %v5186_v62 = vld [vmem:[#allocation62_spill] sm:$0xff] }
  0xde   :  { %1297 = vmatpush.bf16.msra.mxu2 %v5182_v59  ;;  %v5195_v59 = vld [vmem:[#allocation101_spill] sm:$0xff] }
  0xdf   :  { %1310 = vmatpush.bf16.msra.mxu3 %v5183_v57 }
  0xe0   :  { %1272 = vmatpush.bf16.msra.mxu0 %v5184_v18  ;;  %v1028_v51 = vpop.f32.mrf.mxu0 }
  0xe1   :  { %1285 = vmatpush.bf16.msra.mxu1 %v5185_v47  ;;  %v1041_v57 = vpop.f32.mrf.mxu1 }
  0xe2   :  { %1298 = vmatpush.bf16.msra.mxu2 %v3659_v49  ;;  %v5194_v49 = vld [vmem:[#allocation100_spill] sm:$0xff] }
  0xe3   :  { %1311 = vmatpush.bf16.msra.mxu3 %v3672_v52  ;;  %1273 = vmatmul.bf16.vlgmr.msra.gmra.mxu0 %v4219_v54  ;;  %v5193_v52 = vld [vmem:[#allocation71_spill] sm:$0xff] }
  0xe4   :  { %1317 = vmatpush.bf16.msrb.mxu0 %v5186_v62  ;;  %1286 = vmatmul.bf16.vlgmr.msra.gmra.mxu1 %v4225_v39  ;;  %v5203_v62 = vld [vmem:[#allocation109_spill] sm:$0xff] }
  0xe5   :  { %1330 = vmatpush.bf16.msrb.mxu1 %v5187_v27  ;;  %1299 = vmatmul.bf16.vlgmr.msra.gmra.mxu2 %v4223_v13 }
  0xe6   :  { %1343 = vmatpush.bf16.msrb.mxu2 %v3685_v15  ;;  %1312 = vmatmul.bf16.vlgmr.msra.gmra.mxu3 %v4125_v44  ;;  %v5191_v15 = vld [vmem:[#allocation70_spill] sm:$0xff]  ;;  %v5197_v44 = vld [vmem:[#allocation75_spill] sm:$0xff] }
  0xe7   :  { %1356 = vmatpush.bf16.msrb.mxu3 %v3687_v40  ;;  %v4241_v40 = vadd.f32 %v1028_v51, %v1016_v26  ;;  %v5200_v51 = vld [vmem:[#allocation78_spill] sm:$0xff] }
  0xe8   :  { %1318 = vmatpush.bf16.msrb.mxu0 %v5188_v37  ;;  %v5196_v37 = vld [vmem:[#allocation74_spill] sm:$0xff]  ;;  %v1030_v26 = vpop.f32.mrf.mxu0 }
  0xe9   :  { %1331 = vmatpush.bf16.msrb.mxu1 %v5189_v20  ;;  %5192 = vst [vmem:[#allocation135_spill] sm:$0xff] %v4241_v40  ;;  %v5198_v20 = vld [vmem:[#allocation104_spill] sm:$0xff]  ;;  %v1067_v27 = vpop.f32.mrf.mxu3  ;;  %v5201_v40 = vld [vmem:[#allocation79_spill] sm:$0xff]  ;;  %v5208_v26 = vld [vmem:[#allocation86_spill] sm:$0xff] }
  0xea   :  { %1344 = vmatpush.bf16.msrb.mxu2 %v3724_v9  ;;  %v5199_v9 = vld [vmem:[#allocation105_spill] sm:$0xff] }
  0xeb   :  { %1357 = vmatpush.bf16.msrb.mxu3 %v5190_v45  ;;  %v1054_v45 = vpop.f32.mrf.mxu2 }
  0xec   :  { %1319 = vmatpush.bf16.msrb.mxu0 %v5191_v15  ;;  %v1055_v15 = vadd.f32 %v1054_v45, %v1041_v57 }
  0xed   :  { %1332 = vmatpush.bf16.msrb.mxu1 %v5193_v52 }
  0xee   :  { %1345 = vmatpush.bf16.msrb.mxu2 %v5194_v49  ;;  %v5202_v49 = vld [vmem:[#allocation108_spill] sm:$0xff]  ;;  %v1068_v52 = vadd.f32 %v1067_v27, %v1055_v15  ;;  %v5212_v15 = vld [vmem:[#allocation91_spill] sm:$0xff]  ;;  %v5213_v27 = vld [vmem:[#allocation94_spill] sm:$0xff] }
  0xef   :  { %1358 = vmatpush.bf16.msrb.mxu3 %v5195_v59  ;;  %v1043_v59 = vpop.f32.mrf.mxu1 }
  0xf0   :  { %1320 = vmatpush.bf16.msrb.mxu0 %v5196_v37  ;;  %v5204_v37 = vld [vmem:[#allocation82_spill] sm:$0xff] }
  0xf1   :  { %1333 = vmatpush.bf16.msrb.mxu1 %v5197_v44  ;;  %v5205_v44 = vld [vmem:[#allocation83_spill] sm:$0xff]  ;;  %v1069_v45 = vpop.f32.mrf.mxu3  ;;  %v5211_v59 = vld [vmem:[#allocation90_spill] sm:$0xff] }
  0xf2   :  { %1346 = vmatpush.bf16.msrb.mxu2 %v5198_v20  ;;  %v5206_v20 = vld [vmem:[#allocation112_spill] sm:$0xff]  ;;  %v5215_v45 = vld [vmem:[#allocation98_spill] sm:$0xff] }
  0xf3   :  { %1359 = vmatpush.bf16.msrb.mxu3 %v5199_v9  ;;  %v5207_v9 = vld [vmem:[#allocation113_spill] sm:$0xff]  ;;  %v1056_v57 = vpop.f32.mrf.mxu2 }
  0xf4   :  { %1321 = vmatpush.bf16.msrb.mxu0 %v5200_v51  ;;  %v5209_v51 = vld [vmem:[#allocation87_spill] sm:$0xff] }
  0xf5   :  { %1334 = vmatpush.bf16.msrb.mxu1 %v5201_v40  ;;  %v5210_v40 = vld [vmem:[#allocation116_spill] sm:$0xff]  ;;  %v5214_v57 = vld [vmem:[#allocation95_spill] sm:$0xff] }
  0xf6   :  { %1347 = vmatpush.bf16.msrb.mxu2 %v5202_v49 }
  0xf7   :  { %1360 = vmatpush.bf16.msrb.mxu3 %v5203_v62 }
  0xf8   :  { %1322 = vmatpush.bf16.msrb.mxu0 %v5204_v37 }
  0xf9   :  { %1335 = vmatpush.bf16.msrb.mxu1 %v5205_v44 }
  0xfa   :  { %1348 = vmatpush.bf16.msrb.mxu2 %v5206_v20 }
  0xfb   :  { %1361 = vmatpush.bf16.msrb.mxu3 %v5207_v9  ;;  %v5221_v9 = vld [vmem:[#allocation110_spill] sm:$0xff] }
  0xfc   :  { %1323 = vmatpush.bf16.msrb.mxu0 %v5208_v26 }
  0xfd   :  { %1336 = vmatpush.bf16.msrb.mxu1 %v5209_v51 }
  0xfe   :  { %1349 = vmatpush.bf16.msrb.mxu2 %v5210_v40 }
  0xff   :  { %1362 = vmatpush.bf16.msrb.mxu3 %v3915_v24  ;;  %v5219_v24 = vld [vmem:[#allocation106_spill] sm:$0xff] }
 0x100   :  { %1324 = vmatpush.bf16.msrb.mxu0 %v5211_v59 }
 0x101   :  { %1337 = vmatpush.bf16.msrb.mxu1 %v5212_v15 }
 0x102   :  { %1350 = vmatpush.bf16.msrb.mxu2 %v3950_v2  ;;  %v5216_v2 = vld [vmem:[#allocation99_spill] sm:$0xff] }
 0x103   :  { %1363 = vmatpush.bf16.msrb.mxu3 %v3960_v35  ;;  %1325 = vmatmul.bf16.vlgmr.msrb.gmra.mxu0 %v4129_v56  ;;  %v5217_v35 = vld [vmem:[#allocation102_spill] sm:$0xff] }
 0x104   :  { %1369 = vmatpush.bf16.msra.mxu0 %v5213_v27  ;;  %1338 = vmatmul.bf16.vlgmr.msrb.gmra.mxu1 %v4173_v55  ;;  %v5220_v55 = vld [vmem:[#allocation107_spill] sm:$0xff] }
 0x105   :  { %1382 = vmatpush.bf16.msra.mxu1 %v5214_v57  ;;  %1351 = vmatmul.bf16.vlgmr.msrb.gmra.mxu2 %v4179_v43  ;;  %v1093_v43 = vpop.f32.mrf.mxu1 }
 0x106   :  { %1395 = vmatpush.bf16.msra.mxu2 %v3967_v63  ;;  %1364 = vmatmul.bf16.vlgmr.msrb.gmra.mxu3 %v4169_v23  ;;  %v1080_v63 = vpop.f32.mrf.mxu0 }
 0x107   :  { %1408 = vmatpush.bf16.msra.mxu3 %v3969_v14  ;;  %v5218_v14 = vld [vmem:[#allocation103_spill] sm:$0xff]  ;;  %v1081_v56 = vadd.f32 %v1080_v63, %v1068_v52 }
 0x108   :  { %1370 = vmatpush.bf16.msra.mxu0 %v5215_v45  ;;  %v5222_v52 = vld [vmem:[#allocation111_spill] sm:$0xff] }
 0x109   :  { %1383 = vmatpush.bf16.msra.mxu1 %v5216_v2  ;;  %v1094_v23 = vadd.f32 %v1093_v43, %v1081_v56  ;;  %v1119_v40 = vpop.f32.mrf.mxu3  ;;  %v5223_v56 = vld [vmem:[#allocation114_spill] sm:$0xff]  ;;  %v5224_v43 = vld [vmem:[#allocation115_spill] sm:$0xff] }
 0x10a   :  { %1396 = vmatpush.bf16.msra.mxu2 %v3988_v0  ;;  %v1106_v0 = vpop.f32.mrf.mxu2 }
 0x10b   :  { %1409 = vmatpush.bf16.msra.mxu3 %v3992_v61  ;;  %v1107_v61 = vadd.f32 %v1106_v0, %v1094_v23  ;;  %v5225_v23 = vld [vmem:[#allocation118_spill] sm:$0xff] }
 0x10c   :  { %1371 = vmatpush.bf16.msra.mxu0 %v5217_v35 }
 0x10d   :  { %1384 = vmatpush.bf16.msra.mxu1 %v5218_v14  ;;  %v1120_v20 = vadd.f32 %v1119_v40, %v1107_v61  ;;  %v1095_v63 = vpop.f32.mrf.mxu1 }
 0x10e   :  { %1397 = vmatpush.bf16.msra.mxu2 %v4011_v36  ;;  %v1082_v36 = vpop.f32.mrf.mxu0  ;;  %v5229_v63 = vld [vmem:[#allocation12_spill] sm:$0xff] }
 0x10f   :  { %1410 = vmatpush.bf16.msra.mxu3 %v4016_v10 }
 0x110   :  { %1372 = vmatpush.bf16.msra.mxu0 %v5219_v24 }
 0x111   :  { %1385 = vmatpush.bf16.msra.mxu1 %v5220_v55  ;;  %v1121_v0 = vpop.f32.mrf.mxu3 }
 0x112   :  { %1398 = vmatpush.bf16.msra.mxu2 %v4032_v11 }
 0x113   :  { %1411 = vmatpush.bf16.msra.mxu3 %v4036_v28  ;;  %v1108_v28 = vpop.f32.mrf.mxu2 }
 0x114   :  { %1373 = vmatpush.bf16.msra.mxu0 %v5221_v9 }
 0x115   :  { %1386 = vmatpush.bf16.msra.mxu1 %v5222_v52 }
 0x116   :  { %1399 = vmatpush.bf16.msra.mxu2 %v4052_v31 }
 0x117   :  { %1412 = vmatpush.bf16.msra.mxu3 %v4056_v32 }
 0x118   :  { %1374 = vmatpush.bf16.msra.mxu0 %v5223_v56 }
 0x119   :  { %1387 = vmatpush.bf16.msra.mxu1 %v5224_v43 }
 0x11a   :  { %1400 = vmatpush.bf16.msra.mxu2 %v4072_v19 }
 0x11b   :  { %1413 = vmatpush.bf16.msra.mxu3 %v4076_v42 }
 0x11c   :  { %1375 = vmatpush.bf16.msra.mxu0 %v5225_v23 }
 0x11d   :  { %1388 = vmatpush.bf16.msra.mxu1 %v3929_v48 }
 0x11e   :  { %1401 = vmatpush.bf16.msra.mxu2 %v4092_v41  ;;  %v5256_v41 = vld [vmem:[#allocation40_spill] sm:$0xff] }
 0x11f   :  { %1414 = vmatpush.bf16.msra.mxu3 %v4096_v1  ;;  %v5242_v1 = vld [vmem:[#allocation26_spill] sm:$0xff] }
 0x120   :  { %1376 = vmatpush.bf16.msra.mxu0 %v3962_v30  ;;  %v1132_v40 = vpop.f32.mrf.mxu0 }
 0x121   :  { %1389 = vmatpush.bf16.msra.mxu1 %v3965_v22  ;;  %v1133_v61 = vadd.f32 %v1132_v40, %v1120_v20  ;;  %v1145_v36 = vpop.f32.mrf.mxu1 }
 0x122   :  { %1402 = vmatpush.bf16.msra.mxu2 %v4115_v53  ;;  %v5240_v53 = vld [vmem:[#allocation24_spill] sm:$0xff] }
 0x123   :  { %1415 = vmatpush.bf16.msra.mxu3 %v4119_v6  ;;  %1377 = vmatmul.bf16.vlgmr.msra.gmra.mxu0 %v4175_v4  ;;  %v4318_v28 = vadd.f32 %v1145_v36, %v1133_v61  ;;  %v5227_v4 = vld [vmem:[#allocation8_spill] sm:$0xff]  ;;  %v5231_v61 = vld [vmem:[#allocation15_spill] sm:$0xff] }
 0x124   :  { %1461 = vmatpush.bf16.msrb.mxu0 %v2771_v3  ;;  %1390 = vmatmul.bf16.vlgmr.msra.gmra.mxu1 %v4219_v54  ;;  %v5232_v36 = vld [vmem:[#allocation16_spill] sm:$0xff] }
 0x125   :  { %1474 = vmatpush.bf16.msrb.mxu1 %v2782_v7  ;;  %1403 = vmatmul.bf16.vlgmr.msra.gmra.mxu2 %v4225_v39  ;;  %5226 = vst [vmem:[#allocation108_spill] sm:$0xff] %v4318_v28  ;;  %v5228_v39 = vld [vmem:[#allocation9_spill] sm:$0xff]  ;;  %v5344_v28 = vld [vmem:[#allocation11_spill] sm:$0xff] }
 0x126   :  { %1487 = vmatpush.bf16.msrb.mxu2 %v2784_v8  ;;  %1416 = vmatmul.bf16.vlgmr.msra.gmra.mxu3 %v4223_v13  ;;  %v5239_v8 = vld [vmem:[#allocation23_spill] sm:$0xff] }
 0x127   :  { %1500 = vmatpush.bf16.msrb.mxu3 %v2796_v12 }
 0x128   :  { %1462 = vmatpush.bf16.msrb.mxu0 %v2809_v16  ;;  %v1196_v54 = vpop.f32.mrf.mxu2  ;;  %v1134_v20 = vpop.f32.mrf.mxu0 }
 0x129   :  { %1475 = vmatpush.bf16.msrb.mxu1 %v2811_v17  ;;  %v1209_v13 = vpop.f32.mrf.mxu3  ;;  %v1147_v40 = vpop.f32.mrf.mxu1  ;;  %v2587_v20 = vld [vmem:[%s4731_s0 + $0x50] sm:$0xff] }
 0x12a   :  { %1488 = vmatpush.bf16.msrb.mxu2 %v2823_v21  ;;  %v1210_v0 = vadd.f32 %v1209_v13, %v1196_v54  ;;  %v2586_v13 = vld [vmem:[%s4731_s0 + $0x48] sm:$0xff]  ;;  %v5238_v21 = vld [vmem:[#allocation22_spill] sm:$0xff]  ;;  %v1437_v12 = vunpack.c.h.b16 %v2587_v20 }
 0x12b   :  { %1501 = vmatpush.bf16.msrb.mxu3 %v2834_v25  ;;  %v5237_v25 = vld [vmem:[#allocation21_spill] sm:$0xff]  ;;  %v1435_v6 = vunpack.c.h.b16 %v2586_v13 }
 0x12c   :  { %1463 = vmatpush.bf16.msrb.mxu0 %v2846_v29 }
 0x12d   :  { %1476 = vmatpush.bf16.msrb.mxu1 %v2859_v33 }
 0x12e   :  { %1489 = vmatpush.bf16.msrb.mxu2 %v2861_v34  ;;  %v5230_v34 = vld [vmem:[#allocation13_spill] sm:$0xff] }
 0x12f   :  { %1502 = vmatpush.bf16.msrb.mxu3 %v2873_v38  ;;  %v5233_v38 = vld [vmem:[#allocation17_spill] sm:$0xff] }
 0x130   :  { %1464 = vmatpush.bf16.msrb.mxu0 %v5227_v4  ;;  %v1198_v54 = vpop.f32.mrf.mxu2 }
 0x131   :  { %1477 = vmatpush.bf16.msrb.mxu1 %v5228_v39  ;;  %v1211_v40 = vpop.f32.mrf.mxu3 }
 0x132   :  { %1490 = vmatpush.bf16.msrb.mxu2 %v2897_v46  ;;  %v5234_v46 = vld [vmem:[#allocation18_spill] sm:$0xff] }
 0x133   :  { %1503 = vmatpush.bf16.msrb.mxu3 %v2909_v50  ;;  %v5235_v50 = vld [vmem:[#allocation19_spill] sm:$0xff] }
 0x134   :  { %1465 = vmatpush.bf16.msrb.mxu0 %v5229_v63 }
 0x135   :  { %1478 = vmatpush.bf16.msrb.mxu1 %v5230_v34 }
 0x136   :  { %1491 = vmatpush.bf16.msrb.mxu2 %v2933_v58  ;;  %v5236_v58 = vld [vmem:[#allocation20_spill] sm:$0xff] }
 0x137   :  { %1504 = vmatpush.bf16.msrb.mxu3 %v5231_v61  ;;  %v1436_v61 = vunpack.c.l.b16 %v2587_v20  ;;  %v4353_v20 = vpack.c.b16 %v1435_v6, %v1435_v6  ;;  %v5250_v6 = vld [vmem:[#allocation34_spill] sm:$0xff] }
 0x138   :  { %1466 = vmatpush.bf16.msrb.mxu0 %v5232_v36  ;;  %v5259_v36 = vld [vmem:[#allocation44_spill] sm:$0xff] }
 0x139   :  { %1479 = vmatpush.bf16.msrb.mxu1 %v5233_v38  ;;  %v4343_v54 = vpack.c.b16 %v1436_v61, %v1436_v61  ;;  %v5247_v61 = vld [vmem:[#allocation31_spill] sm:$0xff]  ;;  %v5257_v38 = vld [vmem:[#allocation41_spill] sm:$0xff] }
 0x13a   :  { %1492 = vmatpush.bf16.msrb.mxu2 %v5234_v46  ;;  %v1434_v46 = vunpack.c.l.b16 %v2586_v13  ;;  %v5246_v13 = vld [vmem:[#allocation30_spill] sm:$0xff] }
 0x13b   :  { %1505 = vmatpush.bf16.msrb.mxu3 %v5235_v50  ;;  %v5241_v50 = vld [vmem:[#allocation25_spill] sm:$0xff] }
 0x13c   :  { %1467 = vmatpush.bf16.msrb.mxu0 %v5236_v58  ;;  %v4347_v40 = vpack.c.b16 %v1434_v46, %v1434_v46  ;;  %v4349_v58 = vpack.c.b16 %v1437_v12, %v1437_v12  ;;  %v5248_v12 = vld [vmem:[#allocation32_spill] sm:$0xff]  ;;  %v5249_v46 = vld [vmem:[#allocation33_spill] sm:$0xff] }
 0x13d   :  { %1480 = vmatpush.bf16.msrb.mxu1 %v5237_v25  ;;  %v5243_v25 = vld [vmem:[#allocation27_spill] sm:$0xff] }
 0x13e   :  { %1493 = vmatpush.bf16.msrb.mxu2 %v5238_v21  ;;  %v5244_v21 = vld [vmem:[#allocation28_spill] sm:$0xff] }
 0x13f   :  { %1506 = vmatpush.bf16.msrb.mxu3 %v5239_v8  ;;  %v5245_v8 = vld [vmem:[#allocation29_spill] sm:$0xff] }
 0x140   :  { %1468 = vmatpush.bf16.msrb.mxu0 %v5240_v53  ;;  %v5255_v53 = vld [vmem:[#allocation39_spill] sm:$0xff] }
 0x141   :  { %1481 = vmatpush.bf16.msrb.mxu1 %v5241_v50  ;;  %v1235_v50 = vpop.f32.mrf.mxu1 }
 0x142   :  { %1494 = vmatpush.bf16.msrb.mxu2 %v5242_v1  ;;  %v5252_v1 = vld [vmem:[#allocation36_spill] sm:$0xff] }
 0x143   :  { %1507 = vmatpush.bf16.msrb.mxu3 %v5243_v25  ;;  %1469 = vmatmul.bf16.vlgmr.msrb.gmra.mxu0 %v4347_v40  ;;  %v5251_v25 = vld [vmem:[#allocation35_spill] sm:$0xff] }
 0x144   :  { %1513 = vmatpush.bf16.msra.mxu0 %v5244_v21  ;;  %1482 = vmatmul.bf16.vlgmr.msrb.gmra.mxu1 %v4353_v20 }
 0x145   :  { %1526 = vmatpush.bf16.msra.mxu1 %v5245_v8  ;;  %1495 = vmatmul.bf16.vlgmr.msrb.gmra.mxu2 %v4343_v54  ;;  %v5254_v8 = vld [vmem:[#allocation38_spill] sm:$0xff] }
 0x146   :  { %1539 = vmatpush.bf16.msra.mxu2 %v5246_v13  ;;  %1508 = vmatmul.bf16.vlgmr.msrb.gmra.mxu3 %v4349_v58  ;;  %v1222_v13 = vpop.f32.mrf.mxu0 }
 0x147   :  { %1552 = vmatpush.bf16.msra.mxu3 %v5247_v61  ;;  %v5253_v61 = vld [vmem:[#allocation37_spill] sm:$0xff]  ;;  %v1223_v21 = vadd.f32 %v1222_v13, %v1210_v0  ;;  %v5262_v13 = vld [vmem:[#allocation48_spill] sm:$0xff] }
 0x148   :  { %1514 = vmatpush.bf16.msra.mxu0 %v5248_v12  ;;  %v5260_v0 = vld [vmem:[#allocation45_spill] sm:$0xff] }
 0x149   :  { %1527 = vmatpush.bf16.msra.mxu1 %v5249_v46  ;;  %v1236_v12 = vadd.f32 %v1235_v50, %v1223_v21  ;;  %v1261_v46 = vpop.f32.mrf.mxu3  ;;  %v1237_v21 = vpop.f32.mrf.mxu1  ;;  %v5261_v50 = vld [vmem:[#allocation47_spill] sm:$0xff] }
 0x14a   :  { %1540 = vmatpush.bf16.msra.mxu2 %v5250_v6  ;;  %v1248_v6 = vpop.f32.mrf.mxu2  ;;  %v5266_v21 = vld [vmem:[#allocation52_spill] sm:$0xff] }
 0x14b   :  { %1553 = vmatpush.bf16.msra.mxu3 %v5251_v25  ;;  %v5258_v25 = vld [vmem:[#allocation43_spill] sm:$0xff] }
 0x14c   :  { %1515 = vmatpush.bf16.msra.mxu0 %v5252_v1  ;;  %v1249_v1 = vadd.f32 %v1248_v6, %v1236_v12  ;;  %v2589_v12 = vld [vmem:[%s4731_s0 + $0x60] sm:$0xff] }
 0x14d   :  { %1528 = vmatpush.bf16.msra.mxu1 %v5253_v61 }
 0x14e   :  { %1541 = vmatpush.bf16.msra.mxu2 %v5254_v8  ;;  %v1262_v61 = vadd.f32 %v1261_v46, %v1249_v1  ;;  %v1224_v8 = vpop.f32.mrf.mxu0  ;;  %v5265_v1 = vld [vmem:[#allocation51_spill] sm:$0xff] }
 0x14f   :  { %1554 = vmatpush.bf16.msra.mxu3 %v5255_v53  ;;  %v5263_v53 = vld [vmem:[#allocation49_spill] sm:$0xff] }
 0x150   :  { %1516 = vmatpush.bf16.msra.mxu0 %v5256_v41  ;;  %v2588_v8 = vld [vmem:[%s4731_s0 + $0x58] sm:$0xff] }
 0x151   :  { %1529 = vmatpush.bf16.msra.mxu1 %v5257_v38  ;;  %v1263_v46 = vpop.f32.mrf.mxu3  ;;  %v5285_v38 = vld [vmem:[#allocation73_spill] sm:$0xff] }
 0x152   :  { %1542 = vmatpush.bf16.msra.mxu2 %v5168_v60  ;;  %v5264_v60 = vld [vmem:[#allocation50_spill] sm:$0xff]  ;;  %v1250_v6 = vpop.f32.mrf.mxu2 }
 0x153   :  { %1555 = vmatpush.bf16.msra.mxu3 %v5258_v25  ;;  %v5268_v25 = vld [vmem:[#allocation54_spill] sm:$0xff]  ;;  %v5270_v6 = vld [vmem:[#allocation56_spill] sm:$0xff] }
 0x154   :  { %1517 = vmatpush.bf16.msra.mxu0 %v5259_v36  ;;  %v5271_v36 = vld [vmem:[#allocation57_spill] sm:$0xff] }
 0x155   :  { %1530 = vmatpush.bf16.msra.mxu1 %v5260_v0  ;;  %v1439_v0 = vunpack.c.h.b16 %v2588_v8 }
 0x156   :  { %1543 = vmatpush.bf16.msra.mxu2 %v5172_v5  ;;  %v5267_v5 = vld [vmem:[#allocation53_spill] sm:$0xff] }
 0x157   :  { %1556 = vmatpush.bf16.msra.mxu3 %v5261_v50  ;;  %v1440_v50 = vunpack.c.l.b16 %v2589_v12 }
 0x158   :  { %1518 = vmatpush.bf16.msra.mxu0 %v5262_v13  ;;  %v5269_v13 = vld [vmem:[#allocation55_spill] sm:$0xff] }
 0x159   :  { %1531 = vmatpush.bf16.msra.mxu1 %v5263_v53  ;;  %v1441_v53 = vunpack.c.h.b16 %v2589_v12  ;;  %v4403_v12 = vpack.c.b16 %v1439_v0, %v1439_v0  ;;  %v5278_v0 = vld [vmem:[#allocation66_spill] sm:$0xff] }
 0x15a   :  { %1544 = vmatpush.bf16.msra.mxu2 %v5264_v60  ;;  %v1438_v60 = vunpack.c.l.b16 %v2588_v8  ;;  %v5274_v8 = vld [vmem:[#allocation62_spill] sm:$0xff] }
 0x15b   :  { %1557 = vmatpush.bf16.msra.mxu3 %v5265_v1  ;;  %v4393_v1 = vpack.c.b16 %v1440_v50, %v1440_v50  ;;  %v5275_v50 = vld [vmem:[#allocation63_spill] sm:$0xff] }
 0x15c   :  { %1519 = vmatpush.bf16.msra.mxu0 %v5266_v21  ;;  %v4397_v46 = vpack.c.b16 %v1438_v60, %v1438_v60  ;;  %v4399_v21 = vpack.c.b16 %v1441_v53, %v1441_v53  ;;  %v5276_v60 = vld [vmem:[#allocation64_spill] sm:$0xff]  ;;  %v5277_v53 = vld [vmem:[#allocation65_spill] sm:$0xff] }
 0x15d   :  { %1532 = vmatpush.bf16.msra.mxu1 %v5267_v5  ;;  %v5284_v5 = vld [vmem:[#allocation72_spill] sm:$0xff] }
 0x15e   :  { %1545 = vmatpush.bf16.msra.mxu2 %v5268_v25  ;;  %v5272_v25 = vld [vmem:[#allocation60_spill] sm:$0xff] }
 0x15f   :  { %1558 = vmatpush.bf16.msra.mxu3 %v5269_v13  ;;  %v5273_v13 = vld [vmem:[#allocation61_spill] sm:$0xff] }
 0x160   :  { %1520 = vmatpush.bf16.msra.mxu0 %v5270_v6  ;;  %v5283_v6 = vld [vmem:[#allocation71_spill] sm:$0xff] }
 0x161   :  { %1533 = vmatpush.bf16.msra.mxu1 %v5271_v36  ;;  %v5282_v36 = vld [vmem:[#allocation70_spill] sm:$0xff] }
 0x162   :  { %1546 = vmatpush.bf16.msra.mxu2 %v5184_v18  ;;  %v1274_v18 = vpop.f32.mrf.mxu0 }
 0x163   :  { %1559 = vmatpush.bf16.msra.mxu3 %v5185_v47  ;;  %1521 = vmatmul.bf16.vlgmr.msra.gmra.mxu0 %v4397_v46  ;;  %v5279_v47 = vld [vmem:[#allocation67_spill] sm:$0xff] }
 0x164   :  { %1565 = vmatpush.bf16.msrb.mxu0 %v5272_v25  ;;  %1534 = vmatmul.bf16.vlgmr.msra.gmra.mxu1 %v4403_v12  ;;  %v5281_v25 = vld [vmem:[#allocation69_spill] sm:$0xff] }
 0x165   :  { %1578 = vmatpush.bf16.msrb.mxu1 %v5273_v13  ;;  %1547 = vmatmul.bf16.vlgmr.msra.gmra.mxu2 %v4393_v1  ;;  %v1287_v13 = vpop.f32.mrf.mxu1 }
 0x166   :  { %1591 = vmatpush.bf16.msrb.mxu2 %v5274_v8  ;;  %1560 = vmatmul.bf16.vlgmr.msra.gmra.mxu3 %v4399_v21  ;;  %v5280_v8 = vld [vmem:[#allocation68_spill] sm:$0xff] }
 0x167   :  { %1604 = vmatpush.bf16.msrb.mxu3 %v5275_v50  ;;  %v1275_v50 = vadd.f32 %v1274_v18, %v1262_v61 }
 0x168   :  { %1566 = vmatpush.bf16.msrb.mxu0 %v5276_v60 }
 0x169   :  { %1579 = vmatpush.bf16.msrb.mxu1 %v5277_v53  ;;  %v1288_v60 = vadd.f32 %v1287_v13, %v1275_v50  ;;  %v5286_v53 = vld [vmem:[#allocation74_spill] sm:$0xff]  ;;  %v1313_v18 = vpop.f32.mrf.mxu3  ;;  %v5292_v13 = vld [vmem:[#allocation135_spill] sm:$0xff]  ;;  %v5297_v50 = vld [vmem:[#allocation85_spill] sm:$0xff] }
 0x16a   :  { %1592 = vmatpush.bf16.msrb.mxu2 %v5278_v0  ;;  %v5287_v0 = vld [vmem:[#allocation75_spill] sm:$0xff]  ;;  %v1276_v61 = vpop.f32.mrf.mxu0 }
 0x16b   :  { %1605 = vmatpush.bf16.msrb.mxu3 %v5279_v47  ;;  %v1300_v47 = vpop.f32.mrf.mxu2  ;;  %v5296_v61 = vld [vmem:[#allocation84_spill] sm:$0xff] }
 0x16c   :  { %1567 = vmatpush.bf16.msrb.mxu0 %v5280_v8  ;;  %v4424_v41 = vadd.f32 %v1300_v47, %v1288_v60  ;;  %v5289_v8 = vld [vmem:[#allocation76_spill] sm:$0xff]  ;;  %v2590_v47 = vld [vmem:[%s4731_s0 + $0x68] sm:$0xf] }
 0x16d   :  { %1580 = vmatpush.bf16.msrb.mxu1 %v5281_v25  ;;  %v1289_v25 = vpop.f32.mrf.mxu1 }
 0x16e   :  { %1593 = vmatpush.bf16.msrb.mxu2 %v5282_v36  ;;  %5288 = vst [vmem:[#allocation109_spill] sm:$0xff] %v4424_v41  ;;  %v5290_v36 = vld [vmem:[#allocation77_spill] sm:$0xff] }
 0x16f   :  { %1606 = vmatpush.bf16.msrb.mxu3 %v5283_v6  ;;  %v5291_v6 = vld [vmem:[#allocation78_spill] sm:$0xff]  ;;  %v5299_v41 = vld [vmem:[#allocation89_spill] sm:$0xff] }
 0x170   :  { %1568 = vmatpush.bf16.msrb.mxu0 %v5284_v5 }
 0x171   :  { %1581 = vmatpush.bf16.msrb.mxu1 %v5285_v38  ;;  %v5293_v38 = vld [vmem:[#allocation79_spill] sm:$0xff]  ;;  %v1315_v60 = vpop.f32.mrf.mxu3 }
 0x172   :  { %1594 = vmatpush.bf16.msrb.mxu2 %v5286_v53  ;;  %v5294_v53 = vld [vmem:[#allocation80_spill] sm:$0xff]  ;;  %v5301_v60 = vld [vmem:[#allocation93_spill] sm:$0xff] }
 0x173   :  { %1607 = vmatpush.bf16.msrb.mxu3 %v5287_v0  ;;  %v5295_v0 = vld [vmem:[#allocation81_spill] sm:$0xff]  ;;  %v1302_v25 = vpop.f32.mrf.mxu2 }
 0x174   :  { %1569 = vmatpush.bf16.msrb.mxu0 %v5289_v8  ;;  %v5300_v25 = vld [vmem:[#allocation92_spill] sm:$0xff] }
 0x175   :  { %1582 = vmatpush.bf16.msrb.mxu1 %v5290_v36 }
 0x176   :  { %1595 = vmatpush.bf16.msrb.mxu2 %v5291_v6  ;;  %v1442_v6 = vunpack.c.l.b16 %v2590_v47  ;;  %v5303_v47 = vld [vmem:[#allocation97_spill] sm:$0xff] }
 0x177   :  { %1608 = vmatpush.bf16.msrb.mxu3 %v5293_v38  ;;  %v5298_v38 = vld [vmem:[#allocation88_spill] sm:$0xff] }
 0x178   :  { %1570 = vmatpush.bf16.msrb.mxu0 %v5294_v53 }
 0x179   :  { %1583 = vmatpush.bf16.msrb.mxu1 %v5295_v0 }
 0x17a   :  { %1596 = vmatpush.bf16.msrb.mxu2 %v5204_v37  ;;  %v4444_v37 = vpack.c.b16 %v1442_v6, %v1442_v6  ;;  %v5302_v6 = vld [vmem:[#allocation96_spill] sm:$0xff] }
 0x17b   :  { %1609 = vmatpush.bf16.msrb.mxu3 %v5205_v44 }
 0x17c   :  { %1571 = vmatpush.bf16.msrb.mxu0 %v5296_v61 }
 0x17d   :  { %1584 = vmatpush.bf16.msrb.mxu1 %v5297_v50 }
 0x17e   :  { %1597 = vmatpush.bf16.msrb.mxu2 %v5208_v26 }
 0x17f   :  { %1610 = vmatpush.bf16.msrb.mxu3 %v5209_v51  ;;  %v5306_v51 = vld [vmem:[#allocation104_spill] sm:$0xff] }
 0x180   :  { %1572 = vmatpush.bf16.msrb.mxu0 %v5298_v38 }
 0x181   :  { %1585 = vmatpush.bf16.msrb.mxu1 %v5299_v41 }
 0x182   :  { %1598 = vmatpush.bf16.msrb.mxu2 %v5211_v59  ;;  %v1339_v59 = vpop.f32.mrf.mxu1 }
 0x183   :  { %1611 = vmatpush.bf16.msrb.mxu3 %v5212_v15  ;;  %1573 = vmatmul.bf16.vlgmr.msrb.gmra.mxu0 %v4444_v37  ;;  %v5304_v15 = vld [vmem:[#allocation100_spill] sm:$0xff] }
 0x184   :  { %1617 = vmatpush.bf16.msra.mxu0 %v5300_v25  ;;  %1586 = vmatmul.bf16.vlgmr.msrb.gmra.mxu1 %v4347_v40  ;;  %v5307_v40 = vld [vmem:[#allocation105_spill] sm:$0xff] }
 0x185   :  { %1630 = vmatpush.bf16.msra.mxu1 %v5301_v60  ;;  %1599 = vmatmul.bf16.vlgmr.msrb.gmra.mxu2 %v4353_v20 }
 0x186   :  { %1643 = vmatpush.bf16.msra.mxu2 %v5213_v27  ;;  %1612 = vmatmul.bf16.vlgmr.msrb.gmra.mxu3 %v4343_v54  ;;  %v1326_v27 = vpop.f32.mrf.mxu0 }
 0x187   :  { %1656 = vmatpush.bf16.msra.mxu3 %v5214_v57  ;;  %v5305_v57 = vld [vmem:[#allocation101_spill] sm:$0xff]  ;;  %v1327_v20 = vadd.f32 %v1326_v27, %v1313_v18  ;;  %v5308_v27 = vld [vmem:[#allocation112_spill] sm:$0xff] }
 0x188   :  { %1618 = vmatpush.bf16.msra.mxu0 %v5302_v6  ;;  %v5309_v18 = vld [vmem:[#allocation113_spill] sm:$0xff] }
 0x189   :  { %1631 = vmatpush.bf16.msra.mxu1 %v5303_v47  ;;  %v1340_v54 = vadd.f32 %v1339_v59, %v1327_v20  ;;  %v1365_v26 = vpop.f32.mrf.mxu3 }
 0x18a   :  { %1644 = vmatpush.bf16.msra.mxu2 %v5215_v45  ;;  %v1352_v45 = vpop.f32.mrf.mxu2  ;;  %v1341_v59 = vpop.f32.mrf.mxu1 }
 0x18b   :  { %1657 = vmatpush.bf16.msra.mxu3 %v5216_v2  ;;  %v1353_v2 = vadd.f32 %v1352_v45, %v1340_v54  ;;  %v5310_v54 = vld [vmem:[#allocation116_spill] sm:$0xff] }
 0x18c   :  { %1619 = vmatpush.bf16.msra.mxu0 %v5304_v15  ;;  %v5314_v59 = vld [vmem:[#allocation124_spill] sm:$0xff] }
 0x18d   :  { %1632 = vmatpush.bf16.msra.mxu1 %v5305_v57  ;;  %v1366_v44 = vadd.f32 %v1365_v26, %v1353_v2  ;;  %v5312_v2 = vld [vmem:[#allocation120_spill] sm:$0xff]  ;;  %v5313_v26 = vld [vmem:[#allocation121_spill] sm:$0xff] }
 0x18e   :  { %1645 = vmatpush.bf16.msra.mxu2 %v5217_v35  ;;  %v1328_v35 = vpop.f32.mrf.mxu0 }
 0x18f   :  { %1658 = vmatpush.bf16.msra.mxu3 %v5218_v14  ;;  %v5311_v35 = vld [vmem:[#allocation117_spill] sm:$0xff] }
 0x190   :  { %1620 = vmatpush.bf16.msra.mxu0 %v5306_v51 }
 0x191   :  { %1633 = vmatpush.bf16.msra.mxu1 %v5307_v40  ;;  %v1367_v45 = vpop.f32.mrf.mxu3 }
 0x192   :  { %1646 = vmatpush.bf16.msra.mxu2 %v5219_v24  ;;  %v1354_v20 = vpop.f32.mrf.mxu2  ;;  %v5316_v45 = vld [vmem:[#allocation126_spill] sm:$0xff] }
 0x193   :  { %1659 = vmatpush.bf16.msra.mxu3 %v5220_v55  ;;  %v5315_v20 = vld [vmem:[#allocation125_spill] sm:$0xff] }
 0x194   :  { %1621 = vmatpush.bf16.msra.mxu0 %v5202_v49 }
 0x195   :  { %1634 = vmatpush.bf16.msra.mxu1 %v5203_v62 }
 0x196   :  { %1647 = vmatpush.bf16.msra.mxu2 %v5221_v9 }
 0x197   :  { %1660 = vmatpush.bf16.msra.mxu3 %v5222_v52 }
 0x198   :  { %1622 = vmatpush.bf16.msra.mxu0 %v5308_v27 }
 0x199   :  { %1635 = vmatpush.bf16.msra.mxu1 %v5309_v18 }
 0x19a   :  { %1648 = vmatpush.bf16.msra.mxu2 %v5223_v56 }
 0x19b   :  { %1661 = vmatpush.bf16.msra.mxu3 %v5224_v43 }
 0x19c   :  { %1623 = vmatpush.bf16.msra.mxu0 %v5310_v54 }
 0x19d   :  { %1636 = vmatpush.bf16.msra.mxu1 %v5311_v35 }
 0x19e   :  { %1649 = vmatpush.bf16.msra.mxu2 %v5225_v23  ;;  %v5377_v23 = vld [vmem:[#allocation43_spill] sm:$0xff] }
 0x19f   :  { %1662 = vmatpush.bf16.msra.mxu3 %v3929_v48 }
 0x1a0   :  { %1624 = vmatpush.bf16.msra.mxu0 %v5312_v2 }
 0x1a1   :  { %1637 = vmatpush.bf16.msra.mxu1 %v5313_v26  ;;  %v1391_v48 = vpop.f32.mrf.mxu1 }
 0x1a2   :  { %1650 = vmatpush.bf16.msra.mxu2 %v3962_v30  ;;  %v5317_v30 = vld [vmem:[#allocation127_spill] sm:$0xff] }
 0x1a3   :  { %1663 = vmatpush.bf16.msra.mxu3 %v3965_v22  ;;  %1625 = vmatmul.bf16.vlgmr.msra.gmra.mxu0 %v4349_v58  ;;  %v1378_v22 = vpop.f32.mrf.mxu0 }
 0x1a4   :  { %1669 = vmatpush.bf16.msrb.mxu0 %v5314_v59  ;;  %1638 = vmatmul.bf16.vlgmr.msra.gmra.mxu1 %v4397_v46 }
 0x1a5   :  { %1682 = vmatpush.bf16.msrb.mxu1 %v5315_v20  ;;  %1651 = vmatmul.bf16.vlgmr.msra.gmra.mxu2 %v4403_v12 }
 0x1a6   :  { %1735 = vmatpush.bf16.msrb.mxu2 %v2771_v3  ;;  %1664 = vmatmul.bf16.vlgmr.msra.gmra.mxu3 %v4393_v1  ;;  %v5318_v3 = vld [vmem:[#allocation128_spill] sm:$0xff]  ;;  %v5319_v1 = vld [vmem:[#allocation129_spill] sm:$0xff] }
 0x1a7   :  { %1748 = vmatpush.bf16.msrb.mxu3 %v2782_v7  ;;  %v1379_v7 = vadd.f32 %v1378_v22, %v1366_v44 }
 0x1a8   :  { %1670 = vmatpush.bf16.msrb.mxu0 %v5316_v45 }
 0x1a9   :  { %1683 = vmatpush.bf16.msrb.mxu1 %v5317_v30  ;;  %v1392_v58 = vadd.f32 %v1391_v48, %v1379_v7  ;;  %v1417_v46 = vpop.f32.mrf.mxu3  ;;  %v1393_v44 = vpop.f32.mrf.mxu1  ;;  %v5321_v48 = vld [vmem:[#allocation16_spill] sm:$0xff]  ;;  %v5323_v7 = vld [vmem:[#allocation131_spill] sm:$0xff] }
 0x1aa   :  { %1736 = vmatpush.bf16.msrb.mxu2 %v2809_v16  ;;  %v1404_v16 = vpop.f32.mrf.mxu2  ;;  %v5328_v44 = vld [vmem:[#allocation134_spill] sm:$0xff] }
 0x1ab   :  { %1749 = vmatpush.bf16.msrb.mxu3 %v2811_v17  ;;  %v1405_v17 = vadd.f32 %v1404_v16, %v1392_v58  ;;  %v1380_v22 = vpop.f32.mrf.mxu0  ;;  %v5325_v58 = vld [vmem:[#allocation20_spill] sm:$0xff] }
 0x1ac   :  { %1671 = vmatpush.bf16.msrb.mxu0 %v5318_v3  ;;  %v5327_v22 = vld [vmem:[#allocation133_spill] sm:$0xff] }
 0x1ad   :  { %1684 = vmatpush.bf16.msrb.mxu1 %v4016_v10 }
 0x1ae   :  { %1737 = vmatpush.bf16.msrb.mxu2 %v2846_v29  ;;  %v4508_v29 = vadd.f32 %v1417_v46, %v1405_v17  ;;  %v5326_v17 = vld [vmem:[#allocation21_spill] sm:$0xff] }
 0x1af   :  { %1750 = vmatpush.bf16.msrb.mxu3 %v2859_v33 }
 0x1b0   :  { %1672 = vmatpush.bf16.msrb.mxu0 %v4032_v11  ;;  %5320 = vst [vmem:[#allocation103_spill] sm:$0xff] %v4508_v29  ;;  %v5332_v29 = vld [vmem:[#allocation3_spill] sm:$0xff] }
 0x1b1   :  { %1685 = vmatpush.bf16.msrb.mxu1 %v5319_v1  ;;  %v1419_v12 = vpop.f32.mrf.mxu3 }
 0x1b2   :  { %1738 = vmatpush.bf16.msrb.mxu2 %v5227_v4  ;;  %v5322_v4 = vld [vmem:[#allocation17_spill] sm:$0xff]  ;;  %v5331_v12 = vld [vmem:[#allocation2_spill] sm:$0xff] }
 0x1b3   :  { %1751 = vmatpush.bf16.msrb.mxu3 %v5228_v39  ;;  %v1406_v39 = vpop.f32.mrf.mxu2 }
 0x1b4   :  { %1673 = vmatpush.bf16.msrb.mxu0 %v4052_v31  ;;  %v5330_v39 = vld [vmem:[#allocation25_spill] sm:$0xff] }
 0x1b5   :  { %1686 = vmatpush.bf16.msrb.mxu1 %v4056_v32 }
 0x1b6   :  { %1739 = vmatpush.bf16.msrb.mxu2 %v5229_v63  ;;  %v2591_v63 = vld [vmem:[%s4731_s0 + $0x6c] sm:$0xff] }
 0x1b7   :  { %1752 = vmatpush.bf16.msrb.mxu3 %v5230_v34  ;;  %v5324_v34 = vld [vmem:[#allocation132_spill] sm:$0xff]  ;;  %v1708_v16 = vunpack.c.l.b16 %v2591_v63  ;;  %v1709_v46 = vunpack.c.h.b16 %v2591_v63 }
 0x1b8   :  { %1674 = vmatpush.bf16.msrb.mxu0 %v4072_v19  ;;  %v5335_v63 = vld [vmem:[#allocation4_spill] sm:$0xff] }
 0x1b9   :  { %1687 = vmatpush.bf16.msrb.mxu1 %v4076_v42  ;;  %v4531_v33 = vpack.c.b16 %v1709_v46, %v1709_v46  ;;  %v5337_v46 = vld [vmem:[#allocation32_spill] sm:$0xff]  ;;  %v5379_v42 = vld [vmem:[#allocation46_spill] sm:$0xff] }
 0x1ba   :  { %1740 = vmatpush.bf16.msrb.mxu2 %v5321_v48  ;;  %v5329_v48 = vld [vmem:[#allocation24_spill] sm:$0xff] }
 0x1bb   :  { %1753 = vmatpush.bf16.msrb.mxu3 %v5322_v4  ;;  %v4527_v4 = vpack.c.b16 %v1708_v16, %v1708_v16  ;;  %v5336_v16 = vld [vmem:[#allocation5_spill] sm:$0xff] }
 0x1bc   :  { %1675 = vmatpush.bf16.msrb.mxu0 %v5323_v7  ;;  %v5349_v7 = vld [vmem:[#allocation44_spill] sm:$0xff] }
 0x1bd   :  { %1688 = vmatpush.bf16.msrb.mxu1 %v5324_v34 }
 0x1be   :  { %1741 = vmatpush.bf16.msrb.mxu2 %v5325_v58  ;;  %v5333_v58 = vld [vmem:[#allocation28_spill] sm:$0xff] }
 0x1bf   :  { %1754 = vmatpush.bf16.msrb.mxu3 %v5326_v17  ;;  %v5334_v17 = vld [vmem:[#allocation29_spill] sm:$0xff] }
 0x1c0   :  { %1676 = vmatpush.bf16.msrb.mxu0 %v5327_v22  ;;  %v5347_v22 = vld [vmem:[#allocation14_spill] sm:$0xff] }
 0x1c1   :  { %1689 = vmatpush.bf16.msrb.mxu1 %v5328_v44  ;;  %v5346_v44 = vld [vmem:[#allocation41_spill] sm:$0xff] }
 0x1c2   :  { %1742 = vmatpush.bf16.msrb.mxu2 %v5329_v48  ;;  %v5338_v48 = vld [vmem:[#allocation33_spill] sm:$0xff] }
 0x1c3   :  { %1755 = vmatpush.bf16.msrb.mxu3 %v5330_v39  ;;  %1677 = vmatmul.bf16.vlgmr.msrb.gmra.mxu0 %v4399_v21  ;;  %v1470_v39 = vpop.f32.mrf.mxu0  ;;  %v5341_v21 = vld [vmem:[#allocation36_spill] sm:$0xff] }
 0x1c4   :  { %1761 = vmatpush.bf16.msra.mxu0 %v5331_v12  ;;  %1690 = vmatmul.bf16.vlgmr.msrb.gmra.mxu1 %v4444_v37  ;;  %v5340_v12 = vld [vmem:[#allocation7_spill] sm:$0xff]  ;;  %v1483_v37 = vpop.f32.mrf.mxu1 }
 0x1c5   :  { %1774 = vmatpush.bf16.msra.mxu1 %v5332_v29  ;;  %1743 = vmatmul.bf16.vlgmr.msrb.gmra.mxu2 %v4527_v4  ;;  %v5339_v29 = vld [vmem:[#allocation6_spill] sm:$0xff] }
 0x1c6   :  { %1787 = vmatpush.bf16.msra.mxu2 %v5333_v58  ;;  %1756 = vmatmul.bf16.vlgmr.msrb.gmra.mxu3 %v4531_v33  ;;  %v5342_v58 = vld [vmem:[#allocation37_spill] sm:$0xff] }
 0x1c7   :  { %1800 = vmatpush.bf16.msra.mxu3 %v5334_v17  ;;  %v1484_v17 = vadd.f32 %v1483_v37, %v1470_v39  ;;  %v5350_v37 = vld [vmem:[#allocation45_spill] sm:$0xff] }
 0x1c8   :  { %1762 = vmatpush.bf16.msra.mxu0 %v5335_v63  ;;  %v5343_v63 = vld [vmem:[#allocation10_spill] sm:$0xff] }
 0x1c9   :  { %1775 = vmatpush.bf16.msra.mxu1 %v5336_v16  ;;  %v5345_v16 = vld [vmem:[#allocation40_spill] sm:$0xff] }
 0x1ca   :  { %1788 = vmatpush.bf16.msra.mxu2 %v5337_v46  ;;  %v1496_v46 = vpop.f32.mrf.mxu2 }
 0x1cb   :  { %1801 = vmatpush.bf16.msra.mxu3 %v5338_v48  ;;  %v1497_v48 = vadd.f32 %v1496_v46, %v1484_v17  ;;  %v1472_v34 = vpop.f32.mrf.mxu0  ;;  %v5354_v17 = vld [vmem:[#allocation49_spill] sm:$0xff] }
 0x1cc   :  { %1763 = vmatpush.bf16.msra.mxu0 %v5339_v29  ;;  %v1509_v29 = vpop.f32.mrf.mxu3  ;;  %v1485_v39 = vpop.f32.mrf.mxu1 }
 0x1cd   :  { %1776 = vmatpush.bf16.msra.mxu1 %v5340_v12  ;;  %v1510_v12 = vadd.f32 %v1509_v29, %v1497_v48  ;;  %v5356_v48 = vld [vmem:[#allocation23_spill] sm:$0xff]  ;;  %v5357_v29 = vld [vmem:[#allocation52_spill] sm:$0xff] }
 0x1ce   :  { %1789 = vmatpush.bf16.msra.mxu2 %v5341_v21  ;;  %v5348_v21 = vld [vmem:[#allocation15_spill] sm:$0xff] }
 0x1cf   :  { %1802 = vmatpush.bf16.msra.mxu3 %v5342_v58  ;;  %v5351_v58 = vld [vmem:[#allocation18_spill] sm:$0xff] }
 0x1d0   :  { %1764 = vmatpush.bf16.msra.mxu0 %v5343_v63  ;;  %v5353_v63 = vld [vmem:[#allocation48_spill] sm:$0xff] }
 0x1d1   :  { %1777 = vmatpush.bf16.msra.mxu1 %v5344_v28  ;;  %v5352_v28 = vld [vmem:[#allocation19_spill] sm:$0xff] }
 0x1d2   :  { %1790 = vmatpush.bf16.msra.mxu2 %v5345_v16  ;;  %v5355_v16 = vld [vmem:[#allocation22_spill] sm:$0xff] }
 0x1d3   :  { %1803 = vmatpush.bf16.msra.mxu3 %v5346_v44  ;;  %v2593_v44 = vld [vmem:[%s4731_s0 + $0x7c] sm:$0xff] }
 0x1d4   :  { %1765 = vmatpush.bf16.msra.mxu0 %v5347_v22  ;;  %v1498_v22 = vpop.f32.mrf.mxu2  ;;  %v1511_v34 = vpop.f32.mrf.mxu3  ;;  %v1712_v46 = vunpack.c.l.b16 %v2593_v44  ;;  %v1713_v39 = vunpack.c.h.b16 %v2593_v44 }
 0x1d5   :  { %1778 = vmatpush.bf16.msra.mxu1 %v5348_v21  ;;  %v5360_v22 = vld [vmem:[#allocation27_spill] sm:$0xff] }
 0x1d6   :  { %1791 = vmatpush.bf16.msra.mxu2 %v5349_v7  ;;  %v2592_v7 = vld [vmem:[%s4731_s0 + $0x74] sm:$0xff] }
 0x1d7   :  { %1804 = vmatpush.bf16.msra.mxu3 %v5350_v37  ;;  %v1710_v21 = vunpack.c.l.b16 %v2592_v7  ;;  %v5358_v37 = vld [vmem:[#allocation53_spill] sm:$0xff] }
 0x1d8   :  { %1766 = vmatpush.bf16.msra.mxu0 %v5351_v58  ;;  %v1711_v58 = vunpack.c.h.b16 %v2592_v7  ;;  %v5366_v7 = vld [vmem:[#allocation60_spill] sm:$0xff] }
 0x1d9   :  { %1779 = vmatpush.bf16.msra.mxu1 %v5352_v28  ;;  %v5359_v28 = vld [vmem:[#allocation26_spill] sm:$0xff]  ;;  %v4575_v34 = vpack.c.b16 %v1710_v21, %v1710_v21 }
 0x1da   :  { %1792 = vmatpush.bf16.msra.mxu2 %v5353_v63  ;;  %v4571_v63 = vpack.c.b16 %v1712_v46, %v1712_v46  ;;  %v4581_v44 = vpack.c.b16 %v1711_v58, %v1711_v58  ;;  %v5367_v46 = vld [vmem:[#allocation61_spill] sm:$0xff]  ;;  %v5368_v21 = vld [vmem:[#allocation34_spill] sm:$0xff]  ;;  %v5370_v58 = vld [vmem:[#allocation64_spill] sm:$0xff] }
 0x1db   :  { %1805 = vmatpush.bf16.msra.mxu3 %v5354_v17  ;;  %v5361_v17 = vld [vmem:[#allocation56_spill] sm:$0xff] }
 0x1dc   :  { %1767 = vmatpush.bf16.msra.mxu0 %v5355_v16  ;;  %v4577_v16 = vpack.c.b16 %v1713_v39, %v1713_v39  ;;  %v5369_v39 = vld [vmem:[#allocation35_spill] sm:$0xff] }
 0x1dd   :  { %1780 = vmatpush.bf16.msra.mxu1 %v5356_v48  ;;  %v5363_v48 = vld [vmem:[#allocation57_spill] sm:$0xff] }
 0x1de   :  { %1793 = vmatpush.bf16.msra.mxu2 %v5357_v29  ;;  %5362 = vst [vmem:[#allocation106_spill] sm:$0xff] %v4577_v16  ;;  %v5364_v29 = vld [vmem:[#allocation30_spill] sm:$0xff] }
 0x1df   :  { %1806 = vmatpush.bf16.msra.mxu3 %v5358_v37  ;;  %v5365_v37 = vld [vmem:[#allocation31_spill] sm:$0xff] }
 0x1e0   :  { %1768 = vmatpush.bf16.msra.mxu0 %v5359_v28  ;;  %v5371_v28 = vld [vmem:[#allocation65_spill] sm:$0xff] }
 0x1e1   :  { %1781 = vmatpush.bf16.msra.mxu1 %v5360_v22  ;;  %v5372_v22 = vld [vmem:[#allocation38_spill] sm:$0xff] }
 0x1e2   :  { %1794 = vmatpush.bf16.msra.mxu2 %v5361_v17  ;;  %v1522_v17 = vpop.f32.mrf.mxu0 }
 0x1e3   :  { %1807 = vmatpush.bf16.msra.mxu3 %v5363_v48  ;;  %1769 = vmatmul.bf16.vlgmr.msra.gmra.mxu0 %v4575_v34  ;;  %v5373_v48 = vld [vmem:[#allocation39_spill] sm:$0xff] }
 0x1e4   :  { %1813 = vmatpush.bf16.msrb.mxu0 %v5364_v29  ;;  %1782 = vmatmul.bf16.vlgmr.msra.gmra.mxu1 %v4581_v44  ;;  %v5374_v29 = vld [vmem:[#allocation68_spill] sm:$0xff] }
 0x1e5   :  { %1826 = vmatpush.bf16.msrb.mxu1 %v5365_v37  ;;  %1795 = vmatmul.bf16.vlgmr.msra.gmra.mxu2 %v4571_v63  ;;  %v1523_v37 = vadd.f32 %v1522_v17, %v1510_v12  ;;  %v5380_v12 = vld [vmem:[#allocation47_spill] sm:$0xff] }
 0x1e6   :  { %1839 = vmatpush.bf16.msrb.mxu2 %v5366_v7  ;;  %1808 = vmatmul.bf16.vlgmr.msra.gmra.mxu3 %v4577_v16  ;;  %v1535_v7 = vpop.f32.mrf.mxu1  ;;  %v5376_v16 = vld [vmem:[#allocation42_spill] sm:$0xff] }
 0x1e7   :  { %1852 = vmatpush.bf16.msrb.mxu3 %v5367_v46  ;;  %v5375_v46 = vld [vmem:[#allocation69_spill] sm:$0xff] }
 0x1e8   :  { %1814 = vmatpush.bf16.msrb.mxu0 %v5368_v21  ;;  %v1536_v21 = vadd.f32 %v1535_v7, %v1523_v37  ;;  %v5383_v7 = vld [vmem:[#allocation54_spill] sm:$0xff] }
 0x1e9   :  { %1827 = vmatpush.bf16.msrb.mxu1 %v5369_v39  ;;  %v1548_v39 = vpop.f32.mrf.mxu2 }
 0x1ea   :  { %1840 = vmatpush.bf16.msrb.mxu2 %v5370_v58  ;;  %v5378_v58 = vld [vmem:[#allocation73_spill] sm:$0xff] }
 0x1eb   :  { %1853 = vmatpush.bf16.msrb.mxu3 %v5371_v28  ;;  %v1549_v28 = vadd.f32 %v1548_v39, %v1536_v21  ;;  %v5385_v39 = vld [vmem:[#allocation58_spill] sm:$0xff] }
 0x1ec   :  { %1815 = vmatpush.bf16.msrb.mxu0 %v5372_v22  ;;  %v1561_v22 = vpop.f32.mrf.mxu3 }
 0x1ed   :  { %1828 = vmatpush.bf16.msrb.mxu1 %v5373_v48  ;;  %v1562_v48 = vadd.f32 %v1561_v22, %v1549_v28 }
 0x1ee   :  { %1841 = vmatpush.bf16.msrb.mxu2 %v5374_v29  ;;  %v1524_v29 = vpop.f32.mrf.mxu0  ;;  %v1537_v17 = vpop.f32.mrf.mxu1 }
 0x1ef   :  { %1854 = vmatpush.bf16.msrb.mxu3 %v5375_v46  ;;  %v5384_v46 = vld [vmem:[#allocation55_spill] sm:$0xff]  ;;  %v5387_v29 = vld [vmem:[#allocation62_spill] sm:$0xff] }
 0x1f0   :  { %1816 = vmatpush.bf16.msrb.mxu0 %v5376_v16  ;;  %v5381_v16 = vld [vmem:[#allocation50_spill] sm:$0xff] }
 0x1f1   :  { %1829 = vmatpush.bf16.msrb.mxu1 %v5377_v23  ;;  %v5382_v23 = vld [vmem:[#allocation51_spill] sm:$0xff] }
 0x1f2   :  { %1842 = vmatpush.bf16.msrb.mxu2 %v5284_v5  ;;  %v2594_v5 = vld [vmem:[%s4731_s0 + $0x84] sm:$0xff] }
 0x1f3   :  { %1855 = vmatpush.bf16.msrb.mxu3 %v5378_v58  ;;  %v1715_v21 = vunpack.c.h.b16 %v2594_v5 }
 0x1f4   :  { %1817 = vmatpush.bf16.msrb.mxu0 %v5379_v42  ;;  %v1550_v42 = vpop.f32.mrf.mxu2  ;;  %v1563_v37 = vpop.f32.mrf.mxu3 }
 0x1f5   :  { %1830 = vmatpush.bf16.msrb.mxu1 %v5380_v12  ;;  %v4627_v22 = vpack.c.b16 %v1715_v21, %v1715_v21  ;;  %v5392_v12 = vld [vmem:[#allocation71_spill] sm:$0xff] }
 0x1f6   :  { %1843 = vmatpush.bf16.msrb.mxu2 %v5289_v8  ;;  %v2595_v8 = vld [vmem:[%s4731_s0 + $0x8c] sm:$0xf] }
 0x1f7   :  { %1856 = vmatpush.bf16.msrb.mxu3 %v5290_v36  ;;  %v1714_v36 = vunpack.c.l.b16 %v2594_v5  ;;  %v5395_v5 = vld [vmem:[#allocation74_spill] sm:$0xff] }
 0x1f8   :  { %1818 = vmatpush.bf16.msrb.mxu0 %v5381_v16  ;;  %v5393_v16 = vld [vmem:[#allocation109_spill] sm:$0xff] }
 0x1f9   :  { %1831 = vmatpush.bf16.msrb.mxu1 %v5382_v23  ;;  %v4621_v58 = vpack.c.b16 %v1714_v36, %v1714_v36  ;;  %v5400_v36 = vld [vmem:[#allocation83_spill] sm:$0xff] }
 0x1fa   :  { %1844 = vmatpush.bf16.msrb.mxu2 %v5294_v53  ;;  %v1716_v53 = vunpack.c.l.b16 %v2595_v8  ;;  %v5397_v8 = vld [vmem:[#allocation78_spill] sm:$0xff] }
 0x1fb   :  { %1857 = vmatpush.bf16.msrb.mxu3 %v5295_v0  ;;  %v5386_v0 = vld [vmem:[#allocation59_spill] sm:$0xff] }
 0x1fc   :  { %1819 = vmatpush.bf16.msrb.mxu0 %v5383_v7  ;;  %v4625_v28 = vpack.c.b16 %v1716_v53, %v1716_v53  ;;  %v5399_v7 = vld [vmem:[#allocation82_spill] sm:$0xff]  ;;  %v5402_v53 = vld [vmem:[#allocation87_spill] sm:$0xff] }
 0x1fd   :  { %1832 = vmatpush.bf16.msrb.mxu1 %v5384_v46  ;;  %v5401_v46 = vld [vmem:[#allocation86_spill] sm:$0xff] }
 0x1fe   :  { %1845 = vmatpush.bf16.msrb.mxu2 %v5296_v61  ;;  %v5388_v61 = vld [vmem:[#allocation63_spill] sm:$0xff] }
 0x1ff   :  { %1858 = vmatpush.bf16.msrb.mxu3 %v5297_v50  ;;  %v5390_v50 = vld [vmem:[#allocation67_spill] sm:$0xff] }
 0x200   :  { %1820 = vmatpush.bf16.msrb.mxu0 %v5385_v39 }
 0x201   :  { %1833 = vmatpush.bf16.msrb.mxu1 %v5386_v0  ;;  %v1587_v17 = vpop.f32.mrf.mxu1 }
 0x202   :  { %1846 = vmatpush.bf16.msrb.mxu2 %v5298_v38  ;;  %v5389_v38 = vld [vmem:[#allocation66_spill] sm:$0xff] }
 0x203   :  { %1859 = vmatpush.bf16.msrb.mxu3 %v5299_v41  ;;  %1821 = vmatmul.bf16.vlgmr.msrb.gmra.mxu0 %v4621_v58  ;;  %v1574_v41 = vpop.f32.mrf.mxu0 }
 0x204   :  { %1865 = vmatpush.bf16.msra.mxu0 %v5387_v29  ;;  %1834 = vmatmul.bf16.vlgmr.msrb.gmra.mxu1 %v4627_v22  ;;  %v5420_v29 = vld [vmem:[#allocation108_spill] sm:$0xff] }
 0x205   :  { %1878 = vmatpush.bf16.msra.mxu1 %v5388_v61  ;;  %1847 = vmatmul.bf16.vlgmr.msrb.gmra.mxu2 %v4625_v28  ;;  %v5421_v61 = vld [vmem:[#allocation103_spill] sm:$0xff] }
 0x206   :  { %1891 = vmatpush.bf16.msra.mxu2 %v5300_v25  ;;  %1860 = vmatmul.bf16.vlgmr.msrb.gmra.mxu3 %v4527_v4  ;;  %v5391_v25 = vld [vmem:[#allocation70_spill] sm:$0xff]  ;;  %v5394_v4 = vmax.f32 %v5292_v13, %v5393_v16 }
 0x207   :  { %1904 = vmatpush.bf16.msra.mxu3 %v5301_v60  ;;  %v1575_v60 = vadd.f32 %v1574_v41, %v1562_v48 }
 0x208   :  { %1866 = vmatpush.bf16.msra.mxu0 %v5389_v38  ;;  %v5422_v38 = vmax.f32 %v5420_v29, %v5421_v61  ;;  %v2597_v61 = vld [vmem:[%s4732_s2 + $0x2] ss:$8 sm:$0x3] }
 0x209   :  { %1879 = vmatpush.bf16.msra.mxu1 %v5390_v50  ;;  %v4649_v23 = vmax.f32 %v5394_v4, %v1575_v60  ;;  %v1613_v48 = vpop.f32.mrf.mxu3  ;;  %v1589_v37 = vpop.f32.mrf.mxu1 }
 0x20a   :  { %1892 = vmatpush.bf16.msra.mxu2 %v5302_v6  ;;  %v5396_v6 = vld [vmem:[#allocation75_spill] sm:$0xff] }
 0x20b   :  { %1905 = vmatpush.bf16.msra.mxu3 %v5303_v47  ;;  %v1600_v47 = vpop.f32.mrf.mxu2 }
 0x20c   :  { %1867 = vmatpush.bf16.msra.mxu0 %v5391_v25  ;;  %v1601_v42 = vadd.f32 %v1600_v47, %v1587_v17 }
 0x20d   :  { %1880 = vmatpush.bf16.msra.mxu1 %v5392_v12 }
 0x20e   :  { %1893 = vmatpush.bf16.msra.mxu2 %v5304_v15  ;;  %v1576_v15 = vpop.f32.mrf.mxu0  ;;  %v1614_v13 = vadd.f32 %v1613_v48, %v1601_v42 }
 0x20f   :  { %1906 = vmatpush.bf16.msra.mxu3 %v5305_v57  ;;  %v5398_v57 = vld [vmem:[#allocation79_spill] sm:$0xff] }
 0x210   :  { %1868 = vmatpush.bf16.msra.mxu0 %v5395_v5 }
 0x211   :  { %1881 = vmatpush.bf16.msra.mxu1 %v5396_v6 }
 0x212   :  { %1894 = vmatpush.bf16.msra.mxu2 %v5306_v51 }
 0x213   :  { %1907 = vmatpush.bf16.msra.mxu3 %v5307_v40  ;;  %v1602_v51 = vpop.f32.mrf.mxu2  ;;  %v1615_v40 = vpop.f32.mrf.mxu3 }
 0x214   :  { %1869 = vmatpush.bf16.msra.mxu0 %v5397_v8 }
 0x215   :  { %1882 = vmatpush.bf16.msra.mxu1 %v5398_v57 }
 0x216   :  { %1895 = vmatpush.bf16.msra.mxu2 %v5202_v49  ;;  %v5403_v49 = vld [vmem:[#allocation90_spill] sm:$0xff] }
 0x217   :  { %1908 = vmatpush.bf16.msra.mxu3 %v5203_v62  ;;  %v5404_v62 = vld [vmem:[#allocation91_spill] sm:$0xff] }
 0x218   :  { %1870 = vmatpush.bf16.msra.mxu0 %v5399_v7 }
 0x219   :  { %1883 = vmatpush.bf16.msra.mxu1 %v5400_v36 }
 0x21a   :  { %1896 = vmatpush.bf16.msra.mxu2 %v5308_v27  ;;  %v5405_v27 = vld [vmem:[#allocation94_spill] sm:$0xff] }
 0x21b   :  { %1909 = vmatpush.bf16.msra.mxu3 %v5309_v18  ;;  %v5406_v18 = vld [vmem:[#allocation95_spill] sm:$0xff] }
 0x21c   :  { %1871 = vmatpush.bf16.msra.mxu0 %v5401_v46 }
 0x21d   :  { %1884 = vmatpush.bf16.msra.mxu1 %v5402_v53 }
 0x21e   :  { %1897 = vmatpush.bf16.msra.mxu2 %v5310_v54  ;;  %v5407_v54 = vld [vmem:[#allocation98_spill] sm:$0xff] }
 0x21f   :  { %1910 = vmatpush.bf16.msra.mxu3 %v5311_v35  ;;  %v5408_v35 = vld [vmem:[#allocation99_spill] sm:$0xff] }
 0x220   :  { %1872 = vmatpush.bf16.msra.mxu0 %v5403_v49 }
 0x221   :  { %1885 = vmatpush.bf16.msra.mxu1 %v5404_v62 }
 0x222   :  { %1898 = vmatpush.bf16.msra.mxu2 %v5312_v2  ;;  %v5409_v2 = vld [vmem:[#allocation102_spill] sm:$0xff] }
 0x223   :  { %1911 = vmatpush.bf16.msra.mxu3 %v5313_v26  ;;  %1873 = vmatmul.bf16.vlgmr.msra.gmra.mxu0 %v4531_v33  ;;  %v1626_v26 = vpop.f32.mrf.mxu0 }
 0x224   :  { %1917 = vmatpush.bf16.msrb.mxu0 %v5405_v27  ;;  %1886 = vmatmul.bf16.vlgmr.msra.gmra.mxu1 %v4575_v34  ;;  %v5415_v34 = vld [vmem:[#allocation122_spill] sm:$0xff] }
 0x225   :  { %1930 = vmatpush.bf16.msrb.mxu1 %v5406_v18  ;;  %1899 = vmatmul.bf16.vlgmr.msra.gmra.mxu2 %v4581_v44 }
 0x226   :  { %1943 = vmatpush.bf16.msrb.mxu2 %v5314_v59  ;;  %1912 = vmatmul.bf16.vlgmr.msra.gmra.mxu3 %v4571_v63  ;;  %v1627_v59 = vadd.f32 %v1626_v26, %v1614_v13 }
 0x227   :  { %1956 = vmatpush.bf16.msrb.mxu3 %v5315_v20  ;;  %v1639_v20 = vpop.f32.mrf.mxu1 }
 0x228   :  { %1918 = vmatpush.bf16.msrb.mxu0 %v5407_v54  ;;  %v1640_v33 = vadd.f32 %v1639_v20, %v1627_v59 }
 0x229   :  { %1931 = vmatpush.bf16.msrb.mxu1 %v5408_v35  ;;  %v1665_v63 = vpop.f32.mrf.mxu3 }
 0x22a   :  { %1944 = vmatpush.bf16.msrb.mxu2 %v5316_v45  ;;  %v1652_v45 = vpop.f32.mrf.mxu2 }
 0x22b   :  { %1957 = vmatpush.bf16.msrb.mxu3 %v5317_v30  ;;  %v1653_v30 = vadd.f32 %v1652_v45, %v1640_v33 }
 0x22c   :  { %1919 = vmatpush.bf16.msrb.mxu0 %v5409_v2 }
 0x22d   :  { %1932 = vmatpush.bf16.msrb.mxu1 %v5218_v14  ;;  %v1666_v14 = vadd.f32 %v1665_v63, %v1653_v30 }
 0x22e   :  { %1945 = vmatpush.bf16.msrb.mxu2 %v5318_v3  ;;  %v1628_v3 = vpop.f32.mrf.mxu0 }
 0x22f   :  { %1958 = vmatpush.bf16.msrb.mxu3 %v4016_v10  ;;  %v1641_v10 = vpop.f32.mrf.mxu1 }
 0x230   :  { %1920 = vmatpush.bf16.msrb.mxu0 %v5219_v24 }
 0x231   :  { %1933 = vmatpush.bf16.msrb.mxu1 %v5220_v55  ;;  %v1667_v55 = vpop.f32.mrf.mxu3 }
 0x232   :  { %1946 = vmatpush.bf16.msrb.mxu2 %v4032_v11  ;;  %v1654_v24 = vpop.f32.mrf.mxu2  ;;  %v5410_v11 = vld [vmem:[#allocation130_spill] sm:$0xff] }
 0x233   :  { %1959 = vmatpush.bf16.msrb.mxu3 %v5319_v1  ;;  %v5412_v1 = vld [vmem:[#allocation119_spill] sm:$0xff] }
 0x234   :  { %1921 = vmatpush.bf16.msrb.mxu0 %v5221_v9  ;;  %v5411_v9 = vld [vmem:[#allocation118_spill] sm:$0xff] }
 0x235   :  { %1934 = vmatpush.bf16.msrb.mxu1 %v5222_v52  ;;  %v5413_v52 = vld [vmem:[#allocation131_spill] sm:$0xff] }
 0x236   :  { %1947 = vmatpush.bf16.msrb.mxu2 %v4052_v31  ;;  %v5414_v31 = vld [vmem:[#allocation132_spill] sm:$0xff] }
 0x237   :  { %1960 = vmatpush.bf16.msrb.mxu3 %v4056_v32  ;;  %v5416_v32 = vld [vmem:[#allocation123_spill] sm:$0xff] }
 0x238   :  { %1922 = vmatpush.bf16.msrb.mxu0 %v5223_v56  ;;  %v5417_v56 = vld [vmem:[#allocation133_spill] sm:$0xff] }
 0x239   :  { %1935 = vmatpush.bf16.msrb.mxu1 %v5224_v43  ;;  %v5418_v43 = vld [vmem:[#allocation134_spill] sm:$0xff] }
 0x23a   :  { %1948 = vmatpush.bf16.msrb.mxu2 %v4072_v19  ;;  %v5419_v19 = vld [vmem:[#allocation106_spill] sm:$0xff] }
 0x23b   :  { %1961 = vmatpush.bf16.msrb.mxu3 %v5410_v11  ;;  %v1971_v11 = vld [vmem:[%s4732_s2] ss:$8 sm:$0x3] }
 0x23c   :  { %1923 = vmatpush.bf16.msrb.mxu0 %v5411_v9  ;;  %v1973_v9 = vperm.slane %v1971_v11, 0 }
 0x23d   :  { %1936 = vmatpush.bf16.msrb.mxu1 %v5412_v1 }
 0x23e   :  { %1949 = vmatpush.bf16.msrb.mxu2 %v5413_v52 }
 0x23f   :  { %1962 = vmatpush.bf16.msrb.mxu3 %v5414_v31 }
 0x240   :  { %1924 = vmatpush.bf16.msrb.mxu0 %v5415_v34  ;;  %v1678_v44 = vpop.f32.mrf.mxu0 }
 0x241   :  { %1937 = vmatpush.bf16.msrb.mxu1 %v5416_v32  ;;  %v1679_v21 = vadd.f32 %v1678_v44, %v1666_v14  ;;  %v1691_v39 = vpop.f32.mrf.mxu1 }
 0x242   :  { %1950 = vmatpush.bf16.msrb.mxu2 %v5417_v56 }
 0x243   :  { %1963 = vmatpush.bf16.msrb.mxu3 %v5418_v43  ;;  %1925 = vmatmul.bf16.vlgmr.msrb.gmra.mxu0 %v5419_v19  ;;  %v1692_v0 = vadd.f32 %v1691_v39, %v1679_v21  ;;  %v2596_v43 = vld [vmem:[%s4732_s2 + $0x1] ss:$8 sm:$0x3]  ;;  %v1974_v21 = vperm.slane %v1971_v11, 1 }
 0x244   :  { %1938 = vmatmul.bf16.vlgmr.msrb.gmra.mxu1 %v4621_v58 }
 0x245   :  { %1951 = vmatmul.bf16.vlgmr.msrb.gmra.mxu2 %v4627_v22  ;;  %v4714_v50 = vmax.f32 %v5422_v38, %v1692_v0  ;;  %v1984_v0 = vperm.slane %v2596_v43, 0 }
 0x246   :  { %1964 = vmatmul.bf16.vlgmr.msrb.gmra.mxu3 %v4625_v28 }
 0x248   :  { %v1744_v41 = vpop.f32.mrf.mxu2  ;;  %v1680_v60 = vpop.f32.mrf.mxu0 }
 0x249   :  { %v1757_v25 = vpop.f32.mrf.mxu3  ;;  %v1693_v17 = vpop.f32.mrf.mxu1 }
 0x24a   :  { %v1758_v12 = vadd.f32 %v1757_v25, %v1744_v41  ;;  %v1985_v41 = vperm.slane %v2596_v43, 1 }
 0x250   :  { %v1746_v16 = vpop.f32.mrf.mxu2 }
 0x251   :  { %v1759_v58 = vpop.f32.mrf.mxu3  ;;  %v1994_v16 = vperm.slane %v2597_v61, 1 }
 0x260   :  { %v1770_v4 = vpop.f32.mrf.mxu0 }
 0x261   :  { %v1771_v22 = vadd.f32 %v1770_v4, %v1758_v12  ;;  %v1783_v5 = vpop.f32.mrf.mxu1  ;;  %v1993_v12 = vperm.slane %v2597_v61, 0 }
 0x263   :  { %v1784_v28 = vadd.f32 %v1783_v5, %v1771_v22 }
 0x268   :  { %v1796_v6 = vpop.f32.mrf.mxu2  ;;  %v1772_v15 = vpop.f32.mrf.mxu0 }
 0x269   :  { %v1797_v47 = vadd.f32 %v1796_v6, %v1784_v28  ;;  %v1809_v48 = vpop.f32.mrf.mxu3  ;;  %v1785_v8 = vpop.f32.mrf.mxu1 }
 0x26b   :  { %v1810_v42 = vadd.f32 %v1809_v48, %v1797_v47 }
 0x270   :  { %v1798_v57 = vpop.f32.mrf.mxu2 }
 0x271   :  { %v1811_v13 = vpop.f32.mrf.mxu3 }
 0x280   :  { %v1822_v37 = vpop.f32.mrf.mxu0 }
 0x281   :  { %v1823_v7 = vadd.f32 %v1822_v37, %v1810_v42  ;;  %v1835_v36 = vpop.f32.mrf.mxu1 }
 0x283   :  { %v1836_v51 = vadd.f32 %v1835_v36, %v1823_v7 }
 0x288   :  { %v1848_v40 = vpop.f32.mrf.mxu2  ;;  %v1824_v49 = vpop.f32.mrf.mxu0 }
 0x289   :  { %v1849_v46 = vadd.f32 %v1848_v40, %v1836_v51  ;;  %v1861_v53 = vpop.f32.mrf.mxu3  ;;  %v1837_v62 = vpop.f32.mrf.mxu1 }
 0x28b   :  { %v1969_v27 = vmax.f32 %v4649_v23, %v1849_v46 }
 0x28d   :  { %v1977_v31 = vadd.f32 %v1973_v9, %v1969_v27 }
 0x28f   :  { %v1979_v39 = vmax.f32 %v1977_v31, 0.0 }
 0x290   :  { %v1850_v18 = vpop.f32.mrf.mxu2 }
 0x291   :  { %v1863_v54 = vpop.f32.mrf.mxu3  ;;  %v1988_v60 = vmul.f32 %v1984_v0, %v1979_v39 }
 0x293   :  { %v1997_v22 = vadd.f32 %v1993_v12, %v1988_v60 }
 0x2a0   :  { %v1874_v35 = vpop.f32.mrf.mxu0 }
 0x2a1   :  { %v1887_v2 = vpop.f32.mrf.mxu1  ;;  %v1875_v63 = vadd.f32 %v1874_v35, %v1861_v53 }
 0x2a3   :  { %v1888_v14 = vadd.f32 %v1887_v2, %v1875_v63 }
 0x2a8   :  { %v1900_v26 = vpop.f32.mrf.mxu2  ;;  %v1876_v20 = vpop.f32.mrf.mxu0 }
 0x2a9   :  { %v1913_v59 = vpop.f32.mrf.mxu3  ;;  %v1889_v33 = vpop.f32.mrf.mxu1  ;;  %v1901_v3 = vadd.f32 %v1900_v26, %v1888_v14 }
 0x2ab   :  { %v1914_v10 = vadd.f32 %v1913_v59, %v1901_v3 }
 0x2b0   :  { %v1902_v45 = vpop.f32.mrf.mxu2 }
 0x2b1   :  { %v1915_v30 = vpop.f32.mrf.mxu3 }
 0x2c0   :  { %v1926_v24 = vpop.f32.mrf.mxu0 }
 0x2c1   :  { %v1939_v23 = vpop.f32.mrf.mxu1  ;;  %v1927_v55 = vadd.f32 %v1926_v24, %v1914_v10 }
 0x2c3   :  { %v1940_v1 = vadd.f32 %v1939_v23, %v1927_v55 }
 0x2c8   :  { %v1952_v52 = vpop.f32.mrf.mxu2  ;;  %v1928_v56 = vpop.f32.mrf.mxu0 }
 0x2c9   :  { %v1953_v34 = vadd.f32 %v1952_v52, %v1940_v1  ;;  %v1965_v32 = vpop.f32.mrf.mxu3  ;;  %v1941_v19 = vpop.f32.mrf.mxu1 }
 0x2cb   :  { %v1966_v44 = vadd.f32 %v1965_v32, %v1953_v34 }
 0x2cd   :  { %v1970_v29 = vmax.f32 %v4714_v50, %v1966_v44 }
 0x2cf   :  { %v1978_v38 = vadd.f32 %v1974_v21, %v1970_v29 }
 0x2d0   :  { %v1954_v25 = vpop.f32.mrf.mxu2 }
 0x2d1   :  { %v1980_v17 = vmax.f32 %v1978_v38, 0.0  ;;  %v1967_v58 = vpop.f32.mrf.mxu3 }
 0x2d3   :  { %v1989_v4 = vmul.f32 %v1985_v41, %v1980_v17 }
 0x2d5   :  { %v1998_v5 = vadd.f32 %v1994_v16, %v1989_v4 }
 0x2d7   :  { %v1999_v28 = vpack.c.bf16 %v1998_v5, %v1997_v22 }
 0x2d9   :  { %2000 = vst [vmem:[%s4733_s3] sm:$0xff] %v1999_v28 }

// kernel: _lambda_.9
= control target key start
LH: loop header
LB: loop body
LE: loop exit
PB: predicated region body
PF: predicated region fallthrough
CT: control target
= control target key end

     0   :  { %s2861_s0 = inlined_call_operand.vmem [shape: bf16[2,1024], index: 0, kind: input, shape index: {}]   ;;  %s2862_s1 = inlined_call_operand.vmem [shape: bf16[1024,256], index: 1, kind: input, shape index: {}]   ;;  %s2863_s2 = inlined_call_operand.vmem [shape: f32[1,256], index: 2, kind: input, shape index: {}]   ;;  %s2864_s3 = inlined_call_operand.vmem [shape: bf16[256,128], index: 3, kind: input, shape index: {}]   ;;  %s2865_s4 = inlined_call_operand.vmem [shape: f32[1,128], index: 4, kind: input, shape index: {}]   ;;  %s2866_s5 = inlined_call_operand.hbm [shape: f32[2,128], index: 5, kind: output, shape index: {}]  }
   0x1   :  { %v1276_v0 = vld [vmem:[%s2862_s1 + $0x70] sm:$0xf]  ;;  %v1809_v1 = vld [vmem:[%s2862_s1 + $0x74] sm:$0xf0]  ;;  %v1268_v11 = vld [vmem:[%s2862_s1 + $0x60] sm:$0xf] }
   0x2   :  { %v1340_v2 = vld [vmem:[%s2862_s1 + $0xf0] sm:$0xf]  ;;  %v1277_v3 = vor.u32 %v1809_v1, %v1276_v0  ;;  %v1825_v4 = vld [vmem:[%s2862_s1 + $0xf4] sm:$0xf0]  ;;  %v1807_v13 = vld [vmem:[%s2862_s1 + $0x64] sm:$0xf0] }
   0x3   :  { %v1404_v5 = vld [vmem:[%s2862_s1 + $0x170] sm:$0xf]  ;;  %v1841_v6 = vld [vmem:[%s2862_s1 + $0x174] sm:$0xf0]  ;;  %v1341_v7 = vor.u32 %v1825_v4, %v1340_v2  ;;  %v1332_v14 = vld [vmem:[%s2862_s1 + $0xe0] sm:$0xf]  ;;  %v1269_v16 = vor.u32 %v1807_v13, %v1268_v11 }
   0x4   :  { %v1405_v8 = vor.u32 %v1841_v6, %v1404_v5  ;;  %v1468_v9 = vld [vmem:[%s2862_s1 + $0x1f0] sm:$0xf]  ;;  %v1857_v10 = vld [vmem:[%s2862_s1 + $0x1f4] sm:$0xf0]  ;;  %814 = vmatpush.bf16.msra.mxu0 %v1277_v3  ;;  %v1823_v15 = vld [vmem:[%s2862_s1 + $0xe4] sm:$0xf0] }
   0x5   :  { %v1469_v12 = vor.u32 %v1857_v10, %v1468_v9  ;;  %827 = vmatpush.bf16.msra.mxu1 %v1341_v7  ;;  %v1333_v17 = vor.u32 %v1823_v15, %v1332_v14  ;;  %v1396_v18 = vld [vmem:[%s2862_s1 + $0x160] sm:$0xf]  ;;  %v1839_v19 = vld [vmem:[%s2862_s1 + $0x164] sm:$0xf0]  ;;  %v1260_v23 = vld [vmem:[%s2862_s1 + $0x50] sm:$0xf] }
   0x6   :  { %840 = vmatpush.bf16.msra.mxu2 %v1405_v8  ;;  %v1460_v20 = vld [vmem:[%s2862_s1 + $0x1e0] sm:$0xf]  ;;  %v1397_v21 = vor.u32 %v1839_v19, %v1396_v18  ;;  %v1855_v22 = vld [vmem:[%s2862_s1 + $0x1e4] sm:$0xf0]  ;;  %v1805_v24 = vld [vmem:[%s2862_s1 + $0x54] sm:$0xf0] }
   0x7   :  { %853 = vmatpush.bf16.msra.mxu3 %v1469_v12  ;;  %v1461_v25 = vor.u32 %v1855_v22, %v1460_v20  ;;  %v1324_v26 = vld [vmem:[%s2862_s1 + $0xd0] sm:$0xf]  ;;  %v1821_v27 = vld [vmem:[%s2862_s1 + $0xd4] sm:$0xf0]  ;;  %v1261_v29 = vor.u32 %v1805_v24, %v1260_v23  ;;  %v1252_v35 = vld [vmem:[%s2862_s1 + $0x40] sm:$0xf] }
   0x8   :  { %v1388_v28 = vld [vmem:[%s2862_s1 + $0x150] sm:$0xf]  ;;  %815 = vmatpush.bf16.msra.mxu0 %v1269_v16  ;;  %v1837_v30 = vld [vmem:[%s2862_s1 + $0x154] sm:$0xf0]  ;;  %v1325_v33 = vor.u32 %v1821_v27, %v1324_v26  ;;  %v1803_v36 = vld [vmem:[%s2862_s1 + $0x44] sm:$0xf0] }
   0x9   :  { %v1452_v31 = vld [vmem:[%s2862_s1 + $0x1d0] sm:$0xf]  ;;  %v1853_v32 = vld [vmem:[%s2862_s1 + $0x1d4] sm:$0xf0]  ;;  %828 = vmatpush.bf16.msra.mxu1 %v1333_v17  ;;  %v1389_v34 = vor.u32 %v1837_v30, %v1388_v28  ;;  %v1316_v37 = vld [vmem:[%s2862_s1 + $0xc0] sm:$0xf]  ;;  %v1253_v44 = vor.u32 %v1803_v36, %v1252_v35 }
   0xa   :  { %841 = vmatpush.bf16.msra.mxu2 %v1397_v21  ;;  %v1453_v38 = vor.u32 %v1853_v32, %v1452_v31  ;;  %v1819_v39 = vld [vmem:[%s2862_s1 + $0xc4] sm:$0xf0]  ;;  %v1380_v40 = vld [vmem:[%s2862_s1 + $0x140] sm:$0xf]  ;;  %v1244_v47 = vld [vmem:[%s2862_s1 + $0x30] sm:$0xf] }
   0xb   :  { %854 = vmatpush.bf16.msra.mxu3 %v1461_v25  ;;  %v1835_v41 = vld [vmem:[%s2862_s1 + $0x144] sm:$0xf0]  ;;  %v1444_v42 = vld [vmem:[%s2862_s1 + $0x1c0] sm:$0xf]  ;;  %v1317_v45 = vor.u32 %v1819_v39, %v1316_v37  ;;  %v1801_v48 = vld [vmem:[%s2862_s1 + $0x34] sm:$0xf0] }
   0xc   :  { %v1851_v43 = vld [vmem:[%s2862_s1 + $0x1c4] sm:$0xf0]  ;;  %816 = vmatpush.bf16.msra.mxu0 %v1261_v29  ;;  %v1381_v46 = vor.u32 %v1835_v41, %v1380_v40  ;;  %v1308_v49 = vld [vmem:[%s2862_s1 + $0xb0] sm:$0xf]  ;;  %v1817_v51 = vld [vmem:[%s2862_s1 + $0xb4] sm:$0xf0]  ;;  %v1245_v56 = vor.u32 %v1801_v48, %v1244_v47 }
   0xd   :  { %829 = vmatpush.bf16.msra.mxu1 %v1325_v33  ;;  %v1445_v50 = vor.u32 %v1851_v43, %v1444_v42  ;;  %v1372_v52 = vld [vmem:[%s2862_s1 + $0x130] sm:$0xf]  ;;  %v1833_v53 = vld [vmem:[%s2862_s1 + $0x134] sm:$0xf0]  ;;  %v1309_v57 = vor.u32 %v1817_v51, %v1308_v49  ;;  %v1236_v59 = vld [vmem:[%s2862_s1 + $0x20] sm:$0xf] }
   0xe   :  { %842 = vmatpush.bf16.msra.mxu2 %v1389_v34  ;;  %v1436_v54 = vld [vmem:[%s2862_s1 + $0x1b0] sm:$0xf]  ;;  %v1849_v55 = vld [vmem:[%s2862_s1 + $0x1b4] sm:$0xf0]  ;;  %v1373_v58 = vor.u32 %v1833_v53, %v1372_v52  ;;  %v1799_v60 = vld [vmem:[%s2862_s1 + $0x24] sm:$0xf0] }
   0xf   :  { %855 = vmatpush.bf16.msra.mxu3 %v1453_v38  ;;  %v1300_v61 = vld [vmem:[%s2862_s1 + $0xa0] sm:$0xf]  ;;  %v1437_v62 = vor.u32 %v1849_v55, %v1436_v54  ;;  %v1815_v63 = vld [vmem:[%s2862_s1 + $0xa4] sm:$0xf0]  ;;  %v1237_v4 = vor.u32 %v1799_v60, %v1236_v59  ;;  %v1228_v7 = vld [vmem:[%s2862_s1 + $0x10] sm:$0xf] }
  0x10   :  { %817 = vmatpush.bf16.msra.mxu0 %v1253_v44  ;;  %v1364_v0 = vld [vmem:[%s2862_s1 + $0x120] sm:$0xf]  ;;  %v1831_v1 = vld [vmem:[%s2862_s1 + $0x124] sm:$0xf0]  ;;  %v1301_v5 = vor.u32 %v1815_v63, %v1300_v61  ;;  %v1797_v8 = vld [vmem:[%s2862_s1 + $0x14] sm:$0xf0] }
  0x11   :  { %830 = vmatpush.bf16.msra.mxu1 %v1317_v45  ;;  %v1428_v2 = vld [vmem:[%s2862_s1 + $0x1a0] sm:$0xf]  ;;  %v1847_v3 = vld [vmem:[%s2862_s1 + $0x1a4] sm:$0xf0]  ;;  %v1365_v6 = vor.u32 %v1831_v1, %v1364_v0  ;;  %v1292_v9 = vld [vmem:[%s2862_s1 + $0x90] sm:$0xf]  ;;  %v1229_v16 = vor.u32 %v1797_v8, %v1228_v7 }
  0x12   :  { %843 = vmatpush.bf16.msra.mxu2 %v1381_v46  ;;  %v1429_v10 = vor.u32 %v1847_v3, %v1428_v2  ;;  %v1813_v11 = vld [vmem:[%s2862_s1 + $0x94] sm:$0xf0]  ;;  %v1356_v12 = vld [vmem:[%s2862_s1 + $0x110] sm:$0xf]  ;;  %v1220_v17 = vld [vmem:[%s2862_s1] sm:$0xf] }
  0x13   :  { %856 = vmatpush.bf16.msra.mxu3 %v1445_v50  ;;  %v1829_v13 = vld [vmem:[%s2862_s1 + $0x114] sm:$0xf0]  ;;  %v1420_v14 = vld [vmem:[%s2862_s1 + $0x190] sm:$0xf]  ;;  %v1795_v18 = vld [vmem:[%s2862_s1 + $0x4] sm:$0xf0]  ;;  %v1293_v19 = vor.u32 %v1813_v11, %v1292_v9 }
  0x14   :  { %818 = vmatpush.bf16.msra.mxu0 %v1245_v56  ;;  %v1845_v15 = vld [vmem:[%s2862_s1 + $0x194] sm:$0xf0]  ;;  %v1357_v20 = vor.u32 %v1829_v13, %v1356_v12  ;;  %v1284_v21 = vld [vmem:[%s2862_s1 + $0x80] sm:$0xf]  ;;  %v1811_v22 = vld [vmem:[%s2862_s1 + $0x84] sm:$0xf0]  ;;  %v1221_v31 = vor.u32 %v1795_v18, %v1220_v17 }
  0x15   :  { %831 = vmatpush.bf16.msra.mxu1 %v1309_v57  ;;  %v1348_v23 = vld [vmem:[%s2862_s1 + $0x100] sm:$0xf]  ;;  %v1421_v24 = vor.u32 %v1845_v15, %v1420_v14  ;;  %v1827_v25 = vld [vmem:[%s2862_s1 + $0x104] sm:$0xf0]  ;;  %v1532_v28 = vld [vmem:[%s2862_s1 + $0x270] sm:$0xf]  ;;  %v1285_v35 = vor.u32 %v1811_v22, %v1284_v21 }
  0x16   :  { %844 = vmatpush.bf16.msra.mxu2 %v1373_v58  ;;  %v1412_v26 = vld [vmem:[%s2862_s1 + $0x180] sm:$0xf]  ;;  %v1843_v27 = vld [vmem:[%s2862_s1 + $0x184] sm:$0xf0]  ;;  %v1873_v29 = vld [vmem:[%s2862_s1 + $0x274] sm:$0xf0]  ;;  %v1349_v36 = vor.u32 %v1827_v25, %v1348_v23 }
  0x17   :  { %857 = vmatpush.bf16.msra.mxu3 %v1437_v62  ;;  %v1596_v30 = vld [vmem:[%s2862_s1 + $0x2f0] sm:$0xf]  ;;  %v1889_v32 = vld [vmem:[%s2862_s1 + $0x2f4] sm:$0xf0]  ;;  %v1413_v39 = vor.u32 %v1843_v27, %v1412_v26  ;;  %v1533_v40 = vor.u32 %v1873_v29, %v1532_v28  ;;  %v1524_v43 = vld [vmem:[%s2862_s1 + $0x260] sm:$0xf] }
  0x18   :  { %819 = vmatpush.bf16.msra.mxu0 %v1237_v4  ;;  %v1660_v33 = vld [vmem:[%s2862_s1 + $0x370] sm:$0xf]  ;;  %v1905_v34 = vld [vmem:[%s2862_s1 + $0x374] sm:$0xf0]  ;;  %v1597_v41 = vor.u32 %v1889_v32, %v1596_v30  ;;  %v1871_v44 = vld [vmem:[%s2862_s1 + $0x264] sm:$0xf0] }
  0x19   :  { %832 = vmatpush.bf16.msra.mxu1 %v1301_v5  ;;  %v1724_v37 = vld [vmem:[%s2862_s1 + $0x3f0] sm:$0xf]  ;;  %v1921_v38 = vld [vmem:[%s2862_s1 + $0x3f4] sm:$0xf0]  ;;  %v1661_v42 = vor.u32 %v1905_v34, %v1660_v33  ;;  %v1588_v45 = vld [vmem:[%s2862_s1 + $0x2e0] sm:$0xf]  ;;  %v1525_v53 = vor.u32 %v1871_v44, %v1524_v43 }
  0x1a   :  { %845 = vmatpush.bf16.msra.mxu2 %v1365_v6  ;;  %v1725_v46 = vor.u32 %v1921_v38, %v1724_v37  ;;  %v1887_v47 = vld [vmem:[%s2862_s1 + $0x2e4] sm:$0xf0]  ;;  %v1652_v48 = vld [vmem:[%s2862_s1 + $0x360] sm:$0xf]  ;;  %v1516_v56 = vld [vmem:[%s2862_s1 + $0x250] sm:$0xf] }
  0x1b   :  { %858 = vmatpush.bf16.msra.mxu3 %v1429_v10  ;;  %v1903_v49 = vld [vmem:[%s2862_s1 + $0x364] sm:$0xf0]  ;;  %v1716_v50 = vld [vmem:[%s2862_s1 + $0x3e0] sm:$0xf]  ;;  %v1589_v54 = vor.u32 %v1887_v47, %v1588_v45  ;;  %v1869_v57 = vld [vmem:[%s2862_s1 + $0x254] sm:$0xf0] }
  0x1c   :  { %820 = vmatpush.bf16.msra.mxu0 %v1229_v16  ;;  %v1919_v51 = vld [vmem:[%s2862_s1 + $0x3e4] sm:$0xf0]  ;;  %v21_v52 = vld [vmem:[%s2861_s0] sm:$0xff]  ;;  %v1653_v55 = vor.u32 %v1903_v49, %v1652_v48  ;;  %v1580_v58 = vld [vmem:[%s2862_s1 + $0x2d0] sm:$0xf]  ;;  %v1517_v1 = vor.u32 %v1869_v57, %v1516_v56 }
  0x1d   :  { %833 = vmatpush.bf16.msra.mxu1 %v1293_v19  ;;  %157 = vst [vmem:[#allocation1] ss:$9 sm:$0xff] %v21_v52  ;;  %v1717_v59 = vor.u32 %v1919_v51, %v1716_v50  ;;  %v1885_v60 = vld [vmem:[%s2862_s1 + $0x2d4] sm:$0xf0]  ;;  %v1644_v61 = vld [vmem:[%s2862_s1 + $0x350] sm:$0xf] }
  0x1e   :  { %846 = vmatpush.bf16.msra.mxu2 %v1357_v20  ;;  %v1901_v62 = vld [vmem:[%s2862_s1 + $0x354] sm:$0xf0]  ;;  %v1708_v63 = vld [vmem:[%s2862_s1 + $0x3d0] sm:$0xf]  ;;  %v1508_v2 = vld [vmem:[%s2862_s1 + $0x240] sm:$0xf]  ;;  %v1581_v3 = vor.u32 %v1885_v60, %v1580_v58 }
  0x1f   :  { %859 = vmatpush.bf16.msra.mxu3 %v1421_v24  ;;  %v1917_v0 = vld [vmem:[%s2862_s1 + $0x3d4] sm:$0xf0]  ;;  %v1645_v4 = vor.u32 %v1901_v62, %v1644_v61  ;;  %v1867_v5 = vld [vmem:[%s2862_s1 + $0x244] sm:$0xf0]  ;;  %v1572_v6 = vld [vmem:[%s2862_s1 + $0x2c0] sm:$0xf] }
  0x20   :  { %821 = vmatpush.bf16.msra.mxu0 %v1221_v31  ;;  %v1883_v7 = vld [vmem:[%s2862_s1 + $0x2c4] sm:$0xf0]  ;;  %v1709_v8 = vor.u32 %v1917_v0, %v1708_v63  ;;  %v1636_v9 = vld [vmem:[%s2862_s1 + $0x340] sm:$0xf]  ;;  %v1509_v15 = vor.u32 %v1867_v5, %v1508_v2  ;;  %v1500_v20 = vld [vmem:[%s2862_s1 + $0x230] sm:$0xf] }
  0x21   :  { %834 = vmatpush.bf16.msra.mxu1 %v1285_v35  ;;  %v1899_v10 = vld [vmem:[%s2862_s1 + $0x344] sm:$0xf0]  ;;  %v1700_v11 = vld [vmem:[%s2862_s1 + $0x3c0] sm:$0xf]  ;;  %v1573_v18 = vor.u32 %v1883_v7, %v1572_v6  ;;  %v1865_v21 = vld [vmem:[%s2862_s1 + $0x234] sm:$0xf0] }
  0x22   :  { %847 = vmatpush.bf16.msra.mxu2 %v1349_v36  ;;  %v1915_v12 = vld [vmem:[%s2862_s1 + $0x3c4] sm:$0xf0]  ;;  %v1637_v19 = vor.u32 %v1899_v10, %v1636_v9  ;;  %v1564_v22 = vld [vmem:[%s2862_s1 + $0x2b0] sm:$0xf]  ;;  %v1881_v24 = vld [vmem:[%s2862_s1 + $0x2b4] sm:$0xf0]  ;;  %v1501_v29 = vor.u32 %v1865_v21, %v1500_v20 }
  0x23   :  { %860 = vmatpush.bf16.msra.mxu3 %v1413_v39  ;;  %v1701_v23 = vor.u32 %v1915_v12, %v1700_v11  ;;  %v1628_v25 = vld [vmem:[%s2862_s1 + $0x330] sm:$0xf]  ;;  %v1897_v26 = vld [vmem:[%s2862_s1 + $0x334] sm:$0xf0]  ;;  %v1565_v30 = vor.u32 %v1881_v24, %v1564_v22  ;;  %v1492_v32 = vld [vmem:[%s2862_s1 + $0x220] sm:$0xf] }
  0x24   :  { %866 = vmatpush.bf16.msrb.mxu0 %v1533_v40  ;;  %v2292_v13 = vld [vmem:[#allocation1 + $0x12] sm:$0xff]  ;;  %v2294_v14 = vld [vmem:[#allocation1] sm:$0xff]  ;;  %v2299_v17 = vld [vmem:[#allocation1 + $0x9] sm:$0xff]  ;;  %v1629_v31 = vor.u32 %v1897_v26, %v1628_v25 }
  0x25   :  { %879 = vmatpush.bf16.msrb.mxu1 %v1597_v41  ;;  %848 = vmatmul.bf16.vlgmr.msra.gmra.mxu2 %v2292_v13  ;;  %v2297_v16 = vld [vmem:[#allocation1 + $0x1b] sm:$0xff]  ;;  %v1692_v27 = vld [vmem:[%s2862_s1 + $0x3b0] sm:$0xf]  ;;  %v1863_v33 = vld [vmem:[%s2862_s1 + $0x224] sm:$0xf0] }
  0x26   :  { %892 = vmatpush.bf16.msrb.mxu2 %v1661_v42  ;;  %822 = vmatmul.bf16.vlgmr.msra.gmra.mxu0 %v2294_v14  ;;  %v1913_v28 = vld [vmem:[%s2862_s1 + $0x3b4] sm:$0xf0]  ;;  %v1556_v34 = vld [vmem:[%s2862_s1 + $0x2a0] sm:$0xf]  ;;  %v1879_v36 = vld [vmem:[%s2862_s1 + $0x2a4] sm:$0xf0]  ;;  %v1493_v41 = vor.u32 %v1863_v33, %v1492_v32 }
  0x27   :  { %905 = vmatpush.bf16.msrb.mxu3 %v1725_v46  ;;  %835 = vmatmul.bf16.vlgmr.msra.gmra.mxu1 %v2299_v17  ;;  %v1693_v35 = vor.u32 %v1913_v28, %v1692_v27  ;;  %v1620_v37 = vld [vmem:[%s2862_s1 + $0x320] sm:$0xf]  ;;  %v1895_v38 = vld [vmem:[%s2862_s1 + $0x324] sm:$0xf0]  ;;  %v1557_v42 = vor.u32 %v1879_v36, %v1556_v34  ;;  %v1484_v44 = vld [vmem:[%s2862_s1 + $0x210] sm:$0xf] }
  0x28   :  { %867 = vmatpush.bf16.msrb.mxu0 %v1525_v53  ;;  %861 = vmatmul.bf16.vlgmr.msra.gmra.mxu3 %v2297_v16  ;;  %v1684_v39 = vld [vmem:[%s2862_s1 + $0x3a0] sm:$0xf]  ;;  %v1911_v40 = vld [vmem:[%s2862_s1 + $0x3a4] sm:$0xf0]  ;;  %v1621_v43 = vor.u32 %v1895_v38, %v1620_v37  ;;  %v1861_v45 = vld [vmem:[%s2862_s1 + $0x214] sm:$0xf0] }
  0x29   :  { %880 = vmatpush.bf16.msrb.mxu1 %v1589_v54  ;;  %v1548_v46 = vld [vmem:[%s2862_s1 + $0x290] sm:$0xf]  ;;  %v1685_v47 = vor.u32 %v1911_v40, %v1684_v39  ;;  %v1877_v48 = vld [vmem:[%s2862_s1 + $0x294] sm:$0xf0]  ;;  %v1485_v53 = vor.u32 %v1861_v45, %v1484_v44  ;;  %v1476_v54 = vld [vmem:[%s2862_s1 + $0x200] sm:$0xf] }
  0x2a   :  { %893 = vmatpush.bf16.msrb.mxu2 %v1653_v55  ;;  %v1612_v49 = vld [vmem:[%s2862_s1 + $0x310] sm:$0xf]  ;;  %v1893_v50 = vld [vmem:[%s2862_s1 + $0x314] sm:$0xf0]  ;;  %v1859_v55 = vld [vmem:[%s2862_s1 + $0x204] sm:$0xf0]  ;;  %v1549_v56 = vor.u32 %v1877_v48, %v1548_v46 }
  0x2b   :  { %906 = vmatpush.bf16.msrb.mxu3 %v1717_v59  ;;  %v1676_v51 = vld [vmem:[%s2862_s1 + $0x390] sm:$0xf]  ;;  %v1909_v52 = vld [vmem:[%s2862_s1 + $0x394] sm:$0xf0]  ;;  %v1613_v57 = vor.u32 %v1893_v50, %v1612_v49  ;;  %v1540_v58 = vld [vmem:[%s2862_s1 + $0x280] sm:$0xf] }
  0x2c   :  { %868 = vmatpush.bf16.msrb.mxu0 %v1517_v1  ;;  %v1875_v59 = vld [vmem:[%s2862_s1 + $0x284] sm:$0xf0]  ;;  %v1604_v60 = vld [vmem:[%s2862_s1 + $0x300] sm:$0xf]  ;;  %v1677_v61 = vor.u32 %v1909_v52, %v1676_v51  ;;  %v1808_v1 = vld [vmem:[%s2862_s1 + $0x74] sm:$0xf] }
  0x2d   :  { %881 = vmatpush.bf16.msrb.mxu1 %v1581_v3  ;;  %v1891_v62 = vld [vmem:[%s2862_s1 + $0x304] sm:$0xf0]  ;;  %v1668_v63 = vld [vmem:[%s2862_s1 + $0x380] sm:$0xf]  ;;  %v1278_v2 = vld [vmem:[%s2862_s1 + $0x78] sm:$0xf0] }
  0x2e   :  { %894 = vmatpush.bf16.msrb.mxu2 %v1645_v4  ;;  %v1907_v0 = vld [vmem:[%s2862_s1 + $0x384] sm:$0xf0]  ;;  %v1824_v3 = vld [vmem:[%s2862_s1 + $0xf4] sm:$0xf]  ;;  %v1477_v4 = vor.u32 %v1859_v55, %v1476_v54  ;;  %v1342_v5 = vld [vmem:[%s2862_s1 + $0xf8] sm:$0xf0]  ;;  %v1605_v9 = vor.u32 %v1891_v62, %v1604_v60 }
  0x2f   :  { %907 = vmatpush.bf16.msrb.mxu3 %v1709_v8  ;;  %v1840_v6 = vld [vmem:[%s2862_s1 + $0x174] sm:$0xf]  ;;  %v1406_v7 = vld [vmem:[%s2862_s1 + $0x178] sm:$0xf0]  ;;  %v1541_v8 = vor.u32 %v1875_v59, %v1540_v58  ;;  %v1669_v12 = vor.u32 %v1907_v0, %v1668_v63  ;;  %v1806_v20 = vld [vmem:[%s2862_s1 + $0x64] sm:$0xf] }
  0x30   :  { %869 = vmatpush.bf16.msrb.mxu0 %v1509_v15  ;;  %v1856_v10 = vld [vmem:[%s2862_s1 + $0x1f4] sm:$0xf]  ;;  %v1470_v11 = vld [vmem:[%s2862_s1 + $0x1f8] sm:$0xf0]  ;;  %v1281_v15 = vor.u32 %v1808_v1, %v1278_v2  ;;  %v1270_v21 = vld [vmem:[%s2862_s1 + $0x68] sm:$0xf0] }
  0x31   :  { %882 = vmatpush.bf16.msrb.mxu1 %v1573_v18  ;;  %v1345_v18 = vor.u32 %v1824_v3, %v1342_v5  ;;  %v1822_v22 = vld [vmem:[%s2862_s1 + $0xe4] sm:$0xf]  ;;  %v1334_v24 = vld [vmem:[%s2862_s1 + $0xe8] sm:$0xf0]  ;;  %v2442_v27 = vld [vmem:[#allocation1 + $0x36] sm:$0xff]  ;;  %v1273_v32 = vor.u32 %v1806_v20, %v1270_v21 }
  0x32   :  { %895 = vmatpush.bf16.msrb.mxu2 %v1637_v19  ;;  %v1409_v19 = vor.u32 %v1840_v6, %v1406_v7  ;;  %v1838_v25 = vld [vmem:[%s2862_s1 + $0x164] sm:$0xf]  ;;  %v1398_v26 = vld [vmem:[%s2862_s1 + $0x168] sm:$0xf0]  ;;  %v1337_v34 = vor.u32 %v1822_v22, %v1334_v24  ;;  %v1804_v36 = vld [vmem:[%s2862_s1 + $0x54] sm:$0xf] }
  0x33   :  { %908 = vmatpush.bf16.msrb.mxu3 %v1701_v23  ;;  %v1473_v23 = vor.u32 %v1856_v10, %v1470_v11  ;;  %v1854_v28 = vld [vmem:[%s2862_s1 + $0x1e4] sm:$0xf]  ;;  %v2454_v33 = vld [vmem:[#allocation1 + $0x2d] sm:$0xff]  ;;  %v1262_v37 = vld [vmem:[%s2862_s1 + $0x58] sm:$0xf0] }
  0x34   :  { %870 = vmatpush.bf16.msrb.mxu0 %v1501_v29  ;;  %v1462_v29 = vld [vmem:[%s2862_s1 + $0x1e8] sm:$0xf0]  ;;  %v1820_v38 = vld [vmem:[%s2862_s1 + $0xd4] sm:$0xf]  ;;  %v1326_v40 = vld [vmem:[%s2862_s1 + $0xd8] sm:$0xf0]  ;;  %v1265_v45 = vor.u32 %v1804_v36, %v1262_v37 }
  0x35   :  { %883 = vmatpush.bf16.msrb.mxu1 %v1565_v30  ;;  %v2450_v30 = vld [vmem:[#allocation1 + $0x24] sm:$0xff]  ;;  %v1465_v39 = vor.u32 %v1854_v28, %v1462_v29  ;;  %v1454_v44 = vld [vmem:[%s2862_s1 + $0x1d8] sm:$0xf0]  ;;  %v1329_v46 = vor.u32 %v1820_v38, %v1326_v40  ;;  %v1254_v49 = vld [vmem:[%s2862_s1 + $0x48] sm:$0xf0] }
  0x36   :  { %896 = vmatpush.bf16.msrb.mxu2 %v1629_v31  ;;  %v2452_v31 = vld [vmem:[#allocation1 + $0x3f] sm:$0xff]  ;;  %v1318_v52 = vld [vmem:[%s2862_s1 + $0xc8] sm:$0xf0]  ;;  %v1800_v60 = vld [vmem:[%s2862_s1 + $0x34] sm:$0xf] }
  0x37   :  { %909 = vmatpush.bf16.msrb.mxu3 %v1693_v35  ;;  %v1401_v35 = vor.u32 %v1838_v25, %v1398_v26  ;;  %v1802_v48 = vld [vmem:[%s2862_s1 + $0x44] sm:$0xf]  ;;  %v1382_v54 = vld [vmem:[%s2862_s1 + $0x148] sm:$0xf0]  ;;  %v1816_v62 = vld [vmem:[%s2862_s1 + $0xb4] sm:$0xf] }
  0x38   :  { %871 = vmatpush.bf16.msrb.mxu0 %v1493_v41  ;;  %v1836_v41 = vld [vmem:[%s2862_s1 + $0x154] sm:$0xf]  ;;  %v1818_v50 = vld [vmem:[%s2862_s1 + $0xc4] sm:$0xf]  ;;  %v1310_v0 = vld [vmem:[%s2862_s1 + $0xb8] sm:$0xf0] }
  0x39   :  { %884 = vmatpush.bf16.msrb.mxu1 %v1557_v42  ;;  %v1390_v42 = vld [vmem:[%s2862_s1 + $0x158] sm:$0xf0]  ;;  %v1850_v55 = vld [vmem:[%s2862_s1 + $0x1c4] sm:$0xf]  ;;  %v1321_v58 = vor.u32 %v1818_v50, %v1318_v52  ;;  %v1832_v1 = vld [vmem:[%s2862_s1 + $0x134] sm:$0xf]  ;;  %v1313_v6 = vor.u32 %v1816_v62, %v1310_v0 }
  0x3a   :  { %897 = vmatpush.bf16.msrb.mxu2 %v1621_v43  ;;  %v1852_v43 = vld [vmem:[%s2862_s1 + $0x1d4] sm:$0xf]  ;;  %v1374_v2 = vld [vmem:[%s2862_s1 + $0x138] sm:$0xf0]  ;;  %v1814_v10 = vld [vmem:[%s2862_s1 + $0xa4] sm:$0xf] }
  0x3b   :  { %910 = vmatpush.bf16.msrb.mxu3 %v1685_v47  ;;  %v1393_v47 = vor.u32 %v1836_v41, %v1390_v42  ;;  %v1457_v51 = vor.u32 %v1852_v43, %v1454_v44  ;;  %v1848_v3 = vld [vmem:[%s2862_s1 + $0x1b4] sm:$0xf]  ;;  %v1377_v7 = vor.u32 %v1832_v1, %v1374_v2  ;;  %v1430_v20 = vld [vmem:[%s2862_s1 + $0x1a8] sm:$0xf0]  ;;  %v1230_v25 = vld [vmem:[%s2862_s1 + $0x18] sm:$0xf0] }
  0x3c   :  { %872 = vmatpush.bf16.msrb.mxu0 %v1485_v53  ;;  %v1834_v53 = vld [vmem:[%s2862_s1 + $0x144] sm:$0xf]  ;;  %v1796_v24 = vld [vmem:[%s2862_s1 + $0x14] sm:$0xf]  ;;  %v1294_v29 = vld [vmem:[%s2862_s1 + $0x98] sm:$0xf0] }
  0x3d   :  { %885 = vmatpush.bf16.msrb.mxu1 %v1549_v56  ;;  %v1446_v56 = vld [vmem:[%s2862_s1 + $0x1c8] sm:$0xf0]  ;;  %v1385_v59 = vor.u32 %v1834_v53, %v1382_v54  ;;  %v1812_v26 = vld [vmem:[%s2862_s1 + $0x94] sm:$0xf]  ;;  %v1422_v36 = vld [vmem:[%s2862_s1 + $0x198] sm:$0xf0]  ;;  %v1233_v38 = vor.u32 %v1796_v24, %v1230_v25 }
  0x3e   :  { %898 = vmatpush.bf16.msrb.mxu2 %v1613_v57  ;;  %v1257_v57 = vor.u32 %v1802_v48, %v1254_v49  ;;  %v1449_v63 = vor.u32 %v1850_v55, %v1446_v56  ;;  %v1794_v37 = vld [vmem:[%s2862_s1 + $0x4] sm:$0xf]  ;;  %v1286_v41 = vld [vmem:[%s2862_s1 + $0x88] sm:$0xf0]  ;;  %v1297_v42 = vor.u32 %v1812_v26, %v1294_v29  ;;  %v1872_v49 = vld [vmem:[%s2862_s1 + $0x274] sm:$0xf] }
  0x3f   :  { %911 = vmatpush.bf16.msrb.mxu3 %v1677_v61  ;;  %v1246_v61 = vld [vmem:[%s2862_s1 + $0x38] sm:$0xf0]  ;;  %v1810_v40 = vld [vmem:[%s2862_s1 + $0x84] sm:$0xf]  ;;  %v1414_v48 = vld [vmem:[%s2862_s1 + $0x188] sm:$0xf0] }
  0x40   :  { %873 = vmatpush.bf16.msrb.mxu0 %v1477_v4  ;;  %v1438_v4 = vld [vmem:[%s2862_s1 + $0x1b8] sm:$0xf0]  ;;  %v1249_v5 = vor.u32 %v1800_v60, %v1246_v61  ;;  %v1826_v44 = vld [vmem:[%s2862_s1 + $0x104] sm:$0xf] }
  0x41   :  { %886 = vmatpush.bf16.msrb.mxu1 %v1541_v8  ;;  %v1798_v8 = vld [vmem:[%s2862_s1 + $0x24] sm:$0xf]  ;;  %v1441_v11 = vor.u32 %v1848_v3, %v1438_v4  ;;  %v1534_v50 = vld [vmem:[%s2862_s1 + $0x278] sm:$0xf0] }
  0x42   :  { %899 = vmatpush.bf16.msrb.mxu2 %v1605_v9  ;;  %v1238_v9 = vld [vmem:[%s2862_s1 + $0x28] sm:$0xf0] }
  0x43   :  { %912 = vmatpush.bf16.msrb.mxu3 %v1669_v12  ;;  %874 = vmatmul.bf16.vlgmr.msrb.gmra.mxu0 %v2450_v30  ;;  %v1302_v12 = vld [vmem:[%s2862_s1 + $0xa8] sm:$0xf0]  ;;  %v1241_v21 = vor.u32 %v1798_v8, %v1238_v9 }
  0x44   :  { %918 = vmatpush.bf16.msra.mxu0 %v1281_v15  ;;  %887 = vmatmul.bf16.vlgmr.msrb.gmra.mxu1 %v2454_v33  ;;  %v1830_v15 = vld [vmem:[%s2862_s1 + $0x124] sm:$0xf]  ;;  %v1305_v22 = vor.u32 %v1814_v10, %v1302_v12 }
  0x45   :  { %931 = vmatpush.bf16.msra.mxu1 %v1345_v18  ;;  %900 = vmatmul.bf16.vlgmr.msrb.gmra.mxu2 %v2442_v27  ;;  %v1366_v18 = vld [vmem:[%s2862_s1 + $0x128] sm:$0xf0] }
  0x46   :  { %944 = vmatpush.bf16.msra.mxu2 %v1409_v19  ;;  %913 = vmatmul.bf16.vlgmr.msrb.gmra.mxu3 %v2452_v31  ;;  %v1846_v19 = vld [vmem:[%s2862_s1 + $0x1a4] sm:$0xf] }
  0x47   :  { %957 = vmatpush.bf16.msra.mxu3 %v1473_v23  ;;  %v1369_v23 = vor.u32 %v1830_v15, %v1366_v18  ;;  %v1433_v28 = vor.u32 %v1846_v19, %v1430_v20 }
  0x48   :  { %919 = vmatpush.bf16.msra.mxu0 %v1273_v32  ;;  %v1828_v32 = vld [vmem:[%s2862_s1 + $0x114] sm:$0xf] }
  0x49   :  { %932 = vmatpush.bf16.msra.mxu1 %v1337_v34  ;;  %v1358_v34 = vld [vmem:[%s2862_s1 + $0x118] sm:$0xf0] }
  0x4a   :  { %945 = vmatpush.bf16.msra.mxu2 %v1401_v35  ;;  %v1844_v35 = vld [vmem:[%s2862_s1 + $0x194] sm:$0xf]  ;;  %v1361_v43 = vor.u32 %v1828_v32, %v1358_v34 }
  0x4b   :  { %958 = vmatpush.bf16.msra.mxu3 %v1465_v39  ;;  %v1222_v39 = vld [vmem:[%s2862_s1 + $0x8] sm:$0xf0] }
  0x4c   :  { %920 = vmatpush.bf16.msra.mxu0 %v1265_v45  ;;  %v1350_v45 = vld [vmem:[%s2862_s1 + $0x108] sm:$0xf0] }
  0x4d   :  { %933 = vmatpush.bf16.msra.mxu1 %v1329_v46  ;;  %v1842_v46 = vld [vmem:[%s2862_s1 + $0x184] sm:$0xf] }
  0x4e   :  { %946 = vmatpush.bf16.msra.mxu2 %v1393_v47  ;;  %v1425_v47 = vor.u32 %v1844_v35, %v1422_v36 }
  0x4f   :  { %959 = vmatpush.bf16.msra.mxu3 %v1457_v51  ;;  %v1888_v51 = vld [vmem:[%s2862_s1 + $0x2f4] sm:$0xf] }
  0x50   :  { %921 = vmatpush.bf16.msra.mxu0 %v1257_v57 }
  0x51   :  { %934 = vmatpush.bf16.msra.mxu1 %v1321_v58 }
  0x52   :  { %947 = vmatpush.bf16.msra.mxu2 %v1385_v59 }
  0x53   :  { %960 = vmatpush.bf16.msra.mxu3 %v1449_v63 }
  0x54   :  { %922 = vmatpush.bf16.msra.mxu0 %v1249_v5 }
  0x55   :  { %935 = vmatpush.bf16.msra.mxu1 %v1313_v6 }
  0x56   :  { %948 = vmatpush.bf16.msra.mxu2 %v1377_v7 }
  0x57   :  { %961 = vmatpush.bf16.msra.mxu3 %v1441_v11 }
  0x58   :  { %923 = vmatpush.bf16.msra.mxu0 %v1241_v21 }
  0x59   :  { %936 = vmatpush.bf16.msra.mxu1 %v1305_v22 }
  0x5a   :  { %949 = vmatpush.bf16.msra.mxu2 %v1369_v23 }
  0x5b   :  { %962 = vmatpush.bf16.msra.mxu3 %v1433_v28 }
  0x5c   :  { %10 = vsyncpa [#allocation3], 0  ;;  %924 = vmatpush.bf16.msra.mxu0 %v1233_v38  ;;  %v1225_v52 = vor.u32 %v1794_v37, %v1222_v39  ;;  %v1598_v53 = vld [vmem:[%s2862_s1 + $0x2f8] sm:$0xf0]  ;;  %v1904_v54 = vld [vmem:[%s2862_s1 + $0x374] sm:$0xf]  ;;  %v1289_v56 = vor.u32 %v1810_v40, %v1286_v41  ;;  %v1353_v57 = vor.u32 %v1826_v44, %v1350_v45  ;;  %v1417_v60 = vor.u32 %v1842_v46, %v1414_v48 }
  0x5d   :  { %v1662_v55 = vld [vmem:[%s2862_s1 + $0x378] sm:$0xf0]  ;;  %937 = vmatpush.bf16.msra.mxu1 %v1297_v42  ;;  %v1920_v58 = vld [vmem:[%s2862_s1 + $0x3f4] sm:$0xf]  ;;  %v1537_v61 = vor.u32 %v1872_v49, %v1534_v50  ;;  %v1601_v62 = vor.u32 %v1888_v51, %v1598_v53  ;;  %v1870_v0 = vld [vmem:[%s2862_s1 + $0x264] sm:$0xf] }
  0x5e   :  { %950 = vmatpush.bf16.msra.mxu2 %v1361_v43  ;;  %v1726_v59 = vld [vmem:[%s2862_s1 + $0x3f8] sm:$0xf0]  ;;  %v1665_v63 = vor.u32 %v1904_v54, %v1662_v55  ;;  %v1526_v1 = vld [vmem:[%s2862_s1 + $0x268] sm:$0xf0]  ;;  %v1886_v2 = vld [vmem:[%s2862_s1 + $0x2e4] sm:$0xf] }
  0x5f   :  { %963 = vmatpush.bf16.msra.mxu3 %v1425_v47  ;;  %v1729_v3 = vor.u32 %v1920_v58, %v1726_v59  ;;  %v1590_v4 = vld [vmem:[%s2862_s1 + $0x2e8] sm:$0xf0]  ;;  %v1902_v5 = vld [vmem:[%s2862_s1 + $0x364] sm:$0xf]  ;;  %v1529_v9 = vor.u32 %v1870_v0, %v1526_v1  ;;  %v1868_v12 = vld [vmem:[%s2862_s1 + $0x254] sm:$0xf] }
  0x60   :  { %925 = vmatpush.bf16.msra.mxu0 %v1225_v52  ;;  %v1654_v6 = vld [vmem:[%s2862_s1 + $0x368] sm:$0xf0]  ;;  %v1918_v7 = vld [vmem:[%s2862_s1 + $0x3e4] sm:$0xf]  ;;  %v1593_v10 = vor.u32 %v1886_v2, %v1590_v4  ;;  %v1518_v15 = vld [vmem:[%s2862_s1 + $0x258] sm:$0xf0] }
  0x61   :  { %938 = vmatpush.bf16.msra.mxu1 %v1289_v56  ;;  %v1718_v8 = vld [vmem:[%s2862_s1 + $0x3e8] sm:$0xf0]  ;;  %v1657_v11 = vor.u32 %v1902_v5, %v1654_v6  ;;  %v1884_v18 = vld [vmem:[%s2862_s1 + $0x2d4] sm:$0xf]  ;;  %v1582_v20 = vld [vmem:[%s2862_s1 + $0x2d8] sm:$0xf0]  ;;  %v1521_v24 = vor.u32 %v1868_v12, %v1518_v15 }
  0x62   :  { %951 = vmatpush.bf16.msra.mxu2 %v1353_v57  ;;  %v1721_v19 = vor.u32 %v1918_v7, %v1718_v8  ;;  %v1900_v21 = vld [vmem:[%s2862_s1 + $0x354] sm:$0xf]  ;;  %v1646_v22 = vld [vmem:[%s2862_s1 + $0x358] sm:$0xf0]  ;;  %v1585_v25 = vor.u32 %v1884_v18, %v1582_v20  ;;  %v1866_v28 = vld [vmem:[%s2862_s1 + $0x244] sm:$0xf] }
  0x63   :  { %964 = vmatpush.bf16.msra.mxu3 %v1417_v60  ;;  %v1916_v23 = vld [vmem:[%s2862_s1 + $0x3d4] sm:$0xf]  ;;  %926 = vmatmul.bf16.vlgmr.msra.gmra.mxu0 %v2294_v14  ;;  %v1649_v26 = vor.u32 %v1900_v21, %v1646_v22  ;;  %v1510_v29 = vld [vmem:[%s2862_s1 + $0x248] sm:$0xf0]  ;;  %v1882_v14 = vld [vmem:[%s2862_s1 + $0x2c4] sm:$0xf] }
  0x64   :  { %970 = vmatpush.bf16.msrb.mxu0 %v1537_v61  ;;  %939 = vmatmul.bf16.vlgmr.msra.gmra.mxu1 %v2299_v17  ;;  %v1574_v17 = vld [vmem:[%s2862_s1 + $0x2c8] sm:$0xf0]  ;;  %v1898_v32 = vld [vmem:[%s2862_s1 + $0x344] sm:$0xf]  ;;  %v1513_v37 = vor.u32 %v1866_v28, %v1510_v29  ;;  %v1864_v40 = vld [vmem:[%s2862_s1 + $0x234] sm:$0xf] }
  0x65   :  { %983 = vmatpush.bf16.msrb.mxu1 %v1601_v62  ;;  %952 = vmatmul.bf16.vlgmr.msra.gmra.mxu2 %v2292_v13  ;;  %v1710_v13 = vld [vmem:[%s2862_s1 + $0x3d8] sm:$0xf0]  ;;  %v1638_v34 = vld [vmem:[%s2862_s1 + $0x348] sm:$0xf0]  ;;  %v1914_v35 = vld [vmem:[%s2862_s1 + $0x3c4] sm:$0xf]  ;;  %v1577_v38 = vor.u32 %v1882_v14, %v1574_v17 }
  0x66   :  { %996 = vmatpush.bf16.msrb.mxu2 %v1665_v63  ;;  %965 = vmatmul.bf16.vlgmr.msra.gmra.mxu3 %v2297_v16  ;;  %v1713_v16 = vor.u32 %v1916_v23, %v1710_v13  ;;  %v1702_v36 = vld [vmem:[%s2862_s1 + $0x3c8] sm:$0xf0]  ;;  %v1641_v39 = vor.u32 %v1898_v32, %v1638_v34  ;;  %v1502_v41 = vld [vmem:[%s2862_s1 + $0x238] sm:$0xf0]  ;;  %v1880_v42 = vld [vmem:[%s2862_s1 + $0x2b4] sm:$0xf] }
  0x67   :  { %1009 = vmatpush.bf16.msrb.mxu3 %v1729_v3  ;;  %v1705_v43 = vor.u32 %v1914_v35, %v1702_v36  ;;  %v1566_v44 = vld [vmem:[%s2862_s1 + $0x2b8] sm:$0xf0]  ;;  %v1896_v45 = vld [vmem:[%s2862_s1 + $0x334] sm:$0xf]  ;;  %v1505_v49 = vor.u32 %v1864_v40, %v1502_v41  ;;  %v1862_v52 = vld [vmem:[%s2862_s1 + $0x224] sm:$0xf] }
  0x68   :  { %971 = vmatpush.bf16.msrb.mxu0 %v1529_v9  ;;  %v1630_v46 = vld [vmem:[%s2862_s1 + $0x338] sm:$0xf0]  ;;  %v1912_v47 = vld [vmem:[%s2862_s1 + $0x3b4] sm:$0xf]  ;;  %v1569_v50 = vor.u32 %v1880_v42, %v1566_v44  ;;  %v1494_v53 = vld [vmem:[%s2862_s1 + $0x228] sm:$0xf0] }
  0x69   :  { %984 = vmatpush.bf16.msrb.mxu1 %v1593_v10  ;;  %v1694_v48 = vld [vmem:[%s2862_s1 + $0x3b8] sm:$0xf0]  ;;  %v1633_v51 = vor.u32 %v1896_v45, %v1630_v46  ;;  %v1878_v54 = vld [vmem:[%s2862_s1 + $0x2a4] sm:$0xf]  ;;  %v1558_v56 = vld [vmem:[%s2862_s1 + $0x2a8] sm:$0xf0]  ;;  %v1497_v61 = vor.u32 %v1862_v52, %v1494_v53 }
  0x6a   :  { %997 = vmatpush.bf16.msrb.mxu2 %v1657_v11  ;;  %v1697_v55 = vor.u32 %v1912_v47, %v1694_v48  ;;  %v1894_v57 = vld [vmem:[%s2862_s1 + $0x324] sm:$0xf]  ;;  %v1622_v58 = vld [vmem:[%s2862_s1 + $0x328] sm:$0xf0]  ;;  %v1561_v62 = vor.u32 %v1878_v54, %v1558_v56  ;;  %v1860_v0 = vld [vmem:[%s2862_s1 + $0x214] sm:$0xf] }
  0x6b   :  { %1010 = vmatpush.bf16.msrb.mxu3 %v1721_v19  ;;  %v1910_v59 = vld [vmem:[%s2862_s1 + $0x3a4] sm:$0xf]  ;;  %v1686_v60 = vld [vmem:[%s2862_s1 + $0x3a8] sm:$0xf0]  ;;  %v1625_v63 = vor.u32 %v1894_v57, %v1622_v58  ;;  %v1486_v1 = vld [vmem:[%s2862_s1 + $0x218] sm:$0xf0] }
  0x6c   :  { %972 = vmatpush.bf16.msrb.mxu0 %v1521_v24  ;;  %v1876_v2 = vld [vmem:[%s2862_s1 + $0x294] sm:$0xf]  ;;  %v1689_v3 = vor.u32 %v1910_v59, %v1686_v60  ;;  %v1550_v4 = vld [vmem:[%s2862_s1 + $0x298] sm:$0xf0]  ;;  %v1489_v9 = vor.u32 %v1860_v0, %v1486_v1  ;;  %v1858_v12 = vld [vmem:[%s2862_s1 + $0x204] sm:$0xf] }
  0x6d   :  { %985 = vmatpush.bf16.msrb.mxu1 %v1585_v25  ;;  %v1892_v5 = vld [vmem:[%s2862_s1 + $0x314] sm:$0xf]  ;;  %v1614_v6 = vld [vmem:[%s2862_s1 + $0x318] sm:$0xf0]  ;;  %v1553_v10 = vor.u32 %v1876_v2, %v1550_v4  ;;  %v1478_v15 = vld [vmem:[%s2862_s1 + $0x208] sm:$0xf0] }
  0x6e   :  { %998 = vmatpush.bf16.msrb.mxu2 %v1649_v26  ;;  %v1908_v7 = vld [vmem:[%s2862_s1 + $0x394] sm:$0xf]  ;;  %v1678_v8 = vld [vmem:[%s2862_s1 + $0x398] sm:$0xf0]  ;;  %v1617_v11 = vor.u32 %v1892_v5, %v1614_v6  ;;  %v1874_v18 = vld [vmem:[%s2862_s1 + $0x284] sm:$0xf]  ;;  %v1481_v24 = vor.u32 %v1858_v12, %v1478_v15 }
  0x6f   :  { %1011 = vmatpush.bf16.msrb.mxu3 %v1713_v16  ;;  %v1681_v19 = vor.u32 %v1908_v7, %v1678_v8  ;;  %v1542_v20 = vld [vmem:[%s2862_s1 + $0x288] sm:$0xf0]  ;;  %v1890_v21 = vld [vmem:[%s2862_s1 + $0x304] sm:$0xf]  ;;  %v1929_v29 = vld [vmem:[%s2864_s3 + $0x38] sm:$0xff]  ;;  %vm1188_vm1 = vcmask 1041408  }
  0x70   :  { %973 = vmatpush.bf16.msrb.mxu0 %v1513_v37  ;;  %v1606_v22 = vld [vmem:[%s2862_s1 + $0x308] sm:$0xf0]  ;;  %v1906_v23 = vld [vmem:[%s2862_s1 + $0x384] sm:$0xf]  ;;  %v1545_v25 = vor.u32 %v1874_v18, %v1542_v20  ;;  %v1928_v14 = vld [vmem:[%s2864_s3 + $0x30] sm:$0xff]  ;;  %s1209_s27 = sshll.u32 %s2866_s5, 4  ;;  %s1210_s27 = int_to_ptr.hbm [resolvable:$true] %s1209_s27 }
  0x71   :  { %986 = vmatpush.bf16.msrb.mxu1 %v1577_v38  ;;  %v1670_v13 = vld [vmem:[%s2862_s1 + $0x388] sm:$0xf0]  ;;  %v1609_v26 = vor.u32 %v1890_v21, %v1606_v22  ;;  %v150_v32 = vld [vmem:[%s2863_s2] sm:$0x3]  ;;  %v1937_v54 = vld [vmem:[%s2864_s3 + $0x78] sm:$0xff] }
  0x72   :  { %999 = vmatpush.bf16.msrb.mxu2 %v1641_v39  ;;  %v1673_v28 = vor.u32 %v1906_v23, %v1670_v13  ;;  %v1927_v16 = vld [vmem:[%s2864_s3 + $0x28] sm:$0xff]  ;;  %v1922_v35 = vld [vmem:[%s2864_s3] sm:$0xff]  ;;  %v152_v36 = vperm.slane %v150_v32, 0  ;;  %v1936_v57 = vld [vmem:[%s2864_s3 + $0x70] sm:$0xff] }
  0x73   :  { %1012 = vmatpush.bf16.msrb.mxu3 %v1705_v43  ;;  %v1934_v0 = vld [vmem:[%s2864_s3 + $0x60] sm:$0xff]  ;;  %v1933_v1 = vld [vmem:[%s2864_s3 + $0x58] sm:$0xff]  ;;  %v1932_v2 = vld [vmem:[%s2864_s3 + $0x50] sm:$0xff] }
  0x74   :  { %974 = vmatpush.bf16.msrb.mxu0 %v1505_v49  ;;  %v1931_v5 = vld [vmem:[%s2864_s3 + $0x48] sm:$0xff] }
  0x75   :  { %987 = vmatpush.bf16.msrb.mxu1 %v1569_v50 }
  0x76   :  { %1000 = vmatpush.bf16.msrb.mxu2 %v1633_v51 }
  0x77   :  { %1013 = vmatpush.bf16.msrb.mxu3 %v1697_v55 }
  0x78   :  { %975 = vmatpush.bf16.msrb.mxu0 %v1497_v61  ;;  %v1935_v61 = vld [vmem:[%s2864_s3 + $0x68] sm:$0xff] }
  0x79   :  { %988 = vmatpush.bf16.msrb.mxu1 %v1561_v62 }
  0x7a   :  { %1001 = vmatpush.bf16.msrb.mxu2 %v1625_v63 }
  0x7b   :  { %1014 = vmatpush.bf16.msrb.mxu3 %v1689_v3 }
  0x7c   :  { %976 = vmatpush.bf16.msrb.mxu0 %v1489_v9  ;;  %v1930_v9 = vld [vmem:[%s2864_s3 + $0x40] sm:$0xff] }
  0x7d   :  { %989 = vmatpush.bf16.msrb.mxu1 %v1553_v10 }
  0x7e   :  { %1002 = vmatpush.bf16.msrb.mxu2 %v1617_v11  ;;  %v153_v11 = vperm.slane %v150_v32, 1 }
  0x7f   :  { %1015 = vmatpush.bf16.msrb.mxu3 %v1681_v19 }
  0x80   :  { %977 = vmatpush.bf16.msrb.mxu0 %v1481_v24 }
  0x81   :  { %990 = vmatpush.bf16.msrb.mxu1 %v1545_v25 }
  0x82   :  { %1003 = vmatpush.bf16.msrb.mxu2 %v1609_v26 }
  0x83   :  { %1016 = vmatpush.bf16.msrb.mxu3 %v1673_v28  ;;  %978 = vmatmul.bf16.vlgmr.msrb.gmra.mxu0 %v2450_v30  ;;  %v1926_v30 = vld [vmem:[%s2864_s3 + $0x20] sm:$0xff] }
  0x84   :  { %1158 = vmatpush.bf16.msra.mxu0 %v1929_v29  ;;  %991 = vmatmul.bf16.vlgmr.msrb.gmra.mxu1 %v2454_v33  ;;  %v1923_v33 = vld [vmem:[%s2864_s3 + $0x8] sm:$0xff] }
  0x85   :  { %1004 = vmatmul.bf16.vlgmr.msrb.gmra.mxu2 %v2442_v27  ;;  %v1925_v27 = vld [vmem:[%s2864_s3 + $0x18] sm:$0xff]  ;;  %1171 = vmatpush.bf16.msra.mxu1 %v1937_v54 }
  0x86   :  { %1017 = vmatmul.bf16.vlgmr.msrb.gmra.mxu3 %v2452_v31  ;;  %v1924_v31 = vld [vmem:[%s2864_s3 + $0x10] sm:$0xff] }
  0x88   :  { %1159 = vmatpush.bf16.msra.mxu0 %v1928_v14 }
  0x89   :  { %1172 = vmatpush.bf16.msra.mxu1 %v1936_v57 }
  0x8c   :  { %1160 = vmatpush.bf16.msra.mxu0 %v1927_v16 }
  0x8d   :  { %1173 = vmatpush.bf16.msra.mxu1 %v1935_v61 }
  0x90   :  { %1161 = vmatpush.bf16.msra.mxu0 %v1926_v30 }
  0x91   :  { %1174 = vmatpush.bf16.msra.mxu1 %v1934_v0 }
  0x94   :  { %1162 = vmatpush.bf16.msra.mxu0 %v1925_v27 }
  0x95   :  { %1175 = vmatpush.bf16.msra.mxu1 %v1933_v1 }
  0x98   :  { %1163 = vmatpush.bf16.msra.mxu0 %v1924_v31 }
  0x99   :  { %1176 = vmatpush.bf16.msra.mxu1 %v1932_v2 }
  0x9c   :  { %1164 = vmatpush.bf16.msra.mxu0 %v1923_v33 }
  0x9d   :  { %1177 = vmatpush.bf16.msra.mxu1 %v1931_v5 }
  0xa0   :  { %1165 = vmatpush.bf16.msra.mxu0 %v1922_v35  ;;  %v1939_v35 = vld [vmem:[%s2865_s4] ss:$0 sm:$0xff]  ;;  %s1970_s4 = smov [#allocation2]  }
  0xa1   :  { %1178 = vmatpush.bf16.msra.mxu1 %v1930_v9  ;;  %s1207_s24 = sshll.u32 %s1970_s4, 4  ;;  %s1208_s24 = int_to_ptr.vmem [resolvable:$true] %s1207_s24 }
  0xa3   :  { %v823_v17 = vpop.f32.mrf.mxu0 }
  0xa4   :  { %v836_v34 = vpop.f32.mrf.mxu1  ;;  %v824_v39 = vadd.f32 %v823_v17, %v152_v36 }
  0xa6   :  { %v837_v42 = vadd.f32 %v836_v34, %v824_v39  ;;  %v1184_v34 = vlaneseq }
  0xa8   :  { %v849_v37 = vpop.f32.mrf.mxu2  ;;  %v1185_v36 = vand.u32 127, %v1184_v34 }
  0xa9   :  { %v850_v45 = vadd.f32 %v849_v37, %v837_v42 }
  0xaa   :  { %vm1186_vm0 = vcmp.lt.s32.totalorder %v1185_v36, 10 }
  0xab   :  { %v862_v38 = vpop.f32.mrf.mxu3  ;;  %v825_v40 = vpop.f32.mrf.mxu0 }
  0xac   :  { %v838_v41 = vpop.f32.mrf.mxu1  ;;  %v863_v46 = vadd.f32 %v862_v38, %v850_v45 }
  0xb0   :  { %v851_v43 = vpop.f32.mrf.mxu2 }
  0xb3   :  { %v864_v44 = vpop.f32.mrf.mxu3 }
  0xc0   :  { %v875_v47 = vpop.f32.mrf.mxu0 }
  0xc1   :  { %v876_v48 = vadd.f32 %v875_v47, %v863_v46  ;;  %v888_v49 = vpop.f32.mrf.mxu1 }
  0xc3   :  { %v889_v50 = vadd.f32 %v888_v49, %v876_v48 }
  0xc8   :  { %v901_v51 = vpop.f32.mrf.mxu2  ;;  %v877_v56 = vpop.f32.mrf.mxu0 }
  0xc9   :  { %v902_v52 = vadd.f32 %v901_v51, %v889_v50  ;;  %v914_v53 = vpop.f32.mrf.mxu3  ;;  %v890_v58 = vpop.f32.mrf.mxu1 }
  0xcb   :  { %v915_v55 = vadd.f32 %v914_v53, %v902_v52 }
  0xcd   :  { %v1022_v59 = vmax.f32 %v915_v55, 0.0 }
  0xcf   :  { %v1024_v60 = vpack.c.bf16 %v1022_v59, %v1022_v59 }
  0xd0   :  { %v903_v62 = vpop.f32.mrf.mxu2 }
  0xd1   :  { %1166 = vmatmul.bf16.vlgmr.msra.gmra.mxu0 %v1024_v60  ;;  %v916_v63 = vpop.f32.mrf.mxu3 }
  0xe0   :  { %v927_v3 = vpop.f32.mrf.mxu0 }
  0xe1   :  { %v940_v4 = vpop.f32.mrf.mxu1  ;;  %v928_v18 = vadd.f32 %v927_v3, %v153_v11 }
  0xe3   :  { %v941_v19 = vadd.f32 %v940_v4, %v928_v18 }
  0xe8   :  { %v953_v6 = vpop.f32.mrf.mxu2  ;;  %v929_v8 = vpop.f32.mrf.mxu0 }
  0xe9   :  { %v966_v7 = vpop.f32.mrf.mxu3  ;;  %v942_v10 = vpop.f32.mrf.mxu1  ;;  %v954_v20 = vadd.f32 %v953_v6, %v941_v19 }
  0xeb   :  { %v967_v21 = vadd.f32 %v966_v7, %v954_v20 }
  0xf0   :  { %v955_v12 = vpop.f32.mrf.mxu2 }
  0xf1   :  { %v968_v15 = vpop.f32.mrf.mxu3 }
 0x100   :  { %v979_v22 = vpop.f32.mrf.mxu0 }
 0x101   :  { %v992_v23 = vpop.f32.mrf.mxu1  ;;  %v980_v13 = vadd.f32 %v979_v22, %v967_v21 }
 0x103   :  { %v993_v24 = vadd.f32 %v992_v23, %v980_v13 }
 0x108   :  { %v1005_v25 = vpop.f32.mrf.mxu2  ;;  %v981_v29 = vpop.f32.mrf.mxu0 }
 0x109   :  { %v1006_v26 = vadd.f32 %v1005_v25, %v993_v24  ;;  %v1018_v28 = vpop.f32.mrf.mxu3  ;;  %v994_v14 = vpop.f32.mrf.mxu1 }
 0x10b   :  { %v1019_v16 = vadd.f32 %v1018_v28, %v1006_v26 }
 0x10d   :  { %v1023_v30 = vmax.f32 %v1019_v16, 0.0 }
 0x10f   :  { %v1025_v27 = vpack.c.bf16 %v1023_v30, %v1023_v30 }
 0x110   :  { %v1007_v31 = vpop.f32.mrf.mxu2 }
 0x111   :  { %v1020_v33 = vpop.f32.mrf.mxu3  ;;  %1179 = vmatmul.bf16.vlgmr.msra.gmra.mxu1 %v1025_v27 }
 0x14e   :  { %v1167_v17 = vpop.f32.mrf.mxu0 }
 0x14f   :  { %v1168_v37 = vadd.f32 %v1939_v35, %v1167_v17 }
 0x156   :  { %v1169_v32 = vpop.f32.mrf.mxu0 }
 0x18e   :  { %v1180_v38 = vpop.f32.mrf.mxu1 }
 0x18f   :  { %v1181_v39 = vadd.f32 %v1180_v38, %v1168_v37 }
 0x191   :  { %v1187_v40 = vsel %vm1186_vm0, %v1181_v39, -1e+30 }
 0x192   :  { %v1189_v41 = vsel %vm1188_vm1, %v1187_v40, -inf }
 0x193   :  { %1190 = vmax.xlane.f32.xlu0 %v1189_v41 }
 0x196   :  { %v1182_v42 = vpop.f32.mrf.mxu1 }
 0x206   :  { %v1191_v43 = vpop.xlane.xlu0 %1190 }
 0x207   :  { %v1192_v44 = vsub.f32 %v1187_v40, %v1191_v43 }
 0x209   :  { %v1193_v45 = vmul.f32 1.442695, %v1192_v44 }
 0x20b   :  { %1940 = vpow2.f32 %v1193_v45 }
 0x211   :  { %v1941_v46 = vpop.eup %1940 }
 0x212   :  { %v1195_v47 = vsel %vm1188_vm1, %v1941_v46, 0.0 }
 0x213   :  { %1196 = vadd.xlane.f32.xlu0 %v1195_v47 }
 0x286   :  { %v1197_v48 = vpop.xlane.xlu0 %1196 }
 0x287   :  { %1942 = vlog2.f32 %v1197_v48 }
 0x28d   :  { %v1943_v49 = vpop.eup %1942 }
 0x28e   :  { %v1199_v50 = vmul.f32 0.6931472, %v1943_v49 }
 0x290   :  { %v1200_v51 = vsub.f32 %v1192_v44, %v1199_v50 }
 0x292   :  { %1201 = vst [vmem:[#allocation2] sm:$0x3] %v1200_v51 }
 0x293   :  { %1212 = dma.vmem_to_hbm [thread:$0]  %s1208_s24, 32, %s1210_s27, [#allocation3]  }
 0x294   :  { %1968 = dma.done.wait [#allocation3], 32  }
 0x295   :  { %1969 = vsyncadd [#allocation3], 4294967264 }
 0x296   :  { %1217 = vsyncpa [#allocation3], 1 }

</bundles_post_ra>
